<compile_context>
chip_gen: v5e
topology: v5e:2x2
jax: 0.10.0
libtpu: 0.0.40
codegen_flags: <defaults>
</compile_context>

<pallas_src>
import functools

import jax
import jax.numpy as jnp
from jax.experimental import pallas as pl
from jax.experimental.pallas import tpu as pltpu


def _pinn_mlp_kernel(
    xT_ref, w1_ref, b1_ref, w2_ref, b2_ref, w3_ref, b3_ref, o_ref, *, dot_precision
):
    # xT : (3, TM)   f32 or bf16        -- batch on the 128-lane axis
    # w1 : (64, 3)   b1 : (64, 1)       -- PyTorch Linear layout (out, in)
    # w2 : (64, 64)  b2 : (64, 1)
    # w3 : (1, 64)   b3 : (1, 1)
    # o  : (1, TM)   f32                -- lane-dense output slab
    cdt = xT_ref.dtype  # compute dtype for tanh / dot inputs (f32 or bf16)

    def dense(w_ref, b_ref, a):
        # y^T = W @ a + b  with f32 accumulation; precision pinned explicitly.
        z = jnp.dot(
            w_ref[...],
            a,
            preferred_element_type=jnp.float32,
            precision=dot_precision,
        )
        return z + b_ref[...]

    # Hidden layers: tanh runs in the compute dtype (bf16 on v6e/v7x fast path
    # relieves the EUP; f32 by default for exact module semantics).
    h1 = jnp.tanh(dense(w1_ref, b1_ref, xT_ref[...]).astype(cdt))
    h2 = jnp.tanh(dense(w2_ref, b2_ref, h1).astype(cdt))
    # Final 64 -> 1 projection: lane-dense f32 store.
    o_ref[...] = dense(w3_ref, b3_ref, h2)


def _choose_tile(n, tm_req):
    """Batch tile: multiple of 128, big enough to amortize per-step overhead,
    small enough that the grid keeps >= 2 blocks (v7x megacore) when possible."""
    n128 = ((n + 127) // 128) * 128
    tm = max(128, min((int(tm_req) // 128) * 128, n128))
    if n128 >= 256:
        tm = min(tm, max(128, (n128 // 256) * 128))  # keep >= 2 grid blocks
    return tm


def pinn_forward(x, params, *, tm=4096, compute_dtype=jnp.float32):
    """x: (N, 3) float32. params in PyTorch layout (W:(out,in), b:(out,1)).

    Returns (N, 1) float32.  compute_dtype=jnp.bfloat16 enables the v6e/v7x
    fast path (bf16 dot inputs + bf16 tanh, f32 accumulation / output).
    """
    w1, b1, w2, b2, w3, b3 = params
    N, fin = x.shape
    assert fin == 3

    tm = _choose_tile(N, tm)
    n_pad = pl.cdiv(N, tm) * tm
    grid = (n_pad // tm,)

    # Feature-major layout (batch -> lane axis).  Transpose/cast/pad fuse into a
    # single XLA copy; the pad is skipped entirely when N is a tile multiple.
    xT = x.T.astype(compute_dtype)  # (3, N)
    if n_pad != N:
        xT = jnp.pad(xT, ((0, 0), (0, n_pad - N)))

    w1c = w1.astype(compute_dtype)
    w2c = w2.astype(compute_dtype)
    w3c = w3.astype(compute_dtype)

    # Pin contract precision: fp32 passes for the f32 path (bit-stable vs the
    # f32 reference); default bf16 passes when operands are already bf16.
    dot_precision = (
        jax.lax.Precision.HIGHEST if compute_dtype == jnp.float32 else None
    )
    kernel = functools.partial(_pinn_mlp_kernel, dot_precision=dot_precision)

    # VMEM budget: double-buffered x/out tiles + a few (64, tm) f32 intermediates
    # + weights, with headroom; capped at 32 MiB (safe on v5e/v6e/v7x).
    in_bytes = jnp.dtype(compute_dtype).itemsize
    est_bytes = tm * (2 * 3 * in_bytes + 2 * 1 * 4 + 8 * 64 * 4) + (2 << 20)
    vmem_limit = int(min(max(est_bytes, 8 << 20), 32 << 20))

    cost = pl.CostEstimate(
        flops=2 * n_pad * (3 * 64 + 64 * 64 + 64 * 1),
        transcendentals=2 * 64 * n_pad,
        bytes_accessed=in_bytes * 3 * n_pad
        + 4 * n_pad
        + in_bytes * (64 * 3 + 64 * 64 + 64)
        + 4 * (64 + 64 + 1),
    )

    full = lambda shape: pl.BlockSpec(shape, lambda i: (0, 0))

    out = pl.pallas_call(
        kernel,
        out_shape=jax.ShapeDtypeStruct((1, n_pad), jnp.float32),
        grid_spec=pltpu.PrefetchScalarGridSpec(
            num_scalar_prefetch=0,
            grid=grid,
            in_specs=[
                pl.BlockSpec((3, tm), lambda i: (0, i)),  # x^T tile (lane-dense)
                full((64, 3)),                             # w1 (resident)
                full((64, 1)),                             # b1
                full((64, 64)),                            # w2
                full((64, 1)),                             # b2
                full((1, 64)),                             # w3
                full((1, 1)),                              # b3
            ],
            out_specs=pl.BlockSpec((1, tm), lambda i: (0, i)),  # lane-dense store
        ),
        compiler_params=pltpu.CompilerParams(
            dimension_semantics=("parallel",),  # shard blocks across v7x cores
            vmem_limit_bytes=vmem_limit,
        ),
        cost_estimate=cost,
    )(xT, w1c, b1, w2c, b2, w3c, b3)

    # (1, n_pad) -> (N, 1)
    return out[:, :N].T


def init_params(key):
    """PyTorch-style init/layout: W (out,in) ~ U(-1/sqrt(fan_in), +), b (out,1)."""
    ks = jax.random.split(key, 6)

    def linear(kw, kb, fan_in, fan_out):
        bound = 1.0 / jnp.sqrt(jnp.float32(fan_in))
        w = jax.random.uniform(kw, (fan_out, fan_in), jnp.float32, -bound, bound)
        b = jax.random.uniform(kb, (fan_out, 1), jnp.float32, -bound, bound)
        return w, b

    w1, b1 = linear(ks[0], ks[1], 3, 64)
    w2, b2 = linear(ks[2], ks[3], 64, 64)
    w3, b3 = linear(ks[4], ks[5], 64, 1)
    return (w1, b1, w2, b2, w3, b3)


def pinn_reference(x, params):
    """Pure-JAX reference, identical math to PyTorch nn.Linear (y = x @ W.T + b),
    with matmul precision pinned to match the kernel's f32 path."""
    w1, b1, w2, b2, w3, b3 = params
    hp = jax.lax.Precision.HIGHEST
    h1 = jnp.tanh(jnp.dot(x, w1.T, precision=hp) + b1.T)
    h2 = jnp.tanh(jnp.dot(h1, w2.T, precision=hp) + b2.T)
    return jnp.dot(h2, w3.T, precision=hp) + b3.T


if __name__ == "__main__":
    key = jax.random.PRNGKey(0)
    k_param, k_x = jax.random.split(key)

    params = init_params(k_param)

    # Batch of (x, y, t) collocation points.  With the >=2-block cap the tile
    # becomes 1024 here (2 grid blocks -> both v7x TensorCores busy).
    N = 2048
    x = jax.random.normal(k_x, (N, 3), dtype=jnp.float32)

    out = jax.block_until_ready(pinn_forward(x, params))
    ref = pinn_reference(x, params)
    assert out.shape == (N, 1)
    assert jnp.allclose(out, ref, atol=2e-5, rtol=2e-5), "f32 path mismatch vs reference"

    # Exercise the padded-tail path (N not a multiple of the tile).
    N2 = 300
    x2 = jax.random.normal(jax.random.PRNGKey(1), (N2, 3), dtype=jnp.float32)
    out2 = jax.block_until_ready(pinn_forward(x2, params))
    assert out2.shape == (N2, 1)
    assert jnp.allclose(out2, pinn_reference(x2, params), atol=2e-5, rtol=2e-5)

    # Optional bf16 fast path (v6e/v7x: bf16 EUP tanh + 1-pass bf16 MXU).
    out_bf16 = jax.block_until_ready(
        pinn_forward(x, params, compute_dtype=jnp.bfloat16)
    )
    assert out_bf16.shape == (N, 1)
    assert jnp.allclose(out_bf16, ref, atol=5e-2, rtol=0.0), "bf16 path drifted too far"

    print("KERNEL_OK")
</pallas_src>

<mosaic_0001>
module attributes {stable_mosaic.version = 11 : i64} {
  func.func @_pinn_mlp_kernel(%arg0: i32, %arg1: memref<3x1024xf32, #tpu.memory_space<vmem>>, %arg2: memref<64x3xf32, #tpu.memory_space<vmem>>, %arg3: memref<64x1xf32, #tpu.memory_space<vmem>>, %arg4: memref<64x64xf32, #tpu.memory_space<vmem>>, %arg5: memref<64x1xf32, #tpu.memory_space<vmem>>, %arg6: memref<1x64xf32, #tpu.memory_space<vmem>>, %arg7: memref<1x1xf32, #tpu.memory_space<vmem>>, %arg8: memref<1x1024xf32, #tpu.memory_space<vmem>>) attributes {dimension_semantics = [#tpu.dimension_semantics<parallel>], iteration_bounds = array<i64: 2>, scalar_prefetch = 0 : i64, scratch_operands = 0 : i64, tpu.core_type = #tpu.core_type<tc>, window_params = [{transform_indices = @transform_0, window_bounds = array<i64: 3, 1024>}, {pipeline_mode = #tpu.pipeline_mode<synchronous>, transform_indices = @transform_1, window_bounds = array<i64: 64, 3>}, {pipeline_mode = #tpu.pipeline_mode<synchronous>, transform_indices = @transform_2, window_bounds = array<i64: 64, 1>}, {pipeline_mode = #tpu.pipeline_mode<synchronous>, transform_indices = @transform_3, window_bounds = array<i64: 64, 64>}, {pipeline_mode = #tpu.pipeline_mode<synchronous>, transform_indices = @transform_4, window_bounds = array<i64: 64, 1>}, {pipeline_mode = #tpu.pipeline_mode<synchronous>, transform_indices = @transform_5, window_bounds = array<i64: 1, 64>}, {pipeline_mode = #tpu.pipeline_mode<synchronous>, transform_indices = @transform_6, window_bounds = array<i64: 1, 1>}, {transform_indices = @transform_7, window_bounds = array<i64: 1, 1024>}]} {
    %c0 = arith.constant 0 : index
    %c0_0 = arith.constant 0 : index
    %0 = vector.load %arg1[%c0, %c0_0] : memref<3x1024xf32, #tpu.memory_space<vmem>>, vector<3x1024xf32>
    %c0_1 = arith.constant 0 : index
    %c0_2 = arith.constant 0 : index
    %1 = vector.load %arg2[%c0_1, %c0_2] : memref<64x3xf32, #tpu.memory_space<vmem>>, vector<64x3xf32>
    %cst = arith.constant dense<0.000000e+00> : vector<64x1024xf32>
    %2 = tpu.matmul %1, %0, %cst {dimension_numbers = #tpu.dot_dimension_numbers<[1], [0], [0], [1], [0, 0, 1, 1], [], []>, precision = #tpu.contract_precision<fp32>} : vector<64x3xf32>, vector<3x1024xf32>, vector<64x1024xf32> -> vector<64x1024xf32>
    %c0_3 = arith.constant 0 : index
    %c0_4 = arith.constant 0 : index
    %3 = vector.load %arg3[%c0_3, %c0_4] : memref<64x1xf32, #tpu.memory_space<vmem>>, vector<64x1xf32>
    %4 = vector.broadcast %3 : vector<64x1xf32> to vector<64x1024xf32>
    %5 = arith.addf %2, %4 : vector<64x1024xf32>
    %6 = math.tanh %5 : vector<64x1024xf32>
    %c0_5 = arith.constant 0 : index
    %c0_6 = arith.constant 0 : index
    %7 = vector.load %arg4[%c0_5, %c0_6] : memref<64x64xf32, #tpu.memory_space<vmem>>, vector<64x64xf32>
    %cst_7 = arith.constant dense<0.000000e+00> : vector<64x1024xf32>
    %8 = tpu.matmul %7, %6, %cst_7 {dimension_numbers = #tpu.dot_dimension_numbers<[1], [0], [0], [1], [0, 0, 1, 1], [], []>, precision = #tpu.contract_precision<fp32>} : vector<64x64xf32>, vector<64x1024xf32>, vector<64x1024xf32> -> vector<64x1024xf32>
    %c0_8 = arith.constant 0 : index
    %c0_9 = arith.constant 0 : index
    %9 = vector.load %arg5[%c0_8, %c0_9] : memref<64x1xf32, #tpu.memory_space<vmem>>, vector<64x1xf32>
    %10 = vector.broadcast %9 : vector<64x1xf32> to vector<64x1024xf32>
    %11 = arith.addf %8, %10 : vector<64x1024xf32>
    %12 = math.tanh %11 : vector<64x1024xf32>
    %c0_10 = arith.constant 0 : index
    %c0_11 = arith.constant 0 : index
    %13 = vector.load %arg6[%c0_10, %c0_11] : memref<1x64xf32, #tpu.memory_space<vmem>>, vector<1x64xf32>
    %cst_12 = arith.constant dense<0.000000e+00> : vector<1x1024xf32>
    %14 = tpu.matmul %13, %12, %cst_12 {dimension_numbers = #tpu.dot_dimension_numbers<[1], [0], [0], [1], [0, 0, 1, 1], [], []>, precision = #tpu.contract_precision<fp32>} : vector<1x64xf32>, vector<64x1024xf32>, vector<1x1024xf32> -> vector<1x1024xf32>
    %c0_13 = arith.constant 0 : index
    %c0_14 = arith.constant 0 : index
    %15 = vector.load %arg7[%c0_13, %c0_14] : memref<1x1xf32, #tpu.memory_space<vmem>>, vector<1x1xf32>
    %16 = vector.broadcast %15 : vector<1x1xf32> to vector<1x1024xf32>
    %17 = arith.addf %14, %16 : vector<1x1024xf32>
    %c0_15 = arith.constant 0 : index
    %c0_16 = arith.constant 0 : index
    %18 = vector.load %arg8[%c0_15, %c0_16] : memref<1x1024xf32, #tpu.memory_space<vmem>>, vector<1x1024xf32>
    tpu.vector_store %arg8[%c0_15, %c0_16], %17 {strides = array<i32>} : memref<1x1024xf32, #tpu.memory_space<vmem>>, vector<1x1024xf32>,
    return
  }
  func.func @transform_0(%arg0: i32) -> (i32, i32) {
    %c0_i32 = arith.constant 0 : i32
    %c0_i32_0 = arith.constant 0 : i32
    return %c0_i32, %arg0 : i32, i32
  }
  func.func @transform_1(%arg0: i32) -> (i32, i32) {
    %c0_i32 = arith.constant 0 : i32
    %c0_i32_0 = arith.constant 0 : i32
    %c0_i32_1 = arith.constant 0 : i32
    return %c0_i32, %c0_i32_0 : i32, i32
  }
  func.func @transform_2(%arg0: i32) -> (i32, i32) {
    %c0_i32 = arith.constant 0 : i32
    %c0_i32_0 = arith.constant 0 : i32
    %c0_i32_1 = arith.constant 0 : i32
    return %c0_i32, %c0_i32_0 : i32, i32
  }
  func.func @transform_3(%arg0: i32) -> (i32, i32) {
    %c0_i32 = arith.constant 0 : i32
    %c0_i32_0 = arith.constant 0 : i32
    %c0_i32_1 = arith.constant 0 : i32
    return %c0_i32, %c0_i32_0 : i32, i32
  }
  func.func @transform_4(%arg0: i32) -> (i32, i32) {
    %c0_i32 = arith.constant 0 : i32
    %c0_i32_0 = arith.constant 0 : i32
    %c0_i32_1 = arith.constant 0 : i32
    return %c0_i32, %c0_i32_0 : i32, i32
  }
  func.func @transform_5(%arg0: i32) -> (i32, i32) {
    %c0_i32 = arith.constant 0 : i32
    %c0_i32_0 = arith.constant 0 : i32
    %c0_i32_1 = arith.constant 0 : i32
    return %c0_i32, %c0_i32_0 : i32, i32
  }
  func.func @transform_6(%arg0: i32) -> (i32, i32) {
    %c0_i32 = arith.constant 0 : i32
    %c0_i32_0 = arith.constant 0 : i32
    %c0_i32_1 = arith.constant 0 : i32
    return %c0_i32, %c0_i32_0 : i32, i32
  }
  func.func @transform_7(%arg0: i32) -> (i32, i32) {
    %c0_i32 = arith.constant 0 : i32
    %c0_i32_0 = arith.constant 0 : i32
    return %c0_i32, %arg0 : i32, i32
  }
}

</mosaic_0001>

<bundles_post_ra>
// kernel: tpu_custom_call.1
= control target key start
LH: loop header
LB: loop body
LE: loop exit
PB: predicated region body
PF: predicated region fallthrough
CT: control target
= control target key end

     0   :  { %s14663_s0 = inlined_call_operand.vmem [shape: f32[3,2048], index: 0, kind: input, shape index: {}]   ;;  %s14664_s1 = inlined_call_operand.vmem [shape: f32[64,3], index: 1, kind: input, shape index: {}]   ;;  %s14665_s2 = inlined_call_operand.vmem [shape: f32[64,1], index: 2, kind: input, shape index: {}]   ;;  %s14666_s3 = inlined_call_operand.vmem [shape: f32[64,64], index: 3, kind: input, shape index: {}]   ;;  %s14667_s4 = inlined_call_operand.vmem [shape: f32[64,1], index: 4, kind: input, shape index: {}]   ;;  %s14668_s5 = inlined_call_operand.vmem [shape: f32[1,64], index: 5, kind: input, shape index: {}]   ;;  %s14669_s6 = inlined_call_operand.<no memory space> [shape: f32[1,1], index: 6, kind: input, shape index: {}]   ;;  %s14670_s7 = inlined_call_operand.hbm [shape: f32[1,2048], index: 7, kind: output, shape index: {}]  }
   0x1   :  { %v12_v0 = vstv %s14669_s6 }
   0x2   :  { %13 = vst [vmem:[#allocation2] sm:$0x1] %v12_v0 }
   0x3   :  { %14 = vsyncpa [#allocation4], 0 }
   0x4   :  { %16 = vsyncpa [#allocation4 + $0x1], 0  ;;  %s9579_s26 = smov 0   ;;  %s9581_s27 = smov 0  }
   0x5   :  { %s9583_s28 = smov 0   ;;  %s9585_s29 = smov 0  }
   0x6 LB: > { %s9160_s6 = sadd.s32 4294967295, %s9533_s29   ;;  %s9161_s30 = sadd.s32 4294967294, %s9533_s29   ;;  %s9533_s29 = sphi %s9585_s29, %s16173_s29   ;;  %s9529_s28 = sphi %s9583_s28, %s16172_s28   ;;  %s9525_s27 = sphi %s9581_s27, %s16171_s27   ;;  %s9521_s26 = sphi %s9579_s26, %s16170_s26  }
   0x7   : > { %s9602_s8 = sadd.s32 1, %s9533_s29   ;;  %s181_s9 = sadd.s32 1, %s9529_s28 }
   0x8   : > { %s178_s10 = ssub.s32 %s9533_s29, %s9602_s8  ;;  %p191_p0 = scmp.ne.s32.totalorder %s9529_s28, %s9525_s27 }
   0x9   : > { %p179_p1 = scmp.eq.s32.totalorder %s178_s10, 0  ;;  %p192_p2 = scmp.eq.s32.totalorder %s9160_s6, 1 }
   0xa   : > { %p197_p3 = scmp.ne.s32.totalorder %s9525_s27, %s9521_s26  ;;  %p198_p4 = scmp.eq.s32.totalorder %s9161_s30, 1 }
   0xb   : > { %s9612_s11 = scalar_select %p179_p1, %s9529_s28, %s181_s9  }
   0xc   : > { %p9614_p5 = por %p192_p2, %p191_p0  ;;  %p9618_p6 = por %p198_p4, %p197_p3 }
   0xd   : > { %p9164_p7 = scmp.ge.s32.totalorder %s9533_s29, 1  ;;  %p243_p8 = scmp.lt.s32.totalorder %s9533_s29, 3 }
   0xf   : > { %p244_p9 = pnand %p9164_p7, %p243_p8 }
  0x11   : > { %247 = sbr.rel (%p244_p9) target bundleno = 1956 (0x7a4), region = 48 }
  0x16   : > { %s9624_s14 = sshll.u32 %s9160_s6, 3  ;;  %v286_v1 = vld [vmem:[%s14664_s1] sm:$0xff]  ;;  %vm361_vm0 = vcmask 23552   ;;  %v299_v2 = vld [vmem:[%s14665_s2 + $0x28] sm:$0xff]  ;;  %v9535_v3 = vmov 0   ;;  %v301_v5 = vld [vmem:[%s14665_s2 + $0x38] sm:$0xff] }
  0x17   : > { %p276_p10 = scmp.lt.s32.totalorder %s9624_s14, 15  ;;  %9213 = vset.pattern.permute.xlu1 %v9535_v3  ;;  %v363_v4 = vsel %vm361_vm0, %v286_v1, 0  ;;  %9212 = vset.pattern.permute.xlu0 %v9535_v3  ;;  %v287_v7 = vld [vmem:[%s14664_s1 + $0x8] sm:$0xff]  ;;  %v298_v11 = vld [vmem:[%s14665_s2 + $0x20] sm:$0xff]  ;;  %v300_v12 = vld [vmem:[%s14665_s2 + $0x30] sm:$0xff]  ;;  %vm386_vm1 = vcmask 1042432   ;;  %s9097_s16 = scalar_lea.hbm %s14670_s7, %s9624_s14 }
  0x18   : > { %v9637_v6 = vand.u32 4294901760, %v363_v4  ;;  %329 = vperm.xlu1 %9213, %v299_v2   ;;  %339 = vperm.xlu0 %9212, %v301_v5   ;;  %v366_v9 = vsel %vm361_vm0, %v287_v7, 0  ;;  %v288_v15 = vld [vmem:[%s14664_s1 + $0x10] sm:$0xff]  ;;  %v294_v20 = vld [vmem:[%s14665_s2] sm:$0xff]  ;;  %v295_v21 = vld [vmem:[%s14665_s2 + $0x8] sm:$0xff]  ;;  %vm3427_vm2 = vcmask 523264  }
  0x19   : > { %s277_s23 = scalar_select %p276_p10, %s9624_s14, 15  ;;  %9214 = vset.pattern.permute.xlu2 %v9535_v3  ;;  %v9662_v14 = vand.u32 4294901760, %v366_v9  ;;  %v369_v16 = vsel %vm361_vm0, %v288_v15, 0  ;;  %v289_v30 = vld [vmem:[%s14664_s1 + $0x18] sm:$0xff]  ;;  %v290_v45 = vld [vmem:[%s14664_s1 + $0x20] sm:$0xff]  ;;  %v291_v52 = vld [vmem:[%s14664_s1 + $0x28] sm:$0xff] }
  0x1a   : > { %v9644_v8 = vsub.f32 %v363_v4, %v9637_v6  ;;  %v9673_v19 = vand.u32 4294901760, %v369_v16  ;;  %v372_v37 = vsel %vm361_vm0, %v289_v30, 0  ;;  %v375_v48 = vsel %vm361_vm0, %v290_v45, 0  ;;  %v297_v56 = vld [vmem:[%s14665_s2 + $0x18] sm:$0xff]  ;;  %v292_v60 = vld [vmem:[%s14664_s1 + $0x30] sm:$0xff]  ;;  %s272_s6 = sand.u32 1, %s9525_s27  }
  0x1b   : > { %s9167_s24 = sshll.u32 %s277_s23, 2  ;;  %v9671_v18 = vsub.f32 %v366_v9, %v9662_v14  ;;  %v9705_v42 = vand.u32 4294901760, %v372_v37  ;;  %v9725_v51 = vand.u32 4294901760, %v375_v48  ;;  %v378_v55 = vsel %vm361_vm0, %v291_v52, 0  ;;  %319 = vperm.xlu2 %9214, %v297_v56   ;;  %v296_v0 = vld [vmem:[%s14665_s2 + $0x10] sm:$0xff]  ;;  %v293_v4 = vld [vmem:[%s14664_s1 + $0x38] sm:$0xff] }
  0x1c   : > { %s9650_s30 = scalar_lea.vmem %s14663_s0, %s9167_s24  ;;  %v9660_v13 = vand.u32 4294901760, %v9644_v8  ;;  %v9696_v34 = vsub.f32 %v369_v16, %v9673_v19  ;;  %v9748_v59 = vand.u32 4294901760, %v378_v55  ;;  %v381_v63 = vsel %vm361_vm0, %v292_v60, 0  ;;  %s14626_s9 = sshll.u32 %s272_s6, 3 }
  0x1d   : > { %v282_v10 = vld [vmem:[%s9650_s30] sm:$0x77]  ;;  %v9685_v26 = vand.u32 4294901760, %v9671_v18  ;;  %v9715_v47 = vsub.f32 %v372_v37, %v9705_v42  ;;  %v9735_v54 = vsub.f32 %v375_v48, %v9725_v51  ;;  %v9771_v3 = vand.u32 4294901760, %v381_v63  ;;  %s274_s17 = scalar_lea.vmem [#allocation3], %s14626_s9  ;;  %s9101_s19 = sshll.u32 %s9097_s16, 4  ;;  %s9102_s19 = int_to_ptr.hbm [resolvable:$true] %s9101_s19 }
  0x1e   : > { %346 = vst [vmem:[#allocation1] ss:$2 sm:$0xff] %v282_v10  ;;  %v423_v17 = vsub.f32 %v9644_v8, %v9660_v13  ;;  %v9703_v41 = vand.u32 4294901760, %v9696_v34  ;;  %v9758_v62 = vsub.f32 %v378_v55, %v9748_v59  ;;  %v384_v9 = vsel %vm361_vm0, %v293_v4, 0  ;;  %s9099_s18 = sshll.u32 %s274_s17, 4  ;;  %s9087_s14 = scalar_lea.sflag [#allocation4], %s272_s6  ;;  %s9100_s18 = int_to_ptr.vmem [resolvable:$true] %s9099_s18 }
  0x1f   : > { %v431_v33 = vsub.f32 %v9671_v18, %v9685_v26  ;;  %v9723_v50 = vand.u32 4294901760, %v9715_v47  ;;  %v9746_v58 = vand.u32 4294901760, %v9735_v54  ;;  %14854 = vst [vmem:[#allocation7_spill] sm:$0xff] %v9771_v3  ;;  %v9781_v7 = vsub.f32 %v381_v63, %v9771_v3  ;;  %s9485_s20 = sshra.s32 %s9102_s19, 4  ;;  %s9491_s23 = scalar_lea.hbm %s14670_s7, 16  ;;  %s9486_s20 = int_to_ptr.hbm [resolvable:$true] %s9485_s20 }
  0x20   : > { %324 = vperm.xlu1 %9213, %v298_v11   ;;  %334 = vperm.xlu0 %9212, %v300_v12   ;;  %v9682_v25 = vand.u32 4294901760, %v423_v17  ;;  %v439_v46 = vsub.f32 %v9696_v34, %v9703_v41  ;;  %v9769_v2 = vand.u32 4294901760, %v9758_v62  ;;  %v9791_v12 = vand.u32 4294901760, %v384_v9  ;;  %s9487_s21 = scalar_lea.hbm %s9486_s20, 8  ;;  %p9492_p0 = scmp.lt.s32.totalorder %s9486_s20, %s14670_s7 }
  0x21   : > { %v9700_v40 = vand.u32 4294901760, %v431_v33  ;;  %v447_v53 = vsub.f32 %v9715_v47, %v9723_v50  ;;  %v455_v61 = vsub.f32 %v9735_v54, %v9746_v58  ;;  %v9789_v11 = vand.u32 4294901760, %v9781_v7  ;;  %p9488_p11 = scmp.ne.s32.totalorder %s9486_s20, %s9487_s21  ;;  %p9493_p1 = scmp.lt.s32.totalorder %s9491_s23, %s9487_s21 }
  0x22   : > { %v9720_v49 = vand.u32 4294901760, %v439_v46  ;;  %14853 = vst [vmem:[#allocation6_spill] sm:$0xff] %v9769_v2  ;;  %v463_v5 = vsub.f32 %v9758_v62, %v9769_v2  ;;  %v9798_v16 = vsub.f32 %v384_v9, %v9791_v12  ;;  %vm9070_vm3 = vcmask 1040384  }
  0x23   : > { %v9743_v57 = vand.u32 4294901760, %v447_v53  ;;  %314 = vperm.xlu2 %9214, %v296_v0   ;;  %v9766_v1 = vand.u32 4294901760, %v455_v61  ;;  %14855 = vst [vmem:[#allocation8_spill] sm:$0xff] %v9789_v11  ;;  %v471_v15 = vsub.f32 %v9781_v7, %v9789_v11  ;;  %vm9072_vm4 = vcmask 1042434   ;;  %p9489_p12 = pnand %p9488_p11, %p9614_p5  ;;  %p9494_p2 = por %p9493_p1, %p9492_p0 }
  0x24   : > { %v9786_v10 = vand.u32 4294901760, %v463_v5  ;;  %14856 = vst [vmem:[#allocation9_spill] sm:$0xff] %v9798_v16  ;;  %vm9076_vm5 = vcmask 1044484   ;;  %vm9078_vm6 = vcmask 1046534   ;;  %vm9074_vm7 = vcmask 1041408  }
  0x25   : > { %v353_v22 = vld.sshfl [vmem:[#allocation1] sm:$0xff pattern:$0x75316420]  ;;  %v354_v23 = vld.sshfl [vmem:[#allocation1 + $0x8] sm:$0xff pattern:$0x75316420]  ;;  %p9490_p13 = pneg %p9489_p12 }
  0x26   : > { %v387_v24 = vsel %vm386_vm1, %v353_v22, 0  ;;  %v389_v27 = vsel %vm386_vm1, %v354_v23, 0  ;;  %v9802_v17 = vand.u32 4294901760, %v471_v15  ;;  %v283_v23 = vld [vmem:[%s9650_s30 + $0x8] sm:$0x77]  ;;  %vm9080_vm8 = vcmask 1045508  }
  0x27   : > { %v418_v28 = vand.u32 4294901760, %v387_v24  ;;  %v781_v29 = vand.u32 4294901760, %v389_v27  ;;  %348 = vst [vmem:[#allocation1 + $0x10] ss:$2 sm:$0xff] %v283_v23  ;;  %vm9082_vm9 = vcmask 1043456   ;;  %p9495_p3 = pnand %p9494_p2, %p9490_p13 }
  0x28   : > { %304 = vperm.xlu1 %9213, %v294_v20   ;;  %309 = vperm.xlu0 %9212, %v295_v21   ;;  %v9805_v20 = vand.u32 4294901760, %v9798_v16 }
  0x29   : > { %419 = vmatpush.msra.mxu0 %v418_v28  ;;  %614 = vmatpush.msra.mxu3 %v418_v28  ;;  %v501_v31 = vsub.f32 %v387_v24, %v418_v28  ;;  %v864_v32 = vsub.f32 %v389_v27, %v781_v29 }
  0x2a   : > { %425 = vmatmul.f32.vlgmr.msra.gmra.mxu0 %v9682_v25  ;;  %618 = vmatmul.f32.vlgmr.msra.gmra.mxu3 %v9660_v13  ;;  %14857 = vst [vmem:[#allocation10_spill] sm:$0xff] %v9805_v20  ;;  %v479_v21 = vsub.f32 %v9798_v16, %v9805_v20 }
  0x2b   : > { %556 = vmatpush.msra.mxu2 %v501_v31  ;;  %v502_v35 = vand.u32 4294901760, %v501_v31  ;;  %v865_v36 = vand.u32 4294901760, %v864_v32 }
  0x2c   : > { %559 = vmatmul.f32.vlgmr.msra.gmra.mxu2 %v9644_v8  ;;  %v9813_v22 = vand.u32 4294901760, %v479_v21 }
  0x2d   : > { %v503_v38 = vsub.f32 %v501_v31, %v502_v35  ;;  %782 = vmatpush.msrb.mxu2 %v781_v29  ;;  %682 = vmatpush.msrb.mxu0 %v502_v35  ;;  %v866_v39 = vsub.f32 %v864_v32, %v865_v36 }
  0x2e   : > { %v355_v27 = vld.sshfl [vmem:[#allocation1 + $0x10] sm:$0xff pattern:$0x75316420] }
  0x2f   : > { %1045 = vmatpush.msra.mxu2 %v865_v36  ;;  %919 = vmatpush.msra.mxu0 %v864_v32  ;;  %v504_v43 = vand.u32 4294901760, %v503_v38  ;;  %v867_v44 = vand.u32 4294901760, %v866_v39 }
  0x31   : > { %505 = vmatpush.msra.mxu1 %v504_v43  ;;  %868 = vmatpush.msrb.mxu3 %v867_v44 }
  0x32   : > { %433 = vmatmul.f32.gmra.mxu0 %v9700_v40  ;;  %507 = vmatmul.f32.vlgmr.msra.gmra.mxu1 %v9637_v6 }
  0x33   : > { %624 = vmatmul.f32.gmra.mxu3 %v9685_v26  ;;  %732 = vmatpush.msrb.mxu1 %v418_v28 }
  0x34   : > { %564 = vmatmul.f32.gmra.mxu2 %v9671_v18  ;;  %1095 = vmatpush.msra.mxu3 %v781_v29 }
  0x35   : > { %977 = vmatpush.msra.mxu1 %v781_v29  ;;  %v391_v29 = vsel %vm386_vm1, %v355_v27, 0 }
  0x36   : > { %v1144_v30 = vand.u32 4294901760, %v391_v29 }
  0x38   : > { %v1227_v32 = vsub.f32 %v391_v29, %v1144_v30 }
  0x3a   : > { %441 = vmatmul.f32.gmra.mxu0 %v9720_v49  ;;  %511 = vmatmul.f32.gmra.mxu1 %v9662_v14  ;;  %v1228_v33 = vand.u32 4294901760, %v1227_v32 }
  0x3b   : > { %630 = vmatmul.f32.gmra.mxu3 %v9703_v41 }
  0x3c   : > { %569 = vmatmul.f32.gmra.mxu2 %v9696_v34  ;;  %v1229_v35 = vsub.f32 %v1227_v32, %v1228_v33 }
  0x3e   : > { %v1230_v36 = vand.u32 4294901760, %v1229_v35 }
  0x42   : > { %449 = vmatmul.f32.gmra.mxu0 %v9743_v57  ;;  %515 = vmatmul.f32.gmra.mxu1 %v9673_v19 }
  0x43   : > { %636 = vmatmul.f32.gmra.mxu3 %v9723_v50 }
  0x44   : > { %574 = vmatmul.f32.gmra.mxu2 %v9715_v47 }
  0x4a   : > { %457 = vmatmul.f32.gmra.mxu0 %v9766_v1  ;;  %519 = vmatmul.f32.gmra.mxu1 %v9705_v42 }
  0x4b   : > { %642 = vmatmul.f32.gmra.mxu3 %v9746_v58 }
  0x4c   : > { %579 = vmatmul.f32.gmra.mxu2 %v9735_v54 }
  0x52   : > { %465 = vmatmul.f32.gmra.mxu0 %v9786_v10  ;;  %523 = vmatmul.f32.gmra.mxu1 %v9725_v51 }
  0x53   : > { %648 = vmatmul.f32.gmra.mxu3 %v9769_v2 }
  0x54   : > { %584 = vmatmul.f32.gmra.mxu2 %v9758_v62 }
  0x5a   : > { %473 = vmatmul.f32.gmra.mxu0 %v9802_v17  ;;  %527 = vmatmul.f32.gmra.mxu1 %v9748_v59 }
  0x5b   : > { %654 = vmatmul.f32.gmra.mxu3 %v9789_v11 }
  0x5c   : > { %589 = vmatmul.f32.gmra.mxu2 %v9781_v7 }
  0x62   : > { %481 = vmatmul.f32.gmra.mxu0 %v9813_v22  ;;  %531 = vmatmul.f32.gmra.mxu1 %v9771_v3 }
  0x63   : > { %660 = vmatmul.f32.gmra.mxu3 %v9805_v20 }
  0x64   : > { %594 = vmatmul.f32.gmra.mxu2 %v9798_v16 }
  0x6a   : > { %535 = vmatmul.f32.gmra.mxu1 %v9791_v12  ;;  %684 = vmatmul.f32.vlgmr.msrb.gmra.mxu0 %v9637_v6 }
  0x6b   : > { %870 = vmatmul.f32.vlgmr.msrb.gmra.mxu3 %v9637_v6  ;;  %1145 = vmatpush.msrb.mxu0 %v1144_v30 }
  0x6c   : > { %788 = vmatmul.f32.vlgmr.msrb.gmra.mxu2 %v9682_v25  ;;  %1340 = vmatpush.msrb.mxu3 %v1144_v30 }
  0x6d   : > { %1282 = vmatpush.msrb.mxu2 %v1227_v32 }
  0x72   : > { %688 = vmatmul.f32.gmra.mxu0 %v9662_v14  ;;  %734 = vmatmul.f32.vlgmr.msrb.gmra.mxu1 %v9637_v6 }
  0x73   : > { %874 = vmatmul.f32.gmra.mxu3 %v9662_v14  ;;  %1231 = vmatpush.msrb.mxu1 %v1230_v36 }
  0x74   : > { %796 = vmatmul.f32.gmra.mxu2 %v9700_v40 }
  0x75   : > { %v9868_v45 = vpop.permute.xlu2 %319 }
  0x76   : > { %14862 = vst [vmem:[#allocation15_spill] sm:$0xff] %v9868_v45 }
  0x7a   : > { %692 = vmatmul.f32.gmra.mxu0 %v9673_v19  ;;  %738 = vmatmul.f32.gmra.mxu1 %v9662_v14 }
  0x7b   : > { %878 = vmatmul.f32.gmra.mxu3 %v9673_v19 }
  0x7c   : > { %804 = vmatmul.f32.gmra.mxu2 %v9720_v49 }
  0x7d   : > { %v9879_v15 = vpop.permute.xlu2 %314 }
  0x7e   : > { %14865 = vst [vmem:[#allocation18_spill] sm:$0xff] %v9879_v15 }
  0x82   : > { %696 = vmatmul.f32.gmra.mxu0 %v9705_v42  ;;  %742 = vmatmul.f32.gmra.mxu1 %v9673_v19 }
  0x83   : > { %882 = vmatmul.f32.gmra.mxu3 %v9705_v42 }
  0x84   : > { %812 = vmatmul.f32.gmra.mxu2 %v9743_v57 }
  0x8a   : > { %700 = vmatmul.f32.gmra.mxu0 %v9725_v51  ;;  %746 = vmatmul.f32.gmra.mxu1 %v9705_v42  ;;  %v9844_v24 = vpop.permute.xlu1 %329  ;;  %v9850_v28 = vpop.permute.xlu0 %339 }
  0x8b   : > { %886 = vmatmul.f32.gmra.mxu3 %v9725_v51  ;;  %14858 = vst [vmem:[#allocation11_spill] sm:$0xff] %v9844_v24 }
  0x8c   : > { %820 = vmatmul.f32.gmra.mxu2 %v9766_v1  ;;  %14859 = vst [vmem:[#allocation12_spill] sm:$0xff] %v9850_v28 }
  0x92   : > { %704 = vmatmul.f32.gmra.mxu0 %v9748_v59  ;;  %750 = vmatmul.f32.gmra.mxu1 %v9725_v51  ;;  %v9853_v31 = vpop.permute.xlu1 %324  ;;  %v9859_v38 = vpop.permute.xlu0 %334 }
  0x93   : > { %890 = vmatmul.f32.gmra.mxu3 %v9748_v59  ;;  %14860 = vst [vmem:[#allocation13_spill] sm:$0xff] %v9853_v31 }
  0x94   : > { %828 = vmatmul.f32.gmra.mxu2 %v9786_v10  ;;  %14861 = vst [vmem:[#allocation14_spill] sm:$0xff] %v9859_v38 }
  0x9a   : > { %708 = vmatmul.f32.gmra.mxu0 %v9771_v3  ;;  %754 = vmatmul.f32.gmra.mxu1 %v9748_v59  ;;  %v9861_v39 = vpop.permute.xlu1 %304  ;;  %v9870_v55 = vpop.permute.xlu0 %309 }
  0x9b   : > { %894 = vmatmul.f32.gmra.mxu3 %v9771_v3  ;;  %14863 = vst [vmem:[#allocation16_spill] sm:$0xff] %v9870_v55 }
  0x9c   : > { %836 = vmatmul.f32.gmra.mxu2 %v9802_v17 }
  0xa2   : > { %712 = vmatmul.f32.gmra.mxu0 %v9791_v12  ;;  %758 = vmatmul.f32.gmra.mxu1 %v9771_v3 }
  0xa3   : > { %898 = vmatmul.f32.gmra.mxu3 %v9791_v12 }
  0xa4   : > { %844 = vmatmul.f32.gmra.mxu2 %v9813_v22 }
  0xa7   : > { %v426_v37 = vpop.f32.mrf.mxu0 }
  0xa8   : > { %v427_v43 = vadd.f32 %v426_v37, %v9861_v39 }
  0xaa   : > { %762 = vmatmul.f32.gmra.mxu1 %v9791_v12  ;;  %922 = vmatmul.f32.vlgmr.msra.gmra.mxu0 %v9644_v8 }
  0xab   : > { %1097 = vmatmul.f32.vlgmr.msra.gmra.mxu3 %v9637_v6  ;;  %1408 = vmatpush.msra.mxu0 %v1228_v33 }
  0xac   : > { %1047 = vmatmul.f32.vlgmr.msra.gmra.mxu2 %v9637_v6 }
  0xad   : > { %v619_v44 = vpop.f32.mrf.mxu3 }
  0xaf   : > { %v434_v46 = vpop.f32.mrf.mxu0  ;;  %v508_v48 = vpop.f32.mrf.mxu1 }
  0xb0   : > { %v509_v52 = vadd.f32 %v508_v48, %v427_v43  ;;  %v560_v53 = vpop.f32.mrf.mxu2  ;;  %v435_v61 = vadd.f32 %v434_v46, %v9870_v55 }
  0xb2   : > { %v561_v56 = vadd.f32 %v560_v53, %v509_v52  ;;  %927 = vmatmul.f32.gmra.mxu0 %v9671_v18  ;;  %981 = vmatmul.f32.vlgmr.msra.gmra.mxu1 %v9660_v13 }
  0xb3   : > { %1101 = vmatmul.f32.gmra.mxu3 %v9662_v14  ;;  %1458 = vmatpush.msra.mxu1 %v1144_v30 }
  0xb4   : > { %v9875_v60 = vadd.f32 %v619_v44, %v561_v56  ;;  %1051 = vmatmul.f32.gmra.mxu2 %v9662_v14 }
  0xb6   : > { %14864 = vst [vmem:[#allocation17_spill] sm:$0xff] %v9875_v60  ;;  %v625_v63 = vpop.f32.mrf.mxu3 }
  0xb7   : > { %v442_v0 = vpop.f32.mrf.mxu0  ;;  %v512_v4 = vpop.f32.mrf.mxu1 }
  0xb8   : > { %v513_v5 = vadd.f32 %v512_v4, %v435_v61  ;;  %v565_v9 = vpop.f32.mrf.mxu2  ;;  %v443_v27 = vadd.f32 %v442_v0, %v9879_v15 }
  0xba   : > { %v566_v21 = vadd.f32 %v565_v9, %v513_v5  ;;  %932 = vmatmul.f32.gmra.mxu0 %v9696_v34  ;;  %987 = vmatmul.f32.gmra.mxu1 %v9685_v26 }
  0xbb   : > { %1105 = vmatmul.f32.gmra.mxu3 %v9673_v19 }
  0xbc   : > { %v9884_v23 = vadd.f32 %v625_v63, %v566_v21  ;;  %1055 = vmatmul.f32.gmra.mxu2 %v9673_v19 }
  0xbe   : > { %14866 = vst [vmem:[#allocation19_spill] sm:$0xff] %v9884_v23  ;;  %v631_v29 = vpop.f32.mrf.mxu3 }
  0xbf   : > { %v450_v30 = vpop.f32.mrf.mxu0  ;;  %v516_v32 = vpop.f32.mrf.mxu1 }
  0xc0   : > { %v517_v33 = vadd.f32 %v516_v32, %v443_v27  ;;  %v570_v35 = vpop.f32.mrf.mxu2  ;;  %v451_v37 = vadd.f32 %v450_v30, %v9868_v45  ;;  %v356_v32 = vld.sshfl [vmem:[#allocation1 + $0x18] sm:$0xff pattern:$0x75316420] }
  0xc2   : > { %v571_v36 = vadd.f32 %v570_v35, %v517_v33  ;;  %937 = vmatmul.f32.gmra.mxu0 %v9715_v47  ;;  %993 = vmatmul.f32.gmra.mxu1 %v9703_v41  ;;  %v393_v33 = vsel %vm386_vm1, %v356_v32, 0 }
  0xc3   : > { %1109 = vmatmul.f32.gmra.mxu3 %v9705_v42 }
  0xc4   : > { %v9892_v43 = vadd.f32 %v631_v29, %v571_v36  ;;  %1059 = vmatmul.f32.gmra.mxu2 %v9705_v42  ;;  %v1507_v36 = vand.u32 4294901760, %v393_v33 }
  0xc6   : > { %14867 = vst [vmem:[#allocation20_spill] sm:$0xff] %v9892_v43  ;;  %v637_v44 = vpop.f32.mrf.mxu3  ;;  %1508 = vmatpush.msra.mxu2 %v1507_v36 }
  0xc7   : > { %v458_v46 = vpop.f32.mrf.mxu0  ;;  %v520_v48 = vpop.f32.mrf.mxu1 }
  0xc8   : > { %v521_v52 = vadd.f32 %v520_v48, %v451_v37  ;;  %v575_v53 = vpop.f32.mrf.mxu2  ;;  %v459_v61 = vadd.f32 %v458_v46, %v9853_v31 }
  0xca   : > { %v576_v56 = vadd.f32 %v575_v53, %v521_v52  ;;  %942 = vmatmul.f32.gmra.mxu0 %v9735_v54  ;;  %999 = vmatmul.f32.gmra.mxu1 %v9723_v50  ;;  %v1590_v52 = vsub.f32 %v393_v33, %v1507_v36 }
  0xcb   : > { %1113 = vmatmul.f32.gmra.mxu3 %v9725_v51 }
  0xcc   : > { %v9899_v63 = vadd.f32 %v637_v44, %v576_v56  ;;  %1063 = vmatmul.f32.gmra.mxu2 %v9725_v51  ;;  %v1591_v56 = vand.u32 4294901760, %v1590_v52 }
  0xce   : > { %14868 = vst [vmem:[#allocation21_spill] sm:$0xff] %v9899_v63  ;;  %v643_v0 = vpop.f32.mrf.mxu3 }
  0xcf   : > { %v466_v4 = vpop.f32.mrf.mxu0  ;;  %v524_v5 = vpop.f32.mrf.mxu1 }
  0xd0   : > { %v525_v9 = vadd.f32 %v524_v5, %v459_v61  ;;  %v580_v21 = vpop.f32.mrf.mxu2  ;;  %v467_v29 = vadd.f32 %v466_v4, %v9844_v24  ;;  %v1592_v4 = vsub.f32 %v1590_v52, %v1591_v56 }
  0xd2   : > { %v581_v27 = vadd.f32 %v580_v21, %v525_v9  ;;  %947 = vmatmul.f32.gmra.mxu0 %v9758_v62  ;;  %1005 = vmatmul.f32.gmra.mxu1 %v9746_v58  ;;  %v1593_v9 = vand.u32 4294901760, %v1592_v4 }
  0xd3   : > { %1117 = vmatmul.f32.gmra.mxu3 %v9748_v59 }
  0xd4   : > { %v9906_v30 = vadd.f32 %v643_v0, %v581_v27  ;;  %1067 = vmatmul.f32.gmra.mxu2 %v9748_v59  ;;  %1594 = vmatpush.msra.mxu3 %v1593_v9 }
  0xd6   : > { %14869 = vst [vmem:[#allocation22_spill] sm:$0xff] %v9906_v30  ;;  %v649_v35 = vpop.f32.mrf.mxu3 }
  0xd7   : > { %v474_v37 = vpop.f32.mrf.mxu0  ;;  %v528_v44 = vpop.f32.mrf.mxu1 }
  0xd8   : > { %v529_v46 = vadd.f32 %v528_v44, %v467_v29  ;;  %v585_v48 = vpop.f32.mrf.mxu2  ;;  %v475_v61 = vadd.f32 %v474_v37, %v9859_v38 }
  0xda   : > { %v586_v53 = vadd.f32 %v585_v48, %v529_v46  ;;  %952 = vmatmul.f32.gmra.mxu0 %v9781_v7  ;;  %1011 = vmatmul.f32.gmra.mxu1 %v9769_v2 }
  0xdb   : > { %1121 = vmatmul.f32.gmra.mxu3 %v9771_v3 }
  0xdc   : > { %v9914_v0 = vadd.f32 %v649_v35, %v586_v53  ;;  %1071 = vmatmul.f32.gmra.mxu2 %v9771_v3 }
  0xde   : > { %14870 = vst [vmem:[#allocation23_spill] sm:$0xff] %v9914_v0  ;;  %v655_v5 = vpop.f32.mrf.mxu3 }
  0xdf   : > { %v482_v21 = vpop.f32.mrf.mxu0  ;;  %v532_v27 = vpop.f32.mrf.mxu1 }
  0xe0   : > { %v533_v29 = vadd.f32 %v532_v27, %v475_v61  ;;  %v590_v32 = vpop.f32.mrf.mxu2  ;;  %v483_v35 = vadd.f32 %v482_v21, %v9850_v28 }
  0xe2   : > { %v591_v33 = vadd.f32 %v590_v32, %v533_v29  ;;  %957 = vmatmul.f32.gmra.mxu0 %v9798_v16  ;;  %1017 = vmatmul.f32.gmra.mxu1 %v9789_v11 }
  0xe3   : > { %1125 = vmatmul.f32.gmra.mxu3 %v9791_v12 }
  0xe4   : > { %v9921_v37 = vadd.f32 %v655_v5, %v591_v33  ;;  %1075 = vmatmul.f32.gmra.mxu2 %v9791_v12 }
  0xe6   : > { %14871 = vst [vmem:[#allocation24_spill] sm:$0xff] %v9921_v37  ;;  %v661_v44 = vpop.f32.mrf.mxu3 }
  0xe7   : > { %v536_v46 = vpop.f32.mrf.mxu1  ;;  %v9924_v48 = vpop.f32.mrf.mxu0 }
  0xe8   : > { %14872 = vst [vmem:[#allocation25_spill] sm:$0xff] %v9924_v48  ;;  %v537_v53 = vadd.f32 %v536_v46, %v483_v35  ;;  %v595_v61 = vpop.f32.mrf.mxu2 }
  0xea   : > { %v596_v4 = vadd.f32 %v595_v61, %v537_v53  ;;  %1023 = vmatmul.f32.gmra.mxu1 %v9805_v20  ;;  %1151 = vmatmul.f32.vlgmr.msrb.gmra.mxu0 %v9682_v25 }
  0xeb   : > { %1344 = vmatmul.f32.vlgmr.msrb.gmra.mxu3 %v9660_v13  ;;  %1645 = vmatpush.msrb.mxu0 %v1590_v52 }
  0xec   : > { %v9929_v9 = vadd.f32 %v661_v44, %v596_v4  ;;  %1285 = vmatmul.f32.vlgmr.msrb.gmra.mxu2 %v9644_v8  ;;  %1821 = vmatpush.msrb.mxu3 %v1507_v36 }
  0xed   : > { %1771 = vmatpush.msrb.mxu2 %v1591_v56 }
  0xee   : > { %v871_v5 = vpop.f32.mrf.mxu3 }
  0xef   : > { %v9932_v21 = vpop.f32.mrf.mxu0  ;;  %v9934_v27 = vpop.f32.mrf.mxu1 }
  0xf0   : > { %14873 = vst [vmem:[#allocation26_spill] sm:$0xff] %v9932_v21  ;;  %v789_v29 = vpop.f32.mrf.mxu2 }
  0xf1   : > { %14874 = vst [vmem:[#allocation27_spill] sm:$0xff] %v9934_v27  ;;  %v790_v32 = vadd.f32 %v789_v29, %v9861_v39 }
  0xf2   : > { %1159 = vmatmul.f32.gmra.mxu0 %v9700_v40  ;;  %1233 = vmatmul.f32.vlgmr.msrb.gmra.mxu1 %v9637_v6 }
  0xf3   : > { %v9939_v33 = vadd.f32 %v871_v5, %v790_v32  ;;  %1350 = vmatmul.f32.gmra.mxu3 %v9685_v26  ;;  %1703 = vmatpush.msrb.mxu1 %v1507_v36 }
  0xf4   : > { %1290 = vmatmul.f32.gmra.mxu2 %v9671_v18 }
  0xf6   : > { %v875_v52 = vpop.f32.mrf.mxu3 }
  0xf7   : > { %v9943_v56 = vpop.f32.mrf.mxu0  ;;  %v9945_v35 = vpop.f32.mrf.mxu1 }
  0xf8   : > { %14875 = vst [vmem:[#allocation28_spill] sm:$0xff] %v9943_v56  ;;  %v797_v44 = vpop.f32.mrf.mxu2 }
  0xf9   : > { %14876 = vst [vmem:[#allocation29_spill] sm:$0xff] %v9945_v35  ;;  %v798_v46 = vadd.f32 %v797_v44, %v9870_v55 }
  0xfa   : > { %1167 = vmatmul.f32.gmra.mxu0 %v9720_v49  ;;  %1237 = vmatmul.f32.gmra.mxu1 %v9662_v14 }
  0xfb   : > { %v9950_v53 = vadd.f32 %v875_v52, %v798_v46  ;;  %1356 = vmatmul.f32.gmra.mxu3 %v9703_v41 }
  0xfc   : > { %1295 = vmatmul.f32.gmra.mxu2 %v9696_v34 }
  0xfe   : > { %v879_v36 = vpop.f32.mrf.mxu3 }
  0xff   : > { %v9954_v61 = vpop.f32.mrf.mxu0  ;;  %v9956_v4 = vpop.f32.mrf.mxu1 }
 0x100   : > { %14877 = vst [vmem:[#allocation30_spill] sm:$0xff] %v9954_v61  ;;  %v805_v5 = vpop.f32.mrf.mxu2 }
 0x101   : > { %14878 = vst [vmem:[#allocation31_spill] sm:$0xff] %v9956_v4  ;;  %v806_v29 = vadd.f32 %v805_v5, %v9879_v15 }
 0x102   : > { %1175 = vmatmul.f32.gmra.mxu0 %v9743_v57  ;;  %1241 = vmatmul.f32.gmra.mxu1 %v9673_v19 }
 0x103   : > { %v9961_v32 = vadd.f32 %v879_v36, %v806_v29  ;;  %1362 = vmatmul.f32.gmra.mxu3 %v9723_v50 }
 0x104   : > { %1300 = vmatmul.f32.gmra.mxu2 %v9715_v47 }
 0x106   : > { %v883_v52 = vpop.f32.mrf.mxu3 }
 0x107   : > { %v9965_v44 = vpop.f32.mrf.mxu0  ;;  %v9967_v46 = vpop.f32.mrf.mxu1 }
 0x108   : > { %14879 = vst [vmem:[#allocation32_spill] sm:$0xff] %v9965_v44  ;;  %v813_v27 = vpop.f32.mrf.mxu2 }
 0x109   : > { %14880 = vst [vmem:[#allocation33_spill] sm:$0xff] %v9967_v46  ;;  %v814_v35 = vadd.f32 %v813_v27, %v9868_v45 }
 0x10a   : > { %1183 = vmatmul.f32.gmra.mxu0 %v9766_v1  ;;  %1245 = vmatmul.f32.gmra.mxu1 %v9705_v42 }
 0x10b   : > { %v9972_v5 = vadd.f32 %v883_v52, %v814_v35  ;;  %1368 = vmatmul.f32.gmra.mxu3 %v9746_v58 }
 0x10c   : > { %1305 = vmatmul.f32.gmra.mxu2 %v9735_v54 }
 0x10e   : > { %v887_v36 = vpop.f32.mrf.mxu3 }
 0x10f   : > { %v9976_v29 = vpop.f32.mrf.mxu0  ;;  %v9978_v48 = vpop.f32.mrf.mxu1 }
 0x110   : > { %14881 = vst [vmem:[#allocation34_spill] sm:$0xff] %v9976_v29  ;;  %v821_v60 = vpop.f32.mrf.mxu2 }
 0x111   : > { %14882 = vst [vmem:[#allocation35_spill] sm:$0xff] %v9978_v48  ;;  %v822_v4 = vadd.f32 %v821_v60, %v9853_v31 }
 0x112   : > { %1191 = vmatmul.f32.gmra.mxu0 %v9786_v10  ;;  %1249 = vmatmul.f32.gmra.mxu1 %v9725_v51 }
 0x113   : > { %v9983_v27 = vadd.f32 %v887_v36, %v822_v4  ;;  %1374 = vmatmul.f32.gmra.mxu3 %v9769_v2 }
 0x114   : > { %1310 = vmatmul.f32.gmra.mxu2 %v9758_v62 }
 0x116   : > { %v891_v35 = vpop.f32.mrf.mxu3 }
 0x117   : > { %v9987_v52 = vpop.f32.mrf.mxu0  ;;  %v9989_v21 = vpop.f32.mrf.mxu1 }
 0x118   : > { %14883 = vst [vmem:[#allocation36_spill] sm:$0xff] %v9987_v52  ;;  %v829_v23 = vpop.f32.mrf.mxu2 }
 0x119   : > { %14884 = vst [vmem:[#allocation37_spill] sm:$0xff] %v9989_v21  ;;  %v830_v46 = vadd.f32 %v829_v23, %v9844_v24 }
 0x11a   : > { %1199 = vmatmul.f32.gmra.mxu0 %v9802_v17  ;;  %1253 = vmatmul.f32.gmra.mxu1 %v9748_v59 }
 0x11b   : > { %v9994_v60 = vadd.f32 %v891_v35, %v830_v46  ;;  %1380 = vmatmul.f32.gmra.mxu3 %v9789_v11 }
 0x11c   : > { %1315 = vmatmul.f32.gmra.mxu2 %v9781_v7 }
 0x11e   : > { %v895_v4 = vpop.f32.mrf.mxu3 }
 0x11f   : > { %v9998_v36 = vpop.f32.mrf.mxu0  ;;  %v10000_v56 = vpop.f32.mrf.mxu1 }
 0x120   : > { %14885 = vst [vmem:[#allocation38_spill] sm:$0xff] %v10000_v56  ;;  %v837_v43 = vpop.f32.mrf.mxu2 }
 0x121   : > { %v838_v61 = vadd.f32 %v837_v43, %v9859_v38 }
 0x122   : > { %1207 = vmatmul.f32.gmra.mxu0 %v9813_v22  ;;  %1257 = vmatmul.f32.gmra.mxu1 %v9771_v3 }
 0x123   : > { %v10005_v23 = vadd.f32 %v895_v4, %v838_v61  ;;  %1386 = vmatmul.f32.gmra.mxu3 %v9805_v20 }
 0x124   : > { %1320 = vmatmul.f32.gmra.mxu2 %v9798_v16 }
 0x126   : > { %v899_v46 = vpop.f32.mrf.mxu3 }
 0x127   : > { %v10009_v35 = vpop.f32.mrf.mxu1  ;;  %v923_v63 = vpop.f32.mrf.mxu0 }
 0x128   : > { %v845_v48 = vpop.f32.mrf.mxu2  ;;  %v924_v61 = vadd.f32 %v923_v63, %v9939_v33 }
 0x129   : > { %v846_v21 = vadd.f32 %v845_v48, %v9850_v28 }
 0x12a   : > { %1261 = vmatmul.f32.gmra.mxu1 %v9791_v12  ;;  %1410 = vmatmul.f32.vlgmr.msra.gmra.mxu0 %v9637_v6 }
 0x12b   : > { %v10014_v43 = vadd.f32 %v899_v46, %v846_v21  ;;  %1596 = vmatmul.f32.vlgmr.msra.gmra.mxu3 %v9637_v6 }
 0x12c   : > { %1514 = vmatmul.f32.vlgmr.msra.gmra.mxu2 %v9682_v25 }
 0x12e   : > { %v1098_v4 = vpop.f32.mrf.mxu3 }
 0x12f   : > { %v928_v44 = vpop.f32.mrf.mxu0  ;;  %v982_v30 = vpop.f32.mrf.mxu1 }
 0x130   : > { %v983_v56 = vadd.f32 %v982_v30, %v924_v61  ;;  %v1048_v29 = vpop.f32.mrf.mxu2  ;;  %v929_v21 = vadd.f32 %v928_v44, %v9950_v53 }
 0x132   : > { %v1049_v0 = vadd.f32 %v1048_v29, %v983_v56  ;;  %1414 = vmatmul.f32.gmra.mxu0 %v9662_v14  ;;  %1460 = vmatmul.f32.vlgmr.msra.gmra.mxu1 %v9637_v6 }
 0x133   : > { %1600 = vmatmul.f32.gmra.mxu3 %v9662_v14 }
 0x134   : > { %v10022_v48 = vadd.f32 %v1098_v4, %v1049_v0  ;;  %1522 = vmatmul.f32.gmra.mxu2 %v9700_v40 }
 0x136   : > { %14886 = vst [vmem:[#allocation39_spill] sm:$0xff] %v10022_v48  ;;  %v1102_v46 = vpop.f32.mrf.mxu3 }
 0x137   : > { %v933_v63 = vpop.f32.mrf.mxu0  ;;  %v988_v33 = vpop.f32.mrf.mxu1 }
 0x138   : > { %v989_v52 = vadd.f32 %v988_v33, %v929_v21  ;;  %v1052_v37 = vpop.f32.mrf.mxu2  ;;  %v934_v0 = vadd.f32 %v933_v63, %v9961_v32 }
 0x13a   : > { %v1053_v30 = vadd.f32 %v1052_v37, %v989_v52  ;;  %1418 = vmatmul.f32.gmra.mxu0 %v9673_v19  ;;  %1464 = vmatmul.f32.gmra.mxu1 %v9662_v14 }
 0x13b   : > { %1604 = vmatmul.f32.gmra.mxu3 %v9673_v19 }
 0x13c   : > { %v10029_v56 = vadd.f32 %v1102_v46, %v1053_v30  ;;  %1530 = vmatmul.f32.gmra.mxu2 %v9720_v49 }
 0x13e   : > { %14887 = vst [vmem:[#allocation40_spill] sm:$0xff] %v10029_v56  ;;  %v1106_v29 = vpop.f32.mrf.mxu3 }
 0x13f   : > { %v938_v53 = vpop.f32.mrf.mxu0  ;;  %v994_v44 = vpop.f32.mrf.mxu1 }
 0x140   : > { %v995_v61 = vadd.f32 %v994_v44, %v934_v0  ;;  %v1056_v4 = vpop.f32.mrf.mxu2  ;;  %v939_v52 = vadd.f32 %v938_v53, %v9972_v5 }
 0x142   : > { %v1057_v21 = vadd.f32 %v1056_v4, %v995_v61  ;;  %1422 = vmatmul.f32.gmra.mxu0 %v9705_v42  ;;  %1468 = vmatmul.f32.gmra.mxu1 %v9673_v19 }
 0x143   : > { %1608 = vmatmul.f32.gmra.mxu3 %v9705_v42 }
 0x144   : > { %v10036_v37 = vadd.f32 %v1106_v29, %v1057_v21  ;;  %1538 = vmatmul.f32.gmra.mxu2 %v9743_v57 }
 0x146   : > { %14888 = vst [vmem:[#allocation41_spill] sm:$0xff] %v10036_v37  ;;  %v1110_v46 = vpop.f32.mrf.mxu3 }
 0x147   : > { %v943_v32 = vpop.f32.mrf.mxu0  ;;  %v1000_v63 = vpop.f32.mrf.mxu1 }
 0x148   : > { %v1001_v33 = vadd.f32 %v1000_v63, %v939_v52  ;;  %v1060_v30 = vpop.f32.mrf.mxu2  ;;  %v944_v29 = vadd.f32 %v943_v32, %v9983_v27 }
 0x14a   : > { %v1061_v0 = vadd.f32 %v1060_v30, %v1001_v33  ;;  %1426 = vmatmul.f32.gmra.mxu0 %v9725_v51  ;;  %1472 = vmatmul.f32.gmra.mxu1 %v9705_v42  ;;  %v284_v30 = vld [vmem:[%s9650_s30 + $0x10] sm:$0x77] }
 0x14b   : > { %1612 = vmatmul.f32.gmra.mxu3 %v9725_v51  ;;  %350 = vst [vmem:[#allocation1 + $0x20] ss:$2 sm:$0xff] %v284_v30 }
 0x14c   : > { %v10043_v44 = vadd.f32 %v1110_v46, %v1061_v0  ;;  %1546 = vmatmul.f32.gmra.mxu2 %v9766_v1 }
 0x14e   : > { %14889 = vst [vmem:[#allocation42_spill] sm:$0xff] %v10043_v44  ;;  %v1114_v5 = vpop.f32.mrf.mxu3 }
 0x14f   : > { %v948_v53 = vpop.f32.mrf.mxu0  ;;  %v1006_v61 = vpop.f32.mrf.mxu1 }
 0x150   : > { %v1007_v4 = vadd.f32 %v1006_v61, %v944_v29  ;;  %v1064_v21 = vpop.f32.mrf.mxu2  ;;  %v949_v46 = vadd.f32 %v948_v53, %v9994_v60 }
 0x152   : > { %v1065_v52 = vadd.f32 %v1064_v21, %v1007_v4  ;;  %1430 = vmatmul.f32.gmra.mxu0 %v9748_v59  ;;  %1476 = vmatmul.f32.gmra.mxu1 %v9725_v51 }
 0x153   : > { %1616 = vmatmul.f32.gmra.mxu3 %v9748_v59 }
 0x154   : > { %v10050_v63 = vadd.f32 %v1114_v5, %v1065_v52  ;;  %1554 = vmatmul.f32.gmra.mxu2 %v9786_v10  ;;  %v357_v52 = vld.sshfl [vmem:[#allocation1 + $0x20] sm:$0xff pattern:$0x75316420] }
 0x155   : > { %v395_v30 = vsel %vm386_vm1, %v357_v52, 0 }
 0x156   : > { %14890 = vst [vmem:[#allocation43_spill] sm:$0xff] %v10050_v63  ;;  %v1118_v27 = vpop.f32.mrf.mxu3 }
 0x157   : > { %v953_v32 = vpop.f32.mrf.mxu0  ;;  %v1012_v33 = vpop.f32.mrf.mxu1 }
 0x158   : > { %v1013_v0 = vadd.f32 %v1012_v33, %v949_v46  ;;  %v1068_v29 = vpop.f32.mrf.mxu2  ;;  %v954_v60 = vadd.f32 %v953_v32, %v10005_v23 }
 0x15a   : > { %v1069_v61 = vadd.f32 %v1068_v29, %v1013_v0  ;;  %1434 = vmatmul.f32.gmra.mxu0 %v9771_v3  ;;  %1480 = vmatmul.f32.gmra.mxu1 %v9748_v59  ;;  %v1870_v0 = vand.u32 4294901760, %v395_v30 }
 0x15b   : > { %1620 = vmatmul.f32.gmra.mxu3 %v9771_v3 }
 0x15c   : > { %v10058_v5 = vadd.f32 %v1118_v27, %v1069_v61  ;;  %1562 = vmatmul.f32.gmra.mxu2 %v9802_v17  ;;  %v1953_v27 = vsub.f32 %v395_v30, %v1870_v0  ;;  %1871 = vmatpush.msra.mxu0 %v1870_v0 }
 0x15d   : > { %2066 = vmatpush.msra.mxu3 %v1870_v0 }
 0x15e   : > { %14891 = vst [vmem:[#allocation44_spill] sm:$0xff] %v10058_v5  ;;  %v1122_v53 = vpop.f32.mrf.mxu3  ;;  %2008 = vmatpush.msra.mxu2 %v1953_v27  ;;  %v1954_v23 = vand.u32 4294901760, %v1953_v27 }
 0x15f   : > { %v958_v4 = vpop.f32.mrf.mxu0  ;;  %v1018_v21 = vpop.f32.mrf.mxu1 }
 0x160   : > { %v1019_v46 = vadd.f32 %v1018_v21, %v954_v60  ;;  %v1072_v33 = vpop.f32.mrf.mxu2  ;;  %v959_v32 = vadd.f32 %v958_v4, %v10014_v43 }
 0x162   : > { %v1073_v29 = vadd.f32 %v1072_v33, %v1019_v46  ;;  %1438 = vmatmul.f32.gmra.mxu0 %v9791_v12  ;;  %1484 = vmatmul.f32.gmra.mxu1 %v9771_v3  ;;  %v1955_v46 = vsub.f32 %v1953_v27, %v1954_v23 }
 0x163   : > { %1624 = vmatmul.f32.gmra.mxu3 %v9791_v12 }
 0x164   : > { %v10066_v61 = vadd.f32 %v1122_v53, %v1073_v29  ;;  %1570 = vmatmul.f32.gmra.mxu2 %v9813_v22  ;;  %v1956_v56 = vand.u32 4294901760, %v1955_v46 }
 0x166   : > { %14892 = vst [vmem:[#allocation45_spill] sm:$0xff] %v10066_v61  ;;  %v1126_v60 = vpop.f32.mrf.mxu3  ;;  %1957 = vmatpush.msra.mxu1 %v1956_v56 }
 0x167   : > { %v1024_v21 = vpop.f32.mrf.mxu1  ;;  %v1152_v52 = vpop.f32.mrf.mxu0 }
 0x168   : > { %v1025_v33 = vadd.f32 %v1024_v21, %v959_v32  ;;  %v1076_v48 = vpop.f32.mrf.mxu2  ;;  %v1153_v53 = vadd.f32 %v1152_v52, %v9861_v39 }
 0x16a   : > { %v1077_v37 = vadd.f32 %v1076_v48, %v1025_v33  ;;  %1488 = vmatmul.f32.gmra.mxu1 %v9791_v12  ;;  %1648 = vmatmul.f32.vlgmr.msrb.gmra.mxu0 %v9644_v8 }
 0x16b   : > { %1823 = vmatmul.f32.vlgmr.msrb.gmra.mxu3 %v9637_v6  ;;  %2134 = vmatpush.msrb.mxu0 %v1954_v23 }
 0x16c   : > { %v10074_v30 = vadd.f32 %v1126_v60, %v1077_v37  ;;  %1773 = vmatmul.f32.vlgmr.msrb.gmra.mxu2 %v9637_v6 }
 0x16e   : > { %14893 = vst [vmem:[#allocation46_spill] sm:$0xff] %v10074_v30  ;;  %v1345_v43 = vpop.f32.mrf.mxu3 }
 0x16f   : > { %v1160_v4 = vpop.f32.mrf.mxu0  ;;  %v1234_v29 = vpop.f32.mrf.mxu1 }
 0x170   : > { %v1235_v27 = vadd.f32 %v1234_v29, %v1153_v53  ;;  %v1286_v32 = vpop.f32.mrf.mxu2  ;;  %v1161_v56 = vadd.f32 %v1160_v4, %v9870_v55 }
 0x172   : > { %v1287_v48 = vadd.f32 %v1286_v32, %v1235_v27  ;;  %1653 = vmatmul.f32.gmra.mxu0 %v9671_v18  ;;  %1707 = vmatmul.f32.vlgmr.msrb.gmra.mxu1 %v9660_v13 }
 0x173   : > { %1827 = vmatmul.f32.gmra.mxu3 %v9662_v14  ;;  %2184 = vmatpush.msrb.mxu1 %v1870_v0 }
 0x174   : > { %v10081_v37 = vadd.f32 %v1345_v43, %v1287_v48  ;;  %1777 = vmatmul.f32.gmra.mxu2 %v9662_v14 }
 0x176   : > { %14894 = vst [vmem:[#allocation47_spill] sm:$0xff] %v10081_v37  ;;  %v1351_v23 = vpop.f32.mrf.mxu3 }
 0x177   : > { %v1168_v60 = vpop.f32.mrf.mxu0  ;;  %v1238_v21 = vpop.f32.mrf.mxu1 }
 0x178   : > { %v1239_v52 = vadd.f32 %v1238_v21, %v1161_v56  ;;  %v1291_v46 = vpop.f32.mrf.mxu2  ;;  %v1169_v0 = vadd.f32 %v1168_v60, %v9879_v15 }
 0x17a   : > { %v1292_v33 = vadd.f32 %v1291_v46, %v1239_v52  ;;  %1658 = vmatmul.f32.gmra.mxu0 %v9696_v34  ;;  %1713 = vmatmul.f32.gmra.mxu1 %v9685_v26 }
 0x17b   : > { %1831 = vmatmul.f32.gmra.mxu3 %v9673_v19 }
 0x17c   : > { %v10088_v53 = vadd.f32 %v1351_v23, %v1292_v33  ;;  %1781 = vmatmul.f32.gmra.mxu2 %v9673_v19 }
 0x17e   : > { %14895 = vst [vmem:[#allocation48_spill] sm:$0xff] %v10088_v53  ;;  %v1357_v43 = vpop.f32.mrf.mxu3 }
 0x17f   : > { %v1176_v4 = vpop.f32.mrf.mxu0  ;;  %v1242_v29 = vpop.f32.mrf.mxu1 }
 0x180   : > { %v1243_v27 = vadd.f32 %v1242_v29, %v1169_v0  ;;  %v1296_v32 = vpop.f32.mrf.mxu2  ;;  %v1177_v56 = vadd.f32 %v1176_v4, %v9868_v45 }
 0x182   : > { %v1297_v48 = vadd.f32 %v1296_v32, %v1243_v27  ;;  %1663 = vmatmul.f32.gmra.mxu0 %v9715_v47  ;;  %1719 = vmatmul.f32.gmra.mxu1 %v9703_v41 }
 0x183   : > { %1835 = vmatmul.f32.gmra.mxu3 %v9705_v42 }
 0x184   : > { %v10095_v21 = vadd.f32 %v1357_v43, %v1297_v48  ;;  %1785 = vmatmul.f32.gmra.mxu2 %v9705_v42 }
 0x186   : > { %14896 = vst [vmem:[#allocation49_spill] sm:$0xff] %v10095_v21  ;;  %v1363_v23 = vpop.f32.mrf.mxu3 }
 0x187   : > { %v1184_v60 = vpop.f32.mrf.mxu0  ;;  %v1246_v52 = vpop.f32.mrf.mxu1 }
 0x188   : > { %v1247_v46 = vadd.f32 %v1246_v52, %v1177_v56  ;;  %v1301_v33 = vpop.f32.mrf.mxu2  ;;  %v1185_v29 = vadd.f32 %v1184_v60, %v9853_v31 }
 0x18a   : > { %v1302_v0 = vadd.f32 %v1301_v33, %v1247_v46  ;;  %1668 = vmatmul.f32.gmra.mxu0 %v9735_v54  ;;  %1725 = vmatmul.f32.gmra.mxu1 %v9723_v50 }
 0x18b   : > { %1839 = vmatmul.f32.gmra.mxu3 %v9725_v51 }
 0x18c   : > { %v10102_v27 = vadd.f32 %v1363_v23, %v1302_v0  ;;  %1789 = vmatmul.f32.gmra.mxu2 %v9725_v51  ;;  %v358_v23 = vld.sshfl [vmem:[#allocation1 + $0x28] sm:$0xff pattern:$0x75316420] }
 0x18d   : > { %v397_v60 = vsel %vm386_vm1, %v358_v23, 0 }
 0x18e   : > { %14897 = vst [vmem:[#allocation50_spill] sm:$0xff] %v10102_v27  ;;  %v1369_v43 = vpop.f32.mrf.mxu3  ;;  %v2233_v0 = vand.u32 4294901760, %v397_v60 }
 0x18f   : > { %v1192_v4 = vpop.f32.mrf.mxu0  ;;  %v1250_v32 = vpop.f32.mrf.mxu1 }
 0x190   : > { %v1251_v48 = vadd.f32 %v1250_v32, %v1185_v29  ;;  %v1306_v37 = vpop.f32.mrf.mxu2  ;;  %v1193_v52 = vadd.f32 %v1192_v4, %v9844_v24  ;;  %2234 = vmatpush.msrb.mxu2 %v2233_v0  ;;  %v2316_v53 = vsub.f32 %v397_v60, %v2233_v0 }
 0x192   : > { %v1307_v56 = vadd.f32 %v1306_v37, %v1251_v48  ;;  %1673 = vmatmul.f32.gmra.mxu0 %v9758_v62  ;;  %1731 = vmatmul.f32.gmra.mxu1 %v9746_v58 }
 0x193   : > { %1843 = vmatmul.f32.gmra.mxu3 %v9748_v59 }
 0x194   : > { %v10109_v46 = vadd.f32 %v1369_v43, %v1307_v56  ;;  %1793 = vmatmul.f32.gmra.mxu2 %v9748_v59  ;;  %v2317_v43 = vand.u32 4294901760, %v2316_v53 }
 0x196   : > { %14898 = vst [vmem:[#allocation51_spill] sm:$0xff] %v10109_v46  ;;  %v1375_v33 = vpop.f32.mrf.mxu3  ;;  %v2318_v23 = vsub.f32 %v2316_v53, %v2317_v43 }
 0x197   : > { %v1200_v29 = vpop.f32.mrf.mxu0  ;;  %v1254_v32 = vpop.f32.mrf.mxu1 }
 0x198   : > { %v1255_v37 = vadd.f32 %v1254_v32, %v1193_v52  ;;  %v1311_v48 = vpop.f32.mrf.mxu2  ;;  %v1201_v4 = vadd.f32 %v1200_v29, %v9859_v38  ;;  %v2319_v52 = vand.u32 4294901760, %v2318_v23 }
 0x19a   : > { %v1312_v21 = vadd.f32 %v1311_v48, %v1255_v37  ;;  %1678 = vmatmul.f32.gmra.mxu0 %v9781_v7  ;;  %1737 = vmatmul.f32.gmra.mxu1 %v9769_v2 }
 0x19b   : > { %1847 = vmatmul.f32.gmra.mxu3 %v9771_v3 }
 0x19c   : > { %v10117_v56 = vadd.f32 %v1375_v33, %v1312_v21  ;;  %1797 = vmatmul.f32.gmra.mxu2 %v9771_v3  ;;  %2320 = vmatpush.msrb.mxu3 %v2319_v52 }
 0x19e   : > { %14899 = vst [vmem:[#allocation52_spill] sm:$0xff] %v10117_v56  ;;  %v1381_v27 = vpop.f32.mrf.mxu3 }
 0x19f   : > { %v1208_v32 = vpop.f32.mrf.mxu0  ;;  %v1258_v46 = vpop.f32.mrf.mxu1 }
 0x1a0   : > { %v1259_v60 = vadd.f32 %v1258_v46, %v1201_v4  ;;  %v1316_v37 = vpop.f32.mrf.mxu2  ;;  %v1209_v21 = vadd.f32 %v1208_v32, %v9850_v28 }
 0x1a2   : > { %v1317_v48 = vadd.f32 %v1316_v37, %v1259_v60  ;;  %1683 = vmatmul.f32.gmra.mxu0 %v9798_v16  ;;  %1743 = vmatmul.f32.gmra.mxu1 %v9789_v11 }
 0x1a3   : > { %1851 = vmatmul.f32.gmra.mxu3 %v9791_v12 }
 0x1a4   : > { %v10124_v33 = vadd.f32 %v1381_v27, %v1317_v48  ;;  %1801 = vmatmul.f32.gmra.mxu2 %v9791_v12 }
 0x1a6   : > { %14900 = vst [vmem:[#allocation53_spill] sm:$0xff] %v10124_v33  ;;  %v1387_v29 = vpop.f32.mrf.mxu3 }
 0x1a7   : > { %v1262_v23 = vpop.f32.mrf.mxu1  ;;  %v10127_v56 = vpop.f32.mrf.mxu0 }
 0x1a8   : > { %14901 = vst [vmem:[#allocation54_spill] sm:$0xff] %v10127_v56  ;;  %v1263_v46 = vadd.f32 %v1262_v23, %v1209_v21  ;;  %v1321_v4 = vpop.f32.mrf.mxu2 }
 0x1aa   : > { %v1322_v52 = vadd.f32 %v1321_v4, %v1263_v46  ;;  %1749 = vmatmul.f32.gmra.mxu1 %v9805_v20  ;;  %1877 = vmatmul.f32.vlgmr.msra.gmra.mxu0 %v9682_v25 }
 0x1ab   : > { %2070 = vmatmul.f32.vlgmr.msra.gmra.mxu3 %v9660_v13  ;;  %2371 = vmatpush.msra.mxu0 %v2316_v53 }
 0x1ac   : > { %v10132_v60 = vadd.f32 %v1387_v29, %v1322_v52  ;;  %2011 = vmatmul.f32.vlgmr.msra.gmra.mxu2 %v9644_v8  ;;  %2547 = vmatpush.msra.mxu3 %v2233_v0 }
 0x1ad   : > { %2497 = vmatpush.msra.mxu2 %v2317_v43 }
 0x1ae   : > { %14902 = vst [vmem:[#allocation55_spill] sm:$0xff] %v10132_v60  ;;  %v1597_v27 = vpop.f32.mrf.mxu3 }
 0x1af   : > { %v10135_v32 = vpop.f32.mrf.mxu0  ;;  %v10137_v37 = vpop.f32.mrf.mxu1 }
 0x1b0   : > { %14903 = vst [vmem:[#allocation56_spill] sm:$0xff] %v10135_v32  ;;  %v1515_v48 = vpop.f32.mrf.mxu2 }
 0x1b1   : > { %14904 = vst [vmem:[#allocation57_spill] sm:$0xff] %v10137_v37  ;;  %v1516_v21 = vadd.f32 %v1515_v48, %v9861_v39 }
 0x1b2   : > { %1885 = vmatmul.f32.gmra.mxu0 %v9700_v40  ;;  %1959 = vmatmul.f32.vlgmr.msra.gmra.mxu1 %v9637_v6 }
 0x1b3   : > { %v10142_v23 = vadd.f32 %v1597_v27, %v1516_v21  ;;  %2076 = vmatmul.f32.gmra.mxu3 %v9685_v26  ;;  %2429 = vmatpush.msra.mxu1 %v2233_v0 }
 0x1b4   : > { %2016 = vmatmul.f32.gmra.mxu2 %v9671_v18 }
 0x1b6   : > { %v1601_v53 = vpop.f32.mrf.mxu3 }
 0x1b7   : > { %v10146_v43 = vpop.f32.mrf.mxu0  ;;  %v10148_v29 = vpop.f32.mrf.mxu1 }
 0x1b8   : > { %14905 = vst [vmem:[#allocation58_spill] sm:$0xff] %v10146_v43  ;;  %v1523_v46 = vpop.f32.mrf.mxu2 }
 0x1b9   : > { %14906 = vst [vmem:[#allocation59_spill] sm:$0xff] %v10148_v29  ;;  %v1524_v4 = vadd.f32 %v1523_v46, %v9870_v55 }
 0x1ba   : > { %1893 = vmatmul.f32.gmra.mxu0 %v9720_v49  ;;  %1963 = vmatmul.f32.gmra.mxu1 %v9662_v14 }
 0x1bb   : > { %v10153_v52 = vadd.f32 %v1601_v53, %v1524_v4  ;;  %2082 = vmatmul.f32.gmra.mxu3 %v9703_v41 }
 0x1bc   : > { %2021 = vmatmul.f32.gmra.mxu2 %v9696_v34 }
 0x1be   : > { %v1605_v0 = vpop.f32.mrf.mxu3 }
 0x1bf   : > { %v10157_v27 = vpop.f32.mrf.mxu0  ;;  %v10159_v48 = vpop.f32.mrf.mxu1 }
 0x1c0   : > { %14907 = vst [vmem:[#allocation60_spill] sm:$0xff] %v10157_v27  ;;  %v1531_v21 = vpop.f32.mrf.mxu2 }
 0x1c1   : > { %14908 = vst [vmem:[#allocation61_spill] sm:$0xff] %v10159_v48  ;;  %v1532_v37 = vadd.f32 %v1531_v21, %v9879_v15 }
 0x1c2   : > { %1901 = vmatmul.f32.gmra.mxu0 %v9743_v57  ;;  %1967 = vmatmul.f32.gmra.mxu1 %v9673_v19 }
 0x1c3   : > { %v10164_v46 = vadd.f32 %v1605_v0, %v1532_v37  ;;  %2088 = vmatmul.f32.gmra.mxu3 %v9723_v50 }
 0x1c4   : > { %2026 = vmatmul.f32.gmra.mxu2 %v9715_v47 }
 0x1c6   : > { %v1609_v53 = vpop.f32.mrf.mxu3 }
 0x1c7   : > { %v10168_v4 = vpop.f32.mrf.mxu0  ;;  %v10170_v29 = vpop.f32.mrf.mxu1 }
 0x1c8   : > { %14909 = vst [vmem:[#allocation62_spill] sm:$0xff] %v10168_v4  ;;  %v1539_v56 = vpop.f32.mrf.mxu2 }
 0x1c9   : > { %14910 = vst [vmem:[#allocation63_spill] sm:$0xff] %v10170_v29  ;;  %v1540_v48 = vadd.f32 %v1539_v56, %v9868_v45 }
 0x1ca   : > { %1909 = vmatmul.f32.gmra.mxu0 %v9766_v1  ;;  %1971 = vmatmul.f32.gmra.mxu1 %v9705_v42 }
 0x1cb   : > { %v10175_v21 = vadd.f32 %v1609_v53, %v1540_v48  ;;  %2094 = vmatmul.f32.gmra.mxu3 %v9746_v58 }
 0x1cc   : > { %2031 = vmatmul.f32.gmra.mxu2 %v9735_v54 }
 0x1ce   : > { %v1613_v37 = vpop.f32.mrf.mxu3 }
 0x1cf   : > { %v10179_v0 = vpop.f32.mrf.mxu0  ;;  %v10181_v32 = vpop.f32.mrf.mxu1 }
 0x1d0   : > { %14911 = vst [vmem:[#allocation64_spill] sm:$0xff] %v10179_v0  ;;  %v1547_v43 = vpop.f32.mrf.mxu2 }
 0x1d1   : > { %14912 = vst [vmem:[#allocation65_spill] sm:$0xff] %v10181_v32  ;;  %v1548_v29 = vadd.f32 %v1547_v43, %v9853_v31 }
 0x1d2   : > { %1917 = vmatmul.f32.gmra.mxu0 %v9786_v10  ;;  %1975 = vmatmul.f32.gmra.mxu1 %v9725_v51 }
 0x1d3   : > { %v10186_v56 = vadd.f32 %v1613_v37, %v1548_v29  ;;  %2100 = vmatmul.f32.gmra.mxu3 %v9769_v2 }
 0x1d4   : > { %2036 = vmatmul.f32.gmra.mxu2 %v9758_v62 }
 0x1d6   : > { %v1617_v48 = vpop.f32.mrf.mxu3 }
 0x1d7   : > { %v10190_v53 = vpop.f32.mrf.mxu0  ;;  %v10192_v27 = vpop.f32.mrf.mxu1 }
 0x1d8   : > { %14913 = vst [vmem:[#allocation66_spill] sm:$0xff] %v10190_v53  ;;  %v1555_v4 = vpop.f32.mrf.mxu2 }
 0x1d9   : > { %14914 = vst [vmem:[#allocation67_spill] sm:$0xff] %v10192_v27  ;;  %v1556_v32 = vadd.f32 %v1555_v4, %v9844_v24 }
 0x1da   : > { %1925 = vmatmul.f32.gmra.mxu0 %v9802_v17  ;;  %1979 = vmatmul.f32.gmra.mxu1 %v9748_v59 }
 0x1db   : > { %v10197_v43 = vadd.f32 %v1617_v48, %v1556_v32  ;;  %2106 = vmatmul.f32.gmra.mxu3 %v9789_v11 }
 0x1dc   : > { %2041 = vmatmul.f32.gmra.mxu2 %v9781_v7 }
 0x1de   : > { %v1621_v29 = vpop.f32.mrf.mxu3 }
 0x1df   : > { %v10201_v37 = vpop.f32.mrf.mxu0  ;;  %v10203_v0 = vpop.f32.mrf.mxu1 }
 0x1e0   : > { %14915 = vst [vmem:[#allocation68_spill] sm:$0xff] %v10201_v37  ;;  %v1563_v53 = vpop.f32.mrf.mxu2 }
 0x1e1   : > { %14916 = vst [vmem:[#allocation69_spill] sm:$0xff] %v10203_v0  ;;  %v1564_v27 = vadd.f32 %v1563_v53, %v9859_v38 }
 0x1e2   : > { %1933 = vmatmul.f32.gmra.mxu0 %v9813_v22  ;;  %1983 = vmatmul.f32.gmra.mxu1 %v9771_v3 }
 0x1e3   : > { %v10208_v4 = vadd.f32 %v1621_v29, %v1564_v27  ;;  %2112 = vmatmul.f32.gmra.mxu3 %v9805_v20 }
 0x1e4   : > { %2046 = vmatmul.f32.gmra.mxu2 %v9798_v16 }
 0x1e6   : > { %v1625_v32 = vpop.f32.mrf.mxu3 }
 0x1e7   : > { %v10212_v48 = vpop.f32.mrf.mxu1  ;;  %v1649_v33 = vpop.f32.mrf.mxu0 }
 0x1e8   : > { %14917 = vst [vmem:[#allocation70_spill] sm:$0xff] %v10212_v48  ;;  %v1571_v37 = vpop.f32.mrf.mxu2  ;;  %v1650_v27 = vadd.f32 %v1649_v33, %v10142_v23 }
 0x1e9   : > { %v1572_v0 = vadd.f32 %v1571_v37, %v9850_v28 }
 0x1ea   : > { %1987 = vmatmul.f32.gmra.mxu1 %v9791_v12  ;;  %2136 = vmatmul.f32.vlgmr.msrb.gmra.mxu0 %v9637_v6 }
 0x1eb   : > { %v10217_v53 = vadd.f32 %v1625_v32, %v1572_v0  ;;  %2322 = vmatmul.f32.vlgmr.msrb.gmra.mxu3 %v9637_v6 }
 0x1ec   : > { %2240 = vmatmul.f32.vlgmr.msrb.gmra.mxu2 %v9682_v25 }
 0x1ee   : > { %v1824_v29 = vpop.f32.mrf.mxu3 }
 0x1ef   : > { %v1654_v60 = vpop.f32.mrf.mxu0  ;;  %v1708_v44 = vpop.f32.mrf.mxu1 }
 0x1f0   : > { %v1709_v48 = vadd.f32 %v1708_v44, %v1650_v27  ;;  %v1774_v63 = vpop.f32.mrf.mxu2  ;;  %v1655_v37 = vadd.f32 %v1654_v60, %v10153_v52 }
 0x1f2   : > { %v1775_v5 = vadd.f32 %v1774_v63, %v1709_v48  ;;  %2140 = vmatmul.f32.gmra.mxu0 %v9662_v14  ;;  %2186 = vmatmul.f32.vlgmr.msrb.gmra.mxu1 %v9637_v6 }
 0x1f3   : > { %2326 = vmatmul.f32.gmra.mxu3 %v9662_v14 }
 0x1f4   : > { %v10225_v0 = vadd.f32 %v1824_v29, %v1775_v5  ;;  %2248 = vmatmul.f32.gmra.mxu2 %v9700_v40 }
 0x1f6   : > { %14918 = vst [vmem:[#allocation71_spill] sm:$0xff] %v10225_v0  ;;  %v1828_v32 = vpop.f32.mrf.mxu3 }
 0x1f7   : > { %v1659_v33 = vpop.f32.mrf.mxu0  ;;  %v1714_v23 = vpop.f32.mrf.mxu1 }
 0x1f8   : > { %v1715_v61 = vadd.f32 %v1714_v23, %v1655_v37  ;;  %v1778_v30 = vpop.f32.mrf.mxu2  ;;  %v1660_v5 = vadd.f32 %v1659_v33, %v10164_v46 }
 0x1fa   : > { %v1779_v44 = vadd.f32 %v1778_v30, %v1715_v61  ;;  %2144 = vmatmul.f32.gmra.mxu0 %v9673_v19  ;;  %2190 = vmatmul.f32.gmra.mxu1 %v9662_v14 }
 0x1fb   : > { %2330 = vmatmul.f32.gmra.mxu3 %v9673_v19 }
 0x1fc   : > { %v10232_v63 = vadd.f32 %v1828_v32, %v1779_v44  ;;  %2256 = vmatmul.f32.gmra.mxu2 %v9720_v49 }
 0x1fe   : > { %14919 = vst [vmem:[#allocation72_spill] sm:$0xff] %v10232_v63  ;;  %v1832_v48 = vpop.f32.mrf.mxu3 }
 0x1ff   : > { %v1664_v60 = vpop.f32.mrf.mxu0  ;;  %v1720_v52 = vpop.f32.mrf.mxu1 }
 0x200   : > { %v1721_v27 = vadd.f32 %v1720_v52, %v1660_v5  ;;  %v1782_v29 = vpop.f32.mrf.mxu2  ;;  %v1665_v30 = vadd.f32 %v1664_v60, %v10175_v21 }
 0x202   : > { %v1783_v37 = vadd.f32 %v1782_v29, %v1721_v27  ;;  %2148 = vmatmul.f32.gmra.mxu0 %v9705_v42  ;;  %2194 = vmatmul.f32.gmra.mxu1 %v9673_v19 }
 0x203   : > { %2334 = vmatmul.f32.gmra.mxu3 %v9705_v42 }
 0x204   : > { %v10239_v61 = vadd.f32 %v1832_v48, %v1783_v37  ;;  %2264 = vmatmul.f32.gmra.mxu2 %v9743_v57 }
 0x206   : > { %14920 = vst [vmem:[#allocation73_spill] sm:$0xff] %v10239_v61  ;;  %v1836_v32 = vpop.f32.mrf.mxu3 }
 0x207   : > { %v1669_v46 = vpop.f32.mrf.mxu0  ;;  %v1726_v33 = vpop.f32.mrf.mxu1 }
 0x208   : > { %v1727_v23 = vadd.f32 %v1726_v33, %v1665_v30  ;;  %v1786_v44 = vpop.f32.mrf.mxu2  ;;  %v1670_v48 = vadd.f32 %v1669_v46, %v10186_v56 }
 0x20a   : > { %v1787_v5 = vadd.f32 %v1786_v44, %v1727_v23  ;;  %2152 = vmatmul.f32.gmra.mxu0 %v9725_v51  ;;  %2198 = vmatmul.f32.gmra.mxu1 %v9705_v42  ;;  %v285_v44 = vld [vmem:[%s9650_s30 + $0x18] sm:$0x77] }
 0x20b   : > { %2338 = vmatmul.f32.gmra.mxu3 %v9725_v51  ;;  %352 = vst [vmem:[#allocation1 + $0x30] ss:$2 sm:$0xff] %v285_v44 }
 0x20c   : > { %v10246_v52 = vadd.f32 %v1836_v32, %v1787_v5  ;;  %2272 = vmatmul.f32.gmra.mxu2 %v9766_v1 }
 0x20e   : > { %14921 = vst [vmem:[#allocation74_spill] sm:$0xff] %v10246_v52  ;;  %v1840_v21 = vpop.f32.mrf.mxu3 }
 0x20f   : > { %v1674_v60 = vpop.f32.mrf.mxu0  ;;  %v1732_v27 = vpop.f32.mrf.mxu1 }
 0x210   : > { %v1733_v29 = vadd.f32 %v1732_v27, %v1670_v48  ;;  %v1790_v37 = vpop.f32.mrf.mxu2  ;;  %v1675_v32 = vadd.f32 %v1674_v60, %v10197_v43 }
 0x212   : > { %v1791_v30 = vadd.f32 %v1790_v37, %v1733_v29  ;;  %2156 = vmatmul.f32.gmra.mxu0 %v9748_v59  ;;  %2202 = vmatmul.f32.gmra.mxu1 %v9725_v51 }
 0x213   : > { %2342 = vmatmul.f32.gmra.mxu3 %v9748_v59 }
 0x214   : > { %v10253_v33 = vadd.f32 %v1840_v21, %v1791_v30  ;;  %2280 = vmatmul.f32.gmra.mxu2 %v9786_v10  ;;  %v359_v30 = vld.sshfl [vmem:[#allocation1 + $0x30] sm:$0xff pattern:$0x75316420] }
 0x215   : > { %v399_v44 = vsel %vm386_vm1, %v359_v30, 0 }
 0x216   : > { %14922 = vst [vmem:[#allocation75_spill] sm:$0xff] %v10253_v33  ;;  %v1844_v56 = vpop.f32.mrf.mxu3 }
 0x217   : > { %v1679_v46 = vpop.f32.mrf.mxu0  ;;  %v1738_v23 = vpop.f32.mrf.mxu1 }
 0x218   : > { %v1739_v5 = vadd.f32 %v1738_v23, %v1675_v32  ;;  %v1794_v48 = vpop.f32.mrf.mxu2  ;;  %v1680_v43 = vadd.f32 %v1679_v46, %v10208_v4 }
 0x21a   : > { %v1795_v27 = vadd.f32 %v1794_v48, %v1739_v5  ;;  %2160 = vmatmul.f32.gmra.mxu0 %v9771_v3  ;;  %2206 = vmatmul.f32.gmra.mxu1 %v9748_v59  ;;  %v2596_v5 = vand.u32 4294901760, %v399_v44 }
 0x21b   : > { %2346 = vmatmul.f32.gmra.mxu3 %v9771_v3 }
 0x21c   : > { %v10261_v21 = vadd.f32 %v1844_v56, %v1795_v27  ;;  %2288 = vmatmul.f32.gmra.mxu2 %v9802_v17  ;;  %v2679_v56 = vsub.f32 %v399_v44, %v2596_v5  ;;  %2597 = vmatpush.msrb.mxu0 %v2596_v5 }
 0x21d   : > { %2792 = vmatpush.msrb.mxu3 %v2596_v5 }
 0x21e   : > { %14923 = vst [vmem:[#allocation76_spill] sm:$0xff] %v10261_v21  ;;  %v1848_v60 = vpop.f32.mrf.mxu3  ;;  %2734 = vmatpush.msrb.mxu2 %v2679_v56  ;;  %v2680_v4 = vand.u32 4294901760, %v2679_v56 }
 0x21f   : > { %v1684_v29 = vpop.f32.mrf.mxu0  ;;  %v1744_v37 = vpop.f32.mrf.mxu1 }
 0x220   : > { %v1745_v32 = vadd.f32 %v1744_v37, %v1680_v43  ;;  %v1798_v23 = vpop.f32.mrf.mxu2  ;;  %v1685_v46 = vadd.f32 %v1684_v29, %v10217_v53 }
 0x222   : > { %v1799_v48 = vadd.f32 %v1798_v23, %v1745_v32  ;;  %2164 = vmatmul.f32.gmra.mxu0 %v9791_v12  ;;  %2210 = vmatmul.f32.gmra.mxu1 %v9771_v3  ;;  %v2681_v32 = vsub.f32 %v2679_v56, %v2680_v4 }
 0x223   : > { %2350 = vmatmul.f32.gmra.mxu3 %v9791_v12 }
 0x224   : > { %v10269_v27 = vadd.f32 %v1848_v60, %v1799_v48  ;;  %2296 = vmatmul.f32.gmra.mxu2 %v9813_v22  ;;  %v2682_v63 = vand.u32 4294901760, %v2681_v32 }
 0x226   : > { %14924 = vst [vmem:[#allocation77_spill] sm:$0xff] %v10269_v27  ;;  %v1852_v43 = vpop.f32.mrf.mxu3  ;;  %2683 = vmatpush.msrb.mxu1 %v2682_v63 }
 0x227   : > { %v1750_v37 = vpop.f32.mrf.mxu1  ;;  %v1878_v30 = vpop.f32.mrf.mxu0 }
 0x228   : > { %v1751_v23 = vadd.f32 %v1750_v37, %v1685_v46  ;;  %v1802_v0 = vpop.f32.mrf.mxu2  ;;  %v1879_v60 = vadd.f32 %v1878_v30, %v9861_v39 }
 0x22a   : > { %v1803_v61 = vadd.f32 %v1802_v0, %v1751_v23  ;;  %2214 = vmatmul.f32.gmra.mxu1 %v9791_v12  ;;  %2374 = vmatmul.f32.vlgmr.msra.gmra.mxu0 %v9644_v8 }
 0x22b   : > { %2549 = vmatmul.f32.vlgmr.msra.gmra.mxu3 %v9637_v6  ;;  %2860 = vmatpush.msra.mxu0 %v2680_v4 }
 0x22c   : > { %v10277_v44 = vadd.f32 %v1852_v43, %v1803_v61  ;;  %2499 = vmatmul.f32.vlgmr.msra.gmra.mxu2 %v9637_v6 }
 0x22e   : > { %14925 = vst [vmem:[#allocation78_spill] sm:$0xff] %v10277_v44  ;;  %v2071_v53 = vpop.f32.mrf.mxu3 }
 0x22f   : > { %v1886_v29 = vpop.f32.mrf.mxu0  ;;  %v1960_v48 = vpop.f32.mrf.mxu1 }
 0x230   : > { %v1961_v56 = vadd.f32 %v1960_v48, %v1879_v60  ;;  %v2012_v46 = vpop.f32.mrf.mxu2  ;;  %v1887_v63 = vadd.f32 %v1886_v29, %v9870_v55 }
 0x232   : > { %v2013_v0 = vadd.f32 %v2012_v46, %v1961_v56  ;;  %2379 = vmatmul.f32.gmra.mxu0 %v9671_v18  ;;  %2433 = vmatmul.f32.vlgmr.msra.gmra.mxu1 %v9660_v13 }
 0x233   : > { %2553 = vmatmul.f32.gmra.mxu3 %v9662_v14  ;;  %2910 = vmatpush.msra.mxu1 %v2596_v5  ;;  %v3385_v5 = vld [vmem:[%s14667_s4 + $0x30] sm:$0xff] }
 0x234   : > { %v10284_v61 = vadd.f32 %v2071_v53, %v2013_v0  ;;  %2503 = vmatmul.f32.gmra.mxu2 %v9662_v14  ;;  %3419 = vperm.xlu0 %9212, %v3385_v5  }
 0x236   : > { %14926 = vst [vmem:[#allocation79_spill] sm:$0xff] %v10284_v61  ;;  %v2077_v4 = vpop.f32.mrf.mxu3 }
 0x237   : > { %v1894_v43 = vpop.f32.mrf.mxu0  ;;  %v1964_v37 = vpop.f32.mrf.mxu1 }
 0x238   : > { %v1965_v30 = vadd.f32 %v1964_v37, %v1887_v63  ;;  %v2017_v32 = vpop.f32.mrf.mxu2  ;;  %v1895_v60 = vadd.f32 %v1894_v43, %v9879_v15  ;;  %v3382_v37 = vld [vmem:[%s14667_s4 + $0x18] sm:$0xff] }
 0x23a   : > { %v2018_v23 = vadd.f32 %v2017_v32, %v1965_v30  ;;  %2384 = vmatmul.f32.gmra.mxu0 %v9696_v34  ;;  %2439 = vmatmul.f32.gmra.mxu1 %v9685_v26 }
 0x23b   : > { %2557 = vmatmul.f32.gmra.mxu3 %v9673_v19 }
 0x23c   : > { %v10294_v53 = vadd.f32 %v2077_v4, %v2018_v23  ;;  %2507 = vmatmul.f32.gmra.mxu2 %v9673_v19  ;;  %3404 = vperm.xlu0 %9212, %v3382_v37  }
 0x23e   : > { %14927 = vst [vmem:[#allocation80_spill] sm:$0xff] %v10294_v53  ;;  %v2083_v29 = vpop.f32.mrf.mxu3 }
 0x23f   : > { %v1902_v48 = vpop.f32.mrf.mxu0  ;;  %v1968_v56 = vpop.f32.mrf.mxu1 }
 0x240   : > { %v1969_v46 = vadd.f32 %v1968_v56, %v1895_v60  ;;  %v2022_v0 = vpop.f32.mrf.mxu2  ;;  %v1903_v4 = vadd.f32 %v1902_v48, %v9868_v45 }
 0x242   : > { %v2023_v63 = vadd.f32 %v2022_v0, %v1969_v46  ;;  %2389 = vmatmul.f32.gmra.mxu0 %v9715_v47  ;;  %2445 = vmatmul.f32.gmra.mxu1 %v9703_v41  ;;  %v3379_v46 = vld [vmem:[%s14667_s4] sm:$0xff] }
 0x243   : > { %2561 = vmatmul.f32.gmra.mxu3 %v9705_v42 }
 0x244   : > { %v10304_v43 = vadd.f32 %v2083_v29, %v2023_v63  ;;  %2511 = vmatmul.f32.gmra.mxu2 %v9705_v42  ;;  %v3384_v29 = vld [vmem:[%s14667_s4 + $0x28] sm:$0xff]  ;;  %3389 = vperm.xlu0 %9212, %v3379_v46   ;;  %v3381_v46 = vld [vmem:[%s14667_s4 + $0x10] sm:$0xff] }
 0x245   : > { %3414 = vperm.xlu1 %9213, %v3384_v29  }
 0x246   : > { %14928 = vst [vmem:[#allocation81_spill] sm:$0xff] %v10304_v43  ;;  %v2089_v30 = vpop.f32.mrf.mxu3 }
 0x247   : > { %v1910_v32 = vpop.f32.mrf.mxu0  ;;  %v1972_v23 = vpop.f32.mrf.mxu1 }
 0x248   : > { %v1973_v5 = vadd.f32 %v1972_v23, %v1903_v4  ;;  %v2027_v60 = vpop.f32.mrf.mxu2  ;;  %v1911_v48 = vadd.f32 %v1910_v32, %v9853_v31 }
 0x24a   : > { %v2028_v56 = vadd.f32 %v2027_v60, %v1973_v5  ;;  %2394 = vmatmul.f32.gmra.mxu0 %v9735_v54  ;;  %2451 = vmatmul.f32.gmra.mxu1 %v9723_v50 }
 0x24b   : > { %2565 = vmatmul.f32.gmra.mxu3 %v9725_v51 }
 0x24c   : > { %v10317_v0 = vadd.f32 %v2089_v30, %v2028_v56  ;;  %2515 = vmatmul.f32.gmra.mxu2 %v9725_v51  ;;  %v360_v56 = vld.sshfl [vmem:[#allocation1 + $0x38] sm:$0xff pattern:$0x75316420] }
 0x24d   : > { %3399 = vperm.xlu1 %9213, %v3381_v46   ;;  %v401_v29 = vsel %vm386_vm1, %v360_v56, 0 }
 0x24e   : > { %14929 = vst [vmem:[#allocation82_spill] sm:$0xff] %v10317_v0  ;;  %v2095_v63 = vpop.f32.mrf.mxu3 }
 0x24f   : > { %v1918_v37 = vpop.f32.mrf.mxu0  ;;  %v1976_v4 = vpop.f32.mrf.mxu1 }
 0x250   : > { %v1977_v23 = vadd.f32 %v1976_v4, %v1911_v48  ;;  %v2032_v5 = vpop.f32.mrf.mxu2  ;;  %v1919_v30 = vadd.f32 %v1918_v37, %v9844_v24  ;;  %v2959_v4 = vand.u32 4294901760, %v401_v29  ;;  %v7149_v37 = vld [vmem:[#allocation2] sm:$0x1] }
 0x252   : > { %v2033_v60 = vadd.f32 %v2032_v5, %v1977_v23  ;;  %2399 = vmatmul.f32.gmra.mxu0 %v9758_v62  ;;  %2457 = vmatmul.f32.gmra.mxu1 %v9746_v58  ;;  %v3042_v43 = vsub.f32 %v401_v29, %v2959_v4 }
 0x253   : > { %2569 = vmatmul.f32.gmra.mxu3 %v9748_v59  ;;  %2960 = vmatpush.msra.mxu2 %v2959_v4 }
 0x254   : > { %v10327_v32 = vadd.f32 %v2095_v63, %v2033_v60  ;;  %2519 = vmatmul.f32.gmra.mxu2 %v9748_v59  ;;  %v3043_v63 = vand.u32 4294901760, %v3042_v43 }
 0x255   : > { %7152 = vperm.xlu1 %9213, %v7149_v37  }
 0x256   : > { %14930 = vst [vmem:[#allocation83_spill] sm:$0xff] %v10327_v32  ;;  %v2101_v48 = vpop.f32.mrf.mxu3  ;;  %v3044_v56 = vsub.f32 %v3042_v43, %v3043_v63 }
 0x257   : > { %v1926_v23 = vpop.f32.mrf.mxu0  ;;  %v1980_v5 = vpop.f32.mrf.mxu1 }
 0x258   : > { %v1981_v61 = vadd.f32 %v1980_v5, %v1919_v30  ;;  %v2037_v53 = vpop.f32.mrf.mxu2  ;;  %v1927_v60 = vadd.f32 %v1926_v23, %v9859_v38  ;;  %v3045_v5 = vand.u32 4294901760, %v3044_v56 }
 0x25a   : > { %v2038_v0 = vadd.f32 %v2037_v53, %v1981_v61  ;;  %2404 = vmatmul.f32.gmra.mxu0 %v9781_v7  ;;  %2463 = vmatmul.f32.gmra.mxu1 %v9769_v2 }
 0x25b   : > { %2573 = vmatmul.f32.gmra.mxu3 %v9771_v3 }
 0x25c   : > { %v10335_v46 = vadd.f32 %v2101_v48, %v2038_v0  ;;  %2523 = vmatmul.f32.gmra.mxu2 %v9771_v3  ;;  %3046 = vmatpush.msra.mxu3 %v3045_v5 }
 0x25e   : > { %14931 = vst [vmem:[#allocation84_spill] sm:$0xff] %v10335_v46  ;;  %v2107_v30 = vpop.f32.mrf.mxu3 }
 0x25f   : > { %v1934_v29 = vpop.f32.mrf.mxu0  ;;  %v1984_v61 = vpop.f32.mrf.mxu1 }
 0x260   : > { %v1985_v53 = vadd.f32 %v1984_v61, %v1927_v60  ;;  %v2042_v32 = vpop.f32.mrf.mxu2  ;;  %v1935_v0 = vadd.f32 %v1934_v29, %v9850_v28 }
 0x262   : > { %v2043_v52 = vadd.f32 %v2042_v32, %v1985_v53  ;;  %2409 = vmatmul.f32.gmra.mxu0 %v9798_v16  ;;  %2469 = vmatmul.f32.gmra.mxu1 %v9789_v11 }
 0x263   : > { %2577 = vmatmul.f32.gmra.mxu3 %v9791_v12 }
 0x264   : > { %v10342_v48 = vadd.f32 %v2107_v30, %v2043_v52  ;;  %2527 = vmatmul.f32.gmra.mxu2 %v9791_v12 }
 0x266   : > { %14932 = vst [vmem:[#allocation85_spill] sm:$0xff] %v10342_v48  ;;  %v2113_v23 = vpop.f32.mrf.mxu3  ;;  %v14952_v48 = vld [vmem:[#allocation22_spill] sm:$0xff] }
 0x267   : > { %v1988_v37 = vpop.f32.mrf.mxu1  ;;  %v10345_v56 = vpop.f32.mrf.mxu0 }
 0x268   : > { %14933 = vst [vmem:[#allocation86_spill] sm:$0xff] %v10345_v56  ;;  %v1989_v60 = vadd.f32 %v1988_v37, %v1935_v0  ;;  %v2047_v61 = vpop.f32.mrf.mxu2 }
 0x26a   : > { %v2048_v5 = vadd.f32 %v2047_v61, %v1989_v60  ;;  %2475 = vmatmul.f32.gmra.mxu1 %v9805_v20  ;;  %2603 = vmatmul.f32.vlgmr.msrb.gmra.mxu0 %v9682_v25 }
 0x26b   : > { %2796 = vmatmul.f32.vlgmr.msrb.gmra.mxu3 %v9660_v13  ;;  %3097 = vmatpush.msrb.mxu0 %v3042_v43  ;;  %v3386_v43 = vld [vmem:[%s14667_s4 + $0x38] sm:$0xff] }
 0x26c   : > { %v10350_v32 = vadd.f32 %v2113_v23, %v2048_v5  ;;  %2737 = vmatmul.f32.vlgmr.msrb.gmra.mxu2 %v9644_v8  ;;  %3273 = vmatpush.msrb.mxu3 %v2959_v4 }
 0x26d   : > { %3223 = vmatpush.msrb.mxu2 %v3043_v63  ;;  %3424 = vperm.xlu2 %9214, %v3386_v43  }
 0x26e   : > { %14934 = vst [vmem:[#allocation87_spill] sm:$0xff] %v10350_v32  ;;  %v2323_v52 = vpop.f32.mrf.mxu3  ;;  %v14953_v32 = vld [vmem:[#allocation32_spill] sm:$0xff] }
 0x26f   : > { %v10353_v30 = vpop.f32.mrf.mxu0  ;;  %v10355_v29 = vpop.f32.mrf.mxu1 }
 0x270   : > { %14935 = vst [vmem:[#allocation88_spill] sm:$0xff] %v10353_v30  ;;  %v2241_v53 = vpop.f32.mrf.mxu2 }
 0x271   : > { %14936 = vst [vmem:[#allocation89_spill] sm:$0xff] %v10355_v29  ;;  %v2242_v0 = vadd.f32 %v2241_v53, %v9861_v39 }
 0x272   : > { %2611 = vmatmul.f32.gmra.mxu0 %v9700_v40  ;;  %2685 = vmatmul.f32.vlgmr.msrb.gmra.mxu1 %v9637_v6 }
 0x273   : > { %v10363_v23 = vadd.f32 %v2323_v52, %v2242_v0  ;;  %2802 = vmatmul.f32.gmra.mxu3 %v9685_v26  ;;  %3155 = vmatpush.msrb.mxu1 %v2959_v4  ;;  %v3383_v52 = vld [vmem:[%s14667_s4 + $0x20] sm:$0xff] }
 0x274   : > { %2742 = vmatmul.f32.gmra.mxu2 %v9671_v18 }
 0x275   : > { %3409 = vperm.xlu2 %9214, %v3383_v52  }
 0x276   : > { %v2327_v63 = vpop.f32.mrf.mxu3 }
 0x277   : > { %v10367_v37 = vpop.f32.mrf.mxu0  ;;  %v10369_v60 = vpop.f32.mrf.mxu1 }
 0x278   : > { %14937 = vst [vmem:[#allocation90_spill] sm:$0xff] %v10367_v37  ;;  %v2249_v61 = vpop.f32.mrf.mxu2  ;;  %v14946_v37 = vld [vmem:[#allocation36_spill] sm:$0xff] }
 0x279   : > { %14938 = vst [vmem:[#allocation91_spill] sm:$0xff] %v10369_v60  ;;  %v2250_v5 = vadd.f32 %v2249_v61, %v9870_v55 }
 0x27a   : > { %2619 = vmatmul.f32.gmra.mxu0 %v9720_v49  ;;  %2689 = vmatmul.f32.gmra.mxu1 %v9662_v14 }
 0x27b   : > { %v10377_v53 = vadd.f32 %v2327_v63, %v2250_v5  ;;  %2808 = vmatmul.f32.gmra.mxu3 %v9703_v41  ;;  %v3380_v63 = vld [vmem:[%s14667_s4 + $0x8] sm:$0xff] }
 0x27c   : > { %2747 = vmatmul.f32.gmra.mxu2 %v9696_v34 }
 0x27d   : > { %3394 = vperm.xlu2 %9214, %v3380_v63  }
 0x27e   : > { %v2331_v4 = vpop.f32.mrf.mxu3 }
 0x27f   : > { %v10381_v0 = vpop.f32.mrf.mxu0  ;;  %v10383_v43 = vpop.f32.mrf.mxu1 }
 0x280   : > { %14939 = vst [vmem:[#allocation92_spill] sm:$0xff] %v10381_v0  ;;  %v2257_v61 = vpop.f32.mrf.mxu2 }
 0x281   : > { %14940 = vst [vmem:[#allocation93_spill] sm:$0xff] %v10383_v43  ;;  %v2258_v29 = vadd.f32 %v2257_v61, %v9879_v15 }
 0x282   : > { %2627 = vmatmul.f32.gmra.mxu0 %v9743_v57  ;;  %2693 = vmatmul.f32.gmra.mxu1 %v9673_v19 }
 0x283   : > { %v10391_v5 = vadd.f32 %v2331_v4, %v2258_v29  ;;  %2814 = vmatmul.f32.gmra.mxu3 %v9723_v50 }
 0x284   : > { %2752 = vmatmul.f32.gmra.mxu2 %v9715_v47 }
 0x286   : > { %v2335_v52 = vpop.f32.mrf.mxu3 }
 0x287   : > { %v10395_v60 = vpop.f32.mrf.mxu0  ;;  %v10397_v56 = vpop.f32.mrf.mxu1 }
 0x288   : > { %14941 = vst [vmem:[#allocation94_spill] sm:$0xff] %v10395_v60  ;;  %v2265_v61 = vpop.f32.mrf.mxu2  ;;  %v14949_v60 = vld [vmem:[#allocation23_spill] sm:$0xff] }
 0x289   : > { %14942 = vst [vmem:[#allocation95_spill] sm:$0xff] %v10397_v56  ;;  %v2266_v15 = vadd.f32 %v2265_v61, %v9868_v45  ;;  %v14945_v45 = vld [vmem:[#allocation24_spill] sm:$0xff] }
 0x28a   : > { %2635 = vmatmul.f32.gmra.mxu0 %v9766_v1  ;;  %2697 = vmatmul.f32.gmra.mxu1 %v9705_v42  ;;  %v710_v0 = vadd.f32 %v14946_v37, %v14945_v45  ;;  %v14955_v37 = vld [vmem:[#allocation35_spill] sm:$0xff] }
 0x28b   : > { %v10402_v43 = vadd.f32 %v2335_v52, %v2266_v15  ;;  %2820 = vmatmul.f32.gmra.mxu3 %v9746_v58  ;;  %v714_v15 = vadd.f32 %v9998_v36, %v9929_v9  ;;  %v14951_v9 = vld [vmem:[#allocation38_spill] sm:$0xff] }
 0x28c   : > { %2757 = vmatmul.f32.gmra.mxu2 %v9735_v54  ;;  %v760_v36 = vadd.f32 %v14951_v9, %v710_v0  ;;  %v14956_v0 = vld [vmem:[#allocation21_spill] sm:$0xff]  ;;  %v14959_v9 = vld [vmem:[#allocation28_spill] sm:$0xff] }
 0x28d   : > { %v764_v61 = vadd.f32 %v10009_v35, %v714_v15  ;;  %v702_v35 = vadd.f32 %v14953_v32, %v14952_v48  ;;  %v14954_v15 = vld [vmem:[#allocation37_spill] sm:$0xff] }
 0x28e   : > { %v2339_v29 = vpop.f32.mrf.mxu3 }
 0x28f   : > { %v10406_v4 = vpop.f32.mrf.mxu0  ;;  %v10408_v63 = vpop.f32.mrf.mxu1  ;;  %9215 = vtanh.f32 %v764_v61 }
 0x290   : > { %14943 = vst [vmem:[#allocation96_spill] sm:$0xff] %v10406_v4  ;;  %v2273_v30 = vpop.f32.mrf.mxu2  ;;  %v14950_v4 = vld [vmem:[#allocation34_spill] sm:$0xff]  ;;  %9217 = vtanh.f32 %v760_v36  ;;  %v14963_v36 = vld [vmem:[#allocation19_spill] sm:$0xff] }
 0x291   : > { %14944 = vst [vmem:[#allocation97_spill] sm:$0xff] %v10408_v63  ;;  %v2274_v56 = vadd.f32 %v2273_v30, %v9853_v31  ;;  %v706_v46 = vadd.f32 %v14950_v4, %v14949_v60  ;;  %v752_v60 = vadd.f32 %v14955_v37, %v702_v35  ;;  %v14957_v4 = vld [vmem:[#allocation30_spill] sm:$0xff] }
 0x292   : > { %2643 = vmatmul.f32.gmra.mxu0 %v9786_v10  ;;  %2701 = vmatmul.f32.gmra.mxu1 %v9725_v51  ;;  %v698_v61 = vadd.f32 %v14957_v4, %v14956_v0  ;;  %v14964_v37 = vld [vmem:[#allocation26_spill] sm:$0xff] }
 0x293   : > { %v10415_v52 = vadd.f32 %v2339_v29, %v2274_v56  ;;  %2826 = vmatmul.f32.gmra.mxu3 %v9769_v2  ;;  %v756_v33 = vadd.f32 %v14954_v15, %v706_v46  ;;  %v14958_v46 = vld [vmem:[#allocation20_spill] sm:$0xff]  ;;  %v14960_v15 = vld [vmem:[#allocation33_spill] sm:$0xff] }
 0x294   : > { %2762 = vmatmul.f32.gmra.mxu2 %v9758_v62 }
 0x295   : > { %9219 = vtanh.f32 %v756_v33  ;;  %v9216_v32 = vpop.eup %9215 }
 0x296   : > { %v2343_v63 = vpop.f32.mrf.mxu3  ;;  %9221 = vtanh.f32 %v752_v60  ;;  %v9218_v0 = vpop.eup %9217  ;;  %v10455_v4 = vand.u32 4294901760, %v9216_v32 }
 0x297   : > { %v10422_v30 = vpop.f32.mrf.mxu0  ;;  %v10424_v31 = vpop.f32.mrf.mxu1 }
 0x298   : > { %14947 = vst [vmem:[#allocation24_spill] sm:$0xff] %v10422_v30  ;;  %v2281_v56 = vpop.f32.mrf.mxu2  ;;  %v14965_v30 = vld [vmem:[#allocation31_spill] sm:$0xff] }
 0x299   : > { %14948 = vst [vmem:[#allocation36_spill] sm:$0xff] %v10424_v31  ;;  %v2282_v29 = vadd.f32 %v2281_v56, %v9844_v24  ;;  %v694_v56 = vadd.f32 %v14959_v9, %v14958_v46  ;;  %v748_v24 = vadd.f32 %v14960_v15, %v698_v61  ;;  %v690_v31 = vadd.f32 %v14964_v37, %v14963_v36  ;;  %v14966_v61 = vld [vmem:[#allocation17_spill] sm:$0xff] }
 0x29a   : > { %2651 = vmatmul.f32.gmra.mxu0 %v9802_v17  ;;  %2705 = vmatmul.f32.gmra.mxu1 %v9748_v59  ;;  %v14967_v46 = vld [vmem:[#allocation25_spill] sm:$0xff]  ;;  %v10465_v36 = vand.u32 4294901760, %v9218_v0 }
 0x29b   : > { %v10435_v45 = vadd.f32 %v2343_v63, %v2282_v29  ;;  %2832 = vmatmul.f32.gmra.mxu3 %v9789_v11  ;;  %v744_v21 = vadd.f32 %v14965_v30, %v694_v56  ;;  %v686_v9 = vadd.f32 %v14967_v46, %v14966_v61  ;;  %v14968_v15 = vld [vmem:[#allocation29_spill] sm:$0xff]  ;;  %9223 = vtanh.f32 %v748_v24  ;;  %v9220_v30 = vpop.eup %9219  ;;  %v14969_v56 = vld [vmem:[#allocation27_spill] sm:$0xff] }
 0x29c   : > { %2767 = vmatmul.f32.gmra.mxu2 %v9781_v7  ;;  %v740_v60 = vadd.f32 %v14968_v15, %v690_v31  ;;  %v9222_v37 = vpop.eup %9221 }
 0x29d   : > { %9225 = vtanh.f32 %v744_v21  ;;  %v10476_v21 = vsub.f32 %v9218_v0, %v10465_v36 }
 0x29e   : > { %v2347_v48 = vpop.f32.mrf.mxu3  ;;  %9227 = vtanh.f32 %v740_v60 }
 0x29f   : > { %v10445_v63 = vpop.f32.mrf.mxu0  ;;  %v10447_v29 = vpop.f32.mrf.mxu1 }
 0x2a0   : > { %14961 = vst [vmem:[#allocation23_spill] sm:$0xff] %v10445_v63  ;;  %v2289_v35 = vpop.f32.mrf.mxu2  ;;  %v10468_v63 = vsub.f32 %v9216_v32, %v10455_v4 }
 0x2a1   : > { %14962 = vst [vmem:[#allocation34_spill] sm:$0xff] %v10447_v29  ;;  %v2290_v33 = vadd.f32 %v2289_v35, %v9859_v38  ;;  %v736_v35 = vadd.f32 %v14969_v56, %v686_v9  ;;  %v9224_v61 = vpop.eup %9223  ;;  %v10478_v9 = vand.u32 4294901760, %v9222_v37 }
 0x2a2   : > { %2659 = vmatmul.f32.gmra.mxu0 %v9813_v22  ;;  %2709 = vmatmul.f32.gmra.mxu1 %v9771_v3  ;;  %v14685_v32 = vand.u32 4294901760, %v10468_v63  ;;  %v10492_v0 = vand.u32 4294901760, %v9224_v61 }
 0x2a3   : > { %v10460_v29 = vadd.f32 %v2347_v48, %v2290_v33  ;;  %2838 = vmatmul.f32.gmra.mxu3 %v9805_v20  ;;  %v10472_v48 = vand.u32 4294901760, %v9220_v30  ;;  %9229 = vtanh.f32 %v736_v35  ;;  %v9226_v15 = vpop.eup %9225 }
 0x2a4   : > { %2772 = vmatmul.f32.gmra.mxu2 %v9798_v16  ;;  %v9228_v35 = vpop.eup %9227  ;;  %v10512_v44 = vsub.f32 %v9224_v61, %v10492_v0 }
 0x2a5   : > { %v10488_v56 = vsub.f32 %v9220_v30, %v10472_v48  ;;  %v10514_v55 = vand.u32 4294901760, %v9228_v35 }
 0x2a6   : > { %v2351_v38 = vpop.f32.mrf.mxu3 }
 0x2a7   : > { %v10470_v31 = vpop.f32.mrf.mxu1  ;;  %v2375_v24 = vpop.f32.mrf.mxu0  ;;  %v14972_v16 = vand.u32 4294901760, %v10488_v56 }
 0x2a8   : > { %14970 = vst [vmem:[#allocation38_spill] sm:$0xff] %v10470_v31  ;;  %v2297_v33 = vpop.f32.mrf.mxu2 }
 0x2a9   : > { %v2298_v46 = vadd.f32 %v2297_v33, %v9850_v28  ;;  %v10505_v28 = vand.u32 4294901760, %v9226_v15  ;;  %v9230_v31 = vpop.eup %9229 }
 0x2aa   : > { %2713 = vmatmul.f32.gmra.mxu1 %v9791_v12  ;;  %2862 = vmatmul.f32.vlgmr.msra.gmra.mxu0 %v9637_v6 }
 0x2ab   : > { %v10483_v60 = vadd.f32 %v2351_v38, %v2298_v46  ;;  %3048 = vmatmul.f32.vlgmr.msra.gmra.mxu3 %v9637_v6  ;;  %3461 = vmatpush.msra.mxu0 %v10455_v4  ;;  %v10497_v38 = vsub.f32 %v9222_v37, %v10478_v9  ;;  %v2376_v46 = vadd.f32 %v2375_v24, %v10363_v23 }
 0x2ac   : > { %3712 = vmatpush.msra.mxu3 %v10455_v4  ;;  %2966 = vmatmul.f32.vlgmr.msra.gmra.mxu2 %v9682_v25  ;;  %v3552_v25 = vsub.f32 %v10468_v63, %v14685_v32  ;;  %v14971_v32 = vand.u32 4294901760, %v10476_v21  ;;  %v10525_v61 = vsub.f32 %v9226_v15, %v10505_v28 }
 0x2ad   : > { %3463 = vmatpush.msra.mxu0 %v10465_v36  ;;  %3640 = vmatpush.msra.mxu2 %v10468_v63 }
 0x2ae   : > { %3714 = vmatpush.msra.mxu3 %v10465_v36  ;;  %v2550_v30 = vpop.f32.mrf.mxu3  ;;  %v3558_v20 = vsub.f32 %v10476_v21, %v14971_v32  ;;  %v3564_v32 = vsub.f32 %v10488_v56, %v14972_v16 }
 0x2af   : > { %3465 = vmatpush.msra.mxu0 %v10472_v48  ;;  %3643 = vmatpush.msra.mxu2 %v10476_v21  ;;  %v2380_v37 = vpop.f32.mrf.mxu0  ;;  %v2434_v27 = vpop.f32.mrf.mxu1 }
 0x2b0   : > { %3716 = vmatpush.msra.mxu3 %v10472_v48  ;;  %v2435_v23 = vadd.f32 %v2434_v27, %v2376_v46  ;;  %v2500_v24 = vpop.f32.mrf.mxu2  ;;  %v3553_v27 = vand.u32 4294901760, %v3552_v25  ;;  %v10527_v46 = vand.u32 4294901760, %v9230_v31  ;;  %v10538_v25 = vsub.f32 %v9228_v35, %v10514_v55 }
 0x2b1   : > { %3467 = vmatpush.msra.mxu0 %v10478_v9  ;;  %3646 = vmatpush.msra.mxu2 %v10488_v56  ;;  %v2381_v16 = vadd.f32 %v2380_v37, %v10377_v53  ;;  %v14975_v37 = vand.u32 4294901760, %v10512_v44 }
 0x2b2   : > { %v2501_v33 = vadd.f32 %v2500_v24, %v2435_v23  ;;  %3718 = vmatpush.msra.mxu3 %v10478_v9  ;;  %2866 = vmatmul.f32.gmra.mxu0 %v9662_v14  ;;  %v3559_v23 = vand.u32 4294901760, %v3558_v20  ;;  %v14974_v24 = vand.u32 4294901760, %v10497_v38  ;;  %v10550_v35 = vsub.f32 %v9230_v31, %v10527_v46 }
 0x2b3   : > { %2912 = vmatmul.f32.vlgmr.msra.gmra.mxu1 %v9637_v6  ;;  %3052 = vmatmul.f32.gmra.mxu3 %v9662_v14  ;;  %v3565_v20 = vand.u32 4294901760, %v3564_v32  ;;  %v14690_v31 = vand.u32 4294901760, %v10538_v25 }
 0x2b4   : > { %v10534_v11 = vadd.f32 %v2550_v30, %v2501_v33  ;;  %3469 = vmatpush.msra.mxu0 %v10492_v0  ;;  %3554 = vmatpush.msra.mxu1 %v3553_v27  ;;  %v3570_v2 = vsub.f32 %v10497_v38, %v14974_v24  ;;  %v14691_v30 = vand.u32 4294901760, %v10525_v61  ;;  %v3576_v24 = vsub.f32 %v10512_v44, %v14975_v37 }
 0x2b5   : > { %3649 = vmatpush.msra.mxu2 %v10497_v38  ;;  %3720 = vmatpush.msra.mxu3 %v10492_v0 }
 0x2b6   : > { %14973 = vst [vmem:[#allocation22_spill] sm:$0xff] %v10534_v11  ;;  %2974 = vmatmul.f32.gmra.mxu2 %v9700_v40  ;;  %3471 = vmatpush.msra.mxu0 %v10505_v28  ;;  %v2554_v33 = vpop.f32.mrf.mxu3 }
 0x2b7   : > { %3560 = vmatpush.msra.mxu1 %v3559_v23  ;;  %3652 = vmatpush.msra.mxu2 %v10512_v44  ;;  %v2385_v27 = vpop.f32.mrf.mxu0  ;;  %v2440_v15 = vpop.f32.mrf.mxu1  ;;  %v3571_v23 = vand.u32 4294901760, %v3570_v2  ;;  %v3577_v2 = vand.u32 4294901760, %v3576_v24 }
 0x2b8   : > { %3722 = vmatpush.msra.mxu3 %v10505_v28  ;;  %3473 = vmatpush.msra.mxu0 %v10514_v55  ;;  %v2441_v53 = vadd.f32 %v2440_v15, %v2381_v16  ;;  %v2504_v40 = vpop.f32.mrf.mxu2  ;;  %v3582_v15 = vsub.f32 %v10525_v61, %v14691_v30  ;;  %v14692_v16 = vand.u32 4294901760, %v10550_v35 }
 0x2b9   : > { %3566 = vmatpush.msra.mxu1 %v3565_v20  ;;  %3655 = vmatpush.msra.mxu2 %v10525_v61 }
 0x2ba   : > { %3724 = vmatpush.msra.mxu3 %v10514_v55  ;;  %v2505_v32 = vadd.f32 %v2504_v40, %v2441_v53  ;;  %3475 = vmatpush.msra.mxu0 %v10527_v46  ;;  %v3588_v53 = vsub.f32 %v10538_v25, %v14690_v31  ;;  %v2386_v40 = vadd.f32 %v2385_v27, %v10391_v5  ;;  %v3583_v37 = vand.u32 4294901760, %v3582_v15 }
 0x2bb   : > { %3572 = vmatpush.msra.mxu1 %v3571_v23  ;;  %3658 = vmatpush.msra.mxu2 %v10538_v25 }
 0x2bc   : > { %3726 = vmatpush.msra.mxu3 %v10527_v46  ;;  %v10569_v20 = vadd.f32 %v2554_v33, %v2505_v32  ;;  %2870 = vmatmul.f32.gmra.mxu0 %v9673_v19  ;;  %v3594_v33 = vsub.f32 %v10550_v35, %v14692_v16  ;;  %v3589_v31 = vand.u32 4294901760, %v3588_v53  ;;  %v14989_v16 = vld [vmem:[#allocation39_spill] sm:$0xff] }
 0x2bd   : > { %2916 = vmatmul.f32.gmra.mxu1 %v9662_v14  ;;  %3056 = vmatmul.f32.gmra.mxu3 %v9673_v19 }
 0x2be   : > { %14976 = vst [vmem:[#allocation32_spill] sm:$0xff] %v10569_v20  ;;  %3578 = vmatpush.msra.mxu1 %v3577_v2  ;;  %3661 = vmatpush.msra.mxu2 %v10550_v35  ;;  %v2558_v23 = vpop.f32.mrf.mxu3  ;;  %v3595_v5 = vand.u32 4294901760, %v3594_v33 }
 0x2bf   : > { %2982 = vmatmul.f32.gmra.mxu2 %v9720_v49  ;;  %v2390_v24 = vpop.f32.mrf.mxu0  ;;  %v2446_v32 = vpop.f32.mrf.mxu1 }
 0x2c0   : > { %3584 = vmatpush.msra.mxu1 %v3583_v37  ;;  %v2447_v30 = vadd.f32 %v2446_v32, %v2386_v40  ;;  %v2508_v11 = vpop.f32.mrf.mxu2  ;;  %v2391_v49 = vadd.f32 %v2390_v24, %v10402_v43  ;;  %v14979_v32 = vld [vmem:[#allocation46_spill] sm:$0xff] }
 0x2c1   : > { %9231 = vtanh.f32 %v14979_v32 }
 0x2c2   : > { %3590 = vmatpush.msra.mxu1 %v3589_v31  ;;  %v2509_v20 = vadd.f32 %v2508_v11, %v2447_v30 }
 0x2c4   : > { %3596 = vmatpush.msra.mxu1 %v3595_v5  ;;  %v10583_v27 = vadd.f32 %v2558_v23, %v2509_v20  ;;  %2874 = vmatmul.f32.gmra.mxu0 %v9705_v42 }
 0x2c5   : > { %2920 = vmatmul.f32.gmra.mxu1 %v9673_v19  ;;  %3060 = vmatmul.f32.gmra.mxu3 %v9705_v42 }
 0x2c6   : > { %14977 = vst [vmem:[#allocation37_spill] sm:$0xff] %v10583_v27  ;;  %v2562_v15 = vpop.f32.mrf.mxu3 }
 0x2c7   : > { %2990 = vmatmul.f32.gmra.mxu2 %v9743_v57  ;;  %v2395_v2 = vpop.f32.mrf.mxu0  ;;  %v2452_v53 = vpop.f32.mrf.mxu1 }
 0x2c8   : > { %v2453_v40 = vadd.f32 %v2452_v53, %v2391_v49  ;;  %v2512_v31 = vpop.f32.mrf.mxu2  ;;  %v2396_v20 = vadd.f32 %v2395_v2, %v10415_v52  ;;  %v14981_v49 = vld [vmem:[#allocation45_spill] sm:$0xff]  ;;  %v14982_v53 = vld [vmem:[#allocation44_spill] sm:$0xff] }
 0x2c9   : > { %9233 = vtanh.f32 %v14981_v49 }
 0x2ca   : > { %v2513_v11 = vadd.f32 %v2512_v31, %v2453_v40  ;;  %9235 = vtanh.f32 %v14982_v53 }
 0x2cc   : > { %v10590_v30 = vadd.f32 %v2562_v15, %v2513_v11  ;;  %2878 = vmatmul.f32.gmra.mxu0 %v9725_v51  ;;  %v9232_v11 = vpop.eup %9231 }
 0x2cd   : > { %2924 = vmatmul.f32.gmra.mxu1 %v9705_v42  ;;  %3064 = vmatmul.f32.gmra.mxu3 %v9725_v51 }
 0x2ce   : > { %14978 = vst [vmem:[#allocation35_spill] sm:$0xff] %v10590_v30  ;;  %v2566_v37 = vpop.f32.mrf.mxu3 }
 0x2cf   : > { %2998 = vmatmul.f32.gmra.mxu2 %v9766_v1  ;;  %v2400_v43 = vpop.f32.mrf.mxu0  ;;  %v2458_v57 = vpop.f32.mrf.mxu1 }
 0x2d0   : > { %v2459_v33 = vadd.f32 %v2458_v57, %v2396_v20  ;;  %v2516_v23 = vpop.f32.mrf.mxu2  ;;  %v2401_v52 = vadd.f32 %v2400_v43, %v10435_v45  ;;  %v14983_v20 = vld [vmem:[#allocation43_spill] sm:$0xff]  ;;  %v9234_v57 = vpop.eup %9233  ;;  %v14985_v45 = vld [vmem:[#allocation42_spill] sm:$0xff] }
 0x2d1   : > { %9237 = vtanh.f32 %v14983_v20  ;;  %v10617_v32 = vand.u32 4294901760, %v9234_v57 }
 0x2d2   : > { %v2517_v24 = vadd.f32 %v2516_v23, %v2459_v33  ;;  %v10608_v33 = vand.u32 4294901760, %v9232_v11  ;;  %9239 = vtanh.f32 %v14985_v45 }
 0x2d4   : > { %v10598_v5 = vadd.f32 %v2566_v37, %v2517_v24  ;;  %2882 = vmatmul.f32.gmra.mxu0 %v9748_v59  ;;  %v10622_v53 = vsub.f32 %v9232_v11, %v10608_v33 }
 0x2d5   : > { %2928 = vmatmul.f32.gmra.mxu1 %v9725_v51  ;;  %3068 = vmatmul.f32.gmra.mxu3 %v9748_v59 }
 0x2d6   : > { %14980 = vst [vmem:[#allocation21_spill] sm:$0xff] %v10598_v5  ;;  %v2570_v1 = vpop.f32.mrf.mxu3 }
 0x2d7   : > { %3006 = vmatmul.f32.gmra.mxu2 %v9786_v10  ;;  %v2405_v15 = vpop.f32.mrf.mxu0  ;;  %v2464_v2 = vpop.f32.mrf.mxu1  ;;  %14987 = vst [vmem:[#allocation20_spill] sm:$0xff] %v10622_v53 }
 0x2d8   : > { %v2465_v40 = vadd.f32 %v2464_v2, %v2401_v52  ;;  %v2520_v31 = vpop.f32.mrf.mxu2  ;;  %v9236_v10 = vpop.eup %9235  ;;  %v2406_v43 = vadd.f32 %v2405_v15, %v10460_v29  ;;  %v14986_v2 = vld [vmem:[#allocation41_spill] sm:$0xff] }
 0x2d9   : > { %9241 = vtanh.f32 %v14986_v2  ;;  %v10624_v20 = vand.u32 4294901760, %v9236_v10 }
 0x2da   : > { %v2521_v37 = vadd.f32 %v2520_v31, %v2465_v40 }
 0x2dc   : > { %v10610_v23 = vadd.f32 %v2570_v1, %v2521_v37  ;;  %2886 = vmatmul.f32.gmra.mxu0 %v9771_v3  ;;  %v9238_v1 = vpop.eup %9237  ;;  %v14988_v37 = vld [vmem:[#allocation40_spill] sm:$0xff] }
 0x2dd   : > { %2932 = vmatmul.f32.gmra.mxu1 %v9748_v59  ;;  %3072 = vmatmul.f32.gmra.mxu3 %v9771_v3  ;;  %9243 = vtanh.f32 %v14988_v37  ;;  %v9240_v15 = vpop.eup %9239  ;;  %v10627_v45 = vand.u32 4294901760, %v9238_v1 }
 0x2de   : > { %14984 = vst [vmem:[#allocation30_spill] sm:$0xff] %v10610_v23  ;;  %v2574_v24 = vpop.f32.mrf.mxu3  ;;  %9245 = vtanh.f32 %v14989_v16  ;;  %v10642_v2 = vand.u32 4294901760, %v9240_v15 }
 0x2df   : > { %3014 = vmatmul.f32.gmra.mxu2 %v9802_v17  ;;  %v2410_v49 = vpop.f32.mrf.mxu0  ;;  %v2470_v52 = vpop.f32.mrf.mxu1  ;;  %v10630_v17 = vsub.f32 %v9234_v57, %v10617_v32  ;;  %v10648_v37 = vsub.f32 %v9238_v1, %v10627_v45 }
 0x2e0   : > { %v2471_v40 = vadd.f32 %v2470_v52, %v2406_v43  ;;  %v2524_v31 = vpop.f32.mrf.mxu2  ;;  %v10640_v43 = vsub.f32 %v9236_v10, %v10624_v20  ;;  %v9242_v52 = vpop.eup %9241  ;;  %v2411_v57 = vadd.f32 %v2410_v49, %v10483_v60  ;;  %v14991_v10 = vand.u32 4294901760, %v10622_v53 }
 0x2e1   : > { %v10653_v23 = vand.u32 4294901760, %v9242_v52  ;;  %v14992_v1 = vand.u32 4294901760, %v10630_v17 }
 0x2e2   : > { %v2525_v29 = vadd.f32 %v2524_v31, %v2471_v40  ;;  %v4006_v5 = vsub.f32 %v10622_v53, %v14991_v10 }
 0x2e4   : > { %v10633_v27 = vadd.f32 %v2574_v24, %v2525_v29  ;;  %2890 = vmatmul.f32.gmra.mxu0 %v9791_v12  ;;  %v9244_v29 = vpop.eup %9243  ;;  %v4007_v60 = vand.u32 4294901760, %v4006_v5 }
 0x2e5   : > { %2936 = vmatmul.f32.gmra.mxu1 %v9771_v3  ;;  %3076 = vmatmul.f32.gmra.mxu3 %v9791_v12  ;;  %v9246_v49 = vpop.eup %9245  ;;  %v10659_v31 = vand.u32 4294901760, %v9244_v29 }
 0x2e6   : > { %14990 = vst [vmem:[#allocation28_spill] sm:$0xff] %v10633_v27  ;;  %v2578_v40 = vpop.f32.mrf.mxu3  ;;  %v10657_v27 = vsub.f32 %v9240_v15, %v10642_v2  ;;  %v10669_v53 = vand.u32 4294901760, %v9246_v49 }
 0x2e7   : > { %3022 = vmatmul.f32.gmra.mxu2 %v9813_v22  ;;  %v2476_v16 = vpop.f32.mrf.mxu1  ;;  %v2604_v24 = vpop.f32.mrf.mxu0 }
 0x2e8   : > { %v2477_v11 = vadd.f32 %v2476_v16, %v2411_v57  ;;  %v2528_v30 = vpop.f32.mrf.mxu2  ;;  %v4012_v57 = vsub.f32 %v10630_v17, %v14992_v1  ;;  %v14700_v16 = vand.u32 4294901760, %v10648_v37  ;;  %v2605_v3 = vadd.f32 %v2604_v24, %v9861_v39 }
 0x2e9   : > { %v14995_v24 = vand.u32 4294901760, %v10468_v63  ;;  %v14997_v63 = vand.u32 4294901760, %v10476_v21  ;;  %v14999_v21 = vand.u32 4294901760, %v10657_v27 }
 0x2ea   : > { %v2529_v22 = vadd.f32 %v2528_v30, %v2477_v11  ;;  %v14994_v30 = vand.u32 4294901760, %v10640_v43  ;;  %v10677_v11 = vsub.f32 %v9242_v52, %v10653_v23  ;;  %v4013_v5 = vand.u32 4294901760, %v4012_v57 }
 0x2eb   : > { %v10689_v52 = vsub.f32 %v9244_v29, %v10659_v31 }
 0x2ec   : > { %v10666_v10 = vadd.f32 %v2578_v40, %v2529_v22  ;;  %3100 = vmatmul.f32.vlgmr.msrb.gmra.mxu0 %v9644_v8  ;;  %v4018_v15 = vsub.f32 %v10640_v43, %v14994_v30  ;;  %v4024_v30 = vsub.f32 %v10648_v37, %v14700_v16  ;;  %v14699_v57 = vand.u32 4294901760, %v10677_v11 }
 0x2ed   : > { %2940 = vmatmul.f32.gmra.mxu1 %v9791_v12  ;;  %3275 = vmatmul.f32.vlgmr.msrb.gmra.mxu3 %v9637_v6  ;;  %v10696_v8 = vsub.f32 %v9246_v49, %v10669_v53 }
 0x2ee   : > { %14993 = vst [vmem:[#allocation33_spill] sm:$0xff] %v10666_v10  ;;  %3787 = vmatpush.msrb.mxu0 %v14995_v24  ;;  %4008 = vmatpush.msrb.mxu3 %v4007_v60  ;;  %v2797_v40 = vpop.f32.mrf.mxu3  ;;  %v15155_v10 = vld [vmem:[#allocation71_spill] sm:$0xff] }
 0x2ef   : > { %3225 = vmatmul.f32.vlgmr.msrb.gmra.mxu2 %v9637_v6  ;;  %v10683_v22 = vpop.f32.mrf.mxu0  ;;  %v2686_v1 = vpop.f32.mrf.mxu1  ;;  %v4019_v6 = vand.u32 4294901760, %v4018_v15  ;;  %v15000_v15 = vand.u32 4294901760, %v10497_v38 }
 0x2f0   : > { %14996 = vst [vmem:[#allocation19_spill] sm:$0xff] %v10683_v22  ;;  %3791 = vmatpush.msrb.mxu0 %v14997_v63  ;;  %3915 = vmatpush.msrb.mxu2 %v10608_v33  ;;  %v2687_v60 = vadd.f32 %v2686_v1, %v2605_v3  ;;  %v2738_v24 = vpop.f32.mrf.mxu2  ;;  %v14998_v22 = vand.u32 4294901760, %v10488_v56  ;;  %v4030_v63 = vsub.f32 %v10657_v27, %v14999_v21  ;;  %v4025_v3 = vand.u32 4294901760, %v4024_v30 }
 0x2f1   : > { %4014 = vmatpush.msrb.mxu3 %v4013_v5  ;;  %v14698_v5 = vand.u32 4294901760, %v10689_v52  ;;  %v4036_v56 = vsub.f32 %v10677_v11, %v14699_v57  ;;  %v15003_v30 = vand.u32 4294901760, %v10512_v44  ;;  %v15007_v44 = vand.u32 4294901760, %v10525_v61  ;;  %v15043_v57 = vld [vmem:[#allocation20_spill] sm:$0xff] }
 0x2f2   : > { %3795 = vmatpush.msrb.mxu0 %v14998_v22  ;;  %3917 = vmatpush.msrb.mxu2 %v10617_v32  ;;  %v2739_v29 = vadd.f32 %v2738_v24, %v2687_v60  ;;  %v14697_v22 = vand.u32 4294901760, %v10696_v8  ;;  %v4031_v1 = vand.u32 4294901760, %v4030_v63  ;;  %v15044_v16 = vand.u32 4294901760, %v15043_v57 }
 0x2f3   : > { %4020 = vmatpush.msrb.mxu3 %v4019_v6  ;;  %v4037_v24 = vand.u32 4294901760, %v4036_v56  ;;  %v15008_v6 = vand.u32 4294901760, %v10538_v25  ;;  %v15030_v56 = vld [vmem:[#allocation6_spill] sm:$0xff] }
 0x2f4   : > { %3799 = vmatpush.msrb.mxu0 %v15000_v15  ;;  %3919 = vmatpush.msrb.mxu2 %v10624_v20  ;;  %v10708_v49 = vadd.f32 %v2797_v40, %v2739_v29 }
 0x2f5   : > { %4026 = vmatpush.msrb.mxu3 %v4025_v3  ;;  %3105 = vmatmul.f32.gmra.mxu0 %v9671_v18  ;;  %v4042_v18 = vsub.f32 %v10689_v52, %v14698_v5  ;;  %v3374_v5 = vld [vmem:[%s14666_s3 + $0x18] sm:$0xff] }
 0x2f6   : > { %15001 = vst [vmem:[#allocation26_spill] sm:$0xff] %v10708_v49  ;;  %3159 = vmatmul.f32.vlgmr.msrb.gmra.mxu1 %v9660_v13  ;;  %3279 = vmatmul.f32.gmra.mxu3 %v9662_v14  ;;  %v10717_v38 = vpop.f32.mrf.mxu3  ;;  %v15046_v49 = vand.u32 4294901760, %v10630_v17 }
 0x2f7   : > { %15002 = vst [vmem:[#allocation31_spill] sm:$0xff] %v10717_v38  ;;  %3803 = vmatpush.msrb.mxu0 %v15003_v30  ;;  %3858 = vmatpush.msrb.mxu1 %v10455_v4  ;;  %v10725_v40 = vpop.f32.mrf.mxu0  ;;  %v10727_v60 = vpop.f32.mrf.mxu1  ;;  %v4048_v4 = vsub.f32 %v10696_v8, %v14697_v22  ;;  %v4043_v29 = vand.u32 4294901760, %v4042_v18  ;;  %v15041_v22 = vld [vmem:[#allocation10_spill] sm:$0xff]  ;;  %v15050_v38 = vand.u32 4294901760, %v10648_v37 }
 0x2f8   : > { %15004 = vst [vmem:[#allocation17_spill] sm:$0xff] %v10725_v40  ;;  %3921 = vmatpush.msrb.mxu2 %v10627_v45  ;;  %4032 = vmatpush.msrb.mxu3 %v4031_v1  ;;  %v10730_v13 = vpop.f32.mrf.mxu2 }
 0x2f9   : > { %15005 = vst [vmem:[#allocation25_spill] sm:$0xff] %v10727_v60  ;;  %3229 = vmatmul.f32.gmra.mxu2 %v9662_v14  ;;  %3807 = vmatpush.msrb.mxu0 %v15007_v44  ;;  %v15009_v14 = vand.u32 4294901760, %v10550_v35  ;;  %v4049_v61 = vand.u32 4294901760, %v4048_v4 }
 0x2fa   : > { %15006 = vst [vmem:[#allocation29_spill] sm:$0xff] %v10730_v13  ;;  %3860 = vmatpush.msrb.mxu1 %v10465_v36  ;;  %3923 = vmatpush.msrb.mxu2 %v10642_v2 }
 0x2fb   : > { %4038 = vmatpush.msrb.mxu3 %v4037_v24  ;;  %3811 = vmatpush.msrb.mxu0 %v15008_v6  ;;  %v15034_v24 = vld [vmem:[#allocation9_spill] sm:$0xff] }
 0x2fc   : > { %3862 = vmatpush.msrb.mxu1 %v10472_v48  ;;  %3925 = vmatpush.msrb.mxu2 %v10653_v23 }
 0x2fd   : > { %4044 = vmatpush.msrb.mxu3 %v4043_v29  ;;  %3815 = vmatpush.msrb.mxu0 %v15009_v14  ;;  %v15037_v14 = vld [vmem:[#allocation8_spill] sm:$0xff] }
 0x2fe   : > { %3864 = vmatpush.msrb.mxu1 %v10478_v9  ;;  %3927 = vmatpush.msrb.mxu2 %v10659_v31  ;;  %v10748_v36 = vpop.f32.mrf.mxu3 }
 0x2ff   : > { %15010 = vst [vmem:[#allocation27_spill] sm:$0xff] %v10748_v36  ;;  %4050 = vmatpush.msrb.mxu3 %v4049_v61  ;;  %3110 = vmatmul.f32.gmra.mxu0 %v9696_v34  ;;  %v10751_v25 = vpop.f32.mrf.mxu0  ;;  %v10753_v21 = vpop.f32.mrf.mxu1 }
 0x300   : > { %15011 = vst [vmem:[#allocation46_spill] sm:$0xff] %v10751_v25  ;;  %3165 = vmatmul.f32.gmra.mxu1 %v9685_v26  ;;  %3283 = vmatmul.f32.gmra.mxu3 %v9673_v19  ;;  %v10757_v48 = vpop.f32.mrf.mxu2  ;;  %v15108_v25 = vld [vmem:[#allocation61_spill] sm:$0xff] }
 0x301   : > { %15012 = vst [vmem:[#allocation45_spill] sm:$0xff] %v10753_v21  ;;  %3866 = vmatpush.msrb.mxu1 %v10492_v0  ;;  %3929 = vmatpush.msrb.mxu2 %v10669_v53 }
 0x302   : > { %15013 = vst [vmem:[#allocation44_spill] sm:$0xff] %v10757_v48  ;;  %3233 = vmatmul.f32.gmra.mxu2 %v9673_v19 }
 0x303   : > { %3868 = vmatpush.msrb.mxu1 %v10505_v28 }
 0x305   : > { %3870 = vmatpush.msrb.mxu1 %v10514_v55 }
 0x306   : > { %v10764_v34 = vpop.f32.mrf.mxu3 }
 0x307   : > { %15014 = vst [vmem:[#allocation43_spill] sm:$0xff] %v10764_v34  ;;  %3872 = vmatpush.msrb.mxu1 %v10527_v46  ;;  %3115 = vmatmul.f32.gmra.mxu0 %v9715_v47  ;;  %v10768_v26 = vpop.f32.mrf.mxu0  ;;  %v10770_v9 = vpop.f32.mrf.mxu1 }
 0x308   : > { %15015 = vst [vmem:[#allocation42_spill] sm:$0xff] %v10768_v26  ;;  %3171 = vmatmul.f32.gmra.mxu1 %v9703_v41  ;;  %3287 = vmatmul.f32.gmra.mxu3 %v9705_v42  ;;  %v10774_v0 = vpop.f32.mrf.mxu2  ;;  %v3371_v41 = vld [vmem:[%s14666_s3] sm:$0xff] }
 0x309   : > { %15016 = vst [vmem:[#allocation41_spill] sm:$0xff] %v10770_v9 }
 0x30a   : > { %15017 = vst [vmem:[#allocation40_spill] sm:$0xff] %v10774_v0  ;;  %3237 = vmatmul.f32.gmra.mxu2 %v9705_v42  ;;  %v15083_v0 = vld [vmem:[#allocation70_spill] sm:$0xff] }
 0x30e   : > { %v10777_v19 = vpop.f32.mrf.mxu3 }
 0x30f   : > { %15018 = vst [vmem:[#allocation39_spill] sm:$0xff] %v10777_v19  ;;  %3120 = vmatmul.f32.gmra.mxu0 %v9735_v54  ;;  %v10780_v28 = vpop.f32.mrf.mxu0  ;;  %v10782_v55 = vpop.f32.mrf.mxu1 }
 0x310   : > { %15019 = vst [vmem:[#allocation98_spill] sm:$0xff] %v10780_v28  ;;  %3177 = vmatmul.f32.gmra.mxu1 %v9723_v50  ;;  %3291 = vmatmul.f32.gmra.mxu3 %v9725_v51  ;;  %v10786_v47 = vpop.f32.mrf.mxu2 }
 0x311   : > { %15020 = vst [vmem:[#allocation99_spill] sm:$0xff] %v10782_v55 }
 0x312   : > { %15021 = vst [vmem:[#allocation100_spill] sm:$0xff] %v10786_v47  ;;  %3241 = vmatmul.f32.gmra.mxu2 %v9725_v51  ;;  %v3429_v51 = vsel %vm3427_vm2, %v3371_v41, 0  ;;  %v15090_v47 = vld [vmem:[#allocation64_spill] sm:$0xff] }
 0x313   : > { %v10805_v35 = vand.u32 4294901760, %v3429_v51 }
 0x315   : > { %v10818_v15 = vsub.f32 %v3429_v51, %v10805_v35  ;;  %v3373_v51 = vld [vmem:[%s14666_s3 + $0x10] sm:$0xff] }
 0x316   : > { %v10792_v42 = vpop.f32.mrf.mxu3 }
 0x317   : > { %15022 = vst [vmem:[#allocation101_spill] sm:$0xff] %v10792_v42  ;;  %3125 = vmatmul.f32.gmra.mxu0 %v9758_v62  ;;  %v10795_v54 = vpop.f32.mrf.mxu0  ;;  %v10797_v46 = vpop.f32.mrf.mxu1  ;;  %v3372_v62 = vld [vmem:[%s14666_s3 + $0x8] sm:$0xff]  ;;  %v10827_v18 = vand.u32 4294901760, %v10818_v15  ;;  %v15087_v42 = vld [vmem:[#allocation66_spill] sm:$0xff] }
 0x318   : > { %15023 = vst [vmem:[#allocation102_spill] sm:$0xff] %v10795_v54  ;;  %3183 = vmatmul.f32.gmra.mxu1 %v9746_v58  ;;  %3295 = vmatmul.f32.gmra.mxu3 %v9748_v59  ;;  %v10801_v50 = vpop.f32.mrf.mxu2  ;;  %v3432_v30 = vsel %vm3427_vm2, %v3372_v62, 0 }
 0x319   : > { %15024 = vst [vmem:[#allocation103_spill] sm:$0xff] %v10797_v46  ;;  %v3479_v29 = vsub.f32 %v10818_v15, %v10827_v18 }
 0x31a   : > { %15025 = vst [vmem:[#allocation104_spill] sm:$0xff] %v10801_v50  ;;  %3245 = vmatmul.f32.gmra.mxu2 %v9748_v59  ;;  %v15031_v59 = vld [vmem:[#allocation7_spill] sm:$0xff]  ;;  %v15091_v50 = vld [vmem:[#allocation69_spill] sm:$0xff] }
 0x31b   : > { %15029 = vst [vmem:[#allocation108_spill] sm:$0xff] %v10818_v15  ;;  %v10851_v62 = vand.u32 4294901760, %v3479_v29 }
 0x31d   : > { %15039 = vst [vmem:[#allocation110_spill] sm:$0xff] %v10851_v62 }
 0x31e   : > { %v10807_v63 = vpop.f32.mrf.mxu3 }
 0x31f   : > { %15026 = vst [vmem:[#allocation105_spill] sm:$0xff] %v10807_v63  ;;  %3130 = vmatmul.f32.gmra.mxu0 %v9781_v7  ;;  %v10813_v3 = vpop.f32.mrf.mxu0  ;;  %v10815_v58 = vpop.f32.mrf.mxu1  ;;  %v10829_v7 = vand.u32 4294901760, %v3432_v30  ;;  %v15089_v63 = vld [vmem:[#allocation52_spill] sm:$0xff] }
 0x320   : > { %15027 = vst [vmem:[#allocation106_spill] sm:$0xff] %v10813_v3  ;;  %3189 = vmatmul.f32.gmra.mxu1 %v15030_v56  ;;  %3299 = vmatmul.f32.gmra.mxu3 %v15031_v59  ;;  %v10822_v1 = vpop.f32.mrf.mxu2  ;;  %v3435_v56 = vsel %vm3427_vm2, %v3373_v51, 0  ;;  %v1432_v9 = vadd.f32 %v15090_v47, %v15089_v63  ;;  %v15098_v47 = vld [vmem:[#allocation65_spill] sm:$0xff]  ;;  %v15100_v63 = vld [vmem:[#allocation60_spill] sm:$0xff] }
 0x321   : > { %15028 = vst [vmem:[#allocation107_spill] sm:$0xff] %v10815_v58  ;;  %v10845_v41 = vsub.f32 %v3432_v30, %v10829_v7 }
 0x322   : > { %15032 = vst [vmem:[#allocation6_spill] sm:$0xff] %v10822_v1  ;;  %3249 = vmatmul.f32.gmra.mxu2 %v15031_v59 }
 0x323   : > { %v10855_v59 = vand.u32 4294901760, %v10845_v41 }
 0x325   : > { %v3487_v51 = vsub.f32 %v10845_v41, %v10855_v59 }
 0x326   : > { %v10831_v44 = vpop.f32.mrf.mxu3 }
 0x327   : > { %15033 = vst [vmem:[#allocation7_spill] sm:$0xff] %v10831_v44  ;;  %3135 = vmatmul.f32.gmra.mxu0 %v15034_v24  ;;  %v10834_v4 = vpop.f32.mrf.mxu1  ;;  %v10836_v6 = vpop.f32.mrf.mxu0 }
 0x328   : > { %15035 = vst [vmem:[#allocation9_spill] sm:$0xff] %v10834_v4  ;;  %3195 = vmatmul.f32.gmra.mxu1 %v15037_v14  ;;  %3303 = vmatmul.f32.gmra.mxu3 %v9791_v12  ;;  %v10842_v61 = vpop.f32.mrf.mxu2  ;;  %v10859_v14 = vand.u32 4294901760, %v3435_v56 }
 0x329   : > { %15036 = vst [vmem:[#allocation109_spill] sm:$0xff] %v10836_v6  ;;  %v10886_v6 = vand.u32 4294901760, %v3487_v51 }
 0x32a   : > { %15038 = vst [vmem:[#allocation8_spill] sm:$0xff] %v10842_v61  ;;  %3253 = vmatmul.f32.gmra.mxu2 %v9791_v12 }
 0x32b   : > { %15045 = vst [vmem:[#allocation20_spill] sm:$0xff] %v10886_v6 }
 0x32e   : > { %v10857_v24 = vpop.f32.mrf.mxu3 }
 0x32f   : > { %3481 = vmatmul.f32.vlgmr.msra.gmra.mxu0 %v10851_v62  ;;  %v10862_v30 = vpop.f32.mrf.mxu0 }
 0x330   : > { %15040 = vst [vmem:[#allocation111_spill] sm:$0xff] %v10862_v30  ;;  %3201 = vmatmul.f32.gmra.mxu1 %v15041_v22  ;;  %3730 = vmatmul.f32.vlgmr.msra.gmra.mxu3 %v10827_v18  ;;  %v10866_v12 = vpop.f32.mrf.mxu1  ;;  %v10868_v29 = vpop.f32.mrf.mxu2  ;;  %v10879_v22 = vsub.f32 %v3435_v56, %v10859_v14 }
 0x331   : > { %15042 = vst [vmem:[#allocation10_spill] sm:$0xff] %v10866_v12  ;;  %4094 = vmatpush.msra.mxu0 %v15043_v57  ;;  %4312 = vmatpush.msra.mxu3 %v10608_v33  ;;  %v3438_v12 = vsel %vm3427_vm2, %v3374_v5, 0 }
 0x332   : > { %3664 = vmatmul.f32.vlgmr.msra.gmra.mxu2 %v10818_v15  ;;  %v10895_v30 = vand.u32 4294901760, %v10879_v22  ;;  %v10897_v57 = vand.u32 4294901760, %v3438_v12 }
 0x333   : > { %4097 = vmatpush.msra.mxu0 %v10630_v17  ;;  %4241 = vmatpush.msra.mxu2 %v15044_v16  ;;  %v15047_v16 = vand.u32 4294901760, %v10640_v43  ;;  %v3375_v17 = vld [vmem:[%s14666_s3 + $0x20] sm:$0xff] }
 0x334   : > { %4314 = vmatpush.msra.mxu3 %v10617_v32  ;;  %v3495_v51 = vsub.f32 %v10879_v22, %v10895_v30 }
 0x335   : > { %4100 = vmatpush.msra.mxu0 %v10640_v43  ;;  %4245 = vmatpush.msra.mxu2 %v15046_v49 }
 0x336   : > { %4316 = vmatpush.msra.mxu3 %v10624_v20  ;;  %v10892_v56 = vpop.f32.mrf.mxu3 }
 0x337   : > { %4103 = vmatpush.msra.mxu0 %v10648_v37  ;;  %4249 = vmatpush.msra.mxu2 %v15047_v16  ;;  %v10920_v16 = vsub.f32 %v3438_v12, %v10897_v57  ;;  %v10933_v12 = vand.u32 4294901760, %v3495_v51  ;;  %v15055_v51 = vand.u32 4294901760, %v10689_v52 }
 0x338   : > { %4318 = vmatpush.msra.mxu3 %v10627_v45  ;;  %3489 = vmatmul.f32.gmra.mxu0 %v10886_v6 }
 0x339   : > { %3598 = vmatmul.f32.vlgmr.msra.gmra.mxu1 %v10805_v35  ;;  %3736 = vmatmul.f32.gmra.mxu3 %v10855_v59  ;;  %v10909_v5 = vpop.f32.mrf.mxu0  ;;  %v10911_v49 = vpop.f32.mrf.mxu2  ;;  %15052 = vst [vmem:[#allocation114_spill] sm:$0xff] %v10933_v12  ;;  %v10936_v37 = vand.u32 4294901760, %v10920_v16 }
 0x33a   : > { %15048 = vst [vmem:[#allocation112_spill] sm:$0xff] %v10909_v5  ;;  %4106 = vmatpush.msra.mxu0 %v10657_v27  ;;  %4166 = vmatpush.msra.mxu1 %v10608_v33  ;;  %v10915_v43 = vpop.f32.mrf.mxu1  ;;  %v3441_v5 = vsel %vm3427_vm2, %v3375_v17, 0  ;;  %v15051_v33 = vand.u32 4294901760, %v10657_v27  ;;  %v15053_v17 = vand.u32 4294901760, %v10677_v11 }
 0x33b   : > { %15049 = vst [vmem:[#allocation113_spill] sm:$0xff] %v10915_v43  ;;  %4253 = vmatpush.msra.mxu2 %v15050_v38  ;;  %4320 = vmatpush.msra.mxu3 %v10642_v2  ;;  %v10938_v38 = vand.u32 4294901760, %v3441_v5 }
 0x33c   : > { %3669 = vmatmul.f32.gmra.mxu2 %v10845_v41  ;;  %4109 = vmatpush.msra.mxu0 %v10677_v11 }
 0x33d   : > { %4168 = vmatpush.msra.mxu1 %v10617_v32  ;;  %4257 = vmatpush.msra.mxu2 %v15051_v33  ;;  %v3376_v32 = vld [vmem:[%s14666_s3 + $0x28] sm:$0xff] }
 0x33e   : > { %4322 = vmatpush.msra.mxu3 %v10653_v23  ;;  %4112 = vmatpush.msra.mxu0 %v10689_v52  ;;  %v15059_v52 = vand.u32 4294901760, %v10696_v8 }
 0x33f   : > { %4170 = vmatpush.msra.mxu1 %v10624_v20  ;;  %4261 = vmatpush.msra.mxu2 %v15053_v17  ;;  %v3503_v17 = vsub.f32 %v10920_v16, %v10936_v37 }
 0x340   : > { %4324 = vmatpush.msra.mxu3 %v10659_v31  ;;  %4115 = vmatpush.msra.mxu0 %v10696_v8  ;;  %v10945_v27 = vpop.f32.mrf.mxu3 }
 0x341   : > { %15054 = vst [vmem:[#allocation115_spill] sm:$0xff] %v10945_v27  ;;  %4172 = vmatpush.msra.mxu1 %v10627_v45  ;;  %4265 = vmatpush.msra.mxu2 %v15055_v51  ;;  %v10953_v33 = vpop.f32.mrf.mxu0  ;;  %v10964_v27 = vsub.f32 %v3441_v5, %v10938_v38  ;;  %v3444_v45 = vsel %vm3427_vm2, %v3376_v32, 0  ;;  %v10974_v51 = vand.u32 4294901760, %v3503_v17 }
 0x342   : > { %15056 = vst [vmem:[#allocation116_spill] sm:$0xff] %v10953_v33  ;;  %4326 = vmatpush.msra.mxu3 %v10669_v53  ;;  %3497 = vmatmul.f32.gmra.mxu0 %v10933_v12  ;;  %v10957_v20 = vpop.f32.mrf.mxu1  ;;  %v10959_v11 = vpop.f32.mrf.mxu2 }
 0x343   : > { %15057 = vst [vmem:[#allocation117_spill] sm:$0xff] %v10957_v20  ;;  %3602 = vmatmul.f32.gmra.mxu1 %v10829_v7  ;;  %3742 = vmatmul.f32.gmra.mxu3 %v10895_v30  ;;  %v10977_v5 = vand.u32 4294901760, %v10964_v27 }
 0x344   : > { %15058 = vst [vmem:[#allocation118_spill] sm:$0xff] %v10959_v11  ;;  %4174 = vmatpush.msra.mxu1 %v10642_v2  ;;  %4269 = vmatpush.msra.mxu2 %v15059_v52  ;;  %v10979_v11 = vand.u32 4294901760, %v3444_v45  ;;  %v3377_v2 = vld [vmem:[%s14666_s3 + $0x30] sm:$0xff] }
 0x345   : > { %3674 = vmatmul.f32.gmra.mxu2 %v10879_v22  ;;  %15060 = vst [vmem:[#allocation119_spill] sm:$0xff] %v10974_v51  ;;  %v3511_v17 = vsub.f32 %v10964_v27, %v10977_v5  ;;  %v3447_v52 = vsel %vm3427_vm2, %v3377_v2, 0 }
 0x346   : > { %4176 = vmatpush.msra.mxu1 %v10653_v23  ;;  %15061 = vst [vmem:[#allocation120_spill] sm:$0xff] %v10977_v5 }
 0x348   : > { %4178 = vmatpush.msra.mxu1 %v10659_v31  ;;  %v10982_v43 = vpop.f32.mrf.mxu3  ;;  %v10998_v31 = vsub.f32 %v3444_v45, %v10979_v11  ;;  %v3378_v45 = vld [vmem:[%s14666_s3 + $0x38] sm:$0xff] }
 0x349   : > { %15062 = vst [vmem:[#allocation121_spill] sm:$0xff] %v10982_v43  ;;  %v10987_v8 = vpop.f32.mrf.mxu0 }
 0x34a   : > { %15063 = vst [vmem:[#allocation122_spill] sm:$0xff] %v10987_v8  ;;  %4180 = vmatpush.msra.mxu1 %v10669_v53  ;;  %3505 = vmatmul.f32.gmra.mxu0 %v10974_v51  ;;  %v10991_v23 = vpop.f32.mrf.mxu1  ;;  %v10993_v32 = vpop.f32.mrf.mxu2  ;;  %v11004_v53 = vand.u32 4294901760, %v3511_v17  ;;  %v11007_v43 = vand.u32 4294901760, %v10998_v31 }
 0x34b   : > { %15064 = vst [vmem:[#allocation123_spill] sm:$0xff] %v10991_v23  ;;  %3606 = vmatmul.f32.gmra.mxu1 %v10859_v14  ;;  %3748 = vmatmul.f32.gmra.mxu3 %v10936_v37 }
 0x34c   : > { %15065 = vst [vmem:[#allocation124_spill] sm:$0xff] %v10993_v32  ;;  %v11009_v32 = vand.u32 4294901760, %v3447_v52  ;;  %v3519_v17 = vsub.f32 %v10998_v31, %v11007_v43 }
 0x34d   : > { %15066 = vst [vmem:[#allocation125_spill] sm:$0xff] %v10998_v31  ;;  %3679 = vmatmul.f32.gmra.mxu2 %v10920_v16 }
 0x34e   : > { %15067 = vst [vmem:[#allocation126_spill] sm:$0xff] %v11004_v53  ;;  %v11026_v36 = vsub.f32 %v3447_v52, %v11009_v32  ;;  %v11032_v34 = vand.u32 4294901760, %v3519_v17 }
 0x34f   : > { %15068 = vst [vmem:[#allocation127_spill] sm:$0xff] %v11007_v43 }
 0x350   : > { %v11011_v20 = vpop.f32.mrf.mxu3  ;;  %15073 = vst [vmem:[#allocation132_spill] sm:$0xff] %v11026_v36 }
 0x351   : > { %15069 = vst [vmem:[#allocation128_spill] sm:$0xff] %v11011_v20  ;;  %v11016_v23 = vpop.f32.mrf.mxu0  ;;  %v3450_v20 = vsel %vm3427_vm2, %v3378_v45, 0 }
 0x352   : > { %15070 = vst [vmem:[#allocation129_spill] sm:$0xff] %v11016_v23  ;;  %3513 = vmatmul.f32.gmra.mxu0 %v11004_v53  ;;  %v11019_v2 = vpop.f32.mrf.mxu1  ;;  %v11021_v33 = vpop.f32.mrf.mxu2  ;;  %v15081_v23 = vld [vmem:[#allocation55_spill] sm:$0xff] }
 0x353   : > { %15071 = vst [vmem:[#allocation130_spill] sm:$0xff] %v11019_v2  ;;  %3610 = vmatmul.f32.gmra.mxu1 %v10897_v57  ;;  %3754 = vmatmul.f32.gmra.mxu3 %v10977_v5  ;;  %v11035_v2 = vand.u32 4294901760, %v11026_v36 }
 0x354   : > { %15072 = vst [vmem:[#allocation131_spill] sm:$0xff] %v11021_v33  ;;  %v11037_v33 = vand.u32 4294901760, %v3450_v20 }
 0x355   : > { %3684 = vmatmul.f32.gmra.mxu2 %v10964_v27  ;;  %15074 = vst [vmem:[#allocation133_spill] sm:$0xff] %v11032_v34  ;;  %v3527_v45 = vsub.f32 %v11026_v36, %v11035_v2 }
 0x356   : > { %15075 = vst [vmem:[#allocation134_spill] sm:$0xff] %v11035_v2  ;;  %v11051_v17 = vsub.f32 %v3450_v20, %v11037_v33 }
 0x358   : > { %v11039_v13 = vpop.f32.mrf.mxu3  ;;  %15080 = vst [vmem:[#allocation139_spill] sm:$0xff] %v11051_v17 }
 0x359   : > { %15076 = vst [vmem:[#allocation135_spill] sm:$0xff] %v11039_v13  ;;  %v11041_v8 = vpop.f32.mrf.mxu0  ;;  %v15082_v13 = vld [vmem:[#allocation68_spill] sm:$0xff] }
 0x35a   : > { %15077 = vst [vmem:[#allocation136_spill] sm:$0xff] %v11041_v8  ;;  %3521 = vmatmul.f32.gmra.mxu0 %v11032_v34  ;;  %v11044_v52 = vpop.f32.mrf.mxu1  ;;  %v11046_v48 = vpop.f32.mrf.mxu2  ;;  %v1440_v19 = vadd.f32 %v15082_v13, %v15081_v23  ;;  %v15086_v8 = vld [vmem:[#allocation53_spill] sm:$0xff] }
 0x35b   : > { %15078 = vst [vmem:[#allocation137_spill] sm:$0xff] %v11044_v52  ;;  %3614 = vmatmul.f32.gmra.mxu1 %v10938_v38  ;;  %3760 = vmatmul.f32.gmra.mxu3 %v11007_v43  ;;  %v11059_v52 = vand.u32 4294901760, %v3527_v45  ;;  %v1436_v20 = vadd.f32 %v15087_v42, %v15086_v8  ;;  %v15095_v42 = vld [vmem:[#allocation51_spill] sm:$0xff]  ;;  %v15096_v8 = vld [vmem:[#allocation62_spill] sm:$0xff] }
 0x35c   : > { %15079 = vst [vmem:[#allocation138_spill] sm:$0xff] %v11046_v48  ;;  %v1490_v60 = vadd.f32 %v15083_v0, %v1440_v19  ;;  %v11062_v48 = vand.u32 4294901760, %v11051_v17  ;;  %v1428_v45 = vadd.f32 %v15096_v8, %v15095_v42  ;;  %v15103_v42 = vld [vmem:[#allocation58_spill] sm:$0xff] }
 0x35d   : > { %3689 = vmatmul.f32.gmra.mxu2 %v10998_v31  ;;  %15084 = vst [vmem:[#allocation55_spill] sm:$0xff] %v11059_v52  ;;  %v1486_v44 = vadd.f32 %v15091_v50, %v1436_v20  ;;  %v15099_v50 = vld [vmem:[#allocation50_spill] sm:$0xff] }
 0x35e   : > { %15085 = vst [vmem:[#allocation68_spill] sm:$0xff] %v11062_v48  ;;  %9247 = vtanh.f32 %v1490_v60  ;;  %v3535_v23 = vsub.f32 %v11051_v17, %v11062_v48  ;;  %v1478_v60 = vadd.f32 %v15098_v47, %v1428_v45  ;;  %v1424_v20 = vadd.f32 %v15100_v63, %v15099_v50  ;;  %v15106_v45 = vld [vmem:[#allocation48_spill] sm:$0xff]  ;;  %v15112_v63 = vld [vmem:[#allocation54_spill] sm:$0xff] }
 0x35f   : > { %9249 = vtanh.f32 %v1486_v44  ;;  %v15107_v44 = vld [vmem:[#allocation56_spill] sm:$0xff] }
 0x360   : > { %v11066_v21 = vpop.f32.mrf.mxu3  ;;  %v1416_v47 = vadd.f32 %v15107_v44, %v15106_v45  ;;  %v15114_v45 = vld [vmem:[#allocation57_spill] sm:$0xff] }
 0x361   : > { %15088 = vst [vmem:[#allocation70_spill] sm:$0xff] %v11066_v21  ;;  %v11071_v13 = vpop.f32.mrf.mxu0  ;;  %v15097_v21 = vld [vmem:[#allocation67_spill] sm:$0xff] }
 0x362   : > { %15092 = vst [vmem:[#allocation53_spill] sm:$0xff] %v11071_v13  ;;  %3529 = vmatmul.f32.gmra.mxu0 %v11059_v52  ;;  %v11074_v0 = vpop.f32.mrf.mxu1  ;;  %v11076_v19 = vpop.f32.mrf.mxu2  ;;  %v1482_v40 = vadd.f32 %v15097_v21, %v1432_v9  ;;  %v15102_v13 = vld [vmem:[#allocation49_spill] sm:$0xff]  ;;  %v15104_v21 = vld [vmem:[#allocation63_spill] sm:$0xff] }
 0x363   : > { %15093 = vst [vmem:[#allocation66_spill] sm:$0xff] %v11074_v0  ;;  %3618 = vmatmul.f32.gmra.mxu1 %v10979_v11  ;;  %3766 = vmatmul.f32.gmra.mxu3 %v11035_v2  ;;  %v1420_v8 = vadd.f32 %v15103_v42, %v15102_v13  ;;  %v1474_v9 = vadd.f32 %v15104_v21, %v1424_v20  ;;  %v15113_v42 = vld [vmem:[#allocation59_spill] sm:$0xff] }
 0x364   : > { %15094 = vst [vmem:[#allocation52_spill] sm:$0xff] %v11076_v19  ;;  %v11089_v19 = vand.u32 4294901760, %v3535_v23  ;;  %9251 = vtanh.f32 %v1482_v40  ;;  %v9248_v0 = vpop.eup %9247  ;;  %v1466_v21 = vadd.f32 %v15113_v42, %v1416_v47 }
 0x365   : > { %3694 = vmatmul.f32.gmra.mxu2 %v11026_v36  ;;  %9253 = vtanh.f32 %v1478_v60  ;;  %v1470_v46 = vadd.f32 %v15108_v25, %v1420_v8  ;;  %v9250_v50 = vpop.eup %9249  ;;  %v11106_v13 = vand.u32 4294901760, %v9248_v0  ;;  %v15111_v60 = vld [vmem:[#allocation47_spill] sm:$0xff]  ;;  %v2968_v25 = vadd.f32 %v10868_v29, %v9861_v39 }
 0x366   : > { %15101 = vst [vmem:[#allocation64_spill] sm:$0xff] %v11089_v19  ;;  %v1412_v20 = vadd.f32 %v15112_v63, %v15111_v60  ;;  %9255 = vtanh.f32 %v1474_v9 }
 0x367   : > { %9257 = vtanh.f32 %v1470_v46  ;;  %v3050_v60 = vadd.f32 %v10857_v24, %v2968_v25 }
 0x368   : > { %v11094_v1 = vpop.f32.mrf.mxu3  ;;  %v1462_v44 = vadd.f32 %v15114_v45, %v1412_v20  ;;  %9259 = vtanh.f32 %v1466_v21 }
 0x369   : > { %15105 = vst [vmem:[#allocation69_spill] sm:$0xff] %v11094_v1  ;;  %v3101_v55 = vpop.f32.mrf.mxu0  ;;  %v11115_v1 = vand.u32 4294901760, %v9250_v50 }
 0x36a   : > { %3537 = vmatmul.f32.gmra.mxu0 %v11089_v19  ;;  %v11100_v23 = vpop.f32.mrf.mxu1  ;;  %v11102_v40 = vpop.f32.mrf.mxu2  ;;  %9261 = vtanh.f32 %v1462_v44  ;;  %v3102_v39 = vadd.f32 %v3101_v55, %v3050_v60  ;;  %v15115_v44 = vld [vmem:[#allocation16_spill] sm:$0xff] }
 0x36b   : > { %15109 = vst [vmem:[#allocation51_spill] sm:$0xff] %v11100_v23  ;;  %3622 = vmatmul.f32.gmra.mxu1 %v11009_v32  ;;  %3772 = vmatmul.f32.gmra.mxu3 %v11062_v48  ;;  %v9252_v8 = vpop.eup %9251  ;;  %v11118_v23 = vsub.f32 %v9248_v0, %v11106_v13  ;;  %v11125_v29 = vsub.f32 %v9250_v50, %v11115_v1 }
 0x36c   : > { %15110 = vst [vmem:[#allocation62_spill] sm:$0xff] %v11102_v40  ;;  %v9254_v40 = vpop.eup %9253  ;;  %v11121_v47 = vand.u32 4294901760, %v9252_v8  ;;  %v2976_v60 = vadd.f32 %v10911_v49, %v15115_v44 }
 0x36d   : > { %3699 = vmatmul.f32.gmra.mxu2 %v11051_v17  ;;  %v9256_v63 = vpop.eup %9255  ;;  %v11127_v42 = vand.u32 4294901760, %v9254_v40  ;;  %v15118_v44 = vand.u32 4294901760, %v11125_v29 }
 0x36e   : > { %v9258_v21 = vpop.eup %9257  ;;  %v11135_v50 = vsub.f32 %v9252_v8, %v11121_v47  ;;  %v11138_v25 = vand.u32 4294901760, %v9256_v63  ;;  %v15116_v8 = vand.u32 4294901760, %v11118_v23 }
 0x36f   : > { %v9260_v45 = vpop.eup %9259  ;;  %v11145_v26 = vsub.f32 %v9254_v40, %v11127_v42  ;;  %v11152_v61 = vand.u32 4294901760, %v9258_v21 }
 0x370   : > { %v3276_v9 = vpop.f32.mrf.mxu3  ;;  %v9262_v58 = vpop.eup %9261 }
 0x371   : > { %v11175_v40 = vsub.f32 %v9258_v21, %v11152_v61 }
 0x372   : > { %3817 = vmatmul.f32.vlgmr.msrb.gmra.mxu0 %v10805_v35  ;;  %v3106_v46 = vpop.f32.mrf.mxu0  ;;  %v3226_v20 = vpop.f32.mrf.mxu2 }
 0x373   : > { %3626 = vmatmul.f32.gmra.mxu1 %v11037_v33  ;;  %4052 = vmatmul.f32.vlgmr.msrb.gmra.mxu3 %v10805_v35  ;;  %v3160_v24 = vpop.f32.mrf.mxu1 }
 0x374   : > { %4369 = vmatpush.msrb.mxu0 %v11106_v13  ;;  %4620 = vmatpush.msrb.mxu3 %v11106_v13  ;;  %v3161_v55 = vadd.f32 %v3160_v24, %v3102_v39  ;;  %v4460_v24 = vsub.f32 %v11118_v23, %v15116_v8  ;;  %v3054_v8 = vadd.f32 %v10892_v56, %v2976_v60  ;;  %v15119_v60 = vand.u32 4294901760, %v11135_v50 }
 0x375   : > { %3935 = vmatmul.f32.vlgmr.msrb.gmra.mxu2 %v10851_v62 }
 0x376   : > { %4371 = vmatpush.msrb.mxu0 %v11115_v1  ;;  %4548 = vmatpush.msrb.mxu2 %v11118_v23  ;;  %v3227_v0 = vadd.f32 %v3226_v20, %v3161_v55  ;;  %v11161_v20 = vsub.f32 %v9256_v63, %v11138_v25  ;;  %v11163_v55 = vand.u32 4294901760, %v9260_v45  ;;  %v4461_v63 = vand.u32 4294901760, %v4460_v24 }
 0x377   : > { %4622 = vmatpush.msrb.mxu3 %v11115_v1  ;;  %v3107_v56 = vadd.f32 %v3106_v46, %v3054_v8 }
 0x378   : > { %4373 = vmatpush.msrb.mxu0 %v11121_v47  ;;  %4551 = vmatpush.msrb.mxu2 %v11125_v29  ;;  %v11156_v49 = vadd.f32 %v3276_v9, %v3227_v0  ;;  %v4466_v9 = vsub.f32 %v11125_v29, %v15118_v44  ;;  %v4472_v44 = vsub.f32 %v11135_v50, %v15119_v60  ;;  %v15121_v60 = vand.u32 4294901760, %v11145_v26 }
 0x379   : > { %4624 = vmatpush.msrb.mxu3 %v11121_v47  ;;  %v3280_v39 = vpop.f32.mrf.mxu3  ;;  %v11188_v21 = vsub.f32 %v9260_v45, %v11163_v55  ;;  %v14702_v45 = vand.u32 4294901760, %v11175_v40 }
 0x37a   : > { %15117 = vst [vmem:[#allocation67_spill] sm:$0xff] %v11156_v49  ;;  %4375 = vmatpush.msrb.mxu0 %v11127_v42  ;;  %4554 = vmatpush.msrb.mxu2 %v11135_v50  ;;  %v11177_v49 = vand.u32 4294901760, %v9262_v58  ;;  %v4467_v8 = vand.u32 4294901760, %v4466_v9  ;;  %v4473_v46 = vand.u32 4294901760, %v4472_v44  ;;  %v15122_v9 = vand.u32 4294901760, %v11161_v20 }
 0x37b   : > { %4626 = vmatpush.msrb.mxu3 %v11127_v42  ;;  %3821 = vmatmul.f32.gmra.mxu0 %v10829_v7 }
 0x37c   : > { %3874 = vmatmul.f32.vlgmr.msrb.gmra.mxu1 %v10805_v35  ;;  %4056 = vmatmul.f32.gmra.mxu3 %v10829_v7  ;;  %v11184_v0 = vpop.f32.mrf.mxu0  ;;  %v3230_v28 = vpop.f32.mrf.mxu2 }
 0x37d   : > { %15120 = vst [vmem:[#allocation65_spill] sm:$0xff] %v11184_v0  ;;  %4377 = vmatpush.msrb.mxu0 %v11138_v25  ;;  %4462 = vmatpush.msrb.mxu1 %v4461_v63  ;;  %v3166_v24 = vpop.f32.mrf.mxu1  ;;  %v4478_v0 = vsub.f32 %v11145_v26, %v15121_v60  ;;  %v11199_v63 = vsub.f32 %v9262_v58, %v11177_v49 }
 0x37e   : > { %4557 = vmatpush.msrb.mxu2 %v11145_v26  ;;  %4628 = vmatpush.msrb.mxu3 %v11138_v25  ;;  %v3167_v54 = vadd.f32 %v3166_v24, %v3107_v56  ;;  %v4484_v56 = vsub.f32 %v11161_v20, %v15122_v9  ;;  %v14701_v24 = vand.u32 4294901760, %v11188_v21 }
 0x37f   : > { %3943 = vmatmul.f32.gmra.mxu2 %v10886_v6  ;;  %4379 = vmatpush.msrb.mxu0 %v11152_v61  ;;  %v4479_v58 = vand.u32 4294901760, %v4478_v0 }
 0x380   : > { %4468 = vmatpush.msrb.mxu1 %v4467_v8  ;;  %4560 = vmatpush.msrb.mxu2 %v11161_v20  ;;  %v3231_v4 = vadd.f32 %v3230_v28, %v3167_v54  ;;  %v4490_v28 = vsub.f32 %v11175_v40, %v14702_v45  ;;  %v14703_v54 = vand.u32 4294901760, %v11199_v63 }
 0x381   : > { %4630 = vmatpush.msrb.mxu3 %v11152_v61  ;;  %4381 = vmatpush.msrb.mxu0 %v11163_v55 }
 0x382   : > { %4474 = vmatpush.msrb.mxu1 %v4473_v46  ;;  %4563 = vmatpush.msrb.mxu2 %v11175_v40  ;;  %v11210_v60 = vadd.f32 %v3280_v39, %v3231_v4  ;;  %v4485_v4 = vand.u32 4294901760, %v4484_v56  ;;  %v4496_v39 = vsub.f32 %v11188_v21, %v14701_v24  ;;  %v4491_v9 = vand.u32 4294901760, %v4490_v28 }
 0x383   : > { %4632 = vmatpush.msrb.mxu3 %v11163_v55  ;;  %4383 = vmatpush.msrb.mxu0 %v11177_v49  ;;  %v11218_v44 = vpop.f32.mrf.mxu3  ;;  %v4502_v56 = vsub.f32 %v11199_v63, %v14703_v54  ;;  %v15137_v54 = vld [vmem:[#allocation78_spill] sm:$0xff] }
 0x384   : > { %15123 = vst [vmem:[#allocation50_spill] sm:$0xff] %v11210_v60  ;;  %4480 = vmatpush.msrb.mxu1 %v4479_v58  ;;  %4566 = vmatpush.msrb.mxu2 %v11188_v21  ;;  %v11221_v46 = vpop.f32.mrf.mxu0  ;;  %v4497_v58 = vand.u32 4294901760, %v4496_v39  ;;  %9263 = vtanh.f32 %v15137_v54  ;;  %v15143_v54 = vld [vmem:[#allocation75_spill] sm:$0xff] }
 0x385   : > { %15124 = vst [vmem:[#allocation60_spill] sm:$0xff] %v11218_v44  ;;  %4634 = vmatpush.msrb.mxu3 %v11177_v49  ;;  %3825 = vmatmul.f32.gmra.mxu0 %v10859_v14  ;;  %v11228_v0 = vpop.f32.mrf.mxu1  ;;  %v11230_v8 = vpop.f32.mrf.mxu2  ;;  %v4503_v24 = vand.u32 4294901760, %v4502_v56 }
 0x386   : > { %15125 = vst [vmem:[#allocation49_spill] sm:$0xff] %v11221_v46  ;;  %3878 = vmatmul.f32.gmra.mxu1 %v10829_v7  ;;  %4060 = vmatmul.f32.gmra.mxu3 %v10859_v14 }
 0x387   : > { %15126 = vst [vmem:[#allocation58_spill] sm:$0xff] %v11228_v0  ;;  %4486 = vmatpush.msrb.mxu1 %v4485_v4  ;;  %4569 = vmatpush.msrb.mxu2 %v11199_v63 }
 0x388   : > { %15127 = vst [vmem:[#allocation63_spill] sm:$0xff] %v11230_v8  ;;  %3951 = vmatmul.f32.gmra.mxu2 %v10933_v12 }
 0x389   : > { %4492 = vmatpush.msrb.mxu1 %v4491_v9 }
 0x38b   : > { %4498 = vmatpush.msrb.mxu1 %v4497_v58  ;;  %v11239_v45 = vpop.f32.mrf.mxu3 }
 0x38c   : > { %15128 = vst [vmem:[#allocation48_spill] sm:$0xff] %v11239_v45  ;;  %v11241_v60 = vpop.f32.mrf.mxu0 }
 0x38d   : > { %15129 = vst [vmem:[#allocation56_spill] sm:$0xff] %v11241_v60  ;;  %4504 = vmatpush.msrb.mxu1 %v4503_v24  ;;  %3829 = vmatmul.f32.gmra.mxu0 %v10897_v57  ;;  %v11244_v4 = vpop.f32.mrf.mxu1  ;;  %v11246_v28 = vpop.f32.mrf.mxu2 }
 0x38e   : > { %15130 = vst [vmem:[#allocation61_spill] sm:$0xff] %v11244_v4  ;;  %3882 = vmatmul.f32.gmra.mxu1 %v10859_v14  ;;  %4064 = vmatmul.f32.gmra.mxu3 %v10897_v57 }
 0x38f   : > { %15131 = vst [vmem:[#allocation47_spill] sm:$0xff] %v11246_v28  ;;  %v15142_v28 = vld [vmem:[#allocation76_spill] sm:$0xff] }
 0x390   : > { %3959 = vmatmul.f32.gmra.mxu2 %v10974_v51 }
 0x393   : > { %v11251_v39 = vpop.f32.mrf.mxu3 }
 0x394   : > { %15132 = vst [vmem:[#allocation54_spill] sm:$0xff] %v11251_v39  ;;  %v11253_v9 = vpop.f32.mrf.mxu0  ;;  %v15141_v39 = vld [vmem:[#allocation77_spill] sm:$0xff] }
 0x395   : > { %15133 = vst [vmem:[#allocation59_spill] sm:$0xff] %v11253_v9  ;;  %3833 = vmatmul.f32.gmra.mxu0 %v10938_v38  ;;  %v11256_v56 = vpop.f32.mrf.mxu1  ;;  %v11258_v24 = vpop.f32.mrf.mxu2  ;;  %9265 = vtanh.f32 %v15141_v39  ;;  %v15148_v39 = vld [vmem:[#allocation74_spill] sm:$0xff] }
 0x396   : > { %15134 = vst [vmem:[#allocation57_spill] sm:$0xff] %v11256_v56  ;;  %3886 = vmatmul.f32.gmra.mxu1 %v10897_v57  ;;  %4068 = vmatmul.f32.gmra.mxu3 %v10938_v38  ;;  %9267 = vtanh.f32 %v15142_v28 }
 0x397   : > { %15135 = vst [vmem:[#allocation140_spill] sm:$0xff] %v11258_v24  ;;  %9269 = vtanh.f32 %v15143_v54 }
 0x398   : > { %3967 = vmatmul.f32.gmra.mxu2 %v11004_v53  ;;  %9271 = vtanh.f32 %v15148_v39 }
 0x39b   : > { %v11263_v58 = vpop.f32.mrf.mxu3 }
 0x39c   : > { %15136 = vst [vmem:[#allocation141_spill] sm:$0xff] %v11263_v58  ;;  %v11266_v44 = vpop.f32.mrf.mxu0  ;;  %v9264_v58 = vpop.eup %9263 }
 0x39d   : > { %15138 = vst [vmem:[#allocation78_spill] sm:$0xff] %v11266_v44  ;;  %3837 = vmatmul.f32.gmra.mxu0 %v10979_v11  ;;  %v11269_v45 = vpop.f32.mrf.mxu1  ;;  %v11271_v8 = vpop.f32.mrf.mxu2  ;;  %v11283_v46 = vand.u32 4294901760, %v9264_v58 }
 0x39e   : > { %15139 = vst [vmem:[#allocation142_spill] sm:$0xff] %v11269_v45  ;;  %3890 = vmatmul.f32.gmra.mxu1 %v10938_v38  ;;  %4072 = vmatmul.f32.gmra.mxu3 %v10979_v11  ;;  %v9266_v4 = vpop.eup %9265  ;;  %v15149_v45 = vld [vmem:[#allocation73_spill] sm:$0xff] }
 0x39f   : > { %15140 = vst [vmem:[#allocation143_spill] sm:$0xff] %v11271_v8  ;;  %v9268_v28 = vpop.eup %9267  ;;  %v11293_v54 = vand.u32 4294901760, %v9266_v4  ;;  %9273 = vtanh.f32 %v15149_v45  ;;  %v11298_v60 = vsub.f32 %v9264_v58, %v11283_v46 }
 0x3a0   : > { %3975 = vmatmul.f32.gmra.mxu2 %v11032_v34 }
 0x3a1   : > { %15150 = vst [vmem:[#allocation74_spill] sm:$0xff] %v11298_v60  ;;  %v11310_v3 = vsub.f32 %v9266_v4, %v11293_v54 }
 0x3a3   : > { %v11279_v0 = vpop.f32.mrf.mxu3  ;;  %15154 = vst [vmem:[#allocation145_spill] sm:$0xff] %v11310_v3 }
 0x3a4   : > { %15144 = vst [vmem:[#allocation77_spill] sm:$0xff] %v11279_v0  ;;  %v11281_v24 = vpop.f32.mrf.mxu0  ;;  %v9270_v0 = vpop.eup %9269 }
 0x3a5   : > { %15145 = vst [vmem:[#allocation76_spill] sm:$0xff] %v11281_v24  ;;  %3841 = vmatmul.f32.gmra.mxu0 %v11009_v32  ;;  %v11286_v8 = vpop.f32.mrf.mxu1  ;;  %v11288_v56 = vpop.f32.mrf.mxu2  ;;  %v11305_v44 = vand.u32 4294901760, %v9270_v0 }
 0x3a6   : > { %15146 = vst [vmem:[#allocation75_spill] sm:$0xff] %v11286_v8  ;;  %3894 = vmatmul.f32.gmra.mxu1 %v10979_v11  ;;  %4076 = vmatmul.f32.gmra.mxu3 %v11009_v32  ;;  %v11300_v8 = vand.u32 4294901760, %v9268_v28  ;;  %v9272_v9 = vpop.eup %9271 }
 0x3a7   : > { %15147 = vst [vmem:[#allocation144_spill] sm:$0xff] %v11288_v56  ;;  %v15151_v56 = vld [vmem:[#allocation72_spill] sm:$0xff]  ;;  %v11324_v4 = vand.u32 4294901760, %v9272_v9 }
 0x3a8   : > { %3983 = vmatmul.f32.gmra.mxu2 %v11059_v52  ;;  %9275 = vtanh.f32 %v15151_v56  ;;  %v14718_v56 = vand.u32 4294901760, %v11298_v60 }
 0x3a9   : > { %9277 = vtanh.f32 %v15155_v10  ;;  %v14723_v10 = vand.u32 4294901760, %v11310_v3  ;;  %v11340_v12 = vsub.f32 %v9272_v9, %v11324_v4 }
 0x3aa   : > { %v4914_v52 = vsub.f32 %v11298_v60, %v14718_v56 }
 0x3ab   : > { %v11303_v39 = vpop.f32.mrf.mxu3 }
 0x3ac   : > { %15152 = vst [vmem:[#allocation73_spill] sm:$0xff] %v11303_v39  ;;  %v11307_v24 = vpop.f32.mrf.mxu0  ;;  %v11322_v39 = vsub.f32 %v9268_v28, %v11300_v8  ;;  %v4915_v56 = vand.u32 4294901760, %v4914_v52  ;;  %v15163_v52 = vand.u32 4294901760, %v11118_v23 }
 0x3ad   : > { %15153 = vst [vmem:[#allocation72_spill] sm:$0xff] %v11307_v24  ;;  %3845 = vmatmul.f32.gmra.mxu0 %v11037_v33  ;;  %v11314_v45 = vpop.f32.mrf.mxu1  ;;  %v11316_v58 = vpop.f32.mrf.mxu2 }
 0x3ae   : > { %15156 = vst [vmem:[#allocation71_spill] sm:$0xff] %v11314_v45  ;;  %3898 = vmatmul.f32.gmra.mxu1 %v11009_v32  ;;  %4080 = vmatmul.f32.gmra.mxu3 %v11037_v33  ;;  %v9274_v24 = vpop.eup %9273  ;;  %v11329_v45 = vsub.f32 %v9270_v0, %v11305_v44  ;;  %v4920_v0 = vsub.f32 %v11310_v3, %v14723_v10  ;;  %v15161_v9 = vand.u32 4294901760, %v11322_v39 }
 0x3af   : > { %15157 = vst [vmem:[#allocation146_spill] sm:$0xff] %v11316_v58  ;;  %v9276_v58 = vpop.eup %9275  ;;  %v11334_v34 = vand.u32 4294901760, %v9274_v24 }
 0x3b0   : > { %3991 = vmatmul.f32.gmra.mxu2 %v11089_v19  ;;  %v9278_v53 = vpop.eup %9277  ;;  %v11342_v19 = vand.u32 4294901760, %v9276_v58  ;;  %v15164_v3 = vand.u32 4294901760, %v11329_v45 }
 0x3b1   : > { %v11353_v48 = vand.u32 4294901760, %v9278_v53  ;;  %v11363_v6 = vsub.f32 %v9274_v24, %v11334_v34 }
 0x3b3   : > { %v11337_v51 = vpop.f32.mrf.mxu3  ;;  %v14730_v24 = vand.u32 4294901760, %v11363_v6 }
 0x3b4   : > { %15158 = vst [vmem:[#allocation147_spill] sm:$0xff] %v11337_v51  ;;  %v4926_v51 = vsub.f32 %v11322_v39, %v15161_v9  ;;  %v11373_v9 = vsub.f32 %v9276_v58, %v11342_v19 }
 0x3b5   : > { %4118 = vmatmul.f32.vlgmr.msra.gmra.mxu0 %v10818_v15  ;;  %v11349_v60 = vpop.f32.mrf.mxu0  ;;  %v11351_v28 = vpop.f32.mrf.mxu2  ;;  %v4932_v15 = vsub.f32 %v11329_v45, %v15164_v3 }
 0x3b6   : > { %15159 = vst [vmem:[#allocation148_spill] sm:$0xff] %v11349_v60  ;;  %3902 = vmatmul.f32.gmra.mxu1 %v11037_v33  ;;  %4328 = vmatmul.f32.vlgmr.msra.gmra.mxu3 %v10805_v35  ;;  %v11360_v10 = vpop.f32.mrf.mxu1  ;;  %v4921_v60 = vand.u32 4294901760, %v4920_v0  ;;  %v4927_v23 = vand.u32 4294901760, %v4926_v51  ;;  %v15166_v0 = vand.u32 4294901760, %v11135_v50  ;;  %v14729_v58 = vand.u32 4294901760, %v11373_v9 }
 0x3b7   : > { %15160 = vst [vmem:[#allocation149_spill] sm:$0xff] %v11351_v28  ;;  %4695 = vmatpush.msra.mxu0 %v15163_v52  ;;  %4916 = vmatpush.msra.mxu3 %v4915_v56  ;;  %v14731_v28 = vand.u32 4294901760, %v11340_v12  ;;  %v11380_v56 = vsub.f32 %v9278_v53, %v11353_v48  ;;  %v15168_v51 = vand.u32 4294901760, %v11145_v26  ;;  %v4944_v53 = vsub.f32 %v11363_v6, %v14730_v24 }
 0x3b8   : > { %15162 = vst [vmem:[#allocation150_spill] sm:$0xff] %v11360_v10  ;;  %4271 = vmatmul.f32.vlgmr.msra.gmra.mxu2 %v10805_v35  ;;  %v15165_v10 = vand.u32 4294901760, %v11125_v29  ;;  %v4933_v29 = vand.u32 4294901760, %v4932_v15  ;;  %v15171_v52 = vand.u32 4294901760, %v11161_v20 }
 0x3b9   : > { %4823 = vmatpush.msra.mxu2 %v11283_v46  ;;  %4922 = vmatpush.msra.mxu3 %v4921_v60  ;;  %v4938_v3 = vsub.f32 %v11340_v12, %v14731_v28  ;;  %v14728_v50 = vand.u32 4294901760, %v11380_v56 }
 0x3ba   : > { %4699 = vmatpush.msra.mxu0 %v15165_v10 }
 0x3bb   : > { %4825 = vmatpush.msra.mxu2 %v11293_v54  ;;  %4928 = vmatpush.msra.mxu3 %v4927_v23  ;;  %v4939_v15 = vand.u32 4294901760, %v4938_v3  ;;  %v4950_v23 = vsub.f32 %v11373_v9, %v14729_v58  ;;  %v15173_v3 = vand.u32 4294901760, %v11175_v40  ;;  %v4956_v20 = vsub.f32 %v11380_v56, %v14728_v50 }
 0x3bc   : > { %4703 = vmatpush.msra.mxu0 %v15166_v0  ;;  %v11389_v60 = vpop.f32.mrf.mxu3  ;;  %v15175_v40 = vand.u32 4294901760, %v11199_v63 }
 0x3bd   : > { %15167 = vst [vmem:[#allocation151_spill] sm:$0xff] %v11389_v60  ;;  %4827 = vmatpush.msra.mxu2 %v11300_v8  ;;  %4934 = vmatpush.msra.mxu3 %v4933_v29  ;;  %v4945_v29 = vand.u32 4294901760, %v4944_v53  ;;  %v4957_v53 = vand.u32 4294901760, %v4956_v20 }
 0x3be   : > { %4707 = vmatpush.msra.mxu0 %v15168_v51  ;;  %4184 = vmatmul.f32.vlgmr.msra.gmra.mxu1 %v10827_v18  ;;  %v4951_v51 = vand.u32 4294901760, %v4950_v23 }
 0x3bf   : > { %4123 = vmatmul.f32.gmra.mxu0 %v10845_v41  ;;  %4332 = vmatmul.f32.gmra.mxu3 %v10829_v7  ;;  %v11401_v10 = vpop.f32.mrf.mxu0  ;;  %v11403_v26 = vpop.f32.mrf.mxu2 }
 0x3c0   : > { %15169 = vst [vmem:[#allocation152_spill] sm:$0xff] %v11401_v10  ;;  %4711 = vmatpush.msra.mxu0 %v15171_v52  ;;  %4766 = vmatpush.msra.mxu1 %v11106_v13  ;;  %v11411_v0 = vpop.f32.mrf.mxu1  ;;  %v15174_v13 = vand.u32 4294901760, %v11188_v21  ;;  %v15264_v10 = vld [vmem:[#allocation80_spill] sm:$0xff] }
 0x3c1   : > { %15170 = vst [vmem:[#allocation153_spill] sm:$0xff] %v11403_v26  ;;  %4829 = vmatpush.msra.mxu2 %v11305_v44  ;;  %4940 = vmatpush.msra.mxu3 %v4939_v15 }
 0x3c2   : > { %15172 = vst [vmem:[#allocation154_spill] sm:$0xff] %v11411_v0  ;;  %4275 = vmatmul.f32.gmra.mxu2 %v10829_v7  ;;  %4715 = vmatpush.msra.mxu0 %v15173_v3  ;;  %v15207_v0 = vld [vmem:[#allocation145_spill] sm:$0xff] }
 0x3c3   : > { %4768 = vmatpush.msra.mxu1 %v11115_v1  ;;  %4831 = vmatpush.msra.mxu2 %v11324_v4 }
 0x3c4   : > { %4946 = vmatpush.msra.mxu3 %v4945_v29  ;;  %4719 = vmatpush.msra.mxu0 %v15174_v13 }
 0x3c5   : > { %4770 = vmatpush.msra.mxu1 %v11121_v47  ;;  %4833 = vmatpush.msra.mxu2 %v11334_v34 }
 0x3c6   : > { %4952 = vmatpush.msra.mxu3 %v4951_v51  ;;  %4723 = vmatpush.msra.mxu0 %v15175_v40  ;;  %v11428_v15 = vpop.f32.mrf.mxu3 }
 0x3c7   : > { %15176 = vst [vmem:[#allocation155_spill] sm:$0xff] %v11428_v15  ;;  %4772 = vmatpush.msra.mxu1 %v11127_v42  ;;  %4835 = vmatpush.msra.mxu2 %v11342_v19  ;;  %v11432_v1 = vpop.f32.mrf.mxu0 }
 0x3c8   : > { %15177 = vst [vmem:[#allocation156_spill] sm:$0xff] %v11432_v1  ;;  %4958 = vmatpush.msra.mxu3 %v4957_v53  ;;  %4128 = vmatmul.f32.gmra.mxu0 %v10879_v22  ;;  %v11435_v21 = vpop.f32.mrf.mxu1  ;;  %v11437_v47 = vpop.f32.mrf.mxu2 }
 0x3c9   : > { %15178 = vst [vmem:[#allocation157_spill] sm:$0xff] %v11435_v21  ;;  %4190 = vmatmul.f32.gmra.mxu1 %v10855_v59  ;;  %4336 = vmatmul.f32.gmra.mxu3 %v10859_v14  ;;  %v11629_v21 = vpop.permute.xlu2 %3424 }
 0x3ca   : > { %15179 = vst [vmem:[#allocation158_spill] sm:$0xff] %v11437_v47  ;;  %4774 = vmatpush.msra.mxu1 %v11138_v25  ;;  %4837 = vmatpush.msra.mxu2 %v11353_v48 }
 0x3cb   : > { %4279 = vmatmul.f32.gmra.mxu2 %v10859_v14 }
 0x3cc   : > { %4776 = vmatpush.msra.mxu1 %v11152_v61 }
 0x3ce   : > { %4778 = vmatpush.msra.mxu1 %v11163_v55  ;;  %v11446_v42 = vpop.f32.mrf.mxu3 }
 0x3cf   : > { %15180 = vst [vmem:[#allocation159_spill] sm:$0xff] %v11446_v42  ;;  %v11448_v63 = vpop.f32.mrf.mxu0 }
 0x3d0   : > { %15181 = vst [vmem:[#allocation160_spill] sm:$0xff] %v11448_v63  ;;  %4780 = vmatpush.msra.mxu1 %v11177_v49  ;;  %4133 = vmatmul.f32.gmra.mxu0 %v10920_v16  ;;  %v11452_v52 = vpop.f32.mrf.mxu1  ;;  %v11454_v23 = vpop.f32.mrf.mxu2 }
 0x3d1   : > { %15182 = vst [vmem:[#allocation161_spill] sm:$0xff] %v11452_v52  ;;  %4196 = vmatmul.f32.gmra.mxu1 %v10895_v30  ;;  %4340 = vmatmul.f32.gmra.mxu3 %v10897_v57 }
 0x3d2   : > { %15183 = vst [vmem:[#allocation162_spill] sm:$0xff] %v11454_v23  ;;  %v15206_v23 = vld [vmem:[#allocation108_spill] sm:$0xff] }
 0x3d3   : > { %4283 = vmatmul.f32.gmra.mxu2 %v10897_v57 }
 0x3d6   : > { %v11459_v61 = vpop.f32.mrf.mxu3 }
 0x3d7   : > { %15184 = vst [vmem:[#allocation163_spill] sm:$0xff] %v11459_v61  ;;  %v11461_v25 = vpop.f32.mrf.mxu0  ;;  %v15205_v61 = vld [vmem:[#allocation74_spill] sm:$0xff] }
 0x3d8   : > { %15185 = vst [vmem:[#allocation164_spill] sm:$0xff] %v11461_v25  ;;  %4138 = vmatmul.f32.gmra.mxu0 %v10964_v27  ;;  %v11464_v55 = vpop.f32.mrf.mxu1  ;;  %v11466_v49 = vpop.f32.mrf.mxu2 }
 0x3d9   : > { %15186 = vst [vmem:[#allocation165_spill] sm:$0xff] %v11464_v55  ;;  %4202 = vmatmul.f32.gmra.mxu1 %v10936_v37  ;;  %4344 = vmatmul.f32.gmra.mxu3 %v10938_v38 }
 0x3da   : > { %15187 = vst [vmem:[#allocation166_spill] sm:$0xff] %v11466_v49 }
 0x3db   : > { %4287 = vmatmul.f32.gmra.mxu2 %v10938_v38 }
 0x3de   : > { %v11471_v3 = vpop.f32.mrf.mxu3 }
 0x3df   : > { %15188 = vst [vmem:[#allocation167_spill] sm:$0xff] %v11471_v3  ;;  %v11473_v29 = vpop.f32.mrf.mxu0 }
 0x3e0   : > { %15189 = vst [vmem:[#allocation168_spill] sm:$0xff] %v11473_v29  ;;  %4143 = vmatmul.f32.gmra.mxu0 %v10998_v31  ;;  %v11476_v20 = vpop.f32.mrf.mxu1  ;;  %v11478_v13 = vpop.f32.mrf.mxu2 }
 0x3e1   : > { %15190 = vst [vmem:[#allocation169_spill] sm:$0xff] %v11476_v20  ;;  %4208 = vmatmul.f32.gmra.mxu1 %v10977_v5  ;;  %4348 = vmatmul.f32.gmra.mxu3 %v10979_v11 }
 0x3e2   : > { %15191 = vst [vmem:[#allocation170_spill] sm:$0xff] %v11478_v13 }
 0x3e3   : > { %4291 = vmatmul.f32.gmra.mxu2 %v10979_v11 }
 0x3e6   : > { %v11483_v51 = vpop.f32.mrf.mxu3 }
 0x3e7   : > { %15192 = vst [vmem:[#allocation171_spill] sm:$0xff] %v11483_v51  ;;  %v11485_v40 = vpop.f32.mrf.mxu0 }
 0x3e8   : > { %15193 = vst [vmem:[#allocation172_spill] sm:$0xff] %v11485_v40  ;;  %4148 = vmatmul.f32.gmra.mxu0 %v11026_v36  ;;  %v11488_v53 = vpop.f32.mrf.mxu1  ;;  %v11490_v50 = vpop.f32.mrf.mxu2 }
 0x3e9   : > { %15194 = vst [vmem:[#allocation173_spill] sm:$0xff] %v11488_v53  ;;  %4214 = vmatmul.f32.gmra.mxu1 %v11007_v43  ;;  %4352 = vmatmul.f32.gmra.mxu3 %v11009_v32 }
 0x3ea   : > { %15195 = vst [vmem:[#allocation174_spill] sm:$0xff] %v11490_v50 }
 0x3eb   : > { %4295 = vmatmul.f32.gmra.mxu2 %v11009_v32 }
 0x3ee   : > { %v11495_v58 = vpop.f32.mrf.mxu3 }
 0x3ef   : > { %15196 = vst [vmem:[#allocation175_spill] sm:$0xff] %v11495_v58  ;;  %v11497_v24 = vpop.f32.mrf.mxu0  ;;  %v15267_v58 = vld [vmem:[#allocation64_spill] sm:$0xff] }
 0x3f0   : > { %15197 = vst [vmem:[#allocation176_spill] sm:$0xff] %v11497_v24  ;;  %4153 = vmatmul.f32.gmra.mxu0 %v11051_v17  ;;  %v11500_v28 = vpop.f32.mrf.mxu1  ;;  %v11502_v60 = vpop.f32.mrf.mxu2  ;;  %v15203_v24 = vld [vmem:[#allocation68_spill] sm:$0xff] }
 0x3f1   : > { %15198 = vst [vmem:[#allocation177_spill] sm:$0xff] %v11500_v28  ;;  %4220 = vmatmul.f32.gmra.mxu1 %v11035_v2  ;;  %4356 = vmatmul.f32.gmra.mxu3 %v11037_v33 }
 0x3f2   : > { %15199 = vst [vmem:[#allocation178_spill] sm:$0xff] %v11502_v60 }
 0x3f3   : > { %4299 = vmatmul.f32.gmra.mxu2 %v11037_v33 }
 0x3f6   : > { %v11507_v15 = vpop.f32.mrf.mxu3 }
 0x3f7   : > { %15200 = vst [vmem:[#allocation179_spill] sm:$0xff] %v11507_v15  ;;  %v15208_v15 = vand.u32 4294901760, %v15205_v61 }
 0x3f8   : > { %4389 = vmatmul.f32.vlgmr.msrb.gmra.mxu0 %v10851_v62  ;;  %v11510_v42 = vpop.f32.mrf.mxu0  ;;  %v11512_v26 = vpop.f32.mrf.mxu2 }
 0x3f9   : > { %15201 = vst [vmem:[#allocation180_spill] sm:$0xff] %v11510_v42  ;;  %4226 = vmatmul.f32.gmra.mxu1 %v15203_v24  ;;  %4638 = vmatmul.f32.vlgmr.msrb.gmra.mxu3 %v10827_v18  ;;  %v11516_v47 = vpop.f32.mrf.mxu1  ;;  %v15210_v42 = vand.u32 4294901760, %v11322_v39 }
 0x3fa   : > { %15202 = vst [vmem:[#allocation181_spill] sm:$0xff] %v11512_v26  ;;  %5002 = vmatpush.msrb.mxu0 %v15205_v61  ;;  %5220 = vmatpush.msrb.mxu3 %v11283_v46  ;;  %v15209_v26 = vand.u32 4294901760, %v15207_v0  ;;  %v15211_v61 = vld [vmem:[#allocation20_spill] sm:$0xff] }
 0x3fb   : > { %15204 = vst [vmem:[#allocation182_spill] sm:$0xff] %v11516_v47  ;;  %4572 = vmatmul.f32.vlgmr.msrb.gmra.mxu2 %v15206_v23 }
 0x3fc   : > { %5005 = vmatpush.msrb.mxu0 %v15207_v0  ;;  %5149 = vmatpush.msrb.mxu2 %v15208_v15 }
 0x3fd   : > { %5222 = vmatpush.msrb.mxu3 %v11293_v54 }
 0x3fe   : > { %5008 = vmatpush.msrb.mxu0 %v11322_v39  ;;  %5153 = vmatpush.msrb.mxu2 %v15209_v26  ;;  %v15214_v39 = vand.u32 4294901760, %v11329_v45 }
 0x3ff   : > { %5224 = vmatpush.msrb.mxu3 %v11300_v8  ;;  %v11529_v47 = vpop.f32.mrf.mxu3 }
 0x400   : > { %5011 = vmatpush.msrb.mxu0 %v11329_v45  ;;  %5157 = vmatpush.msrb.mxu2 %v15210_v42  ;;  %v15215_v42 = vand.u32 4294901760, %v11340_v12 }
 0x401   : > { %5226 = vmatpush.msrb.mxu3 %v11305_v44  ;;  %4397 = vmatmul.f32.gmra.mxu0 %v15211_v61 }
 0x402   : > { %4506 = vmatmul.f32.vlgmr.msrb.gmra.mxu1 %v10805_v35  ;;  %4644 = vmatmul.f32.gmra.mxu3 %v10855_v59  ;;  %v11538_v15 = vpop.f32.mrf.mxu0  ;;  %v11540_v26 = vpop.f32.mrf.mxu2 }
 0x403   : > { %15212 = vst [vmem:[#allocation74_spill] sm:$0xff] %v11538_v15  ;;  %5014 = vmatpush.msrb.mxu0 %v11340_v12  ;;  %5074 = vmatpush.msrb.mxu1 %v11283_v46  ;;  %v11544_v0 = vpop.f32.mrf.mxu1  ;;  %v15216_v46 = vand.u32 4294901760, %v11363_v6  ;;  %v15218_v12 = vand.u32 4294901760, %v11373_v9 }
 0x404   : > { %15213 = vst [vmem:[#allocation145_spill] sm:$0xff] %v11544_v0  ;;  %5161 = vmatpush.msrb.mxu2 %v15214_v39  ;;  %5228 = vmatpush.msrb.mxu3 %v11324_v4  ;;  %v15220_v39 = vld [vmem:[#allocation114_spill] sm:$0xff]  ;;  %v15240_v0 = vld [vmem:[#allocation23_spill] sm:$0xff] }
 0x405   : > { %4577 = vmatmul.f32.gmra.mxu2 %v10845_v41  ;;  %5017 = vmatpush.msrb.mxu0 %v11363_v6  ;;  %15248 = vst [vmem:[#allocation23_spill] sm:$0xff] %v11629_v21 }
 0x406   : > { %5076 = vmatpush.msrb.mxu1 %v11293_v54  ;;  %5165 = vmatpush.msrb.mxu2 %v15215_v42 }
 0x407   : > { %5230 = vmatpush.msrb.mxu3 %v11334_v34  ;;  %5020 = vmatpush.msrb.mxu0 %v11373_v9 }
 0x408   : > { %5078 = vmatpush.msrb.mxu1 %v11300_v8  ;;  %5169 = vmatpush.msrb.mxu2 %v15216_v46  ;;  %v15226_v46 = vld [vmem:[#allocation119_spill] sm:$0xff] }
 0x409   : > { %5232 = vmatpush.msrb.mxu3 %v11342_v19  ;;  %5023 = vmatpush.msrb.mxu0 %v11380_v56  ;;  %v11561_v45 = vpop.f32.mrf.mxu3 }
 0x40a   : > { %15217 = vst [vmem:[#allocation183_spill] sm:$0xff] %v11561_v45  ;;  %5080 = vmatpush.msrb.mxu1 %v11305_v44  ;;  %5173 = vmatpush.msrb.mxu2 %v15218_v12  ;;  %v11566_v54 = vpop.f32.mrf.mxu0  ;;  %v15223_v44 = vand.u32 4294901760, %v11380_v56  ;;  %v15231_v56 = vld [vmem:[#allocation126_spill] sm:$0xff] }
 0x40b   : > { %15219 = vst [vmem:[#allocation184_spill] sm:$0xff] %v11566_v54  ;;  %5234 = vmatpush.msrb.mxu3 %v11353_v48  ;;  %4405 = vmatmul.f32.gmra.mxu0 %v15220_v39  ;;  %v11570_v8 = vpop.f32.mrf.mxu1  ;;  %v11572_v6 = vpop.f32.mrf.mxu2  ;;  %v15243_v54 = vld [vmem:[#allocation24_spill] sm:$0xff] }
 0x40c   : > { %15221 = vst [vmem:[#allocation185_spill] sm:$0xff] %v11570_v8  ;;  %4510 = vmatmul.f32.gmra.mxu1 %v10829_v7  ;;  %4650 = vmatmul.f32.gmra.mxu3 %v10895_v30 }
 0x40d   : > { %15222 = vst [vmem:[#allocation186_spill] sm:$0xff] %v11572_v6  ;;  %5082 = vmatpush.msrb.mxu1 %v11324_v4  ;;  %5177 = vmatpush.msrb.mxu2 %v15223_v44  ;;  %v15236_v6 = vld [vmem:[#allocation133_spill] sm:$0xff] }
 0x40e   : > { %4582 = vmatmul.f32.gmra.mxu2 %v10879_v22 }
 0x40f   : > { %5084 = vmatpush.msrb.mxu1 %v11334_v34 }
 0x411   : > { %5086 = vmatpush.msrb.mxu1 %v11342_v19  ;;  %v11582_v9 = vpop.f32.mrf.mxu3 }
 0x412   : > { %15224 = vst [vmem:[#allocation187_spill] sm:$0xff] %v11582_v9  ;;  %v11584_v42 = vpop.f32.mrf.mxu0 }
 0x413   : > { %15225 = vst [vmem:[#allocation188_spill] sm:$0xff] %v11584_v42  ;;  %5088 = vmatpush.msrb.mxu1 %v11353_v48  ;;  %4413 = vmatmul.f32.gmra.mxu0 %v15226_v46  ;;  %v11588_v12 = vpop.f32.mrf.mxu1  ;;  %v11590_v4 = vpop.f32.mrf.mxu2 }
 0x414   : > { %15227 = vst [vmem:[#allocation189_spill] sm:$0xff] %v11588_v12  ;;  %4514 = vmatmul.f32.gmra.mxu1 %v10859_v14  ;;  %4656 = vmatmul.f32.gmra.mxu3 %v10936_v37  ;;  %v15241_v12 = vld [vmem:[#allocation38_spill] sm:$0xff] }
 0x415   : > { %15228 = vst [vmem:[#allocation190_spill] sm:$0xff] %v11590_v4 }
 0x416   : > { %4587 = vmatmul.f32.gmra.mxu2 %v10920_v16 }
 0x419   : > { %v11595_v34 = vpop.f32.mrf.mxu3 }
 0x41a   : > { %15229 = vst [vmem:[#allocation191_spill] sm:$0xff] %v11595_v34  ;;  %v11597_v19 = vpop.f32.mrf.mxu0 }
 0x41b   : > { %15230 = vst [vmem:[#allocation192_spill] sm:$0xff] %v11597_v19  ;;  %4421 = vmatmul.f32.gmra.mxu0 %v15231_v56  ;;  %v11600_v44 = vpop.f32.mrf.mxu1  ;;  %v11602_v48 = vpop.f32.mrf.mxu2  ;;  %v15245_v19 = vld [vmem:[#allocation84_spill] sm:$0xff] }
 0x41c   : > { %15232 = vst [vmem:[#allocation193_spill] sm:$0xff] %v11600_v44  ;;  %4518 = vmatmul.f32.gmra.mxu1 %v10897_v57  ;;  %4662 = vmatmul.f32.gmra.mxu3 %v10977_v5 }
 0x41d   : > { %15233 = vst [vmem:[#allocation194_spill] sm:$0xff] %v11602_v48  ;;  %v15239_v48 = vld [vmem:[#allocation87_spill] sm:$0xff] }
 0x41e   : > { %4592 = vmatmul.f32.gmra.mxu2 %v10964_v27  ;;  %v2166_v8 = vadd.f32 %v15240_v0, %v15239_v48  ;;  %v15250_v0 = vld [vmem:[#allocation55_spill] sm:$0xff] }
 0x420   : > { %v2216_v15 = vadd.f32 %v15241_v12, %v2166_v8  ;;  %v15253_v12 = vld [vmem:[#allocation83_spill] sm:$0xff] }
 0x421   : > { %v11607_v45 = vpop.f32.mrf.mxu3 }
 0x422   : > { %15234 = vst [vmem:[#allocation195_spill] sm:$0xff] %v11607_v45  ;;  %v11609_v9 = vpop.f32.mrf.mxu0  ;;  %v15242_v45 = vld [vmem:[#allocation85_spill] sm:$0xff]  ;;  %9279 = vtanh.f32 %v2216_v15  ;;  %v15257_v15 = vld [vmem:[#allocation82_spill] sm:$0xff] }
 0x423   : > { %15235 = vst [vmem:[#allocation196_spill] sm:$0xff] %v11609_v9  ;;  %4429 = vmatmul.f32.gmra.mxu0 %v15236_v6  ;;  %v11612_v34 = vpop.f32.mrf.mxu1  ;;  %v11614_v4 = vpop.f32.mrf.mxu2  ;;  %v2162_v44 = vadd.f32 %v15243_v54, %v15242_v45  ;;  %v15254_v45 = vld [vmem:[#allocation94_spill] sm:$0xff] }
 0x424   : > { %15237 = vst [vmem:[#allocation197_spill] sm:$0xff] %v11612_v34  ;;  %4522 = vmatmul.f32.gmra.mxu1 %v10938_v38  ;;  %4668 = vmatmul.f32.gmra.mxu3 %v11007_v43  ;;  %v15246_v34 = vld [vmem:[#allocation96_spill] sm:$0xff]  ;;  %v2154_v54 = vadd.f32 %v15254_v45, %v15253_v12  ;;  %v15261_v12 = vld [vmem:[#allocation95_spill] sm:$0xff] }
 0x425   : > { %15238 = vst [vmem:[#allocation198_spill] sm:$0xff] %v11614_v4  ;;  %v2158_v9 = vadd.f32 %v15246_v34, %v15245_v19  ;;  %v15247_v4 = vld [vmem:[#allocation34_spill] sm:$0xff]  ;;  %v15258_v19 = vld [vmem:[#allocation92_spill] sm:$0xff] }
 0x426   : > { %4597 = vmatmul.f32.gmra.mxu2 %v10998_v31  ;;  %v2212_v3 = vadd.f32 %v15247_v4, %v2162_v44  ;;  %v15256_v4 = vld [vmem:[#allocation97_spill] sm:$0xff]  ;;  %v2150_v44 = vadd.f32 %v15258_v19, %v15257_v15 }
 0x427   : > { %v2204_v34 = vadd.f32 %v15256_v4, %v2154_v54  ;;  %v15265_v54 = vld [vmem:[#allocation88_spill] sm:$0xff]  ;;  %v15266_v4 = vld [vmem:[#allocation93_spill] sm:$0xff] }
 0x428   : > { %9281 = vtanh.f32 %v2212_v3  ;;  %v2200_v45 = vadd.f32 %v15261_v12, %v2150_v44  ;;  %v2142_v3 = vadd.f32 %v15265_v54, %v15264_v10  ;;  %v15272_v44 = vld [vmem:[#allocation86_spill] sm:$0xff]  ;;  %v15273_v12 = vld [vmem:[#allocation91_spill] sm:$0xff] }
 0x429   : > { %v11624_v42 = vpop.f32.mrf.mxu3 }
 0x42a   : > { %15244 = vst [vmem:[#allocation87_spill] sm:$0xff] %v11624_v42  ;;  %v11631_v51 = vpop.f32.mrf.mxu0  ;;  %v15255_v42 = vld [vmem:[#allocation36_spill] sm:$0xff] }
 0x42b   : > { %15249 = vst [vmem:[#allocation38_spill] sm:$0xff] %v11631_v51  ;;  %4437 = vmatmul.f32.gmra.mxu0 %v15250_v0  ;;  %v11634_v48 = vpop.f32.mrf.mxu1  ;;  %v11636_v8 = vpop.f32.mrf.mxu2  ;;  %v2208_v49 = vadd.f32 %v15255_v42, %v2158_v9  ;;  %v15260_v51 = vld [vmem:[#allocation90_spill] sm:$0xff] }
 0x42c   : > { %15251 = vst [vmem:[#allocation85_spill] sm:$0xff] %v11634_v48  ;;  %4526 = vmatmul.f32.gmra.mxu1 %v10979_v11  ;;  %4674 = vmatmul.f32.gmra.mxu3 %v11035_v2  ;;  %v9280_v48 = vpop.eup %9279 }
 0x42d   : > { %15252 = vst [vmem:[#allocation24_spill] sm:$0xff] %v11636_v8  ;;  %9283 = vtanh.f32 %v2208_v49  ;;  %v15259_v8 = vld [vmem:[#allocation81_spill] sm:$0xff] }
 0x42e   : > { %4602 = vmatmul.f32.gmra.mxu2 %v11026_v36  ;;  %v2146_v52 = vadd.f32 %v15260_v51, %v15259_v8  ;;  %9285 = vtanh.f32 %v2204_v34  ;;  %v9282_v19 = vpop.eup %9281  ;;  %v11662_v51 = vpop.permute.xlu2 %3409  ;;  %v11666_v8 = vand.u32 4294901760, %v9280_v48  ;;  %v15271_v34 = vld [vmem:[#allocation79_spill] sm:$0xff] }
 0x42f   : > { %15270 = vst [vmem:[#allocation94_spill] sm:$0xff] %v11662_v51  ;;  %v2138_v10 = vadd.f32 %v15272_v44, %v15271_v34  ;;  %9287 = vtanh.f32 %v2200_v45 }
 0x430   : > { %v2196_v13 = vadd.f32 %v15266_v4, %v2146_v52  ;;  %v2192_v52 = vadd.f32 %v15273_v12, %v2142_v3  ;;  %v15274_v4 = vld [vmem:[#allocation89_spill] sm:$0xff] }
 0x431   : > { %v11650_v9 = vpop.f32.mrf.mxu3 }
 0x432   : > { %15262 = vst [vmem:[#allocation84_spill] sm:$0xff] %v11650_v9  ;;  %v11652_v42 = vpop.f32.mrf.mxu0  ;;  %9289 = vtanh.f32 %v2196_v13  ;;  %v11673_v9 = vand.u32 4294901760, %v9282_v19 }
 0x433   : > { %15263 = vst [vmem:[#allocation96_spill] sm:$0xff] %v11652_v42  ;;  %4445 = vmatmul.f32.gmra.mxu0 %v15267_v58  ;;  %v11658_v15 = vpop.f32.mrf.mxu1  ;;  %v11660_v49 = vpop.f32.mrf.mxu2  ;;  %v2188_v42 = vadd.f32 %v15274_v4, %v2138_v10  ;;  %9291 = vtanh.f32 %v2192_v52 }
 0x434   : > { %15268 = vst [vmem:[#allocation34_spill] sm:$0xff] %v11658_v15  ;;  %4530 = vmatmul.f32.gmra.mxu1 %v11009_v32  ;;  %4680 = vmatmul.f32.gmra.mxu3 %v15203_v24  ;;  %v9284_v54 = vpop.eup %9283  ;;  %v11676_v15 = vsub.f32 %v9280_v48, %v11666_v8  ;;  %v11684_v45 = vsub.f32 %v9282_v19, %v11673_v9 }
 0x435   : > { %15269 = vst [vmem:[#allocation83_spill] sm:$0xff] %v11660_v49  ;;  %v9286_v49 = vpop.eup %9285  ;;  %v11678_v1 = vand.u32 4294901760, %v9284_v54  ;;  %9293 = vtanh.f32 %v2188_v42 }
 0x436   : > { %4607 = vmatmul.f32.gmra.mxu2 %v11051_v17  ;;  %v9288_v34 = vpop.eup %9287  ;;  %v11688_v44 = vand.u32 4294901760, %v9286_v49  ;;  %v11700_v19 = vpop.permute.xlu2 %3394 }
 0x437   : > { %v11698_v42 = vsub.f32 %v9284_v54, %v11678_v1  ;;  %15278 = vst [vmem:[#allocation92_spill] sm:$0xff] %v11700_v19  ;;  %v11703_v52 = vand.u32 4294901760, %v9288_v34 }
 0x438   : > { %v9290_v12 = vpop.eup %9289  ;;  %v11710_v10 = vsub.f32 %v9286_v49, %v11688_v44 }
 0x439   : > { %v11680_v50 = vpop.f32.mrf.mxu3  ;;  %v9292_v4 = vpop.eup %9291  ;;  %v11717_v55 = vand.u32 4294901760, %v9290_v12  ;;  %v11724_v49 = vsub.f32 %v9288_v34, %v11703_v52 }
 0x43a   : > { %15275 = vst [vmem:[#allocation36_spill] sm:$0xff] %v11680_v50  ;;  %v3945_v50 = vadd.f32 %v11540_v26, %v11700_v19  ;;  %v11726_v54 = vand.u32 4294901760, %v9292_v4  ;;  %v15317_v19 = vld [vmem:[#allocation22_spill] sm:$0xff] }
 0x43b   : > { %4725 = vmatmul.f32.vlgmr.msra.gmra.mxu0 %v10805_v35  ;;  %v11686_v13 = vpop.f32.mrf.mxu2  ;;  %v11692_v48 = vpop.f32.mrf.mxu1  ;;  %v11738_v53 = vsub.f32 %v9290_v12, %v11717_v55 }
 0x43c   : > { %v4124_v3 = vpop.f32.mrf.mxu0  ;;  %15276 = vst [vmem:[#allocation97_spill] sm:$0xff] %v11686_v13  ;;  %4534 = vmatmul.f32.gmra.mxu1 %v11037_v33  ;;  %4960 = vmatmul.f32.vlgmr.msra.gmra.mxu3 %v10805_v35  ;;  %v15279_v13 = vand.u32 4294901760, %v11676_v15  ;;  %v9294_v20 = vpop.eup %9293  ;;  %v4058_v51 = vadd.f32 %v11529_v47, %v3945_v50  ;;  %v15281_v47 = vand.u32 4294901760, %v11698_v42  ;;  %v11751_v12 = vsub.f32 %v9292_v4, %v11726_v54 }
 0x43d   : > { %15277 = vst [vmem:[#allocation82_spill] sm:$0xff] %v11692_v48  ;;  %5277 = vmatpush.msra.mxu0 %v11666_v8  ;;  %5528 = vmatpush.msra.mxu3 %v11666_v8  ;;  %v11740_v25 = vand.u32 4294901760, %v9294_v20  ;;  %v14734_v4 = vand.u32 4294901760, %v11738_v53 }
 0x43e   : > { %4843 = vmatmul.f32.vlgmr.msra.gmra.mxu2 %v10851_v62  ;;  %v5368_v48 = vsub.f32 %v11676_v15, %v15279_v13  ;;  %v15280_v13 = vand.u32 4294901760, %v11684_v45  ;;  %v4125_v50 = vadd.f32 %v4124_v3, %v4058_v51 }
 0x43f   : > { %5279 = vmatpush.msra.mxu0 %v11673_v9  ;;  %5456 = vmatpush.msra.mxu2 %v11676_v15 }
 0x440   : > { %5530 = vmatpush.msra.mxu3 %v11673_v9  ;;  %v5374_v60 = vsub.f32 %v11684_v45, %v15280_v13  ;;  %v5369_v34 = vand.u32 4294901760, %v5368_v48  ;;  %v5380_v13 = vsub.f32 %v11698_v42, %v15281_v47  ;;  %v15283_v47 = vand.u32 4294901760, %v11710_v10 }
 0x441   : > { %5281 = vmatpush.msra.mxu0 %v11678_v1  ;;  %5459 = vmatpush.msra.mxu2 %v11684_v45 }
 0x442   : > { %5532 = vmatpush.msra.mxu3 %v11678_v1  ;;  %v4333_v63 = vpop.f32.mrf.mxu3  ;;  %v5375_v3 = vand.u32 4294901760, %v5374_v60  ;;  %v5381_v51 = vand.u32 4294901760, %v5380_v13  ;;  %v15284_v60 = vand.u32 4294901760, %v11724_v49 }
 0x443   : > { %5283 = vmatpush.msra.mxu0 %v11688_v44  ;;  %5462 = vmatpush.msra.mxu2 %v11698_v42 }
 0x444   : > { %5534 = vmatpush.msra.mxu3 %v11688_v44  ;;  %4729 = vmatmul.f32.gmra.mxu0 %v10829_v7 }
 0x445   : > { %4782 = vmatmul.f32.vlgmr.msra.gmra.mxu1 %v10805_v35  ;;  %4964 = vmatmul.f32.gmra.mxu3 %v10829_v7  ;;  %v11747_v26 = vpop.f32.mrf.mxu0  ;;  %v4276_v29 = vpop.f32.mrf.mxu2 }
 0x446   : > { %15282 = vst [vmem:[#allocation81_spill] sm:$0xff] %v11747_v26  ;;  %5285 = vmatpush.msra.mxu0 %v11703_v52  ;;  %5370 = vmatpush.msra.mxu1 %v5369_v34  ;;  %v4191_v48 = vpop.f32.mrf.mxu1  ;;  %v5386_v26 = vsub.f32 %v11710_v10, %v15283_v47  ;;  %v11762_v34 = vsub.f32 %v9294_v20, %v11740_v25 }
 0x447   : > { %5465 = vmatpush.msra.mxu2 %v11710_v10  ;;  %5536 = vmatpush.msra.mxu3 %v11703_v52  ;;  %v4192_v28 = vadd.f32 %v4191_v48, %v4125_v50  ;;  %v5392_v50 = vsub.f32 %v11724_v49, %v15284_v60  ;;  %v14733_v48 = vand.u32 4294901760, %v11751_v12 }
 0x448   : > { %4851 = vmatmul.f32.gmra.mxu2 %v15211_v61  ;;  %5287 = vmatpush.msra.mxu0 %v11717_v55  ;;  %v5387_v20 = vand.u32 4294901760, %v5386_v26 }
 0x449   : > { %5376 = vmatpush.msra.mxu1 %v5375_v3  ;;  %5468 = vmatpush.msra.mxu2 %v11724_v49  ;;  %v4277_v40 = vadd.f32 %v4276_v29, %v4192_v28  ;;  %v5398_v28 = vsub.f32 %v11738_v53, %v14734_v4  ;;  %v14735_v29 = vand.u32 4294901760, %v11762_v34 }
 0x44a   : > { %5538 = vmatpush.msra.mxu3 %v11717_v55  ;;  %5289 = vmatpush.msra.mxu0 %v11726_v54 }
 0x44b   : > { %5382 = vmatpush.msra.mxu1 %v5381_v51  ;;  %5471 = vmatpush.msra.mxu2 %v11738_v53  ;;  %v11773_v47 = vadd.f32 %v4333_v63, %v4277_v40  ;;  %v5393_v63 = vand.u32 4294901760, %v5392_v50  ;;  %v5404_v40 = vsub.f32 %v11751_v12, %v14733_v48  ;;  %v5399_v60 = vand.u32 4294901760, %v5398_v28 }
 0x44c   : > { %5540 = vmatpush.msra.mxu3 %v11726_v54  ;;  %5291 = vmatpush.msra.mxu0 %v11740_v25  ;;  %v11781_v13 = vpop.f32.mrf.mxu3  ;;  %v5410_v50 = vsub.f32 %v11762_v34, %v14735_v29  ;;  %v15299_v29 = vld [vmem:[#allocation33_spill] sm:$0xff] }
 0x44d   : > { %15285 = vst [vmem:[#allocation90_spill] sm:$0xff] %v11773_v47  ;;  %5388 = vmatpush.msra.mxu1 %v5387_v20  ;;  %5474 = vmatpush.msra.mxu2 %v11751_v12  ;;  %v11784_v51 = vpop.f32.mrf.mxu0  ;;  %v5405_v20 = vand.u32 4294901760, %v5404_v40  ;;  %9295 = vtanh.f32 %v15299_v29  ;;  %v15305_v29 = vld [vmem:[#allocation21_spill] sm:$0xff] }
 0x44e   : > { %15286 = vst [vmem:[#allocation95_spill] sm:$0xff] %v11781_v13  ;;  %5542 = vmatpush.msra.mxu3 %v11740_v25  ;;  %4733 = vmatmul.f32.gmra.mxu0 %v10859_v14  ;;  %v11791_v26 = vpop.f32.mrf.mxu1  ;;  %v11793_v3 = vpop.f32.mrf.mxu2  ;;  %v5411_v48 = vand.u32 4294901760, %v5410_v50 }
 0x44f   : > { %15287 = vst [vmem:[#allocation80_spill] sm:$0xff] %v11784_v51  ;;  %4786 = vmatmul.f32.gmra.mxu1 %v10829_v7  ;;  %4968 = vmatmul.f32.gmra.mxu3 %v10859_v14 }
 0x450   : > { %15288 = vst [vmem:[#allocation88_spill] sm:$0xff] %v11791_v26  ;;  %5394 = vmatpush.msra.mxu1 %v5393_v63  ;;  %5477 = vmatpush.msra.mxu2 %v11762_v34 }
 0x451   : > { %15289 = vst [vmem:[#allocation93_spill] sm:$0xff] %v11793_v3  ;;  %4859 = vmatmul.f32.gmra.mxu2 %v15220_v39 }
 0x452   : > { %5400 = vmatpush.msra.mxu1 %v5399_v60 }
 0x454   : > { %5406 = vmatpush.msra.mxu1 %v5405_v20  ;;  %v11802_v4 = vpop.f32.mrf.mxu3 }
 0x455   : > { %15290 = vst [vmem:[#allocation79_spill] sm:$0xff] %v11802_v4  ;;  %v11804_v47 = vpop.f32.mrf.mxu0 }
 0x456   : > { %15291 = vst [vmem:[#allocation86_spill] sm:$0xff] %v11804_v47  ;;  %5412 = vmatpush.msra.mxu1 %v5411_v48  ;;  %4737 = vmatmul.f32.gmra.mxu0 %v10897_v57  ;;  %v11807_v63 = vpop.f32.mrf.mxu1  ;;  %v11809_v28 = vpop.f32.mrf.mxu2 }
 0x457   : > { %15292 = vst [vmem:[#allocation91_spill] sm:$0xff] %v11807_v63  ;;  %4790 = vmatmul.f32.gmra.mxu1 %v10859_v14  ;;  %4972 = vmatmul.f32.gmra.mxu3 %v10897_v57 }
 0x458   : > { %15293 = vst [vmem:[#allocation89_spill] sm:$0xff] %v11809_v28  ;;  %v15304_v28 = vld [vmem:[#allocation30_spill] sm:$0xff] }
 0x459   : > { %4867 = vmatmul.f32.gmra.mxu2 %v15226_v46 }
 0x45c   : > { %v11814_v40 = vpop.f32.mrf.mxu3 }
 0x45d   : > { %15294 = vst [vmem:[#allocation199_spill] sm:$0xff] %v11814_v40  ;;  %v11816_v60 = vpop.f32.mrf.mxu0  ;;  %v15303_v40 = vld [vmem:[#allocation28_spill] sm:$0xff] }
 0x45e   : > { %15295 = vst [vmem:[#allocation200_spill] sm:$0xff] %v11816_v60  ;;  %4741 = vmatmul.f32.gmra.mxu0 %v10938_v38  ;;  %v11819_v50 = vpop.f32.mrf.mxu1  ;;  %v11821_v48 = vpop.f32.mrf.mxu2  ;;  %9297 = vtanh.f32 %v15303_v40  ;;  %v15310_v40 = vld [vmem:[#allocation35_spill] sm:$0xff] }
 0x45f   : > { %15296 = vst [vmem:[#allocation201_spill] sm:$0xff] %v11819_v50  ;;  %4794 = vmatmul.f32.gmra.mxu1 %v10897_v57  ;;  %4976 = vmatmul.f32.gmra.mxu3 %v10938_v38  ;;  %9299 = vtanh.f32 %v15304_v28 }
 0x460   : > { %15297 = vst [vmem:[#allocation202_spill] sm:$0xff] %v11821_v48  ;;  %9301 = vtanh.f32 %v15305_v29 }
 0x461   : > { %4875 = vmatmul.f32.gmra.mxu2 %v15231_v56  ;;  %9303 = vtanh.f32 %v15310_v40 }
 0x464   : > { %v11826_v20 = vpop.f32.mrf.mxu3 }
 0x465   : > { %15298 = vst [vmem:[#allocation203_spill] sm:$0xff] %v11826_v20  ;;  %v11829_v13 = vpop.f32.mrf.mxu0  ;;  %v9296_v20 = vpop.eup %9295 }
 0x466   : > { %15300 = vst [vmem:[#allocation33_spill] sm:$0xff] %v11829_v13  ;;  %4745 = vmatmul.f32.gmra.mxu0 %v10979_v11  ;;  %v11832_v4 = vpop.f32.mrf.mxu1  ;;  %v11834_v3 = vpop.f32.mrf.mxu2  ;;  %v11846_v51 = vand.u32 4294901760, %v9296_v20 }
 0x467   : > { %15301 = vst [vmem:[#allocation204_spill] sm:$0xff] %v11832_v4  ;;  %4798 = vmatmul.f32.gmra.mxu1 %v10938_v38  ;;  %4980 = vmatmul.f32.gmra.mxu3 %v10979_v11  ;;  %v9298_v63 = vpop.eup %9297  ;;  %v15311_v4 = vld [vmem:[#allocation37_spill] sm:$0xff] }
 0x468   : > { %15302 = vst [vmem:[#allocation205_spill] sm:$0xff] %v11834_v3  ;;  %v9300_v28 = vpop.eup %9299  ;;  %v11856_v29 = vand.u32 4294901760, %v9298_v63  ;;  %9305 = vtanh.f32 %v15311_v4  ;;  %v11861_v47 = vsub.f32 %v9296_v20, %v11846_v51 }
 0x469   : > { %4883 = vmatmul.f32.gmra.mxu2 %v15236_v6 }
 0x46a   : > { %15312 = vst [vmem:[#allocation35_spill] sm:$0xff] %v11861_v47  ;;  %v11873_v21 = vsub.f32 %v9298_v63, %v11856_v29 }
 0x46c   : > { %v11842_v26 = vpop.f32.mrf.mxu3  ;;  %15316 = vst [vmem:[#allocation207_spill] sm:$0xff] %v11873_v21 }
 0x46d   : > { %15306 = vst [vmem:[#allocation28_spill] sm:$0xff] %v11842_v26  ;;  %v11844_v48 = vpop.f32.mrf.mxu0  ;;  %v9302_v26 = vpop.eup %9301 }
 0x46e   : > { %15307 = vst [vmem:[#allocation30_spill] sm:$0xff] %v11844_v48  ;;  %4749 = vmatmul.f32.gmra.mxu0 %v11009_v32  ;;  %v11849_v3 = vpop.f32.mrf.mxu1  ;;  %v11851_v50 = vpop.f32.mrf.mxu2  ;;  %v11868_v13 = vand.u32 4294901760, %v9302_v26 }
 0x46f   : > { %15308 = vst [vmem:[#allocation21_spill] sm:$0xff] %v11849_v3  ;;  %4802 = vmatmul.f32.gmra.mxu1 %v10979_v11  ;;  %4984 = vmatmul.f32.gmra.mxu3 %v11009_v32  ;;  %v11863_v3 = vand.u32 4294901760, %v9300_v28  ;;  %v9304_v60 = vpop.eup %9303 }
 0x470   : > { %15309 = vst [vmem:[#allocation206_spill] sm:$0xff] %v11851_v50  ;;  %v15313_v50 = vld [vmem:[#allocation32_spill] sm:$0xff]  ;;  %v11887_v63 = vand.u32 4294901760, %v9304_v60 }
 0x471   : > { %4891 = vmatmul.f32.gmra.mxu2 %v15250_v0  ;;  %9307 = vtanh.f32 %v15313_v50  ;;  %v14746_v50 = vand.u32 4294901760, %v11861_v47 }
 0x472   : > { %9309 = vtanh.f32 %v15317_v19  ;;  %v14750_v19 = vand.u32 4294901760, %v11873_v21  ;;  %v11903_v39 = vsub.f32 %v9304_v60, %v11887_v63 }
 0x473   : > { %v5822_v0 = vsub.f32 %v11861_v47, %v14746_v50 }
 0x474   : > { %v11866_v40 = vpop.f32.mrf.mxu3 }
 0x475   : > { %15314 = vst [vmem:[#allocation37_spill] sm:$0xff] %v11866_v40  ;;  %v11870_v48 = vpop.f32.mrf.mxu0  ;;  %v11885_v40 = vsub.f32 %v9300_v28, %v11863_v3  ;;  %v5823_v50 = vand.u32 4294901760, %v5822_v0  ;;  %v15325_v0 = vand.u32 4294901760, %v11676_v15 }
 0x476   : > { %15315 = vst [vmem:[#allocation32_spill] sm:$0xff] %v11870_v48  ;;  %4753 = vmatmul.f32.gmra.mxu0 %v11037_v33  ;;  %v11877_v4 = vpop.f32.mrf.mxu1  ;;  %v11879_v20 = vpop.f32.mrf.mxu2 }
 0x477   : > { %15318 = vst [vmem:[#allocation22_spill] sm:$0xff] %v11877_v4  ;;  %4806 = vmatmul.f32.gmra.mxu1 %v11009_v32  ;;  %4988 = vmatmul.f32.gmra.mxu3 %v11037_v33  ;;  %v9306_v48 = vpop.eup %9305  ;;  %v11892_v4 = vsub.f32 %v9302_v26, %v11868_v13  ;;  %v5828_v26 = vsub.f32 %v11873_v21, %v14750_v19  ;;  %v15323_v60 = vand.u32 4294901760, %v11885_v40 }
 0x478   : > { %15319 = vst [vmem:[#allocation208_spill] sm:$0xff] %v11879_v20  ;;  %v9308_v20 = vpop.eup %9307  ;;  %v11897_v6 = vand.u32 4294901760, %v9306_v48 }
 0x479   : > { %4899 = vmatmul.f32.gmra.mxu2 %v15267_v58  ;;  %v9310_v56 = vpop.eup %9309  ;;  %v11905_v58 = vand.u32 4294901760, %v9308_v20  ;;  %v15326_v21 = vand.u32 4294901760, %v11892_v4 }
 0x47a   : > { %v11916_v24 = vand.u32 4294901760, %v9310_v56  ;;  %v11926_v61 = vsub.f32 %v9306_v48, %v11897_v6 }
 0x47c   : > { %v11900_v46 = vpop.f32.mrf.mxu3  ;;  %v14756_v48 = vand.u32 4294901760, %v11926_v61 }
 0x47d   : > { %15320 = vst [vmem:[#allocation209_spill] sm:$0xff] %v11900_v46  ;;  %v5834_v46 = vsub.f32 %v11885_v40, %v15323_v60  ;;  %v11936_v60 = vsub.f32 %v9308_v20, %v11905_v58 }
 0x47e   : > { %5026 = vmatmul.f32.vlgmr.msrb.gmra.mxu0 %v15206_v23  ;;  %v11912_v47 = vpop.f32.mrf.mxu0  ;;  %v11914_v28 = vpop.f32.mrf.mxu2  ;;  %v5840_v23 = vsub.f32 %v11892_v4, %v15326_v21 }
 0x47f   : > { %15321 = vst [vmem:[#allocation210_spill] sm:$0xff] %v11912_v47  ;;  %4810 = vmatmul.f32.gmra.mxu1 %v11037_v33  ;;  %5236 = vmatmul.f32.vlgmr.msrb.gmra.mxu3 %v10805_v35  ;;  %v11923_v19 = vpop.f32.mrf.mxu1  ;;  %v5829_v47 = vand.u32 4294901760, %v5828_v26  ;;  %v5835_v15 = vand.u32 4294901760, %v5834_v46  ;;  %v15328_v26 = vand.u32 4294901760, %v11698_v42  ;;  %v14755_v20 = vand.u32 4294901760, %v11936_v60 }
 0x480   : > { %15322 = vst [vmem:[#allocation211_spill] sm:$0xff] %v11914_v28  ;;  %5603 = vmatpush.msrb.mxu0 %v15325_v0  ;;  %5824 = vmatpush.msrb.mxu3 %v5823_v50  ;;  %v14757_v28 = vand.u32 4294901760, %v11903_v39  ;;  %v11943_v50 = vsub.f32 %v9310_v56, %v11916_v24  ;;  %v15330_v46 = vand.u32 4294901760, %v11710_v10  ;;  %v5852_v56 = vsub.f32 %v11926_v61, %v14756_v48 }
 0x481   : > { %15324 = vst [vmem:[#allocation212_spill] sm:$0xff] %v11923_v19  ;;  %5179 = vmatmul.f32.vlgmr.msrb.gmra.mxu2 %v10805_v35  ;;  %v15327_v19 = vand.u32 4294901760, %v11684_v45  ;;  %v5841_v45 = vand.u32 4294901760, %v5840_v23  ;;  %v15333_v0 = vand.u32 4294901760, %v11724_v49 }
 0x482   : > { %5731 = vmatpush.msrb.mxu2 %v11846_v51  ;;  %5830 = vmatpush.msrb.mxu3 %v5829_v47  ;;  %v5846_v21 = vsub.f32 %v11903_v39, %v14757_v28  ;;  %v14754_v42 = vand.u32 4294901760, %v11943_v50 }
 0x483   : > { %5607 = vmatpush.msrb.mxu0 %v15327_v19 }
 0x484   : > { %5733 = vmatpush.msrb.mxu2 %v11856_v29  ;;  %5836 = vmatpush.msrb.mxu3 %v5835_v15  ;;  %v5847_v23 = vand.u32 4294901760, %v5846_v21  ;;  %v5858_v15 = vsub.f32 %v11936_v60, %v14755_v20  ;;  %v15335_v21 = vand.u32 4294901760, %v11738_v53  ;;  %v5864_v49 = vsub.f32 %v11943_v50, %v14754_v42 }
 0x485   : > { %5611 = vmatpush.msrb.mxu0 %v15328_v26  ;;  %v11952_v47 = vpop.f32.mrf.mxu3  ;;  %v15337_v53 = vand.u32 4294901760, %v11762_v34 }
 0x486   : > { %15329 = vst [vmem:[#allocation213_spill] sm:$0xff] %v11952_v47  ;;  %5735 = vmatpush.msrb.mxu2 %v11863_v3  ;;  %5842 = vmatpush.msrb.mxu3 %v5841_v45  ;;  %v5853_v45 = vand.u32 4294901760, %v5852_v56  ;;  %v5865_v56 = vand.u32 4294901760, %v5864_v49 }
 0x487   : > { %5615 = vmatpush.msrb.mxu0 %v15330_v46  ;;  %5092 = vmatmul.f32.vlgmr.msrb.gmra.mxu1 %v10827_v18  ;;  %v5859_v46 = vand.u32 4294901760, %v5858_v15 }
 0x488   : > { %5031 = vmatmul.f32.gmra.mxu0 %v10845_v41  ;;  %5240 = vmatmul.f32.gmra.mxu3 %v10829_v7  ;;  %v11964_v19 = vpop.f32.mrf.mxu0  ;;  %v11966_v10 = vpop.f32.mrf.mxu2 }
 0x489   : > { %15331 = vst [vmem:[#allocation214_spill] sm:$0xff] %v11964_v19  ;;  %5619 = vmatpush.msrb.mxu0 %v15333_v0  ;;  %5674 = vmatpush.msrb.mxu1 %v11666_v8  ;;  %v11974_v26 = vpop.f32.mrf.mxu1  ;;  %v15336_v8 = vand.u32 4294901760, %v11751_v12 }
 0x48a   : > { %15332 = vst [vmem:[#allocation215_spill] sm:$0xff] %v11966_v10  ;;  %5737 = vmatpush.msrb.mxu2 %v11868_v13  ;;  %5848 = vmatpush.msrb.mxu3 %v5847_v23 }
 0x48b   : > { %15334 = vst [vmem:[#allocation216_spill] sm:$0xff] %v11974_v26  ;;  %5183 = vmatmul.f32.gmra.mxu2 %v10829_v7  ;;  %5623 = vmatpush.msrb.mxu0 %v15335_v21  ;;  %v15431_v26 = vld [vmem:[#allocation25_spill] sm:$0xff] }
 0x48c   : > { %5676 = vmatpush.msrb.mxu1 %v11673_v9  ;;  %5739 = vmatpush.msrb.mxu2 %v11887_v63 }
 0x48d   : > { %5854 = vmatpush.msrb.mxu3 %v5853_v45  ;;  %5627 = vmatpush.msrb.mxu0 %v15336_v8 }
 0x48e   : > { %5678 = vmatpush.msrb.mxu1 %v11678_v1  ;;  %5741 = vmatpush.msrb.mxu2 %v11897_v6 }
 0x48f   : > { %5860 = vmatpush.msrb.mxu3 %v5859_v46  ;;  %5631 = vmatpush.msrb.mxu0 %v15337_v53  ;;  %v11991_v23 = vpop.f32.mrf.mxu3 }
 0x490   : > { %15338 = vst [vmem:[#allocation217_spill] sm:$0xff] %v11991_v23  ;;  %5680 = vmatpush.msrb.mxu1 %v11688_v44  ;;  %5743 = vmatpush.msrb.mxu2 %v11905_v58  ;;  %v11995_v9 = vpop.f32.mrf.mxu0 }
 0x491   : > { %15339 = vst [vmem:[#allocation218_spill] sm:$0xff] %v11995_v9  ;;  %5866 = vmatpush.msrb.mxu3 %v5865_v56  ;;  %5036 = vmatmul.f32.gmra.mxu0 %v10879_v22  ;;  %v11998_v12 = vpop.f32.mrf.mxu1  ;;  %v12000_v1 = vpop.f32.mrf.mxu2  ;;  %v15430_v9 = vld [vmem:[#allocation136_spill] sm:$0xff] }
 0x492   : > { %15340 = vst [vmem:[#allocation219_spill] sm:$0xff] %v11998_v12  ;;  %5098 = vmatmul.f32.gmra.mxu1 %v10855_v59  ;;  %5244 = vmatmul.f32.gmra.mxu3 %v10859_v14  ;;  %v15429_v12 = vld [vmem:[#allocation101_spill] sm:$0xff] }
 0x493   : > { %15341 = vst [vmem:[#allocation220_spill] sm:$0xff] %v12000_v1  ;;  %5682 = vmatpush.msrb.mxu1 %v11703_v52  ;;  %5745 = vmatpush.msrb.mxu2 %v11916_v24  ;;  %v15408_v1 = vld [vmem:[#allocation15_spill] sm:$0xff] }
 0x494   : > { %5187 = vmatmul.f32.gmra.mxu2 %v10859_v14 }
 0x495   : > { %5684 = vmatpush.msrb.mxu1 %v11717_v55 }
 0x497   : > { %5686 = vmatpush.msrb.mxu1 %v11726_v54  ;;  %v12009_v44 = vpop.f32.mrf.mxu3 }
 0x498   : > { %15342 = vst [vmem:[#allocation221_spill] sm:$0xff] %v12009_v44  ;;  %v12011_v34 = vpop.f32.mrf.mxu0  ;;  %v15365_v44 = vld [vmem:[#allocation68_spill] sm:$0xff] }
 0x499   : > { %15343 = vst [vmem:[#allocation222_spill] sm:$0xff] %v12011_v34  ;;  %5688 = vmatpush.msrb.mxu1 %v11740_v25  ;;  %5041 = vmatmul.f32.gmra.mxu0 %v10920_v16  ;;  %v12015_v0 = vpop.f32.mrf.mxu1  ;;  %v12017_v15 = vpop.f32.mrf.mxu2 }
 0x49a   : > { %15344 = vst [vmem:[#allocation223_spill] sm:$0xff] %v12015_v0  ;;  %5104 = vmatmul.f32.gmra.mxu1 %v10895_v30  ;;  %5248 = vmatmul.f32.gmra.mxu3 %v10897_v57  ;;  %v15417_v0 = vld [vmem:[#allocation133_spill] sm:$0xff] }
 0x49b   : > { %15345 = vst [vmem:[#allocation224_spill] sm:$0xff] %v12017_v15 }
 0x49c   : > { %5191 = vmatmul.f32.gmra.mxu2 %v10897_v57 }
 0x49f   : > { %v12022_v55 = vpop.f32.mrf.mxu3 }
 0x4a0   : > { %15346 = vst [vmem:[#allocation225_spill] sm:$0xff] %v12022_v55  ;;  %v12024_v52 = vpop.f32.mrf.mxu0 }
 0x4a1   : > { %15347 = vst [vmem:[#allocation226_spill] sm:$0xff] %v12024_v52  ;;  %5046 = vmatmul.f32.gmra.mxu0 %v10964_v27  ;;  %v12027_v54 = vpop.f32.mrf.mxu1  ;;  %v12029_v25 = vpop.f32.mrf.mxu2  ;;  %v15426_v52 = vld [vmem:[#allocation105_spill] sm:$0xff] }
 0x4a2   : > { %15348 = vst [vmem:[#allocation227_spill] sm:$0xff] %v12027_v54  ;;  %5110 = vmatmul.f32.gmra.mxu1 %v10936_v37  ;;  %5252 = vmatmul.f32.gmra.mxu3 %v10938_v38  ;;  %v15412_v54 = vld [vmem:[#allocation6_spill] sm:$0xff] }
 0x4a3   : > { %15349 = vst [vmem:[#allocation228_spill] sm:$0xff] %v12029_v25 }
 0x4a4   : > { %5195 = vmatmul.f32.gmra.mxu2 %v10938_v38 }
 0x4a7   : > { %v12034_v21 = vpop.f32.mrf.mxu3 }
 0x4a8   : > { %15350 = vst [vmem:[#allocation229_spill] sm:$0xff] %v12034_v21  ;;  %v12036_v45 = vpop.f32.mrf.mxu0 }
 0x4a9   : > { %15351 = vst [vmem:[#allocation230_spill] sm:$0xff] %v12036_v45  ;;  %5051 = vmatmul.f32.gmra.mxu0 %v10998_v31  ;;  %v12039_v49 = vpop.f32.mrf.mxu1  ;;  %v12041_v8 = vpop.f32.mrf.mxu2 }
 0x4aa   : > { %15352 = vst [vmem:[#allocation231_spill] sm:$0xff] %v12039_v49  ;;  %5116 = vmatmul.f32.gmra.mxu1 %v10977_v5  ;;  %5256 = vmatmul.f32.gmra.mxu3 %v10979_v11 }
 0x4ab   : > { %15353 = vst [vmem:[#allocation232_spill] sm:$0xff] %v12041_v8  ;;  %v15405_v8 = vld [vmem:[#allocation13_spill] sm:$0xff] }
 0x4ac   : > { %5199 = vmatmul.f32.gmra.mxu2 %v10979_v11 }
 0x4af   : > { %v12046_v46 = vpop.f32.mrf.mxu3 }
 0x4b0   : > { %15354 = vst [vmem:[#allocation233_spill] sm:$0xff] %v12046_v46  ;;  %v12048_v53 = vpop.f32.mrf.mxu0 }
 0x4b1   : > { %15355 = vst [vmem:[#allocation234_spill] sm:$0xff] %v12048_v53  ;;  %5056 = vmatmul.f32.gmra.mxu0 %v11026_v36  ;;  %v12051_v56 = vpop.f32.mrf.mxu1  ;;  %v12053_v42 = vpop.f32.mrf.mxu2 }
 0x4b2   : > { %15356 = vst [vmem:[#allocation235_spill] sm:$0xff] %v12051_v56  ;;  %5122 = vmatmul.f32.gmra.mxu1 %v11007_v43  ;;  %5260 = vmatmul.f32.gmra.mxu3 %v11009_v32  ;;  %v15411_v56 = vld [vmem:[#allocation99_spill] sm:$0xff] }
 0x4b3   : > { %15357 = vst [vmem:[#allocation236_spill] sm:$0xff] %v12053_v42  ;;  %v15368_v42 = vld [vmem:[#allocation108_spill] sm:$0xff] }
 0x4b4   : > { %5203 = vmatmul.f32.gmra.mxu2 %v11009_v32 }
 0x4b7   : > { %v12058_v20 = vpop.f32.mrf.mxu3 }
 0x4b8   : > { %15358 = vst [vmem:[#allocation237_spill] sm:$0xff] %v12058_v20  ;;  %v12060_v48 = vpop.f32.mrf.mxu0 }
 0x4b9   : > { %15359 = vst [vmem:[#allocation238_spill] sm:$0xff] %v12060_v48  ;;  %5061 = vmatmul.f32.gmra.mxu0 %v11051_v17  ;;  %v12063_v28 = vpop.f32.mrf.mxu1  ;;  %v12065_v46 = vpop.f32.mrf.mxu2  ;;  %v15369_v48 = vld [vmem:[#allocation207_spill] sm:$0xff] }
 0x4ba   : > { %15360 = vst [vmem:[#allocation239_spill] sm:$0xff] %v12063_v28  ;;  %5128 = vmatmul.f32.gmra.mxu1 %v11035_v2  ;;  %5264 = vmatmul.f32.gmra.mxu3 %v11037_v33 }
 0x4bb   : > { %15361 = vst [vmem:[#allocation240_spill] sm:$0xff] %v12065_v46  ;;  %v15367_v46 = vld [vmem:[#allocation35_spill] sm:$0xff] }
 0x4bc   : > { %5207 = vmatmul.f32.gmra.mxu2 %v11037_v33 }
 0x4bf   : > { %v12070_v21 = vpop.f32.mrf.mxu3 }
 0x4c0   : > { %15362 = vst [vmem:[#allocation241_spill] sm:$0xff] %v12070_v21  ;;  %v15370_v21 = vand.u32 4294901760, %v15367_v46 }
 0x4c1   : > { %5297 = vmatmul.f32.vlgmr.msra.gmra.mxu0 %v10851_v62  ;;  %v12073_v55 = vpop.f32.mrf.mxu0  ;;  %v12075_v20 = vpop.f32.mrf.mxu2 }
 0x4c2   : > { %15363 = vst [vmem:[#allocation242_spill] sm:$0xff] %v12073_v55  ;;  %5134 = vmatmul.f32.gmra.mxu1 %v15365_v44  ;;  %5546 = vmatmul.f32.vlgmr.msra.gmra.mxu3 %v10827_v18  ;;  %v12079_v23 = vpop.f32.mrf.mxu1  ;;  %v15371_v55 = vand.u32 4294901760, %v15369_v48 }
 0x4c3   : > { %15364 = vst [vmem:[#allocation243_spill] sm:$0xff] %v12075_v20  ;;  %5910 = vmatpush.msra.mxu0 %v15367_v46  ;;  %6128 = vmatpush.msra.mxu3 %v11846_v51  ;;  %v15372_v20 = vand.u32 4294901760, %v11885_v40  ;;  %v15373_v46 = vld [vmem:[#allocation20_spill] sm:$0xff] }
 0x4c4   : > { %15366 = vst [vmem:[#allocation244_spill] sm:$0xff] %v12079_v23  ;;  %5480 = vmatmul.f32.vlgmr.msra.gmra.mxu2 %v15368_v42 }
 0x4c5   : > { %5913 = vmatpush.msra.mxu0 %v15369_v48  ;;  %6057 = vmatpush.msra.mxu2 %v15370_v21 }
 0x4c6   : > { %6130 = vmatpush.msra.mxu3 %v11856_v29 }
 0x4c7   : > { %5916 = vmatpush.msra.mxu0 %v11885_v40  ;;  %6061 = vmatpush.msra.mxu2 %v15371_v55  ;;  %v15376_v40 = vand.u32 4294901760, %v11892_v4 }
 0x4c8   : > { %6132 = vmatpush.msra.mxu3 %v11863_v3  ;;  %v12092_v23 = vpop.f32.mrf.mxu3 }
 0x4c9   : > { %5919 = vmatpush.msra.mxu0 %v11892_v4  ;;  %6065 = vmatpush.msra.mxu2 %v15372_v20  ;;  %v15377_v20 = vand.u32 4294901760, %v11903_v39 }
 0x4ca   : > { %6134 = vmatpush.msra.mxu3 %v11868_v13  ;;  %5305 = vmatmul.f32.gmra.mxu0 %v15373_v46 }
 0x4cb   : > { %5414 = vmatmul.f32.vlgmr.msra.gmra.mxu1 %v10805_v35  ;;  %5552 = vmatmul.f32.gmra.mxu3 %v10855_v59  ;;  %v12101_v21 = vpop.f32.mrf.mxu0  ;;  %v12103_v48 = vpop.f32.mrf.mxu2 }
 0x4cc   : > { %15374 = vst [vmem:[#allocation35_spill] sm:$0xff] %v12101_v21  ;;  %5922 = vmatpush.msra.mxu0 %v11903_v39  ;;  %5982 = vmatpush.msra.mxu1 %v11846_v51  ;;  %v12107_v55 = vpop.f32.mrf.mxu1  ;;  %v15378_v51 = vand.u32 4294901760, %v11926_v61  ;;  %v15380_v39 = vand.u32 4294901760, %v11936_v60  ;;  %v15400_v21 = vld [vmem:[#allocation102_spill] sm:$0xff] }
 0x4cd   : > { %15375 = vst [vmem:[#allocation108_spill] sm:$0xff] %v12107_v55  ;;  %6069 = vmatpush.msra.mxu2 %v15376_v40  ;;  %6136 = vmatpush.msra.mxu3 %v11887_v63  ;;  %v15382_v40 = vld [vmem:[#allocation114_spill] sm:$0xff] }
 0x4ce   : > { %5485 = vmatmul.f32.gmra.mxu2 %v10845_v41  ;;  %5925 = vmatpush.msra.mxu0 %v11926_v61  ;;  %v15402_v55 = vld [vmem:[#allocation98_spill] sm:$0xff] }
 0x4cf   : > { %5984 = vmatpush.msra.mxu1 %v11856_v29  ;;  %6073 = vmatpush.msra.mxu2 %v15377_v20 }
 0x4d0   : > { %6138 = vmatpush.msra.mxu3 %v11897_v6  ;;  %5928 = vmatpush.msra.mxu0 %v11936_v60 }
 0x4d1   : > { %5986 = vmatpush.msra.mxu1 %v11863_v3  ;;  %6077 = vmatpush.msra.mxu2 %v15378_v51  ;;  %v15388_v51 = vld [vmem:[#allocation119_spill] sm:$0xff] }
 0x4d2   : > { %6140 = vmatpush.msra.mxu3 %v11905_v58  ;;  %5931 = vmatpush.msra.mxu0 %v11943_v50  ;;  %v12124_v4 = vpop.f32.mrf.mxu3 }
 0x4d3   : > { %15379 = vst [vmem:[#allocation207_spill] sm:$0xff] %v12124_v4  ;;  %5988 = vmatpush.msra.mxu1 %v11868_v13  ;;  %6081 = vmatpush.msra.mxu2 %v15380_v39  ;;  %v12129_v29 = vpop.f32.mrf.mxu0  ;;  %v15385_v13 = vand.u32 4294901760, %v11943_v50 }
 0x4d4   : > { %15381 = vst [vmem:[#allocation245_spill] sm:$0xff] %v12129_v29  ;;  %6142 = vmatpush.msra.mxu3 %v11916_v24  ;;  %5313 = vmatmul.f32.gmra.mxu0 %v15382_v40  ;;  %v12133_v3 = vpop.f32.mrf.mxu1  ;;  %v12135_v61 = vpop.f32.mrf.mxu2  ;;  %v15399_v29 = vld [vmem:[#allocation14_spill] sm:$0xff] }
 0x4d5   : > { %15383 = vst [vmem:[#allocation246_spill] sm:$0xff] %v12133_v3  ;;  %5418 = vmatmul.f32.gmra.mxu1 %v10829_v7  ;;  %5558 = vmatmul.f32.gmra.mxu3 %v10895_v30  ;;  %v15396_v3 = vld [vmem:[#allocation126_spill] sm:$0xff] }
 0x4d6   : > { %15384 = vst [vmem:[#allocation247_spill] sm:$0xff] %v12135_v61  ;;  %5990 = vmatpush.msra.mxu1 %v11887_v63  ;;  %6085 = vmatpush.msra.mxu2 %v15385_v13  ;;  %v15403_v61 = vld [vmem:[#allocation107_spill] sm:$0xff] }
 0x4d7   : > { %5490 = vmatmul.f32.gmra.mxu2 %v10879_v22 }
 0x4d8   : > { %5992 = vmatpush.msra.mxu1 %v11897_v6  ;;  %v15391_v6 = vld [vmem:[#allocation12_spill] sm:$0xff] }
 0x4da   : > { %5994 = vmatpush.msra.mxu1 %v11905_v58  ;;  %v12145_v60 = vpop.f32.mrf.mxu3  ;;  %v15392_v58 = vld [vmem:[#allocation106_spill] sm:$0xff] }
 0x4db   : > { %15386 = vst [vmem:[#allocation248_spill] sm:$0xff] %v12145_v60  ;;  %v12147_v20 = vpop.f32.mrf.mxu0  ;;  %v2661_v50 = vadd.f32 %v15392_v58, %v15391_v6  ;;  %v15401_v58 = vld [vmem:[#allocation11_spill] sm:$0xff] }
 0x4dc   : > { %15387 = vst [vmem:[#allocation249_spill] sm:$0xff] %v12147_v20  ;;  %5996 = vmatpush.msra.mxu1 %v11916_v24  ;;  %5321 = vmatmul.f32.gmra.mxu0 %v15388_v51  ;;  %v12151_v39 = vpop.f32.mrf.mxu1  ;;  %v12153_v63 = vpop.f32.mrf.mxu2  ;;  %v15395_v24 = vld [vmem:[#allocation9_spill] sm:$0xff] }
 0x4dd   : > { %15389 = vst [vmem:[#allocation250_spill] sm:$0xff] %v12151_v39  ;;  %5422 = vmatmul.f32.gmra.mxu1 %v10859_v14  ;;  %5564 = vmatmul.f32.gmra.mxu3 %v10936_v37  ;;  %v2715_v60 = vadd.f32 %v15395_v24, %v2661_v50  ;;  %v15404_v50 = vld [vmem:[#allocation8_spill] sm:$0xff] }
 0x4de   : > { %15390 = vst [vmem:[#allocation251_spill] sm:$0xff] %v12153_v63  ;;  %v2653_v63 = vadd.f32 %v15400_v21, %v15399_v29  ;;  %v15409_v21 = vld [vmem:[#allocation46_spill] sm:$0xff] }
 0x4df   : > { %5495 = vmatmul.f32.gmra.mxu2 %v10920_v16  ;;  %v2774_v24 = vadd.f32 %v15404_v50, %v2715_v60  ;;  %v2629_v47 = vadd.f32 %v15409_v21, %v15408_v1  ;;  %v15416_v60 = vld [vmem:[#allocation7_spill] sm:$0xff] }
 0x4e1   : > { %v2840_v50 = vadd.f32 %v15416_v60, %v2774_v24  ;;  %v15425_v24 = vld [vmem:[#allocation100_spill] sm:$0xff] }
 0x4e2   : > { %v12160_v13 = vpop.f32.mrf.mxu3 }
 0x4e3   : > { %15393 = vst [vmem:[#allocation12_spill] sm:$0xff] %v12160_v13  ;;  %v12162_v20 = vpop.f32.mrf.mxu0  ;;  %v2645_v13 = vadd.f32 %v15402_v55, %v15401_v58 }
 0x4e4   : > { %15394 = vst [vmem:[#allocation106_spill] sm:$0xff] %v12162_v20  ;;  %5329 = vmatmul.f32.gmra.mxu0 %v15396_v3  ;;  %v12166_v39 = vpop.f32.mrf.mxu1  ;;  %v12168_v4 = vpop.f32.mrf.mxu2  ;;  %v2711_v20 = vadd.f32 %v15403_v61, %v2653_v63  ;;  %v15414_v61 = vld [vmem:[#allocation18_spill] sm:$0xff]  ;;  %v15415_v63 = vld [vmem:[#allocation17_spill] sm:$0xff] }
 0x4e5   : > { %15397 = vst [vmem:[#allocation9_spill] sm:$0xff] %v12166_v39  ;;  %5426 = vmatmul.f32.gmra.mxu1 %v10897_v57  ;;  %5570 = vmatmul.f32.gmra.mxu3 %v10977_v5  ;;  %v15406_v39 = vld [vmem:[#allocation42_spill] sm:$0xff]  ;;  %v2621_v45 = vadd.f32 %v15415_v63, %v15414_v61  ;;  %v15424_v63 = vld [vmem:[#allocation53_spill] sm:$0xff] }
 0x4e6   : > { %15398 = vst [vmem:[#allocation126_spill] sm:$0xff] %v12168_v4  ;;  %v2637_v25 = vadd.f32 %v15406_v39, %v15405_v8  ;;  %v15407_v4 = vld [vmem:[#allocation103_spill] sm:$0xff]  ;;  %v2769_v55 = vadd.f32 %v15412_v54, %v2711_v20  ;;  %v15421_v54 = vld [vmem:[#allocation16_spill] sm:$0xff]  ;;  %v15423_v20 = vld [vmem:[#allocation41_spill] sm:$0xff] }
 0x4e7   : > { %5500 = vmatmul.f32.gmra.mxu2 %v10964_v27  ;;  %v2707_v15 = vadd.f32 %v15407_v4, %v2645_v13  ;;  %v15420_v13 = vld [vmem:[#allocation104_spill] sm:$0xff] }
 0x4e8   : > { %v2703_v49 = vadd.f32 %v15411_v56, %v2637_v25  ;;  %v15422_v25 = vld [vmem:[#allocation19_spill] sm:$0xff]  ;;  %v2834_v34 = vadd.f32 %v15426_v52, %v2769_v55  ;;  %v15436_v55 = vld [vmem:[#allocation66_spill] sm:$0xff] }
 0x4e9   : > { %v2764_v21 = vadd.f32 %v15420_v13, %v2707_v15  ;;  %v2613_v56 = vadd.f32 %v15422_v25, %v15421_v54  ;;  %v15428_v15 = vld [vmem:[#allocation51_spill] sm:$0xff]  ;;  %v15432_v25 = vld [vmem:[#allocation40_spill] sm:$0xff] }
 0x4ea   : > { %v12184_v28 = vpop.f32.mrf.mxu3  ;;  %v2759_v60 = vadd.f32 %v15425_v24, %v2703_v49  ;;  %v2888_v19 = vadd.f32 %v15430_v9, %v2834_v34  ;;  %v15442_v34 = vld [vmem:[#allocation122_spill] sm:$0xff] }
 0x4eb   : > { %15410 = vst [vmem:[#allocation14_spill] sm:$0xff] %v12184_v28  ;;  %v12188_v53 = vpop.f32.mrf.mxu0  ;;  %v2892_v28 = vadd.f32 %v15424_v63, %v2840_v50  ;;  %v2828_v10 = vadd.f32 %v15429_v12, %v2764_v21  ;;  %v2691_v54 = vadd.f32 %v15431_v26, %v2613_v56  ;;  %v15434_v50 = vld [vmem:[#allocation39_spill] sm:$0xff]  ;;  %v15435_v63 = vld [vmem:[#allocation129_spill] sm:$0xff] }
 0x4ec   : > { %15413 = vst [vmem:[#allocation102_spill] sm:$0xff] %v12188_v53  ;;  %5337 = vmatmul.f32.gmra.mxu0 %v15417_v0  ;;  %v12194_v39 = vpop.f32.mrf.mxu1  ;;  %v12196_v4 = vpop.f32.mrf.mxu2  ;;  %v2699_v53 = vadd.f32 %v15423_v20, %v2629_v47  ;;  %v2822_v49 = vadd.f32 %v15434_v50, %v2759_v60  ;;  %v2938_v24 = vadd.f32 %v15436_v55, %v2888_v19  ;;  %v15439_v12 = vld [vmem:[#allocation55_spill] sm:$0xff]  ;;  %v15444_v19 = vld [vmem:[#allocation29_spill] sm:$0xff]  ;;  %v15448_v50 = vld [vmem:[#allocation116_spill] sm:$0xff] }
 0x4ed   : > { %15418 = vst [vmem:[#allocation11_spill] sm:$0xff] %v12194_v39  ;;  %5430 = vmatmul.f32.gmra.mxu1 %v10938_v38  ;;  %5576 = vmatmul.f32.gmra.mxu3 %v11007_v43  ;;  %v15427_v39 = vld [vmem:[#allocation45_spill] sm:$0xff]  ;;  %v2942_v13 = vadd.f32 %v15428_v15, %v2892_v28  ;;  %v2884_v52 = vadd.f32 %v15435_v63, %v2828_v10  ;;  %v15445_v56 = vld [vmem:[#allocation43_spill] sm:$0xff] }
 0x4ee   : > { %15419 = vst [vmem:[#allocation98_spill] sm:$0xff] %v12196_v4  ;;  %v2695_v4 = vadd.f32 %v15427_v39, %v2621_v45  ;;  %v2754_v47 = vadd.f32 %v15432_v25, %v2699_v53  ;;  %v15438_v45 = vld [vmem:[#allocation44_spill] sm:$0xff]  ;;  %v2880_v53 = vadd.f32 %v15442_v34, %v2822_v49  ;;  %v15443_v39 = vld [vmem:[#allocation137_spill] sm:$0xff]  ;;  %v2744_v10 = vadd.f32 %v15444_v19, %v2691_v54 }
 0x4ef   : > { %5505 = vmatmul.f32.gmra.mxu2 %v10998_v31  ;;  %9311 = vtanh.f32 %v2942_v13  ;;  %v2934_v21 = vadd.f32 %v15443_v39, %v2884_v52  ;;  %v15447_v13 = vld [vmem:[#allocation27_spill] sm:$0xff]  ;;  %v15455_v19 = vld [vmem:[#allocation117_spill] sm:$0xff] }
 0x4f0   : > { %v2749_v28 = vadd.f32 %v15438_v45, %v2695_v4  ;;  %v2816_v60 = vadd.f32 %v15445_v56, %v2754_v47  ;;  %v15446_v4 = vld [vmem:[#allocation130_spill] sm:$0xff]  ;;  %9313 = vtanh.f32 %v2938_v24  ;;  %v15449_v52 = vld [vmem:[#allocation31_spill] sm:$0xff]  ;;  %v15450_v45 = vld [vmem:[#allocation112_spill] sm:$0xff] }
 0x4f1   : > { %v2930_v15 = vadd.f32 %v15446_v4, %v2880_v53  ;;  %9315 = vtanh.f32 %v2934_v21  ;;  %v2804_v55 = vadd.f32 %v15449_v52, %v2744_v10  ;;  %v15451_v39 = vld [vmem:[#allocation123_spill] sm:$0xff] }
 0x4f2   : > { %v12214_v20 = vpop.f32.mrf.mxu3  ;;  %v2810_v25 = vadd.f32 %v15447_v13, %v2749_v28  ;;  %v2876_v63 = vadd.f32 %v15448_v50, %v2816_v60  ;;  %v15454_v24 = vld [vmem:[#allocation111_spill] sm:$0xff]  ;;  %v15456_v28 = vld [vmem:[#allocation64_spill] sm:$0xff]  ;;  %v15460_v13 = vld [vmem:[#allocation109_spill] sm:$0xff] }
 0x4f3   : > { %15433 = vst [vmem:[#allocation107_spill] sm:$0xff] %v12214_v20  ;;  %v12219_v43 = vpop.f32.mrf.mxu0  ;;  %9317 = vtanh.f32 %v2930_v15  ;;  %v2868_v53 = vadd.f32 %v15454_v24, %v2804_v55  ;;  %v15459_v15 = vld [vmem:[#allocation26_spill] sm:$0xff]  ;;  %v15461_v50 = vld [vmem:[#allocation113_spill] sm:$0xff] }
 0x4f4   : > { %15437 = vst [vmem:[#allocation8_spill] sm:$0xff] %v12219_v43  ;;  %5345 = vmatmul.f32.gmra.mxu0 %v15439_v12  ;;  %v12223_v9 = vpop.f32.mrf.mxu1  ;;  %v12225_v26 = vpop.f32.mrf.mxu2  ;;  %v2872_v34 = vadd.f32 %v15450_v45, %v2810_v25  ;;  %v2864_v25 = vadd.f32 %v15460_v13, %v15459_v15  ;;  %v15462_v55 = vld [vmem:[#allocation10_spill] sm:$0xff] }
 0x4f5   : > { %15440 = vst [vmem:[#allocation13_spill] sm:$0xff] %v12223_v9  ;;  %5434 = vmatmul.f32.gmra.mxu1 %v10979_v11  ;;  %5582 = vmatmul.f32.gmra.mxu3 %v11035_v2  ;;  %v9312_v49 = vpop.eup %9311  ;;  %v2926_v9 = vadd.f32 %v15451_v39, %v2876_v63  ;;  %v2918_v63 = vadd.f32 %v15461_v50, %v2868_v53 }
 0x4f6   : > { %15441 = vst [vmem:[#allocation42_spill] sm:$0xff] %v12225_v26  ;;  %v2922_v56 = vadd.f32 %v15455_v19, %v2872_v34  ;;  %v9314_v10 = vpop.eup %9313  ;;  %v12253_v4 = vand.u32 4294901760, %v9312_v49  ;;  %v2914_v45 = vadd.f32 %v15462_v55, %v2864_v25 }
 0x4f7   : > { %5510 = vmatmul.f32.gmra.mxu2 %v11026_v36  ;;  %9319 = vtanh.f32 %v2926_v9  ;;  %v9316_v52 = vpop.eup %9315  ;;  %v12260_v34 = vand.u32 4294901760, %v9314_v10 }
 0x4f8   : > { %9321 = vtanh.f32 %v2922_v56  ;;  %v12263_v24 = vsub.f32 %v9312_v49, %v12253_v4  ;;  %v12265_v19 = vand.u32 4294901760, %v9316_v52 }
 0x4f9   : > { %v9318_v39 = vpop.eup %9317  ;;  %9323 = vtanh.f32 %v2918_v63  ;;  %v12271_v9 = vsub.f32 %v9314_v10, %v12260_v34 }
 0x4fa   : > { %v12240_v54 = vpop.f32.mrf.mxu3  ;;  %9325 = vtanh.f32 %v2914_v45  ;;  %v12275_v13 = vand.u32 4294901760, %v9318_v39  ;;  %v12285_v10 = vsub.f32 %v9316_v52, %v12265_v19  ;;  %v15466_v45 = vld [vmem:[#allocation92_spill] sm:$0xff]  ;;  %v15467_v52 = vand.u32 4294901760, %v12263_v24 }
 0x4fb   : > { %15452 = vst [vmem:[#allocation103_spill] sm:$0xff] %v12240_v54  ;;  %v12242_v47 = vpop.f32.mrf.mxu0 }
 0x4fc   : > { %15453 = vst [vmem:[#allocation15_spill] sm:$0xff] %v12242_v47  ;;  %5353 = vmatmul.f32.gmra.mxu0 %v15456_v28  ;;  %v12247_v60 = vpop.f32.mrf.mxu1  ;;  %v12249_v21 = vpop.f32.mrf.mxu2  ;;  %v12295_v25 = vsub.f32 %v9318_v39, %v12275_v13  ;;  %v6276_v20 = vsub.f32 %v12263_v24, %v15467_v52  ;;  %v15468_v52 = vand.u32 4294901760, %v12271_v9 }
 0x4fd   : > { %15457 = vst [vmem:[#allocation46_spill] sm:$0xff] %v12247_v60  ;;  %5438 = vmatmul.f32.gmra.mxu1 %v11009_v32  ;;  %5588 = vmatmul.f32.gmra.mxu3 %v15365_v44  ;;  %v9320_v15 = vpop.eup %9319 }
 0x4fe   : > { %15458 = vst [vmem:[#allocation99_spill] sm:$0xff] %v12249_v21  ;;  %v9322_v50 = vpop.eup %9321  ;;  %v12288_v63 = vand.u32 4294901760, %v9320_v15  ;;  %v6282_v47 = vsub.f32 %v12271_v9, %v15468_v52 }
 0x4ff   : > { %5515 = vmatmul.f32.gmra.mxu2 %v11051_v17  ;;  %v9324_v55 = vpop.eup %9323  ;;  %v12302_v43 = vand.u32 4294901760, %v9322_v50  ;;  %v15495_v17 = vld [vmem:[#allocation75_spill] sm:$0xff] }
 0x500   : > { %v9326_v54 = vpop.eup %9325  ;;  %v12309_v39 = vsub.f32 %v9320_v15, %v12288_v63  ;;  %v6277_v15 = vand.u32 4294901760, %v6276_v20 }
 0x501   : > { %v12323_v21 = vsub.f32 %v9322_v50, %v12302_v43 }
 0x502   : > { %v12267_v60 = vpop.f32.mrf.mxu3 }
 0x503   : > { %15463 = vst [vmem:[#allocation6_spill] sm:$0xff] %v12267_v60  ;;  %v4853_v60 = vadd.f32 %v12103_v48, %v15466_v45  ;;  %v12325_v45 = vand.u32 4294901760, %v9326_v54 }
 0x504   : > { %5633 = vmatmul.f32.vlgmr.msrb.gmra.mxu0 %v10805_v35  ;;  %v12273_v56 = vpop.f32.mrf.mxu2  ;;  %v12279_v49 = vpop.f32.mrf.mxu1 }
 0x505   : > { %v5032_v53 = vpop.f32.mrf.mxu0  ;;  %15464 = vst [vmem:[#allocation18_spill] sm:$0xff] %v12273_v56  ;;  %5442 = vmatmul.f32.gmra.mxu1 %v11037_v33  ;;  %5868 = vmatmul.f32.vlgmr.msrb.gmra.mxu3 %v10805_v35  ;;  %v12311_v56 = vand.u32 4294901760, %v9324_v55  ;;  %v4966_v26 = vadd.f32 %v12092_v23, %v4853_v60  ;;  %v15469_v60 = vand.u32 4294901760, %v12285_v10 }
 0x506   : > { %15465 = vst [vmem:[#allocation17_spill] sm:$0xff] %v12279_v49  ;;  %6185 = vmatpush.msrb.mxu0 %v12253_v4  ;;  %6436 = vmatpush.msrb.mxu3 %v12253_v4 }
 0x507   : > { %5751 = vmatmul.f32.vlgmr.msrb.gmra.mxu2 %v10851_v62  ;;  %v5033_v23 = vadd.f32 %v5032_v53, %v4966_v26  ;;  %v6288_v52 = vsub.f32 %v12285_v10, %v15469_v60  ;;  %v12336_v50 = vsub.f32 %v9324_v55, %v12311_v56  ;;  %v6283_v53 = vand.u32 4294901760, %v6282_v47 }
 0x508   : > { %6187 = vmatpush.msrb.mxu0 %v12260_v34  ;;  %6364 = vmatpush.msrb.mxu2 %v12263_v24  ;;  %v15471_v60 = vand.u32 4294901760, %v12295_v25  ;;  %v14765_v55 = vand.u32 4294901760, %v12323_v21  ;;  %v15472_v47 = vand.u32 4294901760, %v12309_v39 }
 0x509   : > { %6438 = vmatpush.msrb.mxu3 %v12260_v34  ;;  %v6289_v26 = vand.u32 4294901760, %v6288_v52 }
 0x50a   : > { %6189 = vmatpush.msrb.mxu0 %v12265_v19  ;;  %6367 = vmatpush.msrb.mxu2 %v12271_v9 }
 0x50b   : > { %6440 = vmatpush.msrb.mxu3 %v12265_v19  ;;  %v5241_v49 = vpop.f32.mrf.mxu3 }
 0x50c   : > { %6191 = vmatpush.msrb.mxu0 %v12275_v13  ;;  %6370 = vmatpush.msrb.mxu2 %v12285_v10 }
 0x50d   : > { %6442 = vmatpush.msrb.mxu3 %v12275_v13  ;;  %5637 = vmatmul.f32.gmra.mxu0 %v10829_v7 }
 0x50e   : > { %5690 = vmatmul.f32.vlgmr.msrb.gmra.mxu1 %v10805_v35  ;;  %5872 = vmatmul.f32.gmra.mxu3 %v10829_v7  ;;  %v12332_v48 = vpop.f32.mrf.mxu0  ;;  %v5184_v44 = vpop.f32.mrf.mxu2 }
 0x50f   : > { %15470 = vst [vmem:[#allocation7_spill] sm:$0xff] %v12332_v48  ;;  %6193 = vmatpush.msrb.mxu0 %v12288_v63  ;;  %6278 = vmatpush.msrb.mxu1 %v6277_v15  ;;  %v5099_v20 = vpop.f32.mrf.mxu1  ;;  %v6294_v48 = vsub.f32 %v12295_v25, %v15471_v60  ;;  %v12347_v15 = vsub.f32 %v9326_v54, %v12325_v45 }
 0x510   : > { %6373 = vmatpush.msrb.mxu2 %v12295_v25  ;;  %6444 = vmatpush.msrb.mxu3 %v12288_v63  ;;  %v5100_v62 = vadd.f32 %v5099_v20, %v5033_v23  ;;  %v6300_v23 = vsub.f32 %v12309_v39, %v15472_v47  ;;  %v14766_v20 = vand.u32 4294901760, %v12336_v50 }
 0x511   : > { %5759 = vmatmul.f32.gmra.mxu2 %v15373_v46  ;;  %6195 = vmatpush.msrb.mxu0 %v12302_v43  ;;  %v6295_v54 = vand.u32 4294901760, %v6294_v48 }
 0x512   : > { %6284 = vmatpush.msrb.mxu1 %v6283_v53  ;;  %6376 = vmatpush.msrb.mxu2 %v12309_v39  ;;  %v5185_v2 = vadd.f32 %v5184_v44, %v5100_v62  ;;  %v6306_v62 = vsub.f32 %v12323_v21, %v14765_v55  ;;  %v14767_v44 = vand.u32 4294901760, %v12347_v15 }
 0x513   : > { %6446 = vmatpush.msrb.mxu3 %v12302_v43  ;;  %6197 = vmatpush.msrb.mxu0 %v12311_v56 }
 0x514   : > { %6290 = vmatpush.msrb.mxu1 %v6289_v26  ;;  %6379 = vmatpush.msrb.mxu2 %v12323_v21  ;;  %v12358_v60 = vadd.f32 %v5241_v49, %v5185_v2  ;;  %v6301_v2 = vand.u32 4294901760, %v6300_v23  ;;  %v6312_v49 = vsub.f32 %v12336_v50, %v14766_v20  ;;  %v6307_v47 = vand.u32 4294901760, %v6306_v62 }
 0x515   : > { %6448 = vmatpush.msrb.mxu3 %v12311_v56  ;;  %6199 = vmatpush.msrb.mxu0 %v12325_v45  ;;  %v12366_v52 = vpop.f32.mrf.mxu3  ;;  %v6318_v23 = vsub.f32 %v12347_v15, %v14767_v44  ;;  %v15483_v44 = vld [vmem:[#allocation138_spill] sm:$0xff] }
 0x516   : > { %15473 = vst [vmem:[#allocation133_spill] sm:$0xff] %v12358_v60  ;;  %6296 = vmatpush.msrb.mxu1 %v6295_v54  ;;  %6382 = vmatpush.msrb.mxu2 %v12336_v50  ;;  %v12369_v26 = vpop.f32.mrf.mxu0  ;;  %v15478_v54 = vld [vmem:[#allocation62_spill] sm:$0xff]  ;;  %v6313_v20 = vand.u32 4294901760, %v6312_v49  ;;  %v15479_v60 = vld [vmem:[#allocation52_spill] sm:$0xff]  ;;  %v3008_v46 = vadd.f32 %v15483_v44, %v15401_v58  ;;  %v15490_v44 = vld [vmem:[#allocation135_spill] sm:$0xff] }
 0x517   : > { %15474 = vst [vmem:[#allocation104_spill] sm:$0xff] %v12366_v52  ;;  %6450 = vmatpush.msrb.mxu3 %v12325_v45  ;;  %5641 = vmatmul.f32.gmra.mxu0 %v10859_v14  ;;  %v12376_v48 = vpop.f32.mrf.mxu1  ;;  %v12378_v53 = vpop.f32.mrf.mxu2  ;;  %v3024_v55 = vadd.f32 %v15478_v54, %v15391_v6  ;;  %v3016_v52 = vadd.f32 %v15479_v60, %v15399_v29  ;;  %v15488_v60 = vld [vmem:[#allocation70_spill] sm:$0xff] }
 0x518   : > { %15475 = vst [vmem:[#allocation16_spill] sm:$0xff] %v12369_v26  ;;  %5694 = vmatmul.f32.gmra.mxu1 %v10829_v7  ;;  %5876 = vmatmul.f32.gmra.mxu3 %v10859_v14  ;;  %v15491_v54 = vld [vmem:[#allocation78_spill] sm:$0xff] }
 0x519   : > { %15476 = vst [vmem:[#allocation19_spill] sm:$0xff] %v12376_v48  ;;  %6302 = vmatpush.msrb.mxu1 %v6301_v2  ;;  %6385 = vmatpush.msrb.mxu2 %v12347_v15  ;;  %v15481_v48 = vld [vmem:[#allocation69_spill] sm:$0xff] }
 0x51a   : > { %15477 = vst [vmem:[#allocation41_spill] sm:$0xff] %v12378_v53  ;;  %5767 = vmatmul.f32.gmra.mxu2 %v15382_v40  ;;  %v6319_v53 = vand.u32 4294901760, %v6318_v23  ;;  %v3078_v62 = vadd.f32 %v15481_v48, %v3024_v55  ;;  %v15487_v55 = vld [vmem:[#allocation131_spill] sm:$0xff]  ;;  %v3074_v48 = vadd.f32 %v15488_v60, %v3016_v52  ;;  %v15497_v52 = vld [vmem:[#allocation146_spill] sm:$0xff] }
 0x51b   : > { %6308 = vmatpush.msrb.mxu1 %v6307_v47  ;;  %v15486_v47 = vld [vmem:[#allocation76_spill] sm:$0xff]  ;;  %v15489_v23 = vld [vmem:[#allocation71_spill] sm:$0xff]  ;;  %v15499_v60 = vld [vmem:[#allocation118_spill] sm:$0xff] }
 0x51c   : > { %v3137_v29 = vadd.f32 %v15486_v47, %v3078_v62  ;;  %v15493_v47 = vld [vmem:[#allocation128_spill] sm:$0xff] }
 0x51d   : > { %6314 = vmatpush.msrb.mxu1 %v6313_v20  ;;  %v12391_v2 = vpop.f32.mrf.mxu3  ;;  %v3000_v20 = vadd.f32 %v15487_v55, %v15405_v8 }
 0x51e   : > { %15480 = vst [vmem:[#allocation53_spill] sm:$0xff] %v12391_v2  ;;  %v12394_v26 = vpop.f32.mrf.mxu0  ;;  %v3203_v58 = vadd.f32 %v15489_v23, %v3137_v29  ;;  %v3132_v2 = vadd.f32 %v15491_v54, %v3074_v48  ;;  %v15500_v23 = vld [vmem:[#allocation56_spill] sm:$0xff] }
 0x51f   : > { %15482 = vst [vmem:[#allocation100_spill] sm:$0xff] %v12394_v26  ;;  %6320 = vmatpush.msrb.mxu1 %v6319_v53  ;;  %5645 = vmatmul.f32.gmra.mxu0 %v10897_v57  ;;  %v12399_v6 = vpop.f32.mrf.mxu1  ;;  %v12401_v49 = vpop.f32.mrf.mxu2  ;;  %v3070_v53 = vadd.f32 %v15490_v44, %v3008_v46  ;;  %v15494_v26 = vld [vmem:[#allocation59_spill] sm:$0xff]  ;;  %v2984_v46 = vadd.f32 %v15499_v60, %v15414_v61  ;;  %v15501_v44 = vld [vmem:[#allocation142_spill] sm:$0xff] }
 0x520   : > { %15484 = vst [vmem:[#allocation105_spill] sm:$0xff] %v12399_v6  ;;  %5698 = vmatmul.f32.gmra.mxu1 %v10859_v14  ;;  %5880 = vmatmul.f32.gmra.mxu3 %v10897_v57  ;;  %v3066_v6 = vadd.f32 %v15493_v47, %v3000_v20  ;;  %v3197_v36 = vadd.f32 %v15495_v17, %v3132_v2  ;;  %v15504_v17 = vld [vmem:[#allocation121_spill] sm:$0xff] }
 0x521   : > { %15485 = vst [vmem:[#allocation45_spill] sm:$0xff] %v12401_v49  ;;  %v15492_v49 = vld [vmem:[#allocation124_spill] sm:$0xff]  ;;  %v3127_v40 = vadd.f32 %v15494_v26, %v3070_v53  ;;  %v3255_v55 = vadd.f32 %v15497_v52, %v3203_v58  ;;  %v15507_v53 = vld [vmem:[#allocation49_spill] sm:$0xff]  ;;  %v15509_v52 = vld [vmem:[#allocation115_spill] sm:$0xff] }
 0x522   : > { %5775 = vmatmul.f32.gmra.mxu2 %v15388_v51  ;;  %v2992_v62 = vadd.f32 %v15492_v49, %v15408_v1  ;;  %v3122_v48 = vadd.f32 %v15500_v23, %v3066_v6  ;;  %v15505_v49 = vld [vmem:[#allocation57_spill] sm:$0xff]  ;;  %v15506_v58 = vld [vmem:[#allocation144_spill] sm:$0xff]  ;;  %v3058_v60 = vadd.f32 %v15509_v52, %v2984_v46  ;;  %v15510_v23 = vld [vmem:[#allocation143_spill] sm:$0xff] }
 0x523   : > { %v3191_v54 = vadd.f32 %v15501_v44, %v3127_v40  ;;  %v3251_v61 = vadd.f32 %v15506_v58, %v3197_v36  ;;  %v15508_v47 = vld [vmem:[#allocation73_spill] sm:$0xff] }
 0x524   : > { %v3062_v2 = vadd.f32 %v15504_v17, %v2992_v62  ;;  %v3185_v20 = vadd.f32 %v15505_v49, %v3122_v48  ;;  %v3305_v40 = vadd.f32 %v15508_v47, %v3255_v55  ;;  %v15512_v17 = vld [vmem:[#allocation65_spill] sm:$0xff]  ;;  %v15517_v55 = vld [vmem:[#allocation58_spill] sm:$0xff]  ;;  %v15524_v47 = vld [vmem:[#allocation48_spill] sm:$0xff] }
 0x525   : > { %v12418_v8 = vpop.f32.mrf.mxu3  ;;  %v3247_v44 = vadd.f32 %v15510_v23, %v3191_v54  ;;  %v15514_v51 = vld [vmem:[#allocation77_spill] sm:$0xff]  ;;  %v15521_v54 = vld [vmem:[#allocation47_spill] sm:$0xff] }
 0x526   : > { %15496 = vst [vmem:[#allocation51_spill] sm:$0xff] %v12418_v8  ;;  %v12421_v29 = vpop.f32.mrf.mxu0  ;;  %v3117_v6 = vadd.f32 %v15507_v53, %v3062_v2  ;;  %v15511_v8 = vld [vmem:[#allocation61_spill] sm:$0xff]  ;;  %v3301_v48 = vadd.f32 %v15514_v51, %v3251_v61  ;;  %9327 = vtanh.f32 %v3305_v40  ;;  %v15522_v51 = vld [vmem:[#allocation54_spill] sm:$0xff] }
 0x527   : > { %15498 = vst [vmem:[#allocation101_spill] sm:$0xff] %v12421_v29  ;;  %5649 = vmatmul.f32.gmra.mxu0 %v10938_v38  ;;  %v12428_v1 = vpop.f32.mrf.mxu1  ;;  %v12430_v26 = vpop.f32.mrf.mxu2  ;;  %v15518_v58 = vld [vmem:[#allocation141_spill] sm:$0xff] }
 0x528   : > { %15502 = vst [vmem:[#allocation136_spill] sm:$0xff] %v12428_v1  ;;  %5702 = vmatmul.f32.gmra.mxu1 %v10897_v57  ;;  %5884 = vmatmul.f32.gmra.mxu3 %v10938_v38  ;;  %v3179_v62 = vadd.f32 %v15511_v8, %v3117_v6  ;;  %v15513_v1 = vld [vmem:[#allocation140_spill] sm:$0xff]  ;;  %v3297_v53 = vadd.f32 %v15518_v58, %v3247_v44  ;;  %9329 = vtanh.f32 %v3301_v48 }
 0x529   : > { %15503 = vst [vmem:[#allocation25_spill] sm:$0xff] %v12430_v26  ;;  %v3112_v26 = vadd.f32 %v15512_v17, %v3058_v60  ;;  %v3243_v29 = vadd.f32 %v15513_v1, %v3185_v20  ;;  %v15527_v44 = vld [vmem:[#allocation60_spill] sm:$0xff] }
 0x52a   : > { %5783 = vmatmul.f32.gmra.mxu2 %v15396_v3  ;;  %v3239_v6 = vadd.f32 %v15521_v54, %v3179_v62  ;;  %9331 = vtanh.f32 %v3297_v53 }
 0x52b   : > { %v3173_v2 = vadd.f32 %v15517_v55, %v3112_v26  ;;  %v3293_v1 = vadd.f32 %v15522_v51, %v3243_v29  ;;  %v15523_v26 = vld [vmem:[#allocation63_spill] sm:$0xff] }
 0x52c   : > { %v9328_v61 = vpop.eup %9327  ;;  %v3289_v40 = vadd.f32 %v15524_v47, %v3239_v6  ;;  %v15530_v6 = vld [vmem:[#allocation50_spill] sm:$0xff] }
 0x52d   : > { %v12446_v49 = vpop.f32.mrf.mxu3  ;;  %v3235_v20 = vadd.f32 %v15523_v26, %v3173_v2  ;;  %9333 = vtanh.f32 %v3293_v1  ;;  %v12469_v17 = vand.u32 4294901760, %v9328_v61 }
 0x52e   : > { %15515 = vst [vmem:[#allocation40_spill] sm:$0xff] %v12446_v49  ;;  %v12448_v36 = vpop.f32.mrf.mxu0  ;;  %v9330_v23 = vpop.eup %9329  ;;  %9335 = vtanh.f32 %v3289_v40  ;;  %v15533_v40 = vld [vmem:[#allocation67_spill] sm:$0xff] }
 0x52f   : > { %15516 = vst [vmem:[#allocation39_spill] sm:$0xff] %v12448_v36  ;;  %5653 = vmatmul.f32.gmra.mxu0 %v10979_v11  ;;  %v12453_v46 = vpop.f32.mrf.mxu1  ;;  %v12455_v8 = vpop.f32.mrf.mxu2  ;;  %v3285_v62 = vadd.f32 %v15527_v44, %v3235_v20  ;;  %v12478_v2 = vand.u32 4294901760, %v9330_v23  ;;  %v12482_v53 = vsub.f32 %v9328_v61, %v12469_v17 }
 0x530   : > { %15519 = vst [vmem:[#allocation129_spill] sm:$0xff] %v12453_v46  ;;  %5706 = vmatmul.f32.gmra.mxu1 %v10938_v38  ;;  %5888 = vmatmul.f32.gmra.mxu3 %v10979_v11  ;;  %v9332_v55 = vpop.eup %9331 }
 0x531   : > { %15520 = vst [vmem:[#allocation66_spill] sm:$0xff] %v12455_v8  ;;  %9337 = vtanh.f32 %v3285_v62  ;;  %v12484_v54 = vand.u32 4294901760, %v9332_v55  ;;  %v12494_v47 = vsub.f32 %v9330_v23, %v12478_v2  ;;  %v14775_v62 = vand.u32 4294901760, %v12482_v53 }
 0x532   : > { %5791 = vmatmul.f32.gmra.mxu2 %v15417_v0  ;;  %9339 = vtanh.f32 %v15530_v6 }
 0x533   : > { %v9334_v58 = vpop.eup %9333  ;;  %9341 = vtanh.f32 %v15533_v40  ;;  %v12506_v6 = vsub.f32 %v9332_v55, %v12484_v54  ;;  %v14776_v40 = vand.u32 4294901760, %v12494_v47 }
 0x534   : > { %v9336_v1 = vpop.eup %9335  ;;  %v12489_v26 = vand.u32 4294901760, %v9334_v58 }
 0x535   : > { %v12464_v52 = vpop.f32.mrf.mxu3  ;;  %v12508_v23 = vand.u32 4294901760, %v9336_v1 }
 0x536   : > { %15525 = vst [vmem:[#allocation44_spill] sm:$0xff] %v12464_v52  ;;  %v12466_v60 = vpop.f32.mrf.mxu0  ;;  %v12513_v52 = vsub.f32 %v9334_v58, %v12489_v26  ;;  %v6736_v58 = vsub.f32 %v12494_v47, %v14776_v40 }
 0x537   : > { %15526 = vst [vmem:[#allocation122_spill] sm:$0xff] %v12466_v60  ;;  %5657 = vmatmul.f32.gmra.mxu0 %v11009_v32  ;;  %v12472_v29 = vpop.f32.mrf.mxu1  ;;  %v12474_v48 = vpop.f32.mrf.mxu2 }
 0x538   : > { %15528 = vst [vmem:[#allocation137_spill] sm:$0xff] %v12472_v29  ;;  %5710 = vmatmul.f32.gmra.mxu1 %v10979_v11  ;;  %5892 = vmatmul.f32.gmra.mxu3 %v11009_v32  ;;  %v12524_v29 = vsub.f32 %v9336_v1, %v12508_v23  ;;  %v15539_v1 = vand.u32 4294901760, %v12506_v6 }
 0x539   : > { %15529 = vst [vmem:[#allocation29_spill] sm:$0xff] %v12474_v48 }
 0x53a   : > { %5799 = vmatmul.f32.gmra.mxu2 %v15439_v12 }
 0x53d   : > { %v12487_v51 = vpop.f32.mrf.mxu3 }
 0x53e   : > { %15531 = vst [vmem:[#allocation43_spill] sm:$0xff] %v12487_v51  ;;  %v12491_v20 = vpop.f32.mrf.mxu0  ;;  %v6730_v51 = vsub.f32 %v12482_v53, %v14775_v62 }
 0x53f   : > { %15532 = vst [vmem:[#allocation130_spill] sm:$0xff] %v12491_v20  ;;  %5661 = vmatmul.f32.gmra.mxu0 %v11037_v33  ;;  %v12498_v61 = vpop.f32.mrf.mxu1  ;;  %v12500_v44 = vpop.f32.mrf.mxu2 }
 0x540   : > { %15534 = vst [vmem:[#allocation27_spill] sm:$0xff] %v12498_v61  ;;  %5714 = vmatmul.f32.gmra.mxu1 %v11009_v32  ;;  %5896 = vmatmul.f32.gmra.mxu3 %v11037_v33  ;;  %v9338_v20 = vpop.eup %9337  ;;  %v6731_v62 = vand.u32 4294901760, %v6730_v51  ;;  %v15541_v51 = vand.u32 4294901760, %v12263_v24 }
 0x541   : > { %15535 = vst [vmem:[#allocation116_spill] sm:$0xff] %v12500_v44  ;;  %v9340_v49 = vpop.eup %9339  ;;  %v12518_v48 = vand.u32 4294901760, %v9338_v20 }
 0x542   : > { %5807 = vmatmul.f32.gmra.mxu2 %v15456_v28  ;;  %v9342_v8 = vpop.eup %9341  ;;  %v12526_v46 = vand.u32 4294901760, %v9340_v49  ;;  %v15542_v28 = vand.u32 4294901760, %v12513_v52 }
 0x543   : > { %v12537_v60 = vand.u32 4294901760, %v9342_v8  ;;  %v12547_v61 = vsub.f32 %v9338_v20, %v12518_v48 }
 0x544   : > { %v6748_v12 = vsub.f32 %v12513_v52, %v15542_v28 }
 0x545   : > { %v12521_v44 = vpop.f32.mrf.mxu3  ;;  %v14781_v20 = vand.u32 4294901760, %v12547_v61 }
 0x546   : > { %15536 = vst [vmem:[#allocation31_spill] sm:$0xff] %v12521_v44  ;;  %v6742_v44 = vsub.f32 %v12506_v6, %v15539_v1  ;;  %v12557_v1 = vsub.f32 %v9340_v49, %v12526_v46 }
 0x547   : > { %5934 = vmatmul.f32.vlgmr.msra.gmra.mxu0 %v15368_v42  ;;  %v12533_v36 = vpop.f32.mrf.mxu0  ;;  %v12535_v55 = vpop.f32.mrf.mxu2 }
 0x548   : > { %15537 = vst [vmem:[#allocation112_spill] sm:$0xff] %v12533_v36  ;;  %5718 = vmatmul.f32.gmra.mxu1 %v11037_v33  ;;  %6144 = vmatmul.f32.vlgmr.msra.gmra.mxu3 %v10805_v35  ;;  %v12544_v40 = vpop.f32.mrf.mxu1  ;;  %v6737_v36 = vand.u32 4294901760, %v6736_v58  ;;  %v6743_v24 = vand.u32 4294901760, %v6742_v44  ;;  %v15544_v58 = vand.u32 4294901760, %v12285_v10  ;;  %v14780_v49 = vand.u32 4294901760, %v12557_v1 }
 0x549   : > { %15538 = vst [vmem:[#allocation123_spill] sm:$0xff] %v12535_v55  ;;  %6511 = vmatpush.msra.mxu0 %v15541_v51  ;;  %6732 = vmatpush.msra.mxu3 %v6731_v62  ;;  %v14782_v55 = vand.u32 4294901760, %v12524_v29  ;;  %v12564_v62 = vsub.f32 %v9342_v8, %v12537_v60  ;;  %v15546_v44 = vand.u32 4294901760, %v12295_v25  ;;  %v6760_v10 = vsub.f32 %v12547_v61, %v14781_v20  ;;  %v15575_v20 = vld [vmem:[#allocation127_spill] sm:$0xff] }
 0x54a   : > { %15540 = vst [vmem:[#allocation111_spill] sm:$0xff] %v12544_v40  ;;  %6087 = vmatmul.f32.vlgmr.msra.gmra.mxu2 %v10805_v35  ;;  %v15543_v40 = vand.u32 4294901760, %v12271_v9  ;;  %v6749_v9 = vand.u32 4294901760, %v6748_v12  ;;  %v15549_v51 = vand.u32 4294901760, %v12309_v39 }
 0x54b   : > { %6639 = vmatpush.msra.mxu2 %v12469_v17  ;;  %6738 = vmatpush.msra.mxu3 %v6737_v36  ;;  %v6754_v28 = vsub.f32 %v12524_v29, %v14782_v55  ;;  %v14779_v8 = vand.u32 4294901760, %v12564_v62 }
 0x54c   : > { %6515 = vmatpush.msra.mxu0 %v15543_v40 }
 0x54d   : > { %6641 = vmatpush.msra.mxu2 %v12478_v2  ;;  %6744 = vmatpush.msra.mxu3 %v6743_v24  ;;  %v6755_v12 = vand.u32 4294901760, %v6754_v28  ;;  %v6766_v24 = vsub.f32 %v12557_v1, %v14780_v49  ;;  %v15551_v28 = vand.u32 4294901760, %v12323_v21  ;;  %v6772_v39 = vsub.f32 %v12564_v62, %v14779_v8 }
 0x54e   : > { %6519 = vmatpush.msra.mxu0 %v15544_v58  ;;  %v12573_v36 = vpop.f32.mrf.mxu3  ;;  %v15553_v21 = vand.u32 4294901760, %v12347_v15 }
 0x54f   : > { %15545 = vst [vmem:[#allocation117_spill] sm:$0xff] %v12573_v36  ;;  %6643 = vmatpush.msra.mxu2 %v12484_v54  ;;  %6750 = vmatpush.msra.mxu3 %v6749_v9  ;;  %v6761_v9 = vand.u32 4294901760, %v6760_v10  ;;  %v6773_v10 = vand.u32 4294901760, %v6772_v39 }
 0x550   : > { %6523 = vmatpush.msra.mxu0 %v15546_v44  ;;  %6000 = vmatmul.f32.vlgmr.msra.gmra.mxu1 %v10827_v18  ;;  %v6767_v44 = vand.u32 4294901760, %v6766_v24 }
 0x551   : > { %5939 = vmatmul.f32.gmra.mxu0 %v10845_v41  ;;  %6148 = vmatmul.f32.gmra.mxu3 %v10829_v7  ;;  %v12585_v40 = vpop.f32.mrf.mxu0  ;;  %v12587_v25 = vpop.f32.mrf.mxu2 }
 0x552   : > { %15547 = vst [vmem:[#allocation26_spill] sm:$0xff] %v12585_v40  ;;  %6527 = vmatpush.msra.mxu0 %v15549_v51  ;;  %6582 = vmatpush.msra.mxu1 %v12253_v4  ;;  %v12595_v58 = vpop.f32.mrf.mxu1  ;;  %v15552_v4 = vand.u32 4294901760, %v12336_v50 }
 0x553   : > { %15548 = vst [vmem:[#allocation109_spill] sm:$0xff] %v12587_v25  ;;  %6645 = vmatpush.msra.mxu2 %v12489_v26  ;;  %6756 = vmatpush.msra.mxu3 %v6755_v12 }
 0x554   : > { %15550 = vst [vmem:[#allocation113_spill] sm:$0xff] %v12595_v58  ;;  %6091 = vmatmul.f32.gmra.mxu2 %v10829_v7  ;;  %6531 = vmatpush.msra.mxu0 %v15551_v28 }
 0x555   : > { %6584 = vmatpush.msra.mxu1 %v12260_v34  ;;  %6647 = vmatpush.msra.mxu2 %v12508_v23 }
 0x556   : > { %6762 = vmatpush.msra.mxu3 %v6761_v9  ;;  %6535 = vmatpush.msra.mxu0 %v15552_v4 }
 0x557   : > { %6586 = vmatpush.msra.mxu1 %v12265_v19  ;;  %6649 = vmatpush.msra.mxu2 %v12518_v48 }
 0x558   : > { %6768 = vmatpush.msra.mxu3 %v6767_v44  ;;  %6539 = vmatpush.msra.mxu0 %v15553_v21  ;;  %v12612_v12 = vpop.f32.mrf.mxu3 }
 0x559   : > { %15554 = vst [vmem:[#allocation10_spill] sm:$0xff] %v12612_v12  ;;  %6588 = vmatpush.msra.mxu1 %v12275_v13  ;;  %6651 = vmatpush.msra.mxu2 %v12526_v46  ;;  %v12616_v34 = vpop.f32.mrf.mxu0  ;;  %v15581_v12 = vld [vmem:[#allocation134_spill] sm:$0xff] }
 0x55a   : > { %15555 = vst [vmem:[#allocation62_spill] sm:$0xff] %v12616_v34  ;;  %6774 = vmatpush.msra.mxu3 %v6773_v10  ;;  %5944 = vmatmul.f32.gmra.mxu0 %v10879_v22  ;;  %v12619_v50 = vpop.f32.mrf.mxu1  ;;  %v12621_v19 = vpop.f32.mrf.mxu2  ;;  %v15572_v10 = vld [vmem:[#allocation132_spill] sm:$0xff] }
 0x55b   : > { %15556 = vst [vmem:[#allocation52_spill] sm:$0xff] %v12619_v50  ;;  %6006 = vmatmul.f32.gmra.mxu1 %v10855_v59  ;;  %6152 = vmatmul.f32.gmra.mxu3 %v10859_v14 }
 0x55c   : > { %15557 = vst [vmem:[#allocation69_spill] sm:$0xff] %v12621_v19  ;;  %6590 = vmatpush.msra.mxu1 %v12288_v63  ;;  %6653 = vmatpush.msra.mxu2 %v12537_v60 }
 0x55d   : > { %6095 = vmatmul.f32.gmra.mxu2 %v10859_v14 }
 0x55e   : > { %6592 = vmatpush.msra.mxu1 %v12302_v43 }
 0x560   : > { %6594 = vmatpush.msra.mxu1 %v12311_v56  ;;  %v12630_v13 = vpop.f32.mrf.mxu3 }
 0x561   : > { %15558 = vst [vmem:[#allocation138_spill] sm:$0xff] %v12630_v13  ;;  %v12632_v15 = vpop.f32.mrf.mxu0 }
 0x562   : > { %15559 = vst [vmem:[#allocation76_spill] sm:$0xff] %v12632_v15  ;;  %6596 = vmatpush.msra.mxu1 %v12325_v45  ;;  %5949 = vmatmul.f32.gmra.mxu0 %v10920_v16  ;;  %v12636_v51 = vpop.f32.mrf.mxu1  ;;  %v12638_v24 = vpop.f32.mrf.mxu2 }
 0x563   : > { %15560 = vst [vmem:[#allocation131_spill] sm:$0xff] %v12636_v51  ;;  %6012 = vmatmul.f32.gmra.mxu1 %v10895_v30  ;;  %6156 = vmatmul.f32.gmra.mxu3 %v10897_v57  ;;  %v15644_v51 = vld [vmem:[#allocation34_spill] sm:$0xff] }
 0x564   : > { %15561 = vst [vmem:[#allocation70_spill] sm:$0xff] %v12638_v24  ;;  %v15625_v24 = vld [vmem:[#allocation169_spill] sm:$0xff] }
 0x565   : > { %6099 = vmatmul.f32.gmra.mxu2 %v10897_v57 }
 0x568   : > { %v12643_v43 = vpop.f32.mrf.mxu3 }
 0x569   : > { %15562 = vst [vmem:[#allocation71_spill] sm:$0xff] %v12643_v43  ;;  %v12645_v56 = vpop.f32.mrf.mxu0  ;;  %v15578_v43 = vld [vmem:[#allocation139_spill] sm:$0xff] }
 0x56a   : > { %15563 = vst [vmem:[#allocation135_spill] sm:$0xff] %v12645_v56  ;;  %5954 = vmatmul.f32.gmra.mxu0 %v10964_v27  ;;  %v12648_v63 = vpop.f32.mrf.mxu1  ;;  %v12650_v45 = vpop.f32.mrf.mxu2 }
 0x56b   : > { %15564 = vst [vmem:[#allocation78_spill] sm:$0xff] %v12648_v63  ;;  %6018 = vmatmul.f32.gmra.mxu1 %v10936_v37  ;;  %6160 = vmatmul.f32.gmra.mxu3 %v10938_v38  ;;  %v15642_v63 = vld [vmem:[#allocation148_spill] sm:$0xff] }
 0x56c   : > { %15565 = vst [vmem:[#allocation124_spill] sm:$0xff] %v12650_v45 }
 0x56d   : > { %6103 = vmatmul.f32.gmra.mxu2 %v10938_v38 }
 0x570   : > { %v12655_v28 = vpop.f32.mrf.mxu3 }
 0x571   : > { %15566 = vst [vmem:[#allocation128_spill] sm:$0xff] %v12655_v28  ;;  %v12657_v9 = vpop.f32.mrf.mxu0 }
 0x572   : > { %15567 = vst [vmem:[#allocation59_spill] sm:$0xff] %v12657_v9  ;;  %5959 = vmatmul.f32.gmra.mxu0 %v10998_v31  ;;  %v12660_v39 = vpop.f32.mrf.mxu1  ;;  %v12662_v4 = vpop.f32.mrf.mxu2 }
 0x573   : > { %15568 = vst [vmem:[#allocation75_spill] sm:$0xff] %v12660_v39  ;;  %6024 = vmatmul.f32.gmra.mxu1 %v10977_v5  ;;  %6164 = vmatmul.f32.gmra.mxu3 %v10979_v11 }
 0x574   : > { %15569 = vst [vmem:[#allocation146_spill] sm:$0xff] %v12662_v4 }
 0x575   : > { %6107 = vmatmul.f32.gmra.mxu2 %v10979_v11 }
 0x578   : > { %v12667_v44 = vpop.f32.mrf.mxu3 }
 0x579   : > { %15570 = vst [vmem:[#allocation118_spill] sm:$0xff] %v12667_v44  ;;  %v12669_v21 = vpop.f32.mrf.mxu0 }
 0x57a   : > { %15571 = vst [vmem:[#allocation56_spill] sm:$0xff] %v12669_v21  ;;  %5964 = vmatmul.f32.gmra.mxu0 %v15572_v10  ;;  %v12672_v8 = vpop.f32.mrf.mxu1  ;;  %v12674_v49 = vpop.f32.mrf.mxu2 }
 0x57b   : > { %15573 = vst [vmem:[#allocation142_spill] sm:$0xff] %v12672_v8  ;;  %6030 = vmatmul.f32.gmra.mxu1 %v15575_v20  ;;  %6168 = vmatmul.f32.gmra.mxu3 %v11009_v32  ;;  %v15628_v8 = vld [vmem:[#allocation174_spill] sm:$0xff] }
 0x57c   : > { %15574 = vst [vmem:[#allocation121_spill] sm:$0xff] %v12674_v49  ;;  %v15583_v49 = vld [vmem:[#allocation110_spill] sm:$0xff] }
 0x57d   : > { %6111 = vmatmul.f32.gmra.mxu2 %v11009_v32 }
 0x580   : > { %v12679_v55 = vpop.f32.mrf.mxu3 }
 0x581   : > { %15576 = vst [vmem:[#allocation57_spill] sm:$0xff] %v12679_v55  ;;  %v12681_v28 = vpop.f32.mrf.mxu0 }
 0x582   : > { %15577 = vst [vmem:[#allocation144_spill] sm:$0xff] %v12681_v28  ;;  %5969 = vmatmul.f32.gmra.mxu0 %v15578_v43  ;;  %v12684_v44 = vpop.f32.mrf.mxu1  ;;  %v12686_v13 = vpop.f32.mrf.mxu2  ;;  %v15586_v28 = vld [vmem:[#allocation68_spill] sm:$0xff] }
 0x583   : > { %15579 = vst [vmem:[#allocation49_spill] sm:$0xff] %v12684_v44  ;;  %6036 = vmatmul.f32.gmra.mxu1 %v15581_v12  ;;  %6172 = vmatmul.f32.gmra.mxu3 %v11037_v33  ;;  %v15627_v44 = vld [vmem:[#allocation165_spill] sm:$0xff] }
 0x584   : > { %15580 = vst [vmem:[#allocation73_spill] sm:$0xff] %v12686_v13 }
 0x585   : > { %6115 = vmatmul.f32.gmra.mxu2 %v11037_v33 }
 0x588   : > { %v12691_v36 = vpop.f32.mrf.mxu3 }
 0x589   : > { %15582 = vst [vmem:[#allocation115_spill] sm:$0xff] %v12691_v36  ;;  %v15588_v36 = vand.u32 4294901760, %v12482_v53 }
 0x58a   : > { %6205 = vmatmul.f32.vlgmr.msrb.gmra.mxu0 %v15583_v49  ;;  %v12694_v4 = vpop.f32.mrf.mxu0  ;;  %v12696_v55 = vpop.f32.mrf.mxu2 }
 0x58b   : > { %15584 = vst [vmem:[#allocation143_spill] sm:$0xff] %v12694_v4  ;;  %6042 = vmatmul.f32.gmra.mxu1 %v15586_v28  ;;  %6454 = vmatmul.f32.vlgmr.msrb.gmra.mxu3 %v10827_v18  ;;  %v12700_v45 = vpop.f32.mrf.mxu1  ;;  %v15589_v4 = vand.u32 4294901760, %v12494_v47 }
 0x58c   : > { %15585 = vst [vmem:[#allocation61_spill] sm:$0xff] %v12696_v55  ;;  %6818 = vmatpush.msrb.mxu0 %v12482_v53  ;;  %7036 = vmatpush.msrb.mxu3 %v12469_v17  ;;  %v15590_v55 = vand.u32 4294901760, %v12506_v6  ;;  %v15591_v53 = vld [vmem:[#allocation20_spill] sm:$0xff] }
 0x58d   : > { %15587 = vst [vmem:[#allocation65_spill] sm:$0xff] %v12700_v45  ;;  %6388 = vmatmul.f32.vlgmr.msrb.gmra.mxu2 %v15368_v42 }
 0x58e   : > { %6821 = vmatpush.msrb.mxu0 %v12494_v47  ;;  %6965 = vmatpush.msrb.mxu2 %v15588_v36 }
 0x58f   : > { %7038 = vmatpush.msrb.mxu3 %v12478_v2 }
 0x590   : > { %6824 = vmatpush.msrb.mxu0 %v12506_v6  ;;  %6969 = vmatpush.msrb.mxu2 %v15589_v4  ;;  %v15594_v6 = vand.u32 4294901760, %v12513_v52 }
 0x591   : > { %7040 = vmatpush.msrb.mxu3 %v12484_v54  ;;  %v12713_v45 = vpop.f32.mrf.mxu3 }
 0x592   : > { %6827 = vmatpush.msrb.mxu0 %v12513_v52  ;;  %6973 = vmatpush.msrb.mxu2 %v15590_v55  ;;  %v15595_v55 = vand.u32 4294901760, %v12524_v29  ;;  %v15596_v52 = vand.u32 4294901760, %v12547_v61 }
 0x593   : > { %7042 = vmatpush.msrb.mxu3 %v12489_v26  ;;  %6213 = vmatmul.f32.gmra.mxu0 %v15591_v53 }
 0x594   : > { %6322 = vmatmul.f32.vlgmr.msrb.gmra.mxu1 %v10805_v35  ;;  %6460 = vmatmul.f32.gmra.mxu3 %v10855_v59  ;;  %v12722_v36 = vpop.f32.mrf.mxu0  ;;  %v12724_v47 = vpop.f32.mrf.mxu2 }
 0x595   : > { %15592 = vst [vmem:[#allocation140_spill] sm:$0xff] %v12722_v36  ;;  %6830 = vmatpush.msrb.mxu0 %v12524_v29  ;;  %6890 = vmatpush.msrb.mxu1 %v12469_v17  ;;  %v12728_v4 = vpop.f32.mrf.mxu1  ;;  %v15598_v29 = vand.u32 4294901760, %v12557_v1  ;;  %v15615_v36 = vld [vmem:[#allocation177_spill] sm:$0xff] }
 0x596   : > { %15593 = vst [vmem:[#allocation77_spill] sm:$0xff] %v12728_v4  ;;  %6977 = vmatpush.msrb.mxu2 %v15594_v6  ;;  %7044 = vmatpush.msrb.mxu3 %v12508_v23  ;;  %v15600_v6 = vld [vmem:[#allocation114_spill] sm:$0xff] }
 0x597   : > { %6393 = vmatmul.f32.gmra.mxu2 %v10845_v41  ;;  %6833 = vmatpush.msrb.mxu0 %v12547_v61 }
 0x598   : > { %6892 = vmatpush.msrb.mxu1 %v12478_v2  ;;  %6981 = vmatpush.msrb.mxu2 %v15595_v55 }
 0x599   : > { %7046 = vmatpush.msrb.mxu3 %v12518_v48  ;;  %6836 = vmatpush.msrb.mxu0 %v12557_v1 }
 0x59a   : > { %6894 = vmatpush.msrb.mxu1 %v12484_v54  ;;  %6985 = vmatpush.msrb.mxu2 %v15596_v52  ;;  %v15606_v52 = vld [vmem:[#allocation119_spill] sm:$0xff] }
 0x59b   : > { %7048 = vmatpush.msrb.mxu3 %v12526_v46  ;;  %6839 = vmatpush.msrb.mxu0 %v12564_v62  ;;  %v12745_v17 = vpop.f32.mrf.mxu3 }
 0x59c   : > { %15597 = vst [vmem:[#allocation58_spill] sm:$0xff] %v12745_v17  ;;  %6896 = vmatpush.msrb.mxu1 %v12489_v26  ;;  %6989 = vmatpush.msrb.mxu2 %v15598_v29  ;;  %v12750_v2 = vpop.f32.mrf.mxu0  ;;  %v15603_v26 = vand.u32 4294901760, %v12564_v62  ;;  %v12776_v62 = vpop.permute.xlu0 %3419 }
 0x59d   : > { %15599 = vst [vmem:[#allocation141_spill] sm:$0xff] %v12750_v2  ;;  %7050 = vmatpush.msrb.mxu3 %v12537_v60  ;;  %6221 = vmatmul.f32.gmra.mxu0 %v15600_v6  ;;  %v12754_v54 = vpop.f32.mrf.mxu1  ;;  %v12756_v61 = vpop.f32.mrf.mxu2  ;;  %v15618_v2 = vld [vmem:[#allocation168_spill] sm:$0xff] }
 0x59e   : > { %15601 = vst [vmem:[#allocation47_spill] sm:$0xff] %v12754_v54  ;;  %6326 = vmatmul.f32.gmra.mxu1 %v10829_v7  ;;  %6466 = vmatmul.f32.gmra.mxu3 %v10895_v30 }
 0x59f   : > { %15602 = vst [vmem:[#allocation54_spill] sm:$0xff] %v12756_v61  ;;  %6898 = vmatpush.msrb.mxu1 %v12508_v23  ;;  %6993 = vmatpush.msrb.mxu2 %v15603_v26  ;;  %v15620_v61 = vld [vmem:[#allocation164_spill] sm:$0xff] }
 0x5a0   : > { %6398 = vmatmul.f32.gmra.mxu2 %v10879_v22  ;;  %15609 = vst [vmem:[#allocation67_spill] sm:$0xff] %v12776_v62 }
 0x5a1   : > { %6900 = vmatpush.msrb.mxu1 %v12518_v48  ;;  %v15611_v48 = vld [vmem:[#allocation172_spill] sm:$0xff] }
 0x5a3   : > { %6902 = vmatpush.msrb.mxu1 %v12526_v46  ;;  %v12766_v1 = vpop.f32.mrf.mxu3  ;;  %v15610_v46 = vld [vmem:[#allocation23_spill] sm:$0xff] }
 0x5a4   : > { %15604 = vst [vmem:[#allocation63_spill] sm:$0xff] %v12766_v1  ;;  %v12768_v55 = vpop.f32.mrf.mxu0  ;;  %v3539_v26 = vadd.f32 %v15611_v48, %v15610_v46  ;;  %v12799_v48 = vpop.permute.xlu0 %3404 }
 0x5a5   : > { %15605 = vst [vmem:[#allocation48_spill] sm:$0xff] %v12768_v55  ;;  %6904 = vmatpush.msrb.mxu1 %v12537_v60  ;;  %6229 = vmatmul.f32.gmra.mxu0 %v15606_v52  ;;  %v12772_v29 = vpop.f32.mrf.mxu1  ;;  %v12774_v23 = vpop.f32.mrf.mxu2  ;;  %v3531_v55 = vadd.f32 %v15618_v2, %v12776_v62 }
 0x5a6   : > { %15607 = vst [vmem:[#allocation60_spill] sm:$0xff] %v12772_v29  ;;  %6330 = vmatmul.f32.gmra.mxu1 %v10859_v14  ;;  %6472 = vmatmul.f32.gmra.mxu3 %v10936_v37  ;;  %v12785_v60 = vpop.permute.xlu1 %3414  ;;  %v3628_v29 = vadd.f32 %v15615_v36, %v3539_v26  ;;  %v15622_v26 = vld [vmem:[#allocation178_spill] sm:$0xff] }
 0x5a7   : > { %15608 = vst [vmem:[#allocation50_spill] sm:$0xff] %v12774_v23  ;;  %v15621_v23 = vld [vmem:[#allocation173_spill] sm:$0xff] }
 0x5a8   : > { %6403 = vmatmul.f32.gmra.mxu2 %v10920_v16  ;;  %15613 = vst [vmem:[#allocation20_spill] sm:$0xff] %v12785_v60  ;;  %v3624_v36 = vadd.f32 %v15621_v23, %v3531_v55  ;;  %v15631_v23 = vld [vmem:[#allocation175_spill] sm:$0xff] }
 0x5a9   : > { %15619 = vst [vmem:[#allocation177_spill] sm:$0xff] %v12799_v48 }
 0x5aa   : > { %v3696_v39 = vadd.f32 %v15628_v8, %v3624_v36  ;;  %v15636_v8 = vld [vmem:[#allocation152_spill] sm:$0xff] }
 0x5ab   : > { %v12783_v4 = vpop.f32.mrf.mxu3 }
 0x5ac   : > { %15612 = vst [vmem:[#allocation110_spill] sm:$0xff] %v12783_v4  ;;  %v12787_v54 = vpop.f32.mrf.mxu0  ;;  %v3523_v4 = vadd.f32 %v15620_v61, %v12785_v60  ;;  %v15630_v61 = vld [vmem:[#allocation156_spill] sm:$0xff]  ;;  %v12839_v50 = vpop.permute.xlu0 %3389 }
 0x5ad   : > { %15614 = vst [vmem:[#allocation114_spill] sm:$0xff] %v12787_v54  ;;  %6237 = vmatmul.f32.gmra.mxu0 %v15396_v3  ;;  %v12791_v17 = vpop.f32.mrf.mxu1  ;;  %v12793_v1 = vpop.f32.mrf.mxu2  ;;  %v15623_v54 = vld [vmem:[#allocation94_spill] sm:$0xff]  ;;  %v3507_v55 = vadd.f32 %v15630_v61, %v12799_v48 }
 0x5ae   : > { %15616 = vst [vmem:[#allocation119_spill] sm:$0xff] %v12791_v17  ;;  %6334 = vmatmul.f32.gmra.mxu1 %v10897_v57  ;;  %6478 = vmatmul.f32.gmra.mxu3 %v10977_v5  ;;  %v3701_v17 = vadd.f32 %v15622_v26, %v3628_v29  ;;  %v3620_v2 = vadd.f32 %v15625_v24, %v3523_v4  ;;  %v12823_v24 = vpop.permute.xlu1 %3399  ;;  %v15635_v4 = vld [vmem:[#allocation170_spill] sm:$0xff]  ;;  %v15714_v5 = vld [vmem:[#allocation21_spill] sm:$0xff] }
 0x5af   : > { %15617 = vst [vmem:[#allocation172_spill] sm:$0xff] %v12793_v1  ;;  %v15624_v1 = vld [vmem:[#allocation160_spill] sm:$0xff] }
 0x5b0   : > { %6408 = vmatmul.f32.gmra.mxu2 %v10964_v27  ;;  %v3515_v13 = vadd.f32 %v15624_v1, %v15623_v54  ;;  %v3774_v9 = vadd.f32 %v15631_v23, %v3701_v17  ;;  %15634 = vst [vmem:[#allocation160_spill] sm:$0xff] %v12823_v24  ;;  %v3691_v26 = vadd.f32 %v15635_v4, %v3620_v2  ;;  %v15638_v17 = vld [vmem:[#allocation38_spill] sm:$0xff]  ;;  %v15643_v4 = vld [vmem:[#allocation157_spill] sm:$0xff] }
 0x5b1   : > { %v15639_v23 = vld [vmem:[#allocation166_spill] sm:$0xff]  ;;  %15645 = vst [vmem:[#allocation169_spill] sm:$0xff] %v12839_v50 }
 0x5b2   : > { %v3616_v25 = vadd.f32 %v15627_v44, %v3515_v13  ;;  %v3499_v13 = vadd.f32 %v15636_v8, %v12823_v24  ;;  %v15637_v44 = vld [vmem:[#allocation161_spill] sm:$0xff]  ;;  %v3847_v61 = vadd.f32 %v15638_v17, %v3774_v9  ;;  %v15646_v8 = vld [vmem:[#allocation167_spill] sm:$0xff]  ;;  %v15648_v9 = vld [vmem:[#allocation72_spill] sm:$0xff] }
 0x5b3   : > { %v12809_v19 = vpop.f32.mrf.mxu3  ;;  %v3612_v36 = vadd.f32 %v15637_v44, %v3507_v55  ;;  %v3762_v58 = vadd.f32 %v15646_v8, %v3691_v26  ;;  %v15647_v55 = vld [vmem:[#allocation196_spill] sm:$0xff]  ;;  %v15649_v17 = vld [vmem:[#allocation154_spill] sm:$0xff] }
 0x5b4   : > { %15626 = vst [vmem:[#allocation168_spill] sm:$0xff] %v12809_v19  ;;  %v12813_v21 = vpop.f32.mrf.mxu0  ;;  %v3686_v19 = vadd.f32 %v15639_v23, %v3616_v25  ;;  %v3608_v56 = vadd.f32 %v15643_v4, %v3499_v13  ;;  %v3904_v15 = vadd.f32 %v15644_v51, %v3847_v61  ;;  %v3483_v25 = vadd.f32 %v15648_v9, %v12839_v50  ;;  %v15653_v13 = vld [vmem:[#allocation192_spill] sm:$0xff]  ;;  %v15654_v51 = vld [vmem:[#allocation85_spill] sm:$0xff]  ;;  %v15656_v26 = vld [vmem:[#allocation150_spill] sm:$0xff] }
 0x5b5   : > { %15629 = vst [vmem:[#allocation164_spill] sm:$0xff] %v12813_v21  ;;  %6245 = vmatmul.f32.gmra.mxu0 %v15417_v0  ;;  %v12819_v29 = vpop.f32.mrf.mxu1  ;;  %v12821_v1 = vpop.f32.mrf.mxu2  ;;  %v3839_v4 = vadd.f32 %v15653_v13, %v3762_v58  ;;  %v15658_v9 = vld [vmem:[#allocation55_spill] sm:$0xff]  ;;  %v15663_v58 = vld [vmem:[#allocation153_spill] sm:$0xff] }
 0x5b6   : > { %15632 = vst [vmem:[#allocation173_spill] sm:$0xff] %v12819_v29  ;;  %6338 = vmatmul.f32.gmra.mxu1 %v10938_v38  ;;  %6484 = vmatmul.f32.gmra.mxu3 %v15575_v20  ;;  %v15640_v29 = vld [vmem:[#allocation171_spill] sm:$0xff]  ;;  %v3600_v8 = vadd.f32 %v15656_v26, %v3483_v25  ;;  %9343 = vtanh.f32 %v3904_v15 }
 0x5b7   : > { %15633 = vst [vmem:[#allocation178_spill] sm:$0xff] %v12821_v1  ;;  %v3768_v21 = vadd.f32 %v15640_v29, %v3696_v39  ;;  %v15641_v1 = vld [vmem:[#allocation92_spill] sm:$0xff]  ;;  %v15650_v29 = vld [vmem:[#allocation162_spill] sm:$0xff]  ;;  %v15664_v25 = vld [vmem:[#allocation159_spill] sm:$0xff] }
 0x5b8   : > { %6413 = vmatmul.f32.gmra.mxu2 %v10998_v31  ;;  %v3491_v2 = vadd.f32 %v15642_v63, %v15641_v1  ;;  %v3681_v23 = vadd.f32 %v15650_v29, %v3612_v36  ;;  %v15652_v63 = vld [vmem:[#allocation163_spill] sm:$0xff] }
 0x5b9   : > { %v3843_v44 = vadd.f32 %v15647_v55, %v3768_v21  ;;  %v3756_v40 = vadd.f32 %v15652_v63, %v3686_v19  ;;  %v15657_v21 = vld [vmem:[#allocation158_spill] sm:$0xff]  ;;  %v15662_v19 = vld [vmem:[#allocation197_spill] sm:$0xff] }
 0x5ba   : > { %v3604_v39 = vadd.f32 %v15649_v17, %v3491_v2  ;;  %v3676_v55 = vadd.f32 %v15657_v21, %v3608_v56  ;;  %v15661_v17 = vld [vmem:[#allocation188_spill] sm:$0xff]  ;;  %v3896_v63 = vadd.f32 %v15662_v19, %v3839_v4  ;;  %v3750_v13 = vadd.f32 %v15664_v25, %v3681_v23  ;;  %v15665_v56 = vld [vmem:[#allocation193_spill] sm:$0xff]  ;;  %v15667_v21 = vld [vmem:[#allocation155_spill] sm:$0xff] }
 0x5bb   : > { %v12847_v34 = vpop.f32.mrf.mxu3  ;;  %v3900_v61 = vadd.f32 %v15654_v51, %v3843_v44  ;;  %v3835_v29 = vadd.f32 %v15661_v17, %v3756_v40  ;;  %v15666_v51 = vld [vmem:[#allocation149_spill] sm:$0xff]  ;;  %v15668_v40 = vld [vmem:[#allocation184_spill] sm:$0xff]  ;;  %v15669_v19 = vld [vmem:[#allocation151_spill] sm:$0xff] }
 0x5bc   : > { %15651 = vst [vmem:[#allocation165_spill] sm:$0xff] %v12847_v34  ;;  %v12852_v20 = vpop.f32.mrf.mxu0  ;;  %v3671_v44 = vadd.f32 %v15663_v58, %v3604_v39  ;;  %v3666_v26 = vadd.f32 %v15666_v51, %v3600_v8  ;;  %v3831_v17 = vadd.f32 %v15668_v40, %v3750_v13  ;;  %v9344_v4 = vpop.eup %9343  ;;  %v15670_v34 = vld [vmem:[#allocation74_spill] sm:$0xff]  ;;  %v15671_v39 = vld [vmem:[#allocation189_spill] sm:$0xff]  ;;  %v15675_v8 = vld [vmem:[#allocation180_spill] sm:$0xff] }
 0x5bd   : > { %15655 = vst [vmem:[#allocation174_spill] sm:$0xff] %v12852_v20  ;;  %6253 = vmatmul.f32.gmra.mxu0 %v15658_v9  ;;  %v12857_v2 = vpop.f32.mrf.mxu1  ;;  %v12859_v36 = vpop.f32.mrf.mxu2  ;;  %v3892_v15 = vadd.f32 %v15665_v56, %v3835_v29  ;;  %9345 = vtanh.f32 %v3900_v61  ;;  %v15674_v29 = vld [vmem:[#allocation147_spill] sm:$0xff]  ;;  %v15677_v13 = vld [vmem:[#allocation64_spill] sm:$0xff] }
 0x5be   : > { %15659 = vst [vmem:[#allocation156_spill] sm:$0xff] %v12857_v2  ;;  %6342 = vmatmul.f32.gmra.mxu1 %v10979_v11  ;;  %6490 = vmatmul.f32.gmra.mxu3 %v15581_v12  ;;  %v3744_v2 = vadd.f32 %v15667_v21, %v3676_v55  ;;  %9347 = vtanh.f32 %v3896_v63  ;;  %v3738_v20 = vadd.f32 %v15669_v19, %v3671_v44  ;;  %v15676_v55 = vld [vmem:[#allocation185_spill] sm:$0xff] }
 0x5bf   : > { %15660 = vst [vmem:[#allocation175_spill] sm:$0xff] %v12859_v36  ;;  %v3888_v58 = vadd.f32 %v15671_v39, %v3831_v17  ;;  %9349 = vtanh.f32 %v3892_v15  ;;  %v3732_v25 = vadd.f32 %v15674_v29, %v3666_v26  ;;  %v15680_v15 = vld [vmem:[#allocation176_spill] sm:$0xff]  ;;  %v15681_v26 = vld [vmem:[#allocation145_spill] sm:$0xff] }
 0x5c0   : > { %6418 = vmatmul.f32.gmra.mxu2 %v15572_v10  ;;  %v3827_v36 = vadd.f32 %v15670_v34, %v3744_v2  ;;  %v3823_v56 = vadd.f32 %v15675_v8, %v3738_v20  ;;  %v12889_v2 = vand.u32 4294901760, %v9344_v4 }
 0x5c1   : > { %v3819_v21 = vadd.f32 %v15680_v15, %v3732_v25  ;;  %9351 = vtanh.f32 %v3888_v58 }
 0x5c2   : > { %v3884_v51 = vadd.f32 %v15676_v55, %v3827_v36  ;;  %v3880_v40 = vadd.f32 %v15681_v26, %v3823_v56  ;;  %v15682_v36 = vld [vmem:[#allocation182_spill] sm:$0xff]  ;;  %v12898_v29 = vsub.f32 %v9344_v4, %v12889_v2 }
 0x5c3   : > { %v12875_v23 = vpop.f32.mrf.mxu3  ;;  %v9346_v34 = vpop.eup %9345  ;;  %v3876_v17 = vadd.f32 %v15682_v36, %v3819_v21 }
 0x5c4   : > { %15672 = vst [vmem:[#allocation170_spill] sm:$0xff] %v12875_v23  ;;  %v12877_v61 = vpop.f32.mrf.mxu0  ;;  %v9348_v20 = vpop.eup %9347  ;;  %9353 = vtanh.f32 %v3884_v51  ;;  %v12895_v19 = vand.u32 4294901760, %v9346_v34 }
 0x5c5   : > { %15673 = vst [vmem:[#allocation152_spill] sm:$0xff] %v12877_v61  ;;  %6261 = vmatmul.f32.gmra.mxu0 %v15677_v13  ;;  %v12883_v63 = vpop.f32.mrf.mxu1  ;;  %v12885_v44 = vpop.f32.mrf.mxu2  ;;  %9355 = vtanh.f32 %v3880_v40  ;;  %v12900_v8 = vand.u32 4294901760, %v9348_v20 }
 0x5c6   : > { %15678 = vst [vmem:[#allocation161_spill] sm:$0xff] %v12883_v63  ;;  %6346 = vmatmul.f32.gmra.mxu1 %v11009_v32  ;;  %6496 = vmatmul.f32.gmra.mxu3 %v15586_v28  ;;  %v9350_v39 = vpop.eup %9349  ;;  %9357 = vtanh.f32 %v3876_v17  ;;  %v12906_v58 = vsub.f32 %v9346_v34, %v12895_v19  ;;  %v5761_v17 = vadd.f32 %v12724_v47, %v15641_v1 }
 0x5c7   : > { %15679 = vst [vmem:[#allocation38_spill] sm:$0xff] %v12885_v44  ;;  %v9352_v25 = vpop.eup %9351  ;;  %v12910_v15 = vand.u32 4294901760, %v9350_v39  ;;  %v12920_v34 = vsub.f32 %v9348_v20, %v12900_v8  ;;  %v15686_v20 = vand.u32 4294901760, %v12898_v29 }
 0x5c8   : > { %6423 = vmatmul.f32.gmra.mxu2 %v15578_v43  ;;  %v12923_v40 = vand.u32 4294901760, %v9352_v25  ;;  %v5874_v63 = vadd.f32 %v12713_v45, %v5761_v17 }
 0x5c9   : > { %v12930_v21 = vsub.f32 %v9350_v39, %v12910_v15  ;;  %v15688_v17 = vand.u32 4294901760, %v12920_v34 }
 0x5ca   : > { %v9354_v26 = vpop.eup %9353  ;;  %v12944_v39 = vsub.f32 %v9352_v25, %v12923_v40 }
 0x5cb   : > { %v12902_v55 = vpop.f32.mrf.mxu3  ;;  %v9356_v36 = vpop.eup %9355 }
 0x5cc   : > { %15683 = vst [vmem:[#allocation166_spill] sm:$0xff] %v12902_v55  ;;  %v12946_v55 = vand.u32 4294901760, %v9356_v36 }
 0x5cd   : > { %6541 = vmatmul.f32.vlgmr.msra.gmra.mxu0 %v10805_v35  ;;  %v12908_v51 = vpop.f32.mrf.mxu2  ;;  %v12914_v4 = vpop.f32.mrf.mxu1 }
 0x5ce   : > { %v5940_v56 = vpop.f32.mrf.mxu0  ;;  %15684 = vst [vmem:[#allocation171_spill] sm:$0xff] %v12908_v51  ;;  %6350 = vmatmul.f32.gmra.mxu1 %v11037_v33  ;;  %6776 = vmatmul.f32.vlgmr.msra.gmra.mxu3 %v10805_v35  ;;  %v12937_v51 = vand.u32 4294901760, %v9354_v26 }
 0x5cf   : > { %15685 = vst [vmem:[#allocation148_spill] sm:$0xff] %v12914_v4  ;;  %7168 = vmatpush.msra.mxu0 %v12889_v2  ;;  %7300 = vmatpush.msra.mxu3 %v12889_v2  ;;  %v9358_v4 = vpop.eup %9357  ;;  %v5941_v45 = vadd.f32 %v5940_v56, %v5874_v63 }
 0x5d0   : > { %6659 = vmatmul.f32.vlgmr.msra.gmra.mxu2 %v15583_v49  ;;  %v7203_v49 = vsub.f32 %v12898_v29, %v15686_v20  ;;  %v15687_v20 = vand.u32 4294901760, %v12906_v58  ;;  %v12958_v44 = vsub.f32 %v9354_v26, %v12937_v51  ;;  %v12960_v28 = vand.u32 4294901760, %v9358_v4 }
 0x5d1   : > { %7170 = vmatpush.msra.mxu0 %v12895_v19  ;;  %7263 = vmatpush.msra.mxu2 %v12898_v29  ;;  %v12971_v26 = vsub.f32 %v9356_v36, %v12946_v55 }
 0x5d2   : > { %7302 = vmatpush.msra.mxu3 %v12895_v19  ;;  %v7209_v23 = vsub.f32 %v12906_v58, %v15687_v20  ;;  %v7204_v25 = vand.u32 4294901760, %v7203_v49  ;;  %v7215_v20 = vsub.f32 %v12920_v34, %v15688_v17  ;;  %v15690_v17 = vand.u32 4294901760, %v12930_v21 }
 0x5d3   : > { %7172 = vmatpush.msra.mxu0 %v12900_v8  ;;  %7266 = vmatpush.msra.mxu2 %v12906_v58  ;;  %v14789_v36 = vand.u32 4294901760, %v12958_v44 }
 0x5d4   : > { %7304 = vmatpush.msra.mxu3 %v12900_v8  ;;  %v6149_v61 = vpop.f32.mrf.mxu3  ;;  %v7210_v56 = vand.u32 4294901760, %v7209_v23  ;;  %v7216_v63 = vand.u32 4294901760, %v7215_v20  ;;  %v15691_v23 = vand.u32 4294901760, %v12944_v39 }
 0x5d5   : > { %7174 = vmatpush.msra.mxu0 %v12910_v15  ;;  %7269 = vmatpush.msra.mxu2 %v12920_v34 }
 0x5d6   : > { %7306 = vmatpush.msra.mxu3 %v12910_v15  ;;  %6545 = vmatmul.f32.gmra.mxu0 %v10829_v7 }
 0x5d7   : > { %6598 = vmatmul.f32.vlgmr.msra.gmra.mxu1 %v10805_v35  ;;  %6780 = vmatmul.f32.gmra.mxu3 %v10829_v7  ;;  %v12967_v47 = vpop.f32.mrf.mxu0  ;;  %v6092_v12 = vpop.f32.mrf.mxu2 }
 0x5d8   : > { %15689 = vst [vmem:[#allocation157_spill] sm:$0xff] %v12967_v47  ;;  %7176 = vmatpush.msra.mxu0 %v12923_v40  ;;  %7205 = vmatpush.msra.mxu1 %v7204_v25  ;;  %v6007_v49 = vpop.f32.mrf.mxu1  ;;  %v7221_v47 = vsub.f32 %v12930_v21, %v15690_v17  ;;  %v12982_v25 = vsub.f32 %v9358_v4, %v12960_v28 }
 0x5d9   : > { %7272 = vmatpush.msra.mxu2 %v12930_v21  ;;  %7308 = vmatpush.msra.mxu3 %v12923_v40  ;;  %v6008_v43 = vadd.f32 %v6007_v49, %v5941_v45  ;;  %v14788_v45 = vand.u32 4294901760, %v12971_v26 }
 0x5da   : > { %6667 = vmatmul.f32.gmra.mxu2 %v15591_v53  ;;  %7178 = vmatpush.msra.mxu0 %v12937_v51  ;;  %v7227_v53 = vsub.f32 %v12944_v39, %v15691_v23  ;;  %v7222_v4 = vand.u32 4294901760, %v7221_v47 }
 0x5db   : > { %7211 = vmatpush.msra.mxu1 %v7210_v56  ;;  %7275 = vmatpush.msra.mxu2 %v12944_v39  ;;  %v6093_v10 = vadd.f32 %v6092_v12, %v6008_v43  ;;  %v7233_v12 = vsub.f32 %v12958_v44, %v14789_v36  ;;  %v14790_v43 = vand.u32 4294901760, %v12982_v25  ;;  %v15698_v36 = vld [vmem:[#allocation24_spill] sm:$0xff] }
 0x5dc   : > { %7310 = vmatpush.msra.mxu3 %v12937_v51  ;;  %7180 = vmatpush.msra.mxu0 %v12946_v55 }
 0x5dd   : > { %7217 = vmatpush.msra.mxu1 %v7216_v63  ;;  %7278 = vmatpush.msra.mxu2 %v12958_v44  ;;  %v12993_v49 = vadd.f32 %v6149_v61, %v6093_v10  ;;  %v7228_v10 = vand.u32 4294901760, %v7227_v53  ;;  %v7239_v61 = vsub.f32 %v12971_v26, %v14788_v45  ;;  %v7234_v17 = vand.u32 4294901760, %v7233_v12  ;;  %v15697_v53 = vld [vmem:[#allocation83_spill] sm:$0xff] }
 0x5de   : > { %7312 = vmatpush.msra.mxu3 %v12946_v55  ;;  %7182 = vmatpush.msra.mxu0 %v12960_v28  ;;  %v13001_v20 = vpop.f32.mrf.mxu3  ;;  %v7245_v23 = vsub.f32 %v12982_v25, %v14790_v43  ;;  %v15702_v43 = vld [vmem:[#allocation198_spill] sm:$0xff] }
 0x5df   : > { %15692 = vst [vmem:[#allocation34_spill] sm:$0xff] %v12993_v49  ;;  %7223 = vmatpush.msra.mxu1 %v7222_v4  ;;  %7281 = vmatpush.msra.mxu2 %v12971_v26  ;;  %v13004_v63 = vpop.f32.mrf.mxu0  ;;  %v3993_v4 = vadd.f32 %v15697_v53, %v15610_v46  ;;  %v7240_v45 = vand.u32 4294901760, %v7239_v61  ;;  %v3985_v49 = vadd.f32 %v15698_v36, %v12776_v62  ;;  %v15713_v62 = vld [vmem:[#allocation200_spill] sm:$0xff] }
 0x5e0   : > { %15693 = vst [vmem:[#allocation167_spill] sm:$0xff] %v13001_v20  ;;  %7314 = vmatpush.msra.mxu3 %v12960_v28  ;;  %6549 = vmatmul.f32.gmra.mxu0 %v10859_v14  ;;  %v13011_v47 = vpop.f32.mrf.mxu1  ;;  %v13013_v56 = vpop.f32.mrf.mxu2  ;;  %v7246_v20 = vand.u32 4294901760, %v7245_v23  ;;  %v15707_v23 = vld [vmem:[#allocation87_spill] sm:$0xff] }
 0x5e1   : > { %15694 = vst [vmem:[#allocation196_spill] sm:$0xff] %v13004_v63  ;;  %6602 = vmatmul.f32.gmra.mxu1 %v10829_v7  ;;  %6784 = vmatmul.f32.gmra.mxu3 %v10859_v14  ;;  %v3977_v63 = vadd.f32 %v15702_v43, %v12785_v60  ;;  %v4078_v53 = vadd.f32 %v15707_v23, %v3985_v49  ;;  %v15716_v49 = vld [vmem:[#allocation208_spill] sm:$0xff] }
 0x5e2   : > { %15695 = vst [vmem:[#allocation72_spill] sm:$0xff] %v13011_v47  ;;  %7229 = vmatpush.msra.mxu1 %v7228_v10  ;;  %7284 = vmatpush.msra.mxu2 %v12982_v25 }
 0x5e3   : > { %15696 = vst [vmem:[#allocation154_spill] sm:$0xff] %v13013_v56  ;;  %6675 = vmatmul.f32.gmra.mxu2 %v15600_v6  ;;  %v15700_v56 = vld [vmem:[#allocation84_spill] sm:$0xff] }
 0x5e4   : > { %7235 = vmatpush.msra.mxu1 %v7234_v17  ;;  %v4082_v12 = vadd.f32 %v15700_v56, %v3993_v4  ;;  %v15705_v17 = vld [vmem:[#allocation30_spill] sm:$0xff] }
 0x5e5   : > { %v15708_v4 = vld [vmem:[#allocation22_spill] sm:$0xff] }
 0x5e6   : > { %7241 = vmatpush.msra.mxu1 %v7240_v45  ;;  %v13026_v10 = vpop.f32.mrf.mxu3  ;;  %v4155_v36 = vadd.f32 %v15705_v17, %v4082_v12  ;;  %v15706_v45 = vld [vmem:[#allocation194_spill] sm:$0xff]  ;;  %v15712_v17 = vld [vmem:[#allocation191_spill] sm:$0xff] }
 0x5e7   : > { %15699 = vst [vmem:[#allocation162_spill] sm:$0xff] %v13026_v10  ;;  %v13029_v47 = vpop.f32.mrf.mxu0  ;;  %v3969_v56 = vadd.f32 %v15706_v45, %v15623_v54  ;;  %v15732_v54 = vld [vmem:[#allocation81_spill] sm:$0xff] }
 0x5e8   : > { %15701 = vst [vmem:[#allocation163_spill] sm:$0xff] %v13029_v47  ;;  %7247 = vmatpush.msra.mxu1 %v7246_v20  ;;  %6553 = vmatmul.f32.gmra.mxu0 %v10897_v57  ;;  %v13034_v6 = vpop.f32.mrf.mxu1  ;;  %v13036_v61 = vpop.f32.mrf.mxu2  ;;  %v4228_v43 = vadd.f32 %v15708_v4, %v4155_v36  ;;  %v15709_v20 = vld [vmem:[#allocation195_spill] sm:$0xff]  ;;  %v15719_v4 = vld [vmem:[#allocation86_spill] sm:$0xff] }
 0x5e9   : > { %15703 = vst [vmem:[#allocation192_spill] sm:$0xff] %v13034_v6  ;;  %6606 = vmatmul.f32.gmra.mxu1 %v10859_v14  ;;  %6788 = vmatmul.f32.gmra.mxu3 %v10897_v57  ;;  %v4074_v10 = vadd.f32 %v15709_v20, %v3977_v63  ;;  %v15710_v6 = vld [vmem:[#allocation33_spill] sm:$0xff]  ;;  %v4070_v46 = vadd.f32 %v15712_v17, %v3969_v56 }
 0x5ea   : > { %15704 = vst [vmem:[#allocation85_spill] sm:$0xff] %v13036_v61  ;;  %v4150_v47 = vadd.f32 %v15710_v6, %v4078_v53  ;;  %v15711_v61 = vld [vmem:[#allocation190_spill] sm:$0xff]  ;;  %v4301_v23 = vadd.f32 %v15716_v49, %v4228_v43  ;;  %v15720_v53 = vld [vmem:[#allocation204_spill] sm:$0xff] }
 0x5eb   : > { %6683 = vmatmul.f32.gmra.mxu2 %v15606_v52  ;;  %v3961_v12 = vadd.f32 %v15711_v61, %v12799_v48  ;;  %v4145_v60 = vadd.f32 %v15713_v62, %v4074_v10  ;;  %v15718_v52 = vld [vmem:[#allocation186_spill] sm:$0xff]  ;;  %v4140_v6 = vadd.f32 %v15719_v4, %v4070_v46  ;;  %v15724_v10 = vld [vmem:[#allocation201_spill] sm:$0xff]  ;;  %v15726_v49 = vld [vmem:[#allocation80_spill] sm:$0xff] }
 0x5ec   : > { %v4222_v31 = vadd.f32 %v15714_v5, %v4150_v47  ;;  %v3953_v63 = vadd.f32 %v15718_v52, %v12823_v24  ;;  %v15723_v5 = vld [vmem:[#allocation187_spill] sm:$0xff]  ;;  %v15725_v43 = vld [vmem:[#allocation206_spill] sm:$0xff]  ;;  %v15727_v52 = vld [vmem:[#allocation37_spill] sm:$0xff] }
 0x5ed   : > { %v4216_v20 = vadd.f32 %v15720_v53, %v4145_v60  ;;  %v4066_v47 = vadd.f32 %v15723_v5, %v3961_v12  ;;  %v4210_v56 = vadd.f32 %v15724_v10, %v4140_v6  ;;  %v4358_v60 = vadd.f32 %v15727_v52, %v4301_v23  ;;  %v15728_v4 = vld [vmem:[#allocation181_spill] sm:$0xff]  ;;  %v15733_v6 = vld [vmem:[#allocation202_spill] sm:$0xff]  ;;  %v15738_v52 = vld [vmem:[#allocation88_spill] sm:$0xff] }
 0x5ee   : > { %v13053_v45 = vpop.f32.mrf.mxu3  ;;  %v4297_v17 = vadd.f32 %v15725_v43, %v4222_v31  ;;  %v3937_v53 = vadd.f32 %v15728_v4, %v12839_v50  ;;  %v15730_v12 = vld [vmem:[#allocation205_spill] sm:$0xff]  ;;  %v15734_v31 = vld [vmem:[#allocation28_spill] sm:$0xff] }
 0x5ef   : > { %15715 = vst [vmem:[#allocation150_spill] sm:$0xff] %v13053_v45  ;;  %v13056_v36 = vpop.f32.mrf.mxu0  ;;  %v4135_v46 = vadd.f32 %v15726_v49, %v4066_v47  ;;  %v15729_v45 = vld [vmem:[#allocation183_spill] sm:$0xff]  ;;  %v4293_v5 = vadd.f32 %v15730_v12, %v4216_v20  ;;  %v4289_v10 = vadd.f32 %v15733_v6, %v4210_v56  ;;  %9359 = vtanh.f32 %v4358_v60  ;;  %v15743_v56 = vld [vmem:[#allocation96_spill] sm:$0xff]  ;;  %v15746_v12 = vld [vmem:[#allocation93_spill] sm:$0xff] }
 0x5f0   : > { %15717 = vst [vmem:[#allocation158_spill] sm:$0xff] %v13056_v36  ;;  %6557 = vmatmul.f32.gmra.mxu0 %v10938_v38  ;;  %v13063_v61 = vpop.f32.mrf.mxu1  ;;  %v13065_v62 = vpop.f32.mrf.mxu2  ;;  %v4354_v43 = vadd.f32 %v15734_v31, %v4297_v17  ;;  %v15747_v31 = vld [vmem:[#allocation79_spill] sm:$0xff] }
 0x5f1   : > { %15721 = vst [vmem:[#allocation55_spill] sm:$0xff] %v13063_v61  ;;  %6610 = vmatmul.f32.gmra.mxu1 %v10897_v57  ;;  %6792 = vmatmul.f32.gmra.mxu3 %v10938_v38  ;;  %v15731_v61 = vld [vmem:[#allocation91_spill] sm:$0xff] }
 0x5f2   : > { %15722 = vst [vmem:[#allocation188_spill] sm:$0xff] %v13065_v62  ;;  %v4062_v62 = vadd.f32 %v15729_v45, %v3953_v63  ;;  %v4204_v36 = vadd.f32 %v15731_v61, %v4135_v46  ;;  %v15739_v45 = vld [vmem:[#allocation203_spill] sm:$0xff]  ;;  %v15742_v61 = vld [vmem:[#allocation89_spill] sm:$0xff]  ;;  %9361 = vtanh.f32 %v4354_v43 }
 0x5f3   : > { %6691 = vmatmul.f32.gmra.mxu2 %v15396_v3  ;;  %v15737_v3 = vld [vmem:[#allocation179_spill] sm:$0xff]  ;;  %v4350_v63 = vadd.f32 %v15739_v45, %v4293_v5 }
 0x5f4   : > { %v4130_v48 = vadd.f32 %v15732_v54, %v4062_v62  ;;  %v4054_v49 = vadd.f32 %v15737_v3, %v3937_v53  ;;  %v4285_v62 = vadd.f32 %v15742_v61, %v4204_v36  ;;  %v15744_v46 = vld [vmem:[#allocation199_spill] sm:$0xff] }
 0x5f5   : > { %v4346_v60 = vadd.f32 %v15744_v46, %v4289_v10  ;;  %9363 = vtanh.f32 %v4350_v63  ;;  %v9360_v6 = vpop.eup %9359  ;;  %v15751_v10 = vld [vmem:[#allocation95_spill] sm:$0xff]  ;;  %v15754_v46 = vld [vmem:[#allocation36_spill] sm:$0xff] }
 0x5f6   : > { %v13083_v47 = vpop.f32.mrf.mxu3  ;;  %v4198_v4 = vadd.f32 %v15738_v52, %v4130_v48  ;;  %v4120_v17 = vadd.f32 %v15743_v56, %v4054_v49  ;;  %v15745_v48 = vld [vmem:[#allocation82_spill] sm:$0xff]  ;;  %v4342_v3 = vadd.f32 %v15747_v31, %v4285_v62  ;;  %v15750_v49 = vld [vmem:[#allocation97_spill] sm:$0xff]  ;;  %v13110_v56 = vand.u32 4294901760, %v9360_v6 }
 0x5f7   : > { %15735 = vst [vmem:[#allocation197_spill] sm:$0xff] %v13083_v47  ;;  %v13085_v23 = vpop.f32.mrf.mxu0  ;;  %9365 = vtanh.f32 %v4346_v60 }
 0x5f8   : > { %15736 = vst [vmem:[#allocation153_spill] sm:$0xff] %v13085_v23  ;;  %6561 = vmatmul.f32.gmra.mxu0 %v10979_v11  ;;  %v13091_v20 = vpop.f32.mrf.mxu1  ;;  %v13093_v54 = vpop.f32.mrf.mxu2  ;;  %v4186_v53 = vadd.f32 %v15745_v48, %v4120_v17  ;;  %v4281_v5 = vadd.f32 %v15746_v12, %v4198_v4  ;;  %9367 = vtanh.f32 %v4342_v3  ;;  %v13124_v48 = vsub.f32 %v9360_v6, %v13110_v56  ;;  %v15755_v12 = vld [vmem:[#allocation90_spill] sm:$0xff] }
 0x5f9   : > { %15740 = vst [vmem:[#allocation159_spill] sm:$0xff] %v13091_v20  ;;  %6614 = vmatmul.f32.gmra.mxu1 %v10938_v38  ;;  %6796 = vmatmul.f32.gmra.mxu3 %v10979_v11  ;;  %v9362_v45 = vpop.eup %9361 }
 0x5fa   : > { %15741 = vst [vmem:[#allocation193_spill] sm:$0xff] %v13093_v54  ;;  %v4273_v61 = vadd.f32 %v15750_v49, %v4186_v53  ;;  %v4338_v43 = vadd.f32 %v15751_v10, %v4281_v5  ;;  %v13119_v62 = vand.u32 4294901760, %v9362_v45  ;;  %v14801_v10 = vand.u32 4294901760, %v13124_v48 }
 0x5fb   : > { %6699 = vmatmul.f32.gmra.mxu2 %v15417_v0  ;;  %v9364_v63 = vpop.eup %9363 }
 0x5fc   : > { %v4330_v60 = vadd.f32 %v15754_v46, %v4273_v61  ;;  %9369 = vtanh.f32 %v4338_v43  ;;  %v13126_v53 = vand.u32 4294901760, %v9364_v63  ;;  %v7440_v47 = vsub.f32 %v13124_v48, %v14801_v10 }
 0x5fd   : > { %v9366_v17 = vpop.eup %9365  ;;  %9371 = vtanh.f32 %v15755_v12 }
 0x5fe   : > { %v13104_v36 = vpop.f32.mrf.mxu3  ;;  %v9368_v31 = vpop.eup %9367  ;;  %v13131_v3 = vand.u32 4294901760, %v9366_v17  ;;  %9373 = vtanh.f32 %v4330_v60  ;;  %v13147_v43 = vsub.f32 %v9364_v63, %v13126_v53  ;;  %v7441_v10 = vand.u32 4294901760, %v7440_v47 }
 0x5ff   : > { %15748 = vst [vmem:[#allocation149_spill] sm:$0xff] %v13104_v36  ;;  %v13106_v52 = vpop.f32.mrf.mxu0  ;;  %v13149_v12 = vand.u32 4294901760, %v9368_v31 }
 0x600   : > { %15749 = vst [vmem:[#allocation155_spill] sm:$0xff] %v13106_v52  ;;  %6565 = vmatmul.f32.gmra.mxu0 %v11009_v32  ;;  %v13113_v0 = vpop.f32.mrf.mxu1  ;;  %v13115_v4 = vpop.f32.mrf.mxu2  ;;  %v13154_v60 = vsub.f32 %v9366_v17, %v13131_v3  ;;  %v15819_v52 = vld [vmem:[#allocation132_spill] sm:$0xff] }
 0x601   : > { %15752 = vst [vmem:[#allocation184_spill] sm:$0xff] %v13113_v0  ;;  %6618 = vmatmul.f32.gmra.mxu1 %v10979_v11  ;;  %6800 = vmatmul.f32.gmra.mxu3 %v11009_v32 }
 0x602   : > { %15753 = vst [vmem:[#allocation151_spill] sm:$0xff] %v13115_v4  ;;  %v9370_v46 = vpop.eup %9369  ;;  %v13165_v4 = vsub.f32 %v9368_v31, %v13149_v12  ;;  %v15763_v31 = vand.u32 4294901760, %v13147_v43 }
 0x603   : > { %6707 = vmatmul.f32.gmra.mxu2 %v15658_v9  ;;  %v13136_v9 = vsub.f32 %v9362_v45, %v13119_v62  ;;  %v13159_v36 = vand.u32 4294901760, %v9370_v46 }
 0x604   : > { %v14806_v47 = vand.u32 4294901760, %v13165_v4 }
 0x605   : > { %v14802_v45 = vand.u32 4294901760, %v13136_v9  ;;  %v13188_v20 = vsub.f32 %v9370_v46, %v13159_v36 }
 0x606   : > { %v13129_v5 = vpop.f32.mrf.mxu3 }
 0x607   : > { %15756 = vst [vmem:[#allocation74_spill] sm:$0xff] %v13129_v5  ;;  %v13133_v49 = vpop.f32.mrf.mxu0  ;;  %v7446_v17 = vsub.f32 %v13136_v9, %v14802_v45 }
 0x608   : > { %15757 = vst [vmem:[#allocation189_spill] sm:$0xff] %v13133_v49  ;;  %6569 = vmatmul.f32.gmra.mxu0 %v11037_v33  ;;  %v13139_v61 = vpop.f32.mrf.mxu1  ;;  %v13141_v6 = vpop.f32.mrf.mxu2 }
 0x609   : > { %15758 = vst [vmem:[#allocation147_spill] sm:$0xff] %v13139_v61  ;;  %6622 = vmatmul.f32.gmra.mxu1 %v11009_v32  ;;  %6804 = vmatmul.f32.gmra.mxu3 %v11037_v33  ;;  %v9372_v49 = vpop.eup %9371 }
 0x60a   : > { %15759 = vst [vmem:[#allocation180_spill] sm:$0xff] %v13141_v6  ;;  %v9374_v54 = vpop.eup %9373 }
 0x60b   : > { %6715 = vmatmul.f32.gmra.mxu2 %v15677_v13  ;;  %v13167_v13 = vand.u32 4294901760, %v9372_v49  ;;  %v13178_v0 = vand.u32 4294901760, %v9374_v54 }
 0x60d   : > { %v13205_v46 = vsub.f32 %v9374_v54, %v13178_v0 }
 0x60e   : > { %v13162_v5 = vpop.f32.mrf.mxu3 }
 0x60f   : > { %15760 = vst [vmem:[#allocation185_spill] sm:$0xff] %v13162_v5  ;;  %v7452_v5 = vsub.f32 %v13147_v43, %v15763_v31  ;;  %v13198_v31 = vsub.f32 %v9372_v49, %v13167_v13  ;;  %v7464_v49 = vsub.f32 %v13165_v4, %v14806_v47  ;;  %v14803_v54 = vand.u32 4294901760, %v13205_v46  ;;  %v15802_v47 = vld [vmem:[#allocation20_spill] sm:$0xff] }
 0x610   : > { %6842 = vmatmul.f32.vlgmr.msrb.gmra.mxu0 %v15368_v42  ;;  %v13174_v6 = vpop.f32.mrf.mxu0  ;;  %v13176_v63 = vpop.f32.mrf.mxu2  ;;  %v15765_v42 = vand.u32 4294901760, %v12898_v29 }
 0x611   : > { %15761 = vst [vmem:[#allocation64_spill] sm:$0xff] %v13174_v6  ;;  %6626 = vmatmul.f32.gmra.mxu1 %v11037_v33  ;;  %7052 = vmatmul.f32.vlgmr.msrb.gmra.mxu3 %v10805_v35  ;;  %v13185_v45 = vpop.f32.mrf.mxu1  ;;  %v15766_v6 = vand.u32 4294901760, %v13154_v60  ;;  %v7453_v29 = vand.u32 4294901760, %v7452_v5  ;;  %v15770_v5 = vand.u32 4294901760, %v12930_v21 }
 0x612   : > { %15762 = vst [vmem:[#allocation176_spill] sm:$0xff] %v13176_v63  ;;  %7333 = vmatpush.msrb.mxu0 %v15765_v42  ;;  %7442 = vmatpush.msrb.mxu3 %v7441_v10  ;;  %v7447_v63 = vand.u32 4294901760, %v7446_v17  ;;  %v14805_v10 = vand.u32 4294901760, %v13188_v20  ;;  %v15773_v17 = vand.u32 4294901760, %v12944_v39  ;;  %v7482_v39 = vsub.f32 %v13205_v46, %v14803_v54  ;;  %v15800_v54 = vld [vmem:[#allocation94_spill] sm:$0xff] }
 0x613   : > { %15764 = vst [vmem:[#allocation145_spill] sm:$0xff] %v13185_v45  ;;  %6995 = vmatmul.f32.vlgmr.msrb.gmra.mxu2 %v10805_v35  ;;  %v7458_v61 = vsub.f32 %v13154_v60, %v15766_v6  ;;  %v15767_v45 = vand.u32 4294901760, %v12906_v58  ;;  %v15768_v35 = vand.u32 4294901760, %v12920_v34  ;;  %v14804_v6 = vand.u32 4294901760, %v13198_v31 }
 0x614   : > { %7405 = vmatpush.msrb.mxu2 %v13110_v56  ;;  %7448 = vmatpush.msrb.mxu3 %v7447_v63  ;;  %v7470_v34 = vsub.f32 %v13188_v20, %v14805_v10 }
 0x615   : > { %7337 = vmatpush.msrb.mxu0 %v15767_v45  ;;  %v7459_v58 = vand.u32 4294901760, %v7458_v61  ;;  %v7465_v61 = vand.u32 4294901760, %v7464_v49 }
 0x616   : > { %7407 = vmatpush.msrb.mxu2 %v13119_v62  ;;  %7454 = vmatpush.msrb.mxu3 %v7453_v29  ;;  %v7471_v29 = vand.u32 4294901760, %v7470_v34 }
 0x617   : > { %7341 = vmatpush.msrb.mxu0 %v15768_v35  ;;  %v13214_v45 = vpop.f32.mrf.mxu3 }
 0x618   : > { %15769 = vst [vmem:[#allocation182_spill] sm:$0xff] %v13214_v45  ;;  %7409 = vmatpush.msrb.mxu2 %v13126_v53  ;;  %7460 = vmatpush.msrb.mxu3 %v7459_v58  ;;  %v15787_v58 = vld [vmem:[#allocation212_spill] sm:$0xff] }
 0x619   : > { %7345 = vmatpush.msrb.mxu0 %v15770_v5  ;;  %6908 = vmatmul.f32.vlgmr.msrb.gmra.mxu1 %v10827_v18  ;;  %v15775_v18 = vand.u32 4294901760, %v12958_v44  ;;  %v7483_v44 = vand.u32 4294901760, %v7482_v39 }
 0x61a   : > { %6847 = vmatmul.f32.gmra.mxu0 %v10845_v41  ;;  %7056 = vmatmul.f32.gmra.mxu3 %v10829_v7  ;;  %v13226_v63 = vpop.f32.mrf.mxu0  ;;  %v13228_v21 = vpop.f32.mrf.mxu2  ;;  %v7476_v41 = vsub.f32 %v13198_v31, %v14804_v6  ;;  %v15801_v6 = vld [vmem:[#allocation222_spill] sm:$0xff] }
 0x61b   : > { %15771 = vst [vmem:[#allocation83_spill] sm:$0xff] %v13226_v63  ;;  %7349 = vmatpush.msrb.mxu0 %v15773_v17  ;;  %7376 = vmatpush.msrb.mxu1 %v12889_v2  ;;  %v13236_v42 = vpop.f32.mrf.mxu1  ;;  %v15776_v2 = vand.u32 4294901760, %v12971_v26  ;;  %v4423_v10 = vadd.f32 %v15801_v6, %v15800_v54  ;;  %v15811_v6 = vld [vmem:[#allocation235_spill] sm:$0xff]  ;;  %v15817_v63 = vld [vmem:[#allocation220_spill] sm:$0xff] }
 0x61c   : > { %15772 = vst [vmem:[#allocation24_spill] sm:$0xff] %v13228_v21  ;;  %7411 = vmatpush.msrb.mxu2 %v13131_v3  ;;  %7466 = vmatpush.msrb.mxu3 %v7465_v61  ;;  %v7477_v35 = vand.u32 4294901760, %v7476_v41  ;;  %v15789_v61 = vld [vmem:[#allocation216_spill] sm:$0xff]  ;;  %v15791_v41 = vld [vmem:[#allocation125_spill] sm:$0xff]  ;;  %v15808_v21 = vld [vmem:[#allocation234_spill] sm:$0xff] }
 0x61d   : > { %15774 = vst [vmem:[#allocation84_spill] sm:$0xff] %v13236_v42  ;;  %6999 = vmatmul.f32.gmra.mxu2 %v10829_v7  ;;  %7353 = vmatpush.msrb.mxu0 %v15775_v18  ;;  %v15777_v7 = vand.u32 4294901760, %v12982_v25  ;;  %v15812_v42 = vld [vmem:[#allocation239_spill] sm:$0xff] }
 0x61e   : > { %7378 = vmatpush.msrb.mxu1 %v12895_v19  ;;  %7413 = vmatpush.msrb.mxu2 %v13149_v12 }
 0x61f   : > { %7472 = vmatpush.msrb.mxu3 %v7471_v29  ;;  %7357 = vmatpush.msrb.mxu0 %v15776_v2  ;;  %v15793_v29 = vld [vmem:[#allocation214_spill] sm:$0xff]  ;;  %v15794_v2 = vld [vmem:[#allocation120_spill] sm:$0xff] }
 0x620   : > { %7380 = vmatpush.msrb.mxu1 %v12900_v8  ;;  %7415 = vmatpush.msrb.mxu2 %v13159_v36  ;;  %v4407_v39 = vadd.f32 %v15793_v29, %v12823_v24  ;;  %v15803_v29 = vld [vmem:[#allocation226_spill] sm:$0xff] }
 0x621   : > { %7478 = vmatpush.msrb.mxu3 %v7477_v35  ;;  %7361 = vmatpush.msrb.mxu0 %v15777_v7  ;;  %v13253_v49 = vpop.f32.mrf.mxu3  ;;  %v15795_v7 = vld [vmem:[#allocation211_spill] sm:$0xff]  ;;  %v4431_v45 = vadd.f32 %v15803_v29, %v15802_v47 }
 0x622   : > { %15778 = vst [vmem:[#allocation198_spill] sm:$0xff] %v13253_v49  ;;  %7382 = vmatpush.msrb.mxu1 %v12910_v15  ;;  %7417 = vmatpush.msrb.mxu2 %v13167_v13  ;;  %v13257_v19 = vpop.f32.mrf.mxu0 }
 0x623   : > { %15779 = vst [vmem:[#allocation30_spill] sm:$0xff] %v13257_v19  ;;  %7484 = vmatpush.msrb.mxu3 %v7483_v44  ;;  %6852 = vmatmul.f32.gmra.mxu0 %v10879_v22  ;;  %v13260_v26 = vpop.f32.mrf.mxu1  ;;  %v13262_v8 = vpop.f32.mrf.mxu2  ;;  %v15818_v19 = vld [vmem:[#allocation224_spill] sm:$0xff] }
 0x624   : > { %15780 = vst [vmem:[#allocation194_spill] sm:$0xff] %v13260_v26  ;;  %6914 = vmatmul.f32.gmra.mxu1 %v10855_v59  ;;  %7060 = vmatmul.f32.gmra.mxu3 %v10859_v14 }
 0x625   : > { %15781 = vst [vmem:[#allocation87_spill] sm:$0xff] %v13262_v8  ;;  %7384 = vmatpush.msrb.mxu1 %v12923_v40  ;;  %7419 = vmatpush.msrb.mxu2 %v13178_v0 }
 0x626   : > { %7003 = vmatmul.f32.gmra.mxu2 %v10859_v14 }
 0x627   : > { %7386 = vmatpush.msrb.mxu1 %v12937_v51 }
 0x629   : > { %7388 = vmatpush.msrb.mxu1 %v12946_v55  ;;  %v13271_v15 = vpop.f32.mrf.mxu3 }
 0x62a   : > { %15782 = vst [vmem:[#allocation22_spill] sm:$0xff] %v13271_v15  ;;  %v13273_v22 = vpop.f32.mrf.mxu0  ;;  %v15806_v15 = vld [vmem:[#allocation230_spill] sm:$0xff] }
 0x62b   : > { %7390 = vmatpush.msrb.mxu1 %v12960_v28  ;;  %6857 = vmatmul.f32.gmra.mxu0 %v10920_v16  ;;  %v13277_v59 = vpop.f32.mrf.mxu1  ;;  %v13279_v25 = vpop.f32.mrf.mxu2 }
 0x62c   : > { %15783 = vst [vmem:[#allocation195_spill] sm:$0xff] %v13277_v59  ;;  %6920 = vmatmul.f32.gmra.mxu1 %v10895_v30  ;;  %7064 = vmatmul.f32.gmra.mxu3 %v10897_v57  ;;  %v15785_v30 = vld [vmem:[#allocation32_spill] sm:$0xff] }
 0x62d   : > { %15784 = vst [vmem:[#allocation33_spill] sm:$0xff] %v13279_v25  ;;  %v4391_v16 = vadd.f32 %v15785_v30, %v12839_v50  ;;  %v15796_v30 = vld [vmem:[#allocation177_spill] sm:$0xff] }
 0x62e   : > { %7007 = vmatmul.f32.gmra.mxu2 %v10897_v57  ;;  %v15786_v57 = vld [vmem:[#allocation210_spill] sm:$0xff] }
 0x62f   : > { %v4399_v40 = vadd.f32 %v15786_v57, %v15641_v1  ;;  %v4508_v5 = vadd.f32 %v15787_v58, %v4391_v16  ;;  %v15797_v16 = vld [vmem:[#allocation218_spill] sm:$0xff] }
 0x630   : > { %v4415_v57 = vadd.f32 %v15797_v16, %v15796_v30 }
 0x631   : > { %v13284_v14 = vpop.f32.mrf.mxu3  ;;  %v4574_v44 = vadd.f32 %v15795_v7, %v4508_v5  ;;  %v15807_v7 = vld [vmem:[#allocation23_spill] sm:$0xff] }
 0x632   : > { %v13286_v55 = vpop.f32.mrf.mxu0  ;;  %v4447_v16 = vadd.f32 %v15808_v21, %v15807_v7 }
 0x633   : > { %6862 = vmatmul.f32.gmra.mxu0 %v10964_v27  ;;  %v13289_v51 = vpop.f32.mrf.mxu1  ;;  %v13291_v28 = vpop.f32.mrf.mxu2  ;;  %v7148_v27 = vld [vmem:[%s14668_s5] sm:$0x1] }
 0x634   : > { %6926 = vmatmul.f32.gmra.mxu1 %v10936_v37  ;;  %7068 = vmatmul.f32.gmra.mxu3 %v10938_v38  ;;  %v4512_v37 = vadd.f32 %v15789_v61, %v4399_v40  ;;  %v7157_v35 = vsel %vm3427_vm2, %v7148_v27, 0  ;;  %v15798_v40 = vld [vmem:[#allocation215_spill] sm:$0xff]  ;;  %v4536_v29 = vadd.f32 %v15812_v42, %v4447_v16 }
 0x635   : > { %v15799_v61 = vld [vmem:[#allocation219_spill] sm:$0xff]  ;;  %v13334_v8 = vand.u32 4294901760, %v7157_v35 }
 0x636   : > { %7011 = vmatmul.f32.gmra.mxu2 %v10938_v38  ;;  %v4579_v58 = vadd.f32 %v15798_v40, %v4512_v37  ;;  %v15805_v27 = vld [vmem:[#allocation67_spill] sm:$0xff] }
 0x637   : > { %v4439_v5 = vadd.f32 %v15806_v15, %v15805_v27  ;;  %v15809_v37 = vld [vmem:[#allocation227_spill] sm:$0xff]  ;;  %v15816_v15 = vld [vmem:[#allocation213_spill] sm:$0xff]  ;;  %v13354_v42 = vsub.f32 %v7157_v35, %v13334_v8 }
 0x638   : > { %v15810_v40 = vld [vmem:[#allocation231_spill] sm:$0xff]  ;;  %v4646_v59 = vadd.f32 %v15816_v15, %v4579_v58  ;;  %v15830_v15 = vld [vmem:[#allocation242_spill] sm:$0xff] }
 0x639   : > { %v13301_v34 = vpop.f32.mrf.mxu3  ;;  %v4532_v25 = vadd.f32 %v15811_v6, %v4439_v5  ;;  %15822 = vst [vmem:[#allocation204_spill] sm:$0xff] %v13354_v42  ;;  %v15823_v5 = vld [vmem:[#allocation228_spill] sm:$0xff]  ;;  %v15826_v58 = vld [vmem:[#allocation127_spill] sm:$0xff] }
 0x63a   : > { %15788 = vst [vmem:[#allocation190_spill] sm:$0xff] %v13301_v34  ;;  %v13307_v17 = vpop.f32.mrf.mxu0  ;;  %v4731_v35 = vadd.f32 %v15830_v15, %v4646_v59  ;;  %v15862_v34 = vld [vmem:[#allocation7_spill] sm:$0xff] }
 0x63b   : > { %15790 = vst [vmem:[#allocation191_spill] sm:$0xff] %v13307_v17  ;;  %6867 = vmatmul.f32.gmra.mxu0 %v15791_v41  ;;  %v13310_v38 = vpop.f32.mrf.mxu1  ;;  %v13312_v18 = vpop.f32.mrf.mxu2  ;;  %v4516_v41 = vadd.f32 %v15799_v61, %v4407_v39  ;;  %v4524_v39 = vadd.f32 %v15809_v37, %v4423_v10  ;;  %v4528_v61 = vadd.f32 %v15810_v40, %v4431_v45  ;;  %v15825_v40 = vld [vmem:[#allocation238_spill] sm:$0xff] }
 0x63c   : > { %15792 = vst [vmem:[#allocation200_spill] sm:$0xff] %v13312_v18  ;;  %6932 = vmatmul.f32.gmra.mxu1 %v15794_v2  ;;  %7072 = vmatmul.f32.gmra.mxu3 %v10979_v11  ;;  %v15804_v2 = vld [vmem:[#allocation223_spill] sm:$0xff]  ;;  %v15866_v18 = vld [vmem:[#allocation16_spill] sm:$0xff] }
 0x63d   : > { %v4520_v49 = vadd.f32 %v15804_v2, %v4415_v57  ;;  %v4584_v21 = vadd.f32 %v15817_v63, %v4516_v41  ;;  %v4594_v16 = vadd.f32 %v15823_v5, %v4524_v39  ;;  %v15827_v63 = vld [vmem:[#allocation236_spill] sm:$0xff]  ;;  %v15829_v41 = vld [vmem:[#allocation243_spill] sm:$0xff]  ;;  %v15832_v39 = vld [vmem:[#allocation217_spill] sm:$0xff] }
 0x63e   : > { %7015 = vmatmul.f32.gmra.mxu2 %v10979_v11  ;;  %v15814_v11 = vld [vmem:[#allocation209_spill] sm:$0xff] }
 0x63f   : > { %v4640_v57 = vadd.f32 %v15814_v11, %v4574_v44  ;;  %v4589_v23 = vadd.f32 %v15818_v19, %v4520_v49  ;;  %v15824_v44 = vld [vmem:[#allocation232_spill] sm:$0xff]  ;;  %v4604_v49 = vadd.f32 %v15827_v63, %v4532_v25  ;;  %v4845_v11 = vadd.f32 %v15829_v41, %v12839_v50  ;;  %v15837_v63 = vld [vmem:[#allocation229_spill] sm:$0xff] }
 0x640   : > { %v4599_v37 = vadd.f32 %v15824_v44, %v4528_v61  ;;  %v4652_v61 = vadd.f32 %v15832_v39, %v4584_v21  ;;  %v15834_v44 = vld [vmem:[#allocation247_spill] sm:$0xff]  ;;  %v13373_v25 = vand.u32 4294901760, %v13354_v42  ;;  %v15838_v41 = vld [vmem:[#allocation108_spill] sm:$0xff]  ;;  %v15841_v21 = vld [vmem:[#allocation237_spill] sm:$0xff] }
 0x641   : > { %v13340_v26 = vpop.f32.mrf.mxu3  ;;  %v4727_v6 = vadd.f32 %v15825_v40, %v4640_v57  ;;  %v15833_v57 = vld [vmem:[#allocation221_spill] sm:$0xff]  ;;  %v4861_v40 = vadd.f32 %v15834_v44, %v12823_v24  ;;  %v4788_v59 = vadd.f32 %v15838_v41, %v4731_v35  ;;  %v15843_v44 = vld [vmem:[#allocation126_spill] sm:$0xff]  ;;  %v15847_v35 = vld [vmem:[#allocation99_spill] sm:$0xff] }
 0x642   : > { %15813 = vst [vmem:[#allocation21_spill] sm:$0xff] %v13340_v26  ;;  %v13343_v2 = vpop.f32.mrf.mxu0  ;;  %v4658_v5 = vadd.f32 %v15833_v57, %v4589_v23  ;;  %v15842_v23 = vld [vmem:[#allocation241_spill] sm:$0xff]  ;;  %v4901_v41 = vadd.f32 %v15847_v35, %v15807_v7 }
 0x643   : > { %15815 = vst [vmem:[#allocation208_spill] sm:$0xff] %v13343_v2  ;;  %6872 = vmatmul.f32.gmra.mxu0 %v15819_v52  ;;  %v13349_v10 = vpop.f32.mrf.mxu1  ;;  %v13351_v45 = vpop.f32.mrf.mxu2  ;;  %v15828_v52 = vld [vmem:[#allocation240_spill] sm:$0xff]  ;;  %v4962_v57 = vadd.f32 %v15842_v23, %v4845_v11 }
 0x644   : > { %15820 = vst [vmem:[#allocation186_spill] sm:$0xff] %v13349_v10  ;;  %6938 = vmatmul.f32.gmra.mxu1 %v15826_v58  ;;  %7076 = vmatmul.f32.gmra.mxu3 %v11009_v32  ;;  %v4609_v19 = vadd.f32 %v15828_v52, %v4536_v29  ;;  %v15831_v2 = vld [vmem:[#allocation244_spill] sm:$0xff]  ;;  %v15836_v29 = vld [vmem:[#allocation225_spill] sm:$0xff]  ;;  %v4670_v52 = vadd.f32 %v15837_v63, %v4599_v37 }
 0x645   : > { %15821 = vst [vmem:[#allocation86_spill] sm:$0xff] %v13351_v45  ;;  %v4784_v26 = vadd.f32 %v15831_v2, %v4727_v6  ;;  %v4664_v58 = vadd.f32 %v15836_v29, %v4594_v16  ;;  %v15839_v2 = vld [vmem:[#allocation251_spill] sm:$0xff]  ;;  %v4877_v45 = vadd.f32 %v15843_v44, %v15800_v54  ;;  %v15846_v37 = vld [vmem:[#allocation245_spill] sm:$0xff] }
 0x646   : > { %7019 = vmatmul.f32.gmra.mxu2 %v11009_v32  ;;  %15835 = vst [vmem:[#allocation187_spill] sm:$0xff] %v13373_v25  ;;  %v4869_v6 = vadd.f32 %v15839_v2, %v15796_v30  ;;  %v15840_v32 = vld [vmem:[#allocation233_spill] sm:$0xff]  ;;  %v4682_v39 = vadd.f32 %v15841_v21, %v4609_v19  ;;  %v15845_v16 = vld [vmem:[#allocation35_spill] sm:$0xff]  ;;  %v4739_v63 = vadd.f32 %v15846_v37, %v4658_v5  ;;  %v15850_v19 = vld [vmem:[#allocation98_spill] sm:$0xff] }
 0x647   : > { %v4676_v15 = vadd.f32 %v15840_v32, %v4604_v49  ;;  %9375 = vtanh.f32 %v4784_v26  ;;  %v4735_v29 = vadd.f32 %v15845_v16, %v4652_v61  ;;  %v15849_v49 = vld [vmem:[#allocation207_spill] sm:$0xff]  ;;  %v4885_v11 = vadd.f32 %v15850_v19, %v15802_v47  ;;  %v15855_v5 = vld [vmem:[#allocation246_spill] sm:$0xff]  ;;  %v15856_v37 = vld [vmem:[#allocation248_spill] sm:$0xff] }
 0x648   : > { %v4970_v32 = vadd.f32 %v15849_v49, %v4861_v40  ;;  %v15851_v21 = vld [vmem:[#allocation15_spill] sm:$0xff]  ;;  %v7186_v61 = vsub.f32 %v13354_v42, %v13373_v25  ;;  %9377 = vtanh.f32 %v4788_v59  ;;  %v4974_v35 = vadd.f32 %v15856_v37, %v4869_v6  ;;  %v15857_v40 = vld [vmem:[#allocation42_spill] sm:$0xff] }
 0x649   : > { %v13385_v10 = vpop.f32.mrf.mxu3  ;;  %v5028_v23 = vadd.f32 %v15851_v21, %v4962_v57  ;;  %v15852_v44 = vld [vmem:[#allocation139_spill] sm:$0xff]  ;;  %v4792_v16 = vadd.f32 %v15855_v5, %v4735_v29  ;;  %v4893_v49 = vadd.f32 %v15857_v40, %v15805_v27  ;;  %v15858_v19 = vld [vmem:[#allocation134_spill] sm:$0xff]  ;;  %v15859_v57 = vld [vmem:[#allocation249_spill] sm:$0xff] }
 0x64a   : > { %15844 = vst [vmem:[#allocation201_spill] sm:$0xff] %v13385_v10  ;;  %v13391_v2 = vpop.f32.mrf.mxu0  ;;  %v4743_v21 = vadd.f32 %v15859_v57, %v4664_v58  ;;  %v5038_v7 = vadd.f32 %v15862_v34, %v4970_v32  ;;  %v15863_v59 = vld [vmem:[#allocation250_spill] sm:$0xff]  ;;  %v15865_v6 = vld [vmem:[#allocation103_spill] sm:$0xff]  ;;  %v5043_v40 = vadd.f32 %v15866_v18, %v4974_v35  ;;  %v15869_v57 = vld [vmem:[#allocation100_spill] sm:$0xff] }
 0x64b   : > { %15848 = vst [vmem:[#allocation206_spill] sm:$0xff] %v13391_v2  ;;  %6877 = vmatmul.f32.gmra.mxu0 %v15852_v44  ;;  %v13398_v10 = vpop.f32.mrf.mxu1  ;;  %v13400_v26 = vpop.f32.mrf.mxu2  ;;  %v15860_v44 = vld [vmem:[#allocation12_spill] sm:$0xff]  ;;  %v4796_v17 = vadd.f32 %v15863_v59, %v4739_v63  ;;  %v15864_v29 = vld [vmem:[#allocation106_spill] sm:$0xff]  ;;  %v4990_v37 = vadd.f32 %v15865_v6, %v4901_v41  ;;  %v15868_v30 = vld [vmem:[#allocation19_spill] sm:$0xff]  ;;  %9379 = vtanh.f32 %v4792_v16 }
 0x64c   : > { %15853 = vst [vmem:[#allocation80_spill] sm:$0xff] %v13398_v10  ;;  %6944 = vmatmul.f32.gmra.mxu1 %v15858_v19  ;;  %7080 = vmatmul.f32.gmra.mxu3 %v11037_v33  ;;  %v4978_v2 = vadd.f32 %v15860_v44, %v4877_v45  ;;  %v4747_v5 = vadd.f32 %v15864_v29, %v4670_v52  ;;  %v15867_v19 = vld [vmem:[#allocation14_spill] sm:$0xff]  ;;  %v13422_v44 = vand.u32 4294901760, %v7186_v61  ;;  %v15870_v34 = vld [vmem:[#allocation8_spill] sm:$0xff]  ;;  %v15871_v32 = vld [vmem:[#allocation107_spill] sm:$0xff] }
 0x64d   : > { %15854 = vst [vmem:[#allocation37_spill] sm:$0xff] %v13400_v26  ;;  %v15861_v26 = vld [vmem:[#allocation17_spill] sm:$0xff]  ;;  %v4982_v27 = vadd.f32 %v15867_v19, %v4885_v11  ;;  %v5106_v58 = vadd.f32 %v15868_v30, %v5038_v7  ;;  %v4755_v63 = vadd.f32 %v15870_v34, %v4682_v39  ;;  %v4986_v52 = vadd.f32 %v15871_v32, %v4893_v49  ;;  %v15873_v59 = vld [vmem:[#allocation122_spill] sm:$0xff]  ;;  %v15877_v7 = vld [vmem:[#allocation136_spill] sm:$0xff] }
 0x64e   : > { %v5094_v10 = vadd.f32 %v15861_v26, %v5028_v23  ;;  %7023 = vmatmul.f32.gmra.mxu2 %v11037_v33  ;;  %v5048_v45 = vadd.f32 %v15869_v57, %v4978_v2  ;;  %v13424_v23 = vpop.eup %9375  ;;  %v15872_v26 = vld [vmem:[#allocation105_spill] sm:$0xff]  ;;  %v5063_v18 = vadd.f32 %v15873_v59, %v4990_v37  ;;  %v15875_v29 = vld [vmem:[#allocation18_spill] sm:$0xff]  ;;  %v15881_v32 = vld [vmem:[#allocation39_spill] sm:$0xff]  ;;  %9381 = vtanh.f32 %v4796_v17 }
 0x64f   : > { %v5112_v41 = vadd.f32 %v15872_v26, %v5043_v40  ;;  %v15874_v35 = vld [vmem:[#allocation9_spill] sm:$0xff]  ;;  %v13436_v19 = vpop.eup %9377  ;;  %v15879_v57 = vld [vmem:[#allocation102_spill] sm:$0xff]  ;;  %v5058_v40 = vadd.f32 %v15881_v32, %v4986_v52  ;;  %v15882_v26 = vld [vmem:[#allocation27_spill] sm:$0xff] }
 0x650   : > { %v4800_v33 = vadd.f32 %v15874_v35, %v4743_v21  ;;  %v5181_v11 = vadd.f32 %v15875_v29, %v5094_v10  ;;  %v15876_v6 = vld [vmem:[#allocation101_spill] sm:$0xff]  ;;  %v5118_v2 = vadd.f32 %v15877_v7, %v5048_v45  ;;  %v4751_v39 = vadd.f32 %v15879_v57, %v4676_v15  ;;  %v15880_v34 = vld [vmem:[#allocation46_spill] sm:$0xff]  ;;  %v15883_v21 = vld [vmem:[#allocation11_spill] sm:$0xff] }
 0x651   : > { %v5053_v30 = vadd.f32 %v15876_v6, %v4982_v27  ;;  %v13434_v61 = vpop.f32.mrf.mxu3  ;;  %v4812_v49 = vadd.f32 %v15880_v34, %v4755_v63  ;;  %v5136_v37 = vadd.f32 %v15882_v26, %v5063_v18  ;;  %v4804_v59 = vadd.f32 %v15883_v21, %v4747_v5  ;;  %v15884_v10 = vld [vmem:[#allocation41_spill] sm:$0xff]  ;;  %v15891_v16 = vld [vmem:[#allocation68_spill] sm:$0xff]  ;;  %v15897_v26 = vld [vmem:[#allocation66_spill] sm:$0xff] }
 0x652   : > { %15878 = vst [vmem:[#allocation181_spill] sm:$0xff] %v13434_v61  ;;  %v5189_v35 = vadd.f32 %v15884_v10, %v5106_v58  ;;  %v15885_v27 = vld [vmem:[#allocation129_spill] sm:$0xff]  ;;  %9383 = vtanh.f32 %v4800_v33  ;;  %v15893_v58 = vld [vmem:[#allocation6_spill] sm:$0xff]  ;;  %v15895_v17 = vld [vmem:[#allocation116_spill] sm:$0xff]  ;;  %v15898_v33 = vand.u32 4294901760, %v13124_v48 }
 0x653   : > { %v5124_v29 = vadd.f32 %v15885_v27, %v5053_v30  ;;  %7188 = vmatmul.f32.vlgmr.msra.gmra.mxu0 %v13422_v44  ;;  %v13446_v45 = vpop.f32.mrf.mxu0  ;;  %v13448_v6 = vpop.f32.mrf.mxu2  ;;  %v15888_v15 = vld [vmem:[#allocation13_spill] sm:$0xff]  ;;  %v5238_v30 = vadd.f32 %v15893_v58, %v5181_v11  ;;  %9385 = vtanh.f32 %v4812_v49 }
 0x654   : > { %15886 = vst [vmem:[#allocation183_spill] sm:$0xff] %v13446_v45  ;;  %v4808_v63 = vadd.f32 %v15888_v15, %v4751_v39  ;;  %v15889_v7 = vld [vmem:[#allocation45_spill] sm:$0xff]  ;;  %6950 = vmatmul.f32.gmra.mxu1 %v15891_v16  ;;  %7318 = vmatmul.f32.vlgmr.msra.gmra.mxu3 %v13373_v25  ;;  %v13455_v5 = vpop.f32.mrf.mxu1  ;;  %9387 = vtanh.f32 %v4804_v59  ;;  %v15896_v39 = vld [vmem:[#allocation104_spill] sm:$0xff]  ;;  %v13471_v49 = vpop.eup %9379 }
 0x655   : > { %15887 = vst [vmem:[#allocation205_spill] sm:$0xff] %v13448_v6  ;;  %v5193_v52 = vadd.f32 %v15889_v7, %v5112_v41  ;;  %v15890_v57 = vld [vmem:[#allocation137_spill] sm:$0xff]  ;;  %7500 = vmatpush.msra.mxu0 %v13124_v48  ;;  %7613 = vmatpush.msra.mxu3 %v13110_v56  ;;  %v5209_v41 = vadd.f32 %v15895_v17, %v5136_v37  ;;  %v15901_v37 = vld [vmem:[#allocation51_spill] sm:$0xff]  ;;  %v13478_v48 = vand.u32 4294901760, %v13424_v23 }
 0x656   : > { %v5130_v18 = vadd.f32 %v15890_v57, %v5058_v40  ;;  %15892 = vst [vmem:[#allocation91_spill] sm:$0xff] %v13455_v5  ;;  %v15894_v34 = vld [vmem:[#allocation25_spill] sm:$0xff]  ;;  %7287 = vmatmul.f32.vlgmr.msra.gmra.mxu2 %v13354_v42  ;;  %v5246_v40 = vadd.f32 %v15896_v39, %v5189_v35  ;;  %v5201_v21 = vadd.f32 %v15897_v26, %v5124_v29  ;;  %9389 = vtanh.f32 %v4808_v63  ;;  %v13480_v29 = vpop.eup %9381  ;;  %v15905_v63 = vld [vmem:[#allocation43_spill] sm:$0xff] }
 0x657   : > { %v5197_v32 = vadd.f32 %v15894_v34, %v5118_v2  ;;  %7503 = vmatpush.msra.mxu0 %v13136_v9  ;;  %7570 = vmatpush.msra.mxu2 %v15898_v33  ;;  %v15899_v11 = vld [vmem:[#allocation53_spill] sm:$0xff]  ;;  %9391 = vtanh.f32 %v5238_v30  ;;  %v15902_v35 = vand.u32 4294901760, %v13136_v9  ;;  %15903 = vst [vmem:[#allocation81_spill] sm:$0xff] %v13478_v48  ;;  %v5266_v7 = vadd.f32 %v15905_v63, %v5209_v41  ;;  %v15909_v30 = vld [vmem:[#allocation44_spill] sm:$0xff] }
 0x658   : > { %v5250_v2 = vadd.f32 %v15899_v11, %v5193_v52  ;;  %v15900_v10 = vld [vmem:[#allocation29_spill] sm:$0xff]  ;;  %7615 = vmatpush.msra.mxu3 %v13119_v62  ;;  %v13487_v57 = vpop.eup %9383  ;;  %v15908_v9 = vand.u32 4294901760, %v13147_v43  ;;  %v6239_v5 = vadd.f32 %v13273_v22, %v15800_v54 }
 0x659   : > { %v5205_v27 = vadd.f32 %v15900_v10, %v5130_v18  ;;  %v5254_v59 = vadd.f32 %v15901_v37, %v5197_v32  ;;  %7506 = vmatpush.msra.mxu0 %v13147_v43  ;;  %7574 = vmatpush.msra.mxu2 %v15902_v35  ;;  %v15904_v15 = vld [vmem:[#allocation133_spill] sm:$0xff]  ;;  %v15907_v18 = vld [vmem:[#allocation40_spill] sm:$0xff]  ;;  %v9386_v58 = vpop.eup %9385  ;;  %v13504_v43 = vsub.f32 %v13424_v23, %v13478_v48  ;;  %v13518_v23 = vand.u32 4294901760, %v13436_v19 }
 0x65a   : > { %9393 = vtanh.f32 %v15904_v15  ;;  %7617 = vmatpush.msra.mxu3 %v13126_v53  ;;  %v13485_v52 = vpop.f32.mrf.mxu3  ;;  %v5258_v16 = vadd.f32 %v15907_v18, %v5201_v21  ;;  %v9388_v32 = vpop.eup %9387  ;;  %v13533_v37 = vand.u32 4294901760, %v13471_v49 }
 0x65b   : > { %15906 = vst [vmem:[#allocation202_spill] sm:$0xff] %v13485_v52  ;;  %9395 = vtanh.f32 %v5246_v40  ;;  %7509 = vmatpush.msra.mxu0 %v13154_v60  ;;  %7578 = vmatpush.msra.mxu2 %v15908_v9  ;;  %v5262_v34 = vadd.f32 %v15909_v30, %v5205_v27  ;;  %v15912_v40 = vand.u32 4294901760, %v13154_v60  ;;  %v15915_v60 = vand.u32 4294901760, %v13165_v4 }
 0x65c   : > { %9397 = vtanh.f32 %v5250_v2  ;;  %7619 = vmatpush.msra.mxu3 %v13131_v3  ;;  %7249 = vmatmul.f32.vlgmr.msra.gmra.mxu1 %v13334_v8  ;;  %v9390_v39 = vpop.eup %9389  ;;  %15914 = vst [vmem:[#allocation203_spill] sm:$0xff] %v13518_v23  ;;  %v14810_v10 = vand.u32 4294901760, %v13504_v43  ;;  %v13543_v35 = vand.u32 4294901760, %v9388_v32  ;;  %v13547_v15 = vsub.f32 %v13436_v19, %v13518_v23 }
 0x65d   : > { %9399 = vtanh.f32 %v5254_v59  ;;  %7512 = vmatpush.msra.mxu0 %v13165_v4  ;;  %7537 = vmatpush.msra.mxu1 %v13110_v56  ;;  %v13498_v17 = vpop.f32.mrf.mxu0  ;;  %v13500_v41 = vpop.f32.mrf.mxu2  ;;  %v13515_v56 = vand.u32 4294901760, %v9386_v58  ;;  %v13527_v2 = vand.u32 4294901760, %v9390_v39  ;;  %15916 = vst [vmem:[#allocation89_spill] sm:$0xff] %v13533_v37  ;;  %v15917_v4 = vand.u32 4294901760, %v13188_v20 }
 0x65e   : > { %15910 = vst [vmem:[#allocation28_spill] sm:$0xff] %v13498_v17  ;;  %9401 = vtanh.f32 %v5266_v7  ;;  %7582 = vmatpush.msra.mxu2 %v15912_v40  ;;  %7621 = vmatpush.msra.mxu3 %v13149_v12  ;;  %v13509_v26 = vpop.f32.mrf.mxu1  ;;  %v13511_v21 = vpop.eup %9391  ;;  %v13552_v7 = vand.u32 4294901760, %v13487_v57  ;;  %v15920_v19 = vand.u32 4294901760, %v13198_v31  ;;  %v13573_v30 = vsub.f32 %v13504_v43, %v14810_v10 }
 0x65f   : > { %15911 = vst [vmem:[#allocation179_spill] sm:$0xff] %v13500_v41  ;;  %9403 = vtanh.f32 %v5258_v16  ;;  %7425 = vmatmul.f32.vlgmr.msrb.gmra.mxu2 %v13422_v44  ;;  %7515 = vmatpush.msra.mxu0 %v13188_v20  ;;  %v13541_v59 = vsub.f32 %v9386_v58, %v13515_v56  ;;  %v13557_v20 = vand.u32 4294901760, %v13480_v29  ;;  %v13560_v16 = vand.u32 4294901760, %v13511_v21 }
 0x660   : > { %15913 = vst [vmem:[#allocation88_spill] sm:$0xff] %v13509_v26  ;;  %v13520_v33 = vpop.eup %9393  ;;  %9405 = vtanh.f32 %v5262_v34  ;;  %7539 = vmatpush.msra.mxu1 %v13119_v62  ;;  %7586 = vmatpush.msra.mxu2 %v15915_v60  ;;  %v13566_v9 = vsub.f32 %v9390_v39, %v13527_v2  ;;  %v13597_v10 = vsub.f32 %v9388_v32, %v13543_v35 }
 0x661   : > { %v9396_v11 = vpop.eup %9395  ;;  %7623 = vmatpush.msra.mxu3 %v13159_v36  ;;  %7363 = vmatmul.f32.vlgmr.msrb.gmra.mxu0 %v13334_v8  ;;  %15919 = vst [vmem:[#allocation199_spill] sm:$0xff] %v13560_v16  ;;  %v13576_v40 = vand.u32 4294901760, %v13520_v33  ;;  %v13615_v32 = vsub.f32 %v13480_v29, %v13557_v20 }
 0x662   : > { %v9398_v27 = vpop.eup %9397  ;;  %7486 = vmatmul.f32.vlgmr.msrb.gmra.mxu3 %v13334_v8  ;;  %7518 = vmatpush.msra.mxu0 %v13198_v31  ;;  %v13578_v60 = vand.u32 4294901760, %v9396_v11 }
 0x663   : > { %v13535_v62 = vpop.eup %9399  ;;  %7541 = vmatpush.msra.mxu1 %v13126_v53  ;;  %7590 = vmatpush.msra.mxu2 %v15917_v4  ;;  %v13590_v4 = vsub.f32 %v13471_v49, %v13533_v37  ;;  %v15924_v49 = vand.u32 4294901760, %v13205_v46 }
 0x664   : > { %v9402_v63 = vpop.eup %9401  ;;  %7625 = vmatpush.msra.mxu3 %v13167_v13  ;;  %7521 = vmatpush.msra.mxu0 %v13205_v46  ;;  %v13554_v53 = vpop.f32.mrf.mxu3  ;;  %v13602_v26 = vand.u32 4294901760, %v13535_v62  ;;  %v13626_v46 = vsub.f32 %v13511_v21, %v13560_v16  ;;  %v13635_v22 = vsub.f32 %v9396_v11, %v13578_v60  ;;  %v6340_v21 = vadd.f32 %v13289_v51, %v6239_v5  ;;  %v15955_v16 = vld [vmem:[#allocation62_spill] sm:$0xff] }
 0x665   : > { %15918 = vst [vmem:[#allocation96_spill] sm:$0xff] %v13554_v53  ;;  %v9404_v18 = vpop.eup %9403  ;;  %7543 = vmatpush.msra.mxu1 %v13131_v3  ;;  %7594 = vmatpush.msra.mxu2 %v15920_v19  ;;  %v13568_v58 = vpop.f32.mrf.mxu0  ;;  %v13580_v3 = vand.u32 4294901760, %v9398_v27  ;;  %v13592_v19 = vand.u32 4294901760, %v9402_v63  ;;  %v15935_v51 = vand.u32 4294901760, %v13547_v15 }
 0x666   : > { %15921 = vst [vmem:[#allocation82_spill] sm:$0xff] %v13568_v58  ;;  %v9406_v34 = vpop.eup %9405  ;;  %7627 = vmatpush.msra.mxu3 %v13178_v0  ;;  %7642 = vmatpush.msrb.mxu0 %v13515_v56  ;;  %v13584_v31 = vpop.f32.mrf.mxu1  ;;  %v13662_v29 = vsub.f32 %v13535_v62, %v13602_v26  ;;  %v6410_v62 = vadd.f32 %v13291_v28, %v6340_v21  ;;  %v15941_v28 = vand.u32 4294901760, %v13615_v32  ;;  %v15942_v41 = vand.u32 4294901760, %v13626_v46 }
 0x667   : > { %15922 = vst [vmem:[#allocation93_spill] sm:$0xff] %v13584_v31  ;;  %v13586_v39 = vpop.f32.mrf.mxu2  ;;  %7392 = vmatmul.f32.vlgmr.msrb.gmra.mxu1 %v13334_v8  ;;  %7598 = vmatpush.msra.mxu2 %v15924_v49  ;;  %v13611_v31 = vsub.f32 %v13487_v57, %v13552_v7  ;;  %v13617_v53 = vand.u32 4294901760, %v9406_v34  ;;  %v13632_v57 = vsub.f32 %v9398_v27, %v13580_v3 }
 0x668   : > { %15923 = vst [vmem:[#allocation79_spill] sm:$0xff] %v13586_v39  ;;  %7774 = vmatpush.msrb.mxu3 %v13515_v56  ;;  %v13604_v39 = vand.u32 4294901760, %v9404_v18  ;;  %7545 = vmatpush.msra.mxu1 %v13149_v12  ;;  %v13639_v49 = vsub.f32 %v13520_v33, %v13576_v40  ;;  %v13642_v12 = vsub.f32 %v9402_v63, %v13592_v19 }
 0x669   : > { %7644 = vmatpush.msrb.mxu0 %v13527_v2  ;;  %7737 = vmatpush.msrb.mxu2 %v13541_v59  ;;  %15925 = vst [vmem:[#allocation97_spill] sm:$0xff] %v13626_v46  ;;  %v7701_v21 = vsub.f32 %v13615_v32, %v15941_v28  ;;  %v15943_v28 = vand.u32 4294901760, %v13632_v57 }
 0x66a   : > { %7776 = vmatpush.msrb.mxu3 %v13527_v2  ;;  %7547 = vmatpush.msra.mxu1 %v13159_v36  ;;  %15926 = vst [vmem:[#allocation95_spill] sm:$0xff] %v13632_v57  ;;  %v15929_v36 = vand.u32 4294901760, %v13541_v59  ;;  %v13658_v5 = vsub.f32 %v9404_v18, %v13604_v39  ;;  %v13675_v18 = vsub.f32 %v13547_v15, %v15935_v51  ;;  %v15940_v51 = vand.u32 4294901760, %v13611_v31 }
 0x66b   : > { %15927 = vst [vmem:[#allocation36_spill] sm:$0xff] %v13635_v22  ;;  %7646 = vmatpush.msrb.mxu0 %v13543_v35  ;;  %7740 = vmatpush.msrb.mxu2 %v13566_v9 }
 0x66c   : > { %15928 = vst [vmem:[#allocation90_spill] sm:$0xff] %v13639_v49  ;;  %v7677_v27 = vsub.f32 %v13541_v59, %v15929_v36  ;;  %7778 = vmatpush.msrb.mxu3 %v13543_v35  ;;  %7524 = vmatmul.f32.vlgmr.msra.gmra.mxu0 %v13354_v42  ;;  %v13654_v63 = vpop.f32.mrf.mxu3  ;;  %v15933_v36 = vand.u32 4294901760, %v13566_v9  ;;  %v7695_v58 = vsub.f32 %v13611_v31, %v15940_v51 }
 0x66d   : > { %15930 = vst [vmem:[#allocation32_spill] sm:$0xff] %v13654_v63  ;;  %7549 = vmatpush.msra.mxu1 %v13167_v13  ;;  %7600 = vmatmul.f32.vlgmr.msra.gmra.mxu2 %v13334_v8  ;;  %v6558_v33 = vpop.f32.mrf.mxu0  ;;  %v13670_v63 = vsub.f32 %v9406_v34, %v13617_v53  ;;  %v13716_v51 = vsub.f32 %v13626_v46, %v15942_v41 }
 0x66e   : > { %15931 = vst [vmem:[#allocation210_spill] sm:$0xff] %v13658_v5  ;;  %v7683_v11 = vsub.f32 %v13566_v9, %v15933_v36  ;;  %7648 = vmatpush.msrb.mxu0 %v13552_v7  ;;  %7743 = vmatpush.msrb.mxu2 %v13597_v10  ;;  %v13680_v13 = vpop.f32.mrf.mxu1  ;;  %v15938_v36 = vand.u32 4294901760, %v13590_v4  ;;  %v6480_v41 = vadd.f32 %v13284_v14, %v6410_v62 }
 0x66f   : > { %15932 = vst [vmem:[#allocation212_spill] sm:$0xff] %v13662_v29  ;;  %v13682_v45 = vpop.f32.mrf.mxu2  ;;  %7780 = vmatpush.msrb.mxu3 %v13552_v7  ;;  %7551 = vmatpush.msra.mxu1 %v13178_v0 }
 0x670   : > { %15934 = vst [vmem:[#allocation216_spill] sm:$0xff] %v13670_v63  ;;  %v13687_v34 = vsub.f32 %v13590_v4, %v15938_v36  ;;  %7629 = vmatmul.f32.vlgmr.msra.gmra.mxu3 %v13334_v8  ;;  %7650 = vmatpush.msrb.mxu0 %v13557_v20  ;;  %v7684_v36 = vand.u32 4294901760, %v7683_v11 }
 0x671   : > { %15936 = vst [vmem:[#allocation125_spill] sm:$0xff] %v13680_v13  ;;  %v7678_v13 = vand.u32 4294901760, %v7677_v27  ;;  %7746 = vmatpush.msrb.mxu2 %v13611_v31  ;;  %7782 = vmatpush.msrb.mxu3 %v13557_v20  ;;  %v13723_v27 = vsub.f32 %v13632_v57, %v15943_v28  ;;  %v15946_v28 = vand.u32 4294901760, %v13642_v12 }
 0x672   : > { %15937 = vst [vmem:[#allocation214_spill] sm:$0xff] %v13682_v45  ;;  %v15939_v45 = vand.u32 4294901760, %v13597_v10  ;;  %7555 = vmatmul.f32.vlgmr.msra.gmra.mxu1 %v13373_v25  ;;  %7652 = vmatpush.msrb.mxu0 %v13533_v37 }
 0x673   : > { %7679 = vmatpush.msrb.mxu1 %v7678_v13  ;;  %v15945_v13 = vand.u32 4294901760, %v13639_v49  ;;  %v7914_v57 = vsub.f32 %v13642_v12, %v15946_v28  ;;  %7749 = vmatpush.msrb.mxu2 %v13615_v32  ;;  %v6559_v28 = vadd.f32 %v6558_v33, %v6480_v41 }
 0x674   : > { %v7689_v52 = vsub.f32 %v13597_v10, %v15939_v45  ;;  %v6247_v45 = vadd.f32 %v13286_v55, %v15802_v47  ;;  %v15944_v55 = vand.u32 4294901760, %v13635_v22  ;;  %7784 = vmatpush.msrb.mxu3 %v13533_v37  ;;  %v6793_v62 = vpop.f32.mrf.mxu3  ;;  %7654 = vmatpush.msrb.mxu0 %v13518_v23  ;;  %v15953_v37 = vld [vmem:[#allocation26_spill] sm:$0xff] }
 0x675   : > { %v13733_v17 = vsub.f32 %v13639_v49, %v15945_v13  ;;  %7685 = vmatpush.msrb.mxu1 %v7684_v36  ;;  %v15948_v13 = vand.u32 4294901760, %v13658_v5  ;;  %v15950_v36 = vld [vmem:[#allocation112_spill] sm:$0xff]  ;;  %v15951_v49 = vand.u32 4294901760, %v13670_v63  ;;  %7752 = vmatpush.msrb.mxu2 %v13590_v4 }
 0x676   : > { %v13728_v11 = vsub.f32 %v13635_v22, %v15944_v55  ;;  %v6344_v0 = vadd.f32 %v13310_v38, %v6247_v45  ;;  %v7690_v46 = vand.u32 4294901760, %v7689_v52  ;;  %v15947_v55 = vld [vmem:[#allocation130_spill] sm:$0xff]  ;;  %v15949_v38 = vand.u32 4294901760, %v13662_v29  ;;  %7786 = vmatpush.msrb.mxu3 %v13518_v23  ;;  %7656 = vmatpush.msrb.mxu0 %v13478_v48 }
 0x677   : > { %v5299_v22 = vadd.f32 %v15947_v55, %v12839_v50  ;;  %v13748_v14 = vsub.f32 %v13658_v5, %v15948_v13  ;;  %v5307_v45 = vadd.f32 %v15950_v36, %v15641_v1  ;;  %v7696_v55 = vand.u32 4294901760, %v7695_v58  ;;  %v6562_v13 = vpop.f32.mrf.mxu0  ;;  %v15952_v5 = vld [vmem:[#allocation111_spill] sm:$0xff]  ;;  %v6692_v33 = vpop.f32.mrf.mxu2  ;;  %v15956_v58 = vld [vmem:[#allocation200_spill] sm:$0xff]  ;;  %7755 = vmatpush.msrb.mxu2 %v13547_v15  ;;  %7662 = vmatmul.f32.vlgmr.msrb.gmra.mxu0 %v13422_v44 }
 0x678   : > { %v13753_v52 = vsub.f32 %v13662_v29, %v15949_v38  ;;  %7691 = vmatpush.msrb.mxu1 %v7690_v46  ;;  %v7920_v61 = vsub.f32 %v13670_v63, %v15951_v49  ;;  %v5315_v38 = vadd.f32 %v15953_v37, %v12823_v24  ;;  %v15954_v29 = vld [vmem:[#allocation177_spill] sm:$0xff]  ;;  %v6615_v46 = vpop.f32.mrf.mxu1  ;;  %v6415_v41 = vadd.f32 %v15956_v58, %v6344_v0  ;;  %v15959_v1 = vld [vmem:[#allocation52_spill] sm:$0xff]  ;;  %v15961_v58 = vld [vmem:[#allocation131_spill] sm:$0xff] }
 0x679   : > { %v5416_v6 = vadd.f32 %v15952_v5, %v5299_v22  ;;  %v5323_v50 = vadd.f32 %v15955_v16, %v15954_v29  ;;  %v7915_v49 = vand.u32 4294901760, %v7914_v57  ;;  %v13770_v36 = vadd.f32 %v6615_v46, %v6559_v28  ;;  %v15958_v37 = vld [vmem:[#allocation113_spill] sm:$0xff]  ;;  %v15960_v63 = vld [vmem:[#allocation76_spill] sm:$0xff]  ;;  %7788 = vmatpush.msrb.mxu3 %v13478_v48  ;;  %v15963_v57 = vld [vmem:[#allocation191_spill] sm:$0xff]  ;;  %7758 = vmatpush.msrb.mxu2 %v13504_v43 }
 0x67a   : > { %7697 = vmatpush.msrb.mxu1 %v7696_v55  ;;  %v6693_v22 = vadd.f32 %v6692_v33, %v15800_v54  ;;  %v5420_v5 = vadd.f32 %v15958_v37, %v5307_v45  ;;  %v5424_v16 = vadd.f32 %v15959_v1, %v5315_v38  ;;  %v5331_v24 = vadd.f32 %v15960_v63, %v15800_v54  ;;  %v15962_v55 = vld [vmem:[#allocation67_spill] sm:$0xff]  ;;  %v15966_v63 = vld [vmem:[#allocation78_spill] sm:$0xff] }
 0x67b   : > { %15957 = vst [vmem:[#allocation120_spill] sm:$0xff] %v13770_v36  ;;  %v7702_v0 = vand.u32 4294901760, %v7701_v21  ;;  %v5428_v23 = vadd.f32 %v15961_v58, %v5323_v50  ;;  %v6255_v28 = vadd.f32 %v15963_v57, %v15962_v55  ;;  %7916 = vmatpush.msra.mxu3 %v7915_v49  ;;  %v7921_v46 = vand.u32 4294901760, %v7920_v61  ;;  %v15965_v1 = vld [vmem:[#allocation135_spill] sm:$0xff]  ;;  %v15970_v58 = vld [vmem:[#allocation56_spill] sm:$0xff]  ;;  %v15971_v48 = vld [vmem:[#allocation190_spill] sm:$0xff]  ;;  %7879 = vmatpush.msra.mxu2 %v13592_v19 }
 0x67c   : > { %v13783_v45 = vadd.f32 %v6793_v62, %v6693_v22  ;;  %v5339_v38 = vadd.f32 %v15965_v1, %v15802_v47  ;;  %v5432_v33 = vadd.f32 %v15966_v63, %v5331_v24  ;;  %v15967_v37 = vld [vmem:[#allocation59_spill] sm:$0xff]  ;;  %v15968_v21 = vand.u32 4294901760, %v13541_v59  ;;  %v15972_v61 = vld [vmem:[#allocation186_spill] sm:$0xff]  ;;  %7761 = vmatmul.f32.vlgmr.msrb.gmra.mxu2 %v13354_v42  ;;  %7792 = vmatmul.f32.vlgmr.msrb.gmra.mxu3 %v13373_v25 }
 0x67d   : > { %v5347_v36 = vadd.f32 %v15967_v37, %v15962_v55  ;;  %7703 = vmatpush.msrb.mxu1 %v7702_v0  ;;  %v15969_v50 = vld [vmem:[#allocation23_spill] sm:$0xff]  ;;  %v6486_v49 = vadd.f32 %v15971_v48, %v6415_v41  ;;  %v6348_v62 = vadd.f32 %v15972_v61, %v6255_v28  ;;  %7922 = vmatpush.msra.mxu3 %v7921_v46  ;;  %v7708_v22 = vand.u32 4294901760, %v13687_v34  ;;  %v6797_v41 = vpop.f32.mrf.mxu3  ;;  %v15977_v28 = vld [vmem:[#allocation109_spill] sm:$0xff] }
 0x67e   : > { %15964 = vst [vmem:[#allocation211_spill] sm:$0xff] %v13783_v45  ;;  %7807 = vmatpush.msra.mxu0 %v15968_v21  ;;  %v5355_v57 = vadd.f32 %v15970_v58, %v15969_v50  ;;  %v15973_v24 = vld [vmem:[#allocation123_spill] sm:$0xff]  ;;  %v15975_v45 = vld [vmem:[#allocation142_spill] sm:$0xff]  ;;  %v15976_v0 = vand.u32 4294901760, %v13566_v9  ;;  %v7714_v48 = vand.u32 4294901760, %v13675_v18  ;;  %v5487_v21 = vadd.f32 %v15977_v28, %v5420_v5  ;;  %v15978_v58 = vld [vmem:[#allocation49_spill] sm:$0xff]  ;;  %7881 = vmatpush.msra.mxu2 %v13617_v53 }
 0x67f   : > { %v5482_v1 = vadd.f32 %v15973_v24, %v5416_v6  ;;  %v15974_v63 = vld [vmem:[#allocation75_spill] sm:$0xff]  ;;  %v5440_v59 = vadd.f32 %v15975_v45, %v5347_v36  ;;  %7709 = vmatpush.msrb.mxu1 %v7708_v22  ;;  %v7927_v6 = vand.u32 4294901760, %v13748_v14  ;;  %v6563_v34 = vadd.f32 %v6562_v13, %v6486_v49  ;;  %v15979_v36 = vld [vmem:[#allocation69_spill] sm:$0xff]  ;;  %v15980_v9 = vld [vmem:[#allocation70_spill] sm:$0xff] }
 0x680   : > { %v5436_v37 = vadd.f32 %v15974_v63, %v5339_v38  ;;  %7811 = vmatpush.msra.mxu0 %v15976_v0  ;;  %v5444_v46 = vadd.f32 %v15978_v58, %v5355_v57  ;;  %v6566_v38 = vpop.f32.mrf.mxu0  ;;  %v5492_v45 = vadd.f32 %v15979_v36, %v5424_v16  ;;  %v5497_v61 = vadd.f32 %v15980_v9, %v5428_v23  ;;  %v15981_v24 = vld [vmem:[#allocation124_spill] sm:$0xff]  ;;  %v6619_v5 = vpop.f32.mrf.mxu1  ;;  %v15983_v22 = vld [vmem:[#allocation86_spill] sm:$0xff] }
 0x681   : > { %v5502_v63 = vadd.f32 %v15981_v24, %v5432_v33  ;;  %v15982_v18 = vand.u32 4294901760, %v13597_v10  ;;  %v6700_v57 = vpop.f32.mrf.mxu2  ;;  %v6420_v0 = vadd.f32 %v15983_v22, %v6348_v62  ;;  %7928 = vmatpush.msra.mxu3 %v7927_v6  ;;  %7715 = vmatpush.msrb.mxu1 %v7714_v48  ;;  %v7933_v14 = vand.u32 4294901760, %v13753_v52  ;;  %v15984_v23 = vld [vmem:[#allocation146_spill] sm:$0xff]  ;;  %v15985_v33 = vld [vmem:[#allocation121_spill] sm:$0xff]  ;;  %v15988_v48 = vld [vmem:[#allocation31_spill] sm:$0xff] }
 0x682   : > { %v13817_v13 = vadd.f32 %v6619_v5, %v6563_v34  ;;  %v6701_v16 = vadd.f32 %v6700_v57, %v15802_v47  ;;  %v5507_v49 = vadd.f32 %v15984_v23, %v5436_v37  ;;  %v5512_v28 = vadd.f32 %v15985_v33, %v5440_v59  ;;  %v15986_v10 = vld [vmem:[#allocation38_spill] sm:$0xff]  ;;  %v15989_v6 = vld [vmem:[#allocation73_spill] sm:$0xff]  ;;  %7883 = vmatpush.msra.mxu2 %v13604_v39 }
 0x683   : > { %7815 = vmatpush.msra.mxu0 %v15982_v18  ;;  %v5809_v58 = vadd.f32 %v15986_v10, %v15969_v50  ;;  %v15987_v36 = vand.u32 4294901760, %v13611_v31  ;;  %v7720_v62 = vand.u32 4294901760, %v13573_v30  ;;  %v5548_v52 = vadd.f32 %v15988_v48, %v5482_v1  ;;  %7934 = vmatpush.msra.mxu3 %v7933_v14  ;;  %v15990_v59 = vld [vmem:[#allocation117_spill] sm:$0xff]  ;;  %v15991_v24 = vld [vmem:[#allocation10_spill] sm:$0xff]  ;;  %v15992_v31 = vld [vmem:[#allocation175_spill] sm:$0xff] }
 0x684   : > { %v5517_v34 = vadd.f32 %v15989_v6, %v5444_v46  ;;  %v13831_v37 = vadd.f32 %v6797_v41, %v6701_v16  ;;  %v13834_v9 = vadd.f32 %v15990_v59, %v5487_v21  ;;  %v13837_v18 = vadd.f32 %v15991_v24, %v5492_v45  ;;  %v15994_v46 = vld [vmem:[#allocation138_spill] sm:$0xff]  ;;  %v15995_v41 = vld [vmem:[#allocation71_spill] sm:$0xff]  ;;  %v15996_v14 = vld [vmem:[#allocation21_spill] sm:$0xff]  ;;  %7885 = vmatpush.msra.mxu2 %v13602_v26 }
 0x685   : > { %7819 = vmatpush.msra.mxu0 %v15987_v36  ;;  %v5801_v5 = vadd.f32 %v15992_v31, %v15962_v55  ;;  %7721 = vmatpush.msrb.mxu1 %v7720_v62  ;;  %v15993_v30 = vand.u32 4294901760, %v13615_v32  ;;  %v7939_v1 = vand.u32 4294901760, %v13723_v27  ;;  %v13845_v57 = vadd.f32 %v15994_v46, %v5497_v61  ;;  %v15997_v45 = vld [vmem:[#allocation128_spill] sm:$0xff]  ;;  %v15998_v23 = vld [vmem:[#allocation118_spill] sm:$0xff]  ;;  %v6801_v61 = vpop.f32.mrf.mxu3  ;;  %v16000_v36 = vld [vmem:[#allocation57_spill] sm:$0xff] }
 0x686   : > { %v5572_v22 = vadd.f32 %v15995_v41, %v5502_v63  ;;  %v6492_v21 = vadd.f32 %v15996_v14, %v6420_v0  ;;  %7723 = vmatmul.f32.vlgmr.msrb.gmra.mxu1 %v13334_v8  ;;  %v5578_v16 = vadd.f32 %v15997_v45, %v5507_v49  ;;  %v5584_v33 = vadd.f32 %v15998_v23, %v5512_v28  ;;  %v15999_v10 = vld [vmem:[#allocation170_spill] sm:$0xff]  ;;  %v16001_v0 = vld [vmem:[#allocation172_spill] sm:$0xff]  ;;  %v16004_v6 = vld [vmem:[#allocation165_spill] sm:$0xff] }
 0x687   : > { %7823 = vmatpush.msra.mxu0 %v15993_v30  ;;  %v5898_v32 = vadd.f32 %v15999_v10, %v5809_v58  ;;  %7850 = vmatpush.msra.mxu1 %v13515_v56  ;;  %v7945_v27 = vand.u32 4294901760, %v13728_v11  ;;  %v5590_v63 = vadd.f32 %v16000_v36, %v5517_v34  ;;  %v5785_v62 = vadd.f32 %v16001_v0, %v15800_v54  ;;  %v16003_v58 = vld [vmem:[#allocation178_spill] sm:$0xff]  ;;  %v16005_v11 = vld [vmem:[#allocation155_spill] sm:$0xff]  ;;  %v16012_v23 = vld [vmem:[#allocation161_spill] sm:$0xff] }
 0x688   : > { %7940 = vmatpush.msra.mxu3 %v7939_v1  ;;  %v16002_v48 = vand.u32 4294901760, %v13590_v4  ;;  %7887 = vmatpush.msra.mxu2 %v13580_v3  ;;  %v6567_v49 = vadd.f32 %v6566_v38, %v6492_v21  ;;  %v13862_v28 = vpop.f32.mrf.mxu0  ;;  %v5793_v56 = vadd.f32 %v16003_v58, %v15802_v47  ;;  %v5894_v59 = vadd.f32 %v16004_v6, %v5801_v5  ;;  %v6623_v34 = vpop.f32.mrf.mxu1  ;;  %v16006_v31 = vld [vmem:[#allocation174_spill] sm:$0xff]  ;;  %v16008_v5 = vld [vmem:[#allocation144_spill] sm:$0xff]  ;;  %v16010_v14 = vld [vmem:[#allocation147_spill] sm:$0xff] }
 0x689   : > { %v5971_v24 = vadd.f32 %v16005_v11, %v5898_v32  ;;  %7852 = vmatpush.msra.mxu1 %v13527_v2  ;;  %v7951_v54 = vand.u32 4294901760, %v13733_v17  ;;  %v6708_v4 = vpop.f32.mrf.mxu2  ;;  %v5663_v30 = vadd.f32 %v16006_v31, %v5590_v63  ;;  %v16007_v38 = vand.u32 4294901760, %v13547_v15  ;;  %v16009_v2 = vld [vmem:[#allocation153_spill] sm:$0xff]  ;;  %v16011_v15 = vld [vmem:[#allocation164_spill] sm:$0xff]  ;;  %v16021_v6 = vld [vmem:[#allocation158_spill] sm:$0xff] }
 0x68a   : > { %7827 = vmatpush.msra.mxu0 %v16002_v48  ;;  %7946 = vmatpush.msra.mxu3 %v7945_v27  ;;  %v13874_v1 = vadd.f32 %v6623_v34, %v6567_v49  ;;  %v6709_v47 = vadd.f32 %v6708_v4, %v15962_v55  ;;  %v13878_v46 = vadd.f32 %v16008_v5, %v5548_v52  ;;  %v7957_v21 = vand.u32 4294901760, %v13716_v51  ;;  %v16014_v52 = vld [vmem:[#allocation114_spill] sm:$0xff]  ;;  %v16015_v36 = vld [vmem:[#allocation168_spill] sm:$0xff] }
 0x68b   : > { %7889 = vmatpush.msra.mxu2 %v13578_v60  ;;  %v5966_v41 = vadd.f32 %v16009_v2, %v5894_v59  ;;  %v6044_v17 = vadd.f32 %v16010_v14, %v5971_v24  ;;  %7854 = vmatpush.msra.mxu1 %v13543_v35  ;;  %v5659_v45 = vadd.f32 %v16011_v15, %v5584_v33  ;;  %v16013_v32 = vand.u32 4294901760, %v13504_v43  ;;  %v16016_v0 = vld [vmem:[#allocation184_spill] sm:$0xff]  ;;  %v16017_v51 = vld [vmem:[#allocation50_spill] sm:$0xff]  ;;  %v16024_v24 = vld [vmem:[#allocation169_spill] sm:$0xff] }
 0x68c   : > { %7831 = vmatpush.msra.mxu0 %v16007_v38  ;;  %7952 = vmatpush.msra.mxu3 %v7951_v54  ;;  %v5720_v10 = vadd.f32 %v16012_v23, %v5663_v30  ;;  %v13889_v55 = vadd.f32 %v6801_v61, %v6709_v47  ;;  %v5655_v27 = vadd.f32 %v16014_v52, %v5578_v16  ;;  %v16018_v48 = vld [vmem:[#allocation110_spill] sm:$0xff]  ;;  %v16019_v43 = vld [vmem:[#allocation156_spill] sm:$0xff]  ;;  %v16020_v61 = vld [vmem:[#allocation173_spill] sm:$0xff] }
 0x68d   : > { %7891 = vmatpush.msra.mxu2 %v13576_v40  ;;  %v5890_v63 = vadd.f32 %v16015_v36, %v5793_v56  ;;  %v6038_v35 = vadd.f32 %v16016_v0, %v5966_v41  ;;  %7856 = vmatpush.msra.mxu1 %v13552_v7  ;;  %v5777_v33 = vadd.f32 %v16017_v51, %v15954_v29  ;;  %v16022_v59 = vld [vmem:[#allocation180_spill] sm:$0xff]  ;;  %v13906_v7 = vpop.f32.mrf.mxu3  ;;  %v16027_v4 = vld [vmem:[#allocation54_spill] sm:$0xff]  ;;  %v16029_v47 = vld [vmem:[#allocation199_spill] sm:$0xff] }
 0x68e   : > { %7835 = vmatpush.msra.mxu0 %v16013_v32  ;;  %7958 = vmatpush.msra.mxu3 %v7957_v21  ;;  %v5886_v49 = vadd.f32 %v16018_v48, %v5785_v62  ;;  %v5716_v58 = vadd.f32 %v16019_v43, %v5659_v45  ;;  %v5712_v16 = vadd.f32 %v16020_v61, %v5655_v27  ;;  %v16025_v62 = vld [vmem:[#allocation61_spill] sm:$0xff]  ;;  %v16026_v34 = vld [vmem:[#allocation160_spill] sm:$0xff]  ;;  %9407 = vtanh.f32 %v5720_v10  ;;  %v16030_v2 = vld [vmem:[#allocation163_spill] sm:$0xff] }
 0x68f   : > { %7837 = vmatmul.f32.vlgmr.msra.gmra.mxu0 %v13334_v8  ;;  %v5961_v56 = vadd.f32 %v16021_v6, %v5890_v63  ;;  %v6117_v11 = vadd.f32 %v16022_v59, %v6044_v17  ;;  %7858 = vmatpush.msra.mxu1 %v13557_v20  ;;  %16023 = vst [vmem:[#allocation218_spill] sm:$0xff] %v13906_v7  ;;  %v16028_v30 = vld [vmem:[#allocation48_spill] sm:$0xff]  ;;  %v16031_v14 = vld [vmem:[#allocation159_spill] sm:$0xff]  ;;  %v16037_v63 = vand.u32 4294901760, %v13642_v12  ;;  %v16038_v0 = vld [vmem:[#allocation89_spill] sm:$0xff] }
 0x690   : > { %8087 = vmatpush.msrb.mxu3 %v13592_v19  ;;  %7974 = vmatpush.msrb.mxu0 %v13642_v12  ;;  %v5753_v54 = vadd.f32 %v16025_v62, %v16024_v24  ;;  %v5769_v31 = vadd.f32 %v16027_v4, %v16026_v34  ;;  %v5651_v38 = vadd.f32 %v16028_v30, %v5572_v22  ;;  %v6843_v5 = vpop.f32.mrf.mxu0  ;;  %v16032_v17 = vld [vmem:[#allocation151_spill] sm:$0xff]  ;;  %v16033_v15 = vld [vmem:[#allocation216_spill] sm:$0xff]  ;;  %v13920_v45 = vpop.f32.mrf.mxu1  ;;  %v16034_v22 = vld [vmem:[#allocation141_spill] sm:$0xff]  ;;  %9409 = vtanh.f32 %v5716_v58 }
 0x691   : > { %7893 = vmatpush.msra.mxu2 %v16029_v47  ;;  %v5956_v41 = vadd.f32 %v16030_v2, %v5886_v49  ;;  %v6032_v20 = vadd.f32 %v16031_v14, %v5961_v56  ;;  %v6113_v21 = vadd.f32 %v16032_v17, %v6038_v35  ;;  %v13922_v23 = vpop.f32.mrf.mxu2  ;;  %v5647_v10 = vadd.f32 %v16034_v22, %v13845_v57  ;;  %v16035_v32 = vld [vmem:[#allocation63_spill] sm:$0xff]  ;;  %v16040_v48 = vld [vmem:[#allocation74_spill] sm:$0xff]  ;;  %v16041_v43 = vld [vmem:[#allocation205_spill] sm:$0xff] }
 0x692   : > { %8089 = vmatpush.msrb.mxu3 %v13617_v53  ;;  %7899 = vmatmul.f32.vlgmr.msra.gmra.mxu2 %v13422_v44  ;;  %v5882_v52 = vadd.f32 %v16035_v32, %v5777_v33  ;;  %v16036_v27 = vld [vmem:[#allocation119_spill] sm:$0xff]  ;;  %9411 = vtanh.f32 %v5712_v16  ;;  %v6174_v49 = vadd.f32 %v16040_v48, %v6117_v11  ;;  %v6661_v61 = vadd.f32 %v16041_v43, %v16024_v24  ;;  %v16042_v57 = vld [vmem:[#allocation210_spill] sm:$0xff]  ;;  %v16044_v58 = vld [vmem:[#allocation60_spill] sm:$0xff] }
 0x693   : > { %7977 = vmatpush.msrb.mxu0 %v16033_v15  ;;  %v5708_v36 = vadd.f32 %v16036_v27, %v5651_v38  ;;  %8044 = vmatpush.msrb.mxu2 %v16037_v63  ;;  %v16039_v35 = vld [vmem:[#allocation55_spill] sm:$0xff]  ;;  %v16043_v33 = vld [vmem:[#allocation58_spill] sm:$0xff]  ;;  %v5704_v56 = vadd.f32 %v16044_v58, %v5647_v10  ;;  %v16045_v12 = vld [vmem:[#allocation196_spill] sm:$0xff]  ;;  %v16046_v62 = vand.u32 4294901760, %v16033_v15  ;;  %v16055_v27 = vand.u32 4294901760, %v16042_v57 }
 0x694   : > { %7860 = vmatpush.msra.mxu1 %v16038_v0  ;;  %v6026_v51 = vadd.f32 %v16039_v35, %v5956_v41  ;;  %7960 = vmatmul.f32.vlgmr.msra.gmra.mxu3 %v13334_v8  ;;  %v5878_v6 = vadd.f32 %v16043_v33, %v5769_v31  ;;  %v5951_v59 = vadd.f32 %v16045_v12, %v5882_v52  ;;  %v16047_v16 = vld [vmem:[#allocation140_spill] sm:$0xff]  ;;  %v16048_v4 = vld [vmem:[#allocation193_spill] sm:$0xff]  ;;  %v16050_v41 = vld [vmem:[#allocation203_spill] sm:$0xff]  ;;  %v9408_v31 = vpop.eup %9407 }
 0x695   : > { %7980 = vmatpush.msrb.mxu0 %v16042_v57  ;;  %8048 = vmatpush.msrb.mxu2 %v16046_v62  ;;  %v5643_v11 = vadd.f32 %v16047_v16, %v13837_v18  ;;  %v6109_v30 = vadd.f32 %v16048_v4, %v6032_v20  ;;  %v16049_v38 = vld [vmem:[#allocation149_spill] sm:$0xff]  ;;  %v16051_v14 = vld [vmem:[#allocation212_spill] sm:$0xff]  ;;  %v16052_v17 = vld [vmem:[#allocation143_spill] sm:$0xff]  ;;  %9413 = vtanh.f32 %v5708_v36  ;;  %v7053_v36 = vpop.f32.mrf.mxu3  ;;  %v13970_v16 = vand.u32 4294901760, %v9408_v31 }
 0x696   : > { %8091 = vmatpush.msrb.mxu3 %v13604_v39  ;;  %v6170_v2 = vadd.f32 %v16049_v38, %v6113_v21  ;;  %7862 = vmatpush.msra.mxu1 %v16050_v41  ;;  %v5639_v22 = vadd.f32 %v16052_v17, %v13834_v9  ;;  %v16053_v15 = vld [vmem:[#allocation157_spill] sm:$0xff]  ;;  %v16054_v32 = vld [vmem:[#allocation192_spill] sm:$0xff]  ;;  %v16056_v18 = vld [vmem:[#allocation47_spill] sm:$0xff]  ;;  %9415 = vtanh.f32 %v6174_v49  ;;  %v9410_v43 = vpop.eup %9409 }
 0x697   : > { %7983 = vmatpush.msrb.mxu0 %v16051_v14  ;;  %v5946_v10 = vadd.f32 %v16053_v15, %v5878_v6  ;;  %v6020_v52 = vadd.f32 %v16054_v32, %v5951_v59  ;;  %8052 = vmatpush.msrb.mxu2 %v16055_v27  ;;  %v5700_v20 = vadd.f32 %v16056_v18, %v5643_v11  ;;  %v16057_v21 = vld [vmem:[#allocation188_spill] sm:$0xff]  ;;  %v16058_v0 = vld [vmem:[#allocation181_spill] sm:$0xff]  ;;  %v16060_v9 = vld [vmem:[#allocation95_spill] sm:$0xff]  ;;  %9417 = vtanh.f32 %v5704_v56 }
 0x698   : > { %8093 = vmatpush.msrb.mxu3 %v13602_v26  ;;  %v6105_v63 = vadd.f32 %v16057_v21, %v6026_v51  ;;  %v6778_v35 = vadd.f32 %v16058_v0, %v6661_v61  ;;  %v16059_v48 = vld [vmem:[#allocation81_spill] sm:$0xff]  ;;  %v16061_v33 = vld [vmem:[#allocation115_spill] sm:$0xff]  ;;  %v16063_v12 = vld [vmem:[#allocation72_spill] sm:$0xff]  ;;  %v16064_v51 = vand.u32 4294901760, %v16051_v14  ;;  %v9412_v49 = vpop.eup %9411  ;;  %9419 = vtanh.f32 %v6170_v2  ;;  %v6848_v11 = vpop.f32.mrf.mxu0 }
 0x699   : > { %7864 = vmatpush.msra.mxu1 %v16059_v48  ;;  %7986 = vmatpush.msrb.mxu0 %v16060_v9  ;;  %v5870_v6 = vadd.f32 %v16061_v33, %v5753_v54  ;;  %v16062_v58 = vld [vmem:[#allocation77_spill] sm:$0xff]  ;;  %v6014_v59 = vadd.f32 %v16063_v12, %v5946_v10  ;;  %v6996_v56 = vpop.f32.mrf.mxu2  ;;  %v16067_v41 = vld [vmem:[#allocation152_spill] sm:$0xff]  ;;  %9421 = vtanh.f32 %v5700_v20  ;;  %v16071_v2 = vld [vmem:[#allocation150_spill] sm:$0xff]  ;;  %v13989_v20 = vand.u32 4294901760, %v9412_v49 }
 0x69a   : > { %v5696_v57 = vadd.f32 %v16062_v58, %v5639_v22  ;;  %7866 = vmatmul.f32.vlgmr.msra.gmra.mxu1 %v13334_v8  ;;  %8056 = vmatpush.msrb.mxu2 %v16064_v51  ;;  %v16065_v61 = vld [vmem:[#allocation197_spill] sm:$0xff]  ;;  %v6844_v54 = vadd.f32 %v6843_v5, %v6778_v35  ;;  %v16069_v15 = vld [vmem:[#allocation36_spill] sm:$0xff]  ;;  %v6162_v10 = vadd.f32 %v16071_v2, %v6105_v63  ;;  %v13982_v5 = vand.u32 4294901760, %v9410_v43  ;;  %v16073_v18 = vld [vmem:[#allocation154_spill] sm:$0xff] }
 0x69b   : > { %v6166_v62 = vadd.f32 %v16065_v61, %v6109_v30  ;;  %8011 = vmatpush.msrb.mxu1 %v13592_v19  ;;  %8095 = vmatpush.msrb.mxu3 %v13580_v3  ;;  %v16066_v4 = vld [vmem:[#allocation65_spill] sm:$0xff]  ;;  %v5936_v17 = vadd.f32 %v16067_v41, %v5870_v6  ;;  %v16070_v30 = vand.u32 4294901760, %v16060_v9  ;;  %v6909_v19 = vpop.f32.mrf.mxu1  ;;  %v9414_v32 = vpop.eup %9413  ;;  %v16072_v27 = vld [vmem:[#allocation148_spill] sm:$0xff]  ;;  %v6097_v21 = vadd.f32 %v16073_v18, %v6014_v59  ;;  %v16074_v0 = vld [vmem:[#allocation90_spill] sm:$0xff] }
 0x69c   : > { %v5692_v38 = vadd.f32 %v16066_v4, %v13878_v46  ;;  %v16068_v14 = vld [vmem:[#allocation85_spill] sm:$0xff]  ;;  %7989 = vmatpush.msrb.mxu0 %v16069_v15  ;;  %v6910_v46 = vadd.f32 %v6909_v19, %v6844_v54  ;;  %9423 = vtanh.f32 %v5696_v57  ;;  %v16075_v35 = vand.u32 4294901760, %v16069_v15  ;;  %v9416_v63 = vpop.eup %9415  ;;  %v16077_v48 = vld [vmem:[#allocation179_spill] sm:$0xff]  ;;  %v16078_v57 = vld [vmem:[#allocation162_spill] sm:$0xff] }
 0x69d   : > { %v6101_v22 = vadd.f32 %v16068_v14, %v6020_v52  ;;  %8060 = vmatpush.msrb.mxu2 %v16070_v30  ;;  %8013 = vmatpush.msrb.mxu1 %v13617_v53  ;;  %v6002_v52 = vadd.f32 %v16072_v27, %v5936_v17  ;;  %9425 = vtanh.f32 %v6166_v62  ;;  %v16076_v53 = vld [vmem:[#allocation92_spill] sm:$0xff]  ;;  %v13996_v33 = vsub.f32 %v9408_v31, %v13970_v16  ;;  %v9418_v58 = vpop.eup %9417  ;;  %v16079_v59 = vld [vmem:[#allocation97_spill] sm:$0xff]  ;;  %v16082_v54 = vld [vmem:[#allocation171_spill] sm:$0xff] }
 0x69e   : > { %8097 = vmatpush.msrb.mxu3 %v13578_v60  ;;  %7992 = vmatpush.msrb.mxu0 %v16074_v0  ;;  %v6669_v9 = vadd.f32 %v16077_v48, %v16076_v53  ;;  %v6997_v6 = vadd.f32 %v6996_v56, %v6910_v46  ;;  %9427 = vtanh.f32 %v5692_v38  ;;  %v16080_v51 = vand.u32 4294901760, %v16074_v0  ;;  %v9420_v61 = vpop.eup %9419  ;;  %v16083_v4 = vld [vmem:[#allocation167_spill] sm:$0xff]  ;;  %v16084_v14 = vld [vmem:[#allocation202_spill] sm:$0xff]  ;;  %v16105_v7 = vld [vmem:[#allocation80_spill] sm:$0xff] }
 0x69f   : > { %8064 = vmatpush.msrb.mxu2 %v16075_v35  ;;  %8015 = vmatpush.msrb.mxu1 %v13604_v39  ;;  %v6158_v12 = vadd.f32 %v16078_v57, %v6101_v22  ;;  %9429 = vtanh.f32 %v6162_v10  ;;  %v14005_v39 = vsub.f32 %v9410_v43, %v13982_v5  ;;  %v14007_v31 = vand.u32 4294901760, %v9414_v32  ;;  %v9422_v17 = vpop.eup %9421  ;;  %v16088_v57 = vld [vmem:[#allocation34_spill] sm:$0xff] }
 0x6a0   : > { %8099 = vmatpush.msrb.mxu3 %v13576_v40  ;;  %7995 = vmatpush.msrb.mxu0 %v16079_v59  ;;  %v14009_v62 = vadd.f32 %v7053_v36, %v6997_v6  ;;  %v6089_v56 = vadd.f32 %v16082_v54, %v6002_v52  ;;  %v6154_v38 = vadd.f32 %v16083_v4, %v6097_v21  ;;  %v14013_v41 = vand.u32 4294901760, %v9416_v63  ;;  %v14037_v27 = vpop.f32.mrf.mxu0  ;;  %v16087_v21 = vld [vmem:[#allocation166_spill] sm:$0xff] }
 0x6a1   : > { %8068 = vmatpush.msrb.mxu2 %v16080_v51  ;;  %8017 = vmatpush.msrb.mxu1 %v13602_v26  ;;  %v7057_v26 = vpop.f32.mrf.mxu3  ;;  %v6782_v22 = vadd.f32 %v16084_v14, %v6669_v9  ;;  %v14021_v36 = vsub.f32 %v9412_v49, %v13989_v20  ;;  %v14023_v43 = vand.u32 4294901760, %v9418_v58  ;;  %v14838_v15 = vand.u32 4294901760, %v13996_v33  ;;  %16086 = vst [vmem:[#allocation219_spill] sm:$0xff] %v14037_v27  ;;  %v7000_v52 = vpop.f32.mrf.mxu2 }
 0x6a2   : > { %8101 = vmatpush.msrb.mxu3 %v16029_v47  ;;  %16081 = vst [vmem:[#allocation215_spill] sm:$0xff] %v14009_v62  ;;  %7998 = vmatmul.f32.vlgmr.msrb.gmra.mxu0 %v13354_v42  ;;  %v9424_v30 = vpop.eup %9423  ;;  %9431 = vtanh.f32 %v6158_v12  ;;  %v14026_v19 = vand.u32 4294901760, %v9420_v61  ;;  %v16085_v2 = vand.u32 4294901760, %v16079_v59  ;;  %v14837_v46 = vand.u32 4294901760, %v14005_v39 }
 0x6a3   : > { %8116 = vmatpush.msra.mxu0 %v13970_v16  ;;  %8019 = vmatpush.msrb.mxu1 %v13580_v3  ;;  %v9426_v10 = vpop.eup %9425  ;;  %v14034_v3 = vsub.f32 %v9414_v32, %v14007_v31  ;;  %v6849_v49 = vadd.f32 %v6848_v11, %v6782_v22  ;;  %v6146_v0 = vadd.f32 %v16087_v21, %v6089_v56  ;;  %9433 = vtanh.f32 %v6154_v38  ;;  %v6915_v11 = vpop.f32.mrf.mxu1 }
 0x6a4   : > { %8248 = vmatpush.msra.mxu3 %v13970_v16  ;;  %8072 = vmatpush.msrb.mxu2 %v16085_v2  ;;  %v14039_v18 = vpop.eup %9427  ;;  %v14043_v35 = vsub.f32 %v9416_v63, %v14013_v41  ;;  %v14047_v32 = vand.u32 4294901760, %v9422_v17  ;;  %v8151_v9 = vsub.f32 %v13996_v33, %v14838_v15  ;;  %v14055_v6 = vsub.f32 %v9418_v58, %v14023_v43 }
 0x6a5   : > { %8118 = vmatpush.msra.mxu0 %v13982_v5  ;;  %8021 = vmatpush.msrb.mxu1 %v13578_v60  ;;  %v9430_v48 = vpop.eup %9429  ;;  %v14835_v63 = vand.u32 4294901760, %v14021_v36  ;;  %v6916_v60 = vadd.f32 %v6915_v11, %v6849_v49  ;;  %9435 = vtanh.f32 %v16088_v57  ;;  %v14059_v12 = vand.u32 4294901760, %v9426_v10 }
 0x6a6   : > { %8250 = vmatpush.msra.mxu3 %v13982_v5  ;;  %8211 = vmatpush.msra.mxu2 %v13996_v33  ;;  %v14063_v59 = vand.u32 4294901760, %v9424_v30  ;;  %v14066_v51 = vsub.f32 %v9420_v61, %v14026_v19  ;;  %v8157_v58 = vsub.f32 %v14005_v39, %v14837_v46  ;;  %v14074_v54 = vand.u32 4294901760, %v14039_v18 }
 0x6a7   : > { %8074 = vmatmul.f32.vlgmr.msrb.gmra.mxu2 %v13334_v8  ;;  %8120 = vmatpush.msra.mxu0 %v13989_v20  ;;  %v14836_v56 = vand.u32 4294901760, %v14034_v3  ;;  %v7001_v4 = vadd.f32 %v7000_v52, %v6916_v60  ;;  %9437 = vtanh.f32 %v6146_v0  ;;  %v14077_v38 = vand.u32 4294901760, %v9430_v48 }
 0x6a8   : > { %8214 = vmatpush.msra.mxu2 %v14005_v39  ;;  %8252 = vmatpush.msra.mxu3 %v13989_v20  ;;  %v14082_v61 = vsub.f32 %v9422_v17, %v14047_v32  ;;  %v14839_v14 = vand.u32 4294901760, %v14043_v35  ;;  %v8152_v22 = vand.u32 4294901760, %v8151_v9  ;;  %v8163_v2 = vsub.f32 %v14021_v36, %v14835_v63  ;;  %v14110_v57 = vpop.f32.mrf.mxu0 }
 0x6a9   : > { %8023 = vmatpush.msrb.mxu1 %v13576_v40  ;;  %8103 = vmatmul.f32.vlgmr.msrb.gmra.mxu3 %v13334_v8  ;;  %v9432_v40 = vpop.eup %9431  ;;  %v14840_v49 = vand.u32 4294901760, %v14055_v6  ;;  %v14091_v52 = vadd.f32 %v7057_v26, %v7001_v4  ;;  %v14096_v17 = vsub.f32 %v9424_v30, %v14063_v59  ;;  %v14100_v0 = vsub.f32 %v9426_v10, %v14059_v12  ;;  %v14102_v11 = vpop.f32.mrf.mxu3 }
 0x6aa   : > { %8122 = vmatpush.msra.mxu0 %v14007_v31  ;;  %8217 = vmatpush.msra.mxu2 %v14021_v36  ;;  %v9434_v21 = vpop.eup %9433  ;;  %16090 = vst [vmem:[#allocation222_spill] sm:$0xff] %v14102_v11  ;;  %v14104_v9 = vand.u32 4294901760, %v9432_v40  ;;  %v8158_v26 = vand.u32 4294901760, %v8157_v58  ;;  %v8169_v60 = vsub.f32 %v14034_v3, %v14836_v56  ;;  %v8388_v10 = vsub.f32 %v14043_v35, %v14839_v14  ;;  %v14123_v63 = vpop.f32.mrf.mxu2 }
 0x6ab   : > { %8254 = vmatpush.msra.mxu3 %v14007_v31  ;;  %8025 = vmatpush.msrb.mxu1 %v16029_v47  ;;  %16089 = vst [vmem:[#allocation94_spill] sm:$0xff] %v14091_v52  ;;  %v14841_v47 = vand.u32 4294901760, %v14066_v51  ;;  %v9436_v30 = vpop.eup %9435  ;;  %v14121_v58 = vpop.f32.mrf.mxu1  ;;  %v14125_v56 = vand.u32 4294901760, %v9434_v21  ;;  %v8164_v46 = vand.u32 4294901760, %v8163_v2  ;;  %v8175_v15 = vsub.f32 %v14055_v6, %v14840_v49 }
 0x6ac   : > { %8124 = vmatpush.msra.mxu0 %v14023_v43  ;;  %8029 = vmatmul.f32.vlgmr.msrb.gmra.mxu1 %v13373_v25  ;;  %16091 = vst [vmem:[#allocation20_spill] sm:$0xff] %v14121_v58  ;;  %v14133_v14 = vsub.f32 %v14039_v18, %v14074_v54  ;;  %v14142_v62 = vand.u32 4294901760, %v9436_v30  ;;  %v8170_v18 = vand.u32 4294901760, %v8169_v60  ;;  %v14146_v49 = vsub.f32 %v9432_v40, %v14104_v9 }
 0x6ad   : > { %8220 = vmatpush.msra.mxu2 %v14034_v3  ;;  %8153 = vmatpush.msra.mxu1 %v8152_v22  ;;  %v14119_v22 = vsub.f32 %v9430_v48, %v14077_v38  ;;  %16092 = vst [vmem:[#allocation226_spill] sm:$0xff] %v14123_v63  ;;  %v9438_v48 = vpop.eup %9437  ;;  %v8389_v52 = vand.u32 4294901760, %v8388_v10  ;;  %v14159_v60 = vsub.f32 %v9434_v21, %v14125_v56  ;;  %v16095_v63 = vand.u32 4294901760, %v14100_v0 }
 0x6ae   : > { %8256 = vmatpush.msra.mxu3 %v14023_v43  ;;  %8126 = vmatpush.msra.mxu0 %v14047_v32  ;;  %v14154_v11 = vand.u32 4294901760, %v9438_v48  ;;  %v16096_v2 = vand.u32 4294901760, %v14096_v17  ;;  %v14174_v40 = vsub.f32 %v9436_v30, %v14142_v62  ;;  %v16103_v30 = vand.u32 4294901760, %v14005_v39 }
 0x6af   : > { %8223 = vmatpush.msra.mxu2 %v14055_v6  ;;  %8159 = vmatpush.msra.mxu1 %v8158_v26  ;;  %v8394_v26 = vsub.f32 %v14066_v51, %v14841_v47  ;;  %v16093_v47 = vand.u32 4294901760, %v14082_v61  ;;  %16094 = vst [vmem:[#allocation223_spill] sm:$0xff] %v14159_v60  ;;  %v16104_v21 = vand.u32 4294901760, %v14133_v14  ;;  %v16106_v39 = vand.u32 4294901760, %v14021_v36 }
 0x6b0   : > { %8258 = vmatpush.msra.mxu3 %v14047_v32  ;;  %8128 = vmatpush.msra.mxu0 %v14063_v59  ;;  %16099 = vst [vmem:[#allocation234_spill] sm:$0xff] %v14174_v40  ;;  %v16109_v36 = vand.u32 4294901760, %v14159_v60 }
 0x6b1   : > { %8226 = vmatpush.msra.mxu2 %v14082_v61  ;;  %8165 = vmatpush.msra.mxu1 %v8164_v46  ;;  %v8181_v4 = vsub.f32 %v14082_v61, %v16093_v47  ;;  %v8176_v46 = vand.u32 4294901760, %v8175_v15  ;;  %v8395_v10 = vand.u32 4294901760, %v8394_v26  ;;  %v8400_v47 = vsub.f32 %v14100_v0, %v16095_v63  ;;  %v14168_v58 = vpop.f32.mrf.mxu3  ;;  %v16100_v26 = vld [vmem:[#allocation208_spill] sm:$0xff] }
 0x6b2   : > { %8260 = vmatpush.msra.mxu3 %v14063_v59  ;;  %8130 = vmatpush.msra.mxu0 %v14074_v54  ;;  %16097 = vst [vmem:[#allocation230_spill] sm:$0xff] %v14168_v58  ;;  %v16098_v15 = vand.u32 4294901760, %v13996_v33  ;;  %v6263_v63 = vadd.f32 %v16100_v26, %v15969_v50  ;;  %v16101_v58 = vand.u32 4294901760, %v14119_v22  ;;  %v8193_v26 = vsub.f32 %v14133_v14, %v16104_v21 }
 0x6b3   : > { %8229 = vmatpush.msra.mxu2 %v14096_v17  ;;  %8171 = vmatpush.msra.mxu1 %v8170_v18  ;;  %v8187_v18 = vsub.f32 %v14096_v17, %v16096_v2  ;;  %v8182_v2 = vand.u32 4294901760, %v8181_v4  ;;  %v14196_v4 = vsub.f32 %v9438_v48, %v14154_v11 }
 0x6b4   : > { %8262 = vmatpush.msra.mxu3 %v14074_v54  ;;  %8136 = vmatmul.f32.vlgmr.msra.gmra.mxu0 %v13422_v44  ;;  %v8406_v33 = vsub.f32 %v14119_v22, %v16101_v58  ;;  %v6352_v58 = vadd.f32 %v16105_v7, %v6263_v63  ;;  %v16108_v7 = vand.u32 4294901760, %v14034_v3  ;;  %v16113_v3 = vand.u32 4294901760, %v14055_v6  ;;  %v16116_v6 = vld [vmem:[#allocation64_spill] sm:$0xff] }
 0x6b5   : > { %8281 = vmatpush.msrb.mxu0 %v16098_v15  ;;  %8177 = vmatpush.msra.mxu1 %v8176_v46  ;;  %v14184_v15 = vpop.f32.mrf.mxu1  ;;  %v14186_v46 = vpop.f32.mrf.mxu2  ;;  %v8188_v27 = vand.u32 4294901760, %v8187_v18  ;;  %v8418_v18 = vsub.f32 %v14159_v60, %v16109_v36  ;;  %v8429_v63 = vand.u32 4294901760, %v14196_v4  ;;  %v16121_v60 = vand.u32 4294901760, %v14082_v61 }
 0x6b6   : > { %8390 = vmatpush.msrb.mxu3 %v8389_v52  ;;  %v14176_v52 = vpop.f32.mrf.mxu0  ;;  %8232 = vmatpush.msra.mxu2 %v14133_v14  ;;  %16102 = vst [vmem:[#allocation227_spill] sm:$0xff] %v14186_v46  ;;  %v8401_v46 = vand.u32 4294901760, %v8400_v47  ;;  %v8407_v48 = vand.u32 4294901760, %v8406_v33  ;;  %v8194_v47 = vand.u32 4294901760, %v8193_v26 }
 0x6b7   : > { %8285 = vmatpush.msrb.mxu0 %v16103_v30  ;;  %8183 = vmatpush.msra.mxu1 %v8182_v2  ;;  %v16107_v30 = vand.u32 4294901760, %v14146_v49  ;;  %v16110_v2 = vld [vmem:[#allocation37_spill] sm:$0xff] }
 0x6b8   : > { %8396 = vmatpush.msrb.mxu3 %v8395_v10  ;;  %8353 = vmatpush.msrb.mxu2 %v14013_v41  ;;  %v14842_v10 = vand.u32 4294901760, %v14174_v40 }
 0x6b9   : > { %8235 = vmatmul.f32.vlgmr.msra.gmra.mxu2 %v13354_v42  ;;  %8289 = vmatpush.msrb.mxu0 %v16106_v39  ;;  %v8412_v21 = vsub.f32 %v14146_v49, %v16107_v30  ;;  %v6425_v39 = vadd.f32 %v16110_v2, %v6352_v58  ;;  %v16114_v58 = vld [vmem:[#allocation83_spill] sm:$0xff]  ;;  %v16119_v42 = vld [vmem:[#allocation194_spill] sm:$0xff] }
 0x6ba   : > { %8355 = vmatpush.msrb.mxu2 %v14026_v19  ;;  %8402 = vmatpush.msrb.mxu3 %v8401_v46  ;;  %v14216_v46 = vpop.f32.mrf.mxu3  ;;  %v8424_v30 = vsub.f32 %v14174_v40, %v14842_v10  ;;  %v6223_v36 = vadd.f32 %v16114_v58, %v16026_v34  ;;  %v16117_v2 = vld [vmem:[#allocation195_spill] sm:$0xff]  ;;  %v8430_v58 = vsub.f32 %v14196_v4, %v8429_v63  ;;  %v16118_v10 = vld [vmem:[#allocation189_spill] sm:$0xff] }
 0x6bb   : > { %8189 = vmatpush.msra.mxu1 %v8188_v27  ;;  %8266 = vmatmul.f32.vlgmr.msra.gmra.mxu3 %v13373_v25  ;;  %16111 = vst [vmem:[#allocation231_spill] sm:$0xff] %v14216_v46  ;;  %v16112_v27 = vld [vmem:[#allocation30_spill] sm:$0xff]  ;;  %v8413_v26 = vand.u32 4294901760, %v8412_v21  ;;  %v6215_v21 = vadd.f32 %v16116_v6, %v16076_v53  ;;  %v6207_v25 = vadd.f32 %v16118_v10, %v16024_v24  ;;  %v16120_v40 = vld [vmem:[#allocation201_spill] sm:$0xff]  ;;  %v16122_v53 = vld [vmem:[#allocation84_spill] sm:$0xff]  ;;  %v16124_v24 = vand.u32 4294901760, %v14096_v17 }
 0x6bc   : > { %8293 = vmatpush.msrb.mxu0 %v16108_v7  ;;  %8357 = vmatpush.msrb.mxu2 %v14059_v12  ;;  %v6231_v33 = vadd.f32 %v16112_v27, %v15954_v29  ;;  %v6332_v46 = vadd.f32 %v16119_v42, %v6223_v36  ;;  %v16125_v42 = vld [vmem:[#allocation33_spill] sm:$0xff] }
 0x6bd   : > { %8408 = vmatpush.msrb.mxu3 %v8407_v48  ;;  %8195 = vmatpush.msra.mxu1 %v8194_v47  ;;  %v14231_v48 = vpop.f32.mrf.mxu1  ;;  %v14233_v47 = vpop.f32.mrf.mxu2 }
 0x6be   : > { %8297 = vmatpush.msrb.mxu0 %v16113_v3  ;;  %v14225_v7 = vpop.f32.mrf.mxu0  ;;  %8197 = vmatmul.f32.vlgmr.msra.gmra.mxu1 %v13334_v8  ;;  %16115 = vst [vmem:[#allocation235_spill] sm:$0xff] %v14233_v47  ;;  %v6336_v27 = vadd.f32 %v16117_v2, %v6231_v33  ;;  %v8419_v3 = vand.u32 4294901760, %v8418_v18  ;;  %v6498_v47 = vadd.f32 %v16120_v40, %v6425_v39  ;;  %v8425_v18 = vand.u32 4294901760, %v8424_v30  ;;  %v16123_v33 = vld [vmem:[#allocation145_spill] sm:$0xff] }
 0x6bf   : > { %8359 = vmatpush.msrb.mxu2 %v14077_v38  ;;  %8324 = vmatpush.msrb.mxu1 %v13970_v16  ;;  %v6328_v16 = vadd.f32 %v16122_v53, %v6215_v21  ;;  %v8431_v40 = vand.u32 4294901760, %v8430_v58  ;;  %v16127_v39 = vand.u32 4294901760, %v14133_v14  ;;  %v16130_v14 = vld [vmem:[#allocation22_spill] sm:$0xff] }
 0x6c0   : > { %8414 = vmatpush.msrb.mxu3 %v8413_v26  ;;  %8301 = vmatpush.msrb.mxu0 %v16121_v60  ;;  %v6324_v26 = vadd.f32 %v16123_v33, %v6207_v25  ;;  %v6571_v6 = vadd.f32 %v13862_v28, %v6498_v47  ;;  %v6405_v61 = vadd.f32 %v16125_v42, %v6336_v27  ;;  %v16126_v60 = vld [vmem:[#allocation87_spill] sm:$0xff]  ;;  %v16128_v28 = vld [vmem:[#allocation24_spill] sm:$0xff]  ;;  %v16131_v21 = vld [vmem:[#allocation198_spill] sm:$0xff] }
 0x6c1   : > { %8361 = vmatpush.msrb.mxu2 %v14104_v9  ;;  %8326 = vmatpush.msrb.mxu1 %v13982_v5  ;;  %v6400_v10 = vadd.f32 %v16126_v60, %v6332_v46  ;;  %v6395_v17 = vadd.f32 %v16128_v28, %v6328_v16  ;;  %v16134_v53 = vld [vmem:[#allocation82_spill] sm:$0xff]  ;;  %v16136_v33 = vld [vmem:[#allocation28_spill] sm:$0xff]  ;;  %v16139_v42 = vld [vmem:[#allocation125_spill] sm:$0xff] }
 0x6c2   : > { %8420 = vmatpush.msrb.mxu3 %v8419_v3  ;;  %8305 = vmatpush.msrb.mxu0 %v16124_v24  ;;  %v6628_v5 = vadd.f32 %v13920_v45, %v6571_v6  ;;  %v14263_v25 = vpop.f32.mrf.mxu3  ;;  %v6474_v47 = vadd.f32 %v16130_v14, %v6405_v61  ;;  %v16133_v3 = vld [vmem:[#allocation182_spill] sm:$0xff]  ;;  %v16138_v6 = vld [vmem:[#allocation183_spill] sm:$0xff]  ;;  %v16140_v60 = vld [vmem:[#allocation93_spill] sm:$0xff] }
 0x6c3   : > { %8363 = vmatpush.msrb.mxu2 %v14125_v56  ;;  %8328 = vmatpush.msrb.mxu1 %v13989_v20  ;;  %v16129_v20 = vld [vmem:[#allocation176_spill] sm:$0xff]  ;;  %v6468_v2 = vadd.f32 %v16131_v21, %v6400_v10  ;;  %v6462_v58 = vadd.f32 %v16133_v3, %v6395_v17  ;;  %v16144_v28 = vld [vmem:[#allocation211_spill] sm:$0xff] }
 0x6c4   : > { %8426 = vmatpush.msrb.mxu3 %v8425_v18  ;;  %8309 = vmatpush.msrb.mxu0 %v16127_v39  ;;  %v6390_v36 = vadd.f32 %v16129_v20, %v6324_v26  ;;  %9439 = vtanh.f32 %v6628_v5  ;;  %v6555_v16 = vadd.f32 %v16134_v53, %v6474_v47  ;;  %v16135_v18 = vld [vmem:[#allocation185_spill] sm:$0xff]  ;;  %v16142_v5 = vld [vmem:[#allocation32_spill] sm:$0xff]  ;;  %v16143_v39 = vand.u32 4294901760, %v14066_v51 }
 0x6c5   : > { %8365 = vmatpush.msrb.mxu2 %v14142_v62  ;;  %8330 = vmatpush.msrb.mxu1 %v14007_v31  ;;  %v6939_v45 = vpop.f32.mrf.mxu1  ;;  %v7016_v46 = vpop.f32.mrf.mxu2  ;;  %v16132_v31 = vld [vmem:[#allocation214_spill] sm:$0xff]  ;;  %v6551_v26 = vadd.f32 %v16136_v33, %v6468_v2  ;;  %9441 = vtanh.f32 %v13874_v1  ;;  %v6547_v24 = vadd.f32 %v16138_v6, %v6462_v58  ;;  %v6864_v17 = vadd.f32 %v14176_v52, %v16144_v28  ;;  %v16146_v14 = vld [vmem:[#allocation88_spill] sm:$0xff] }
 0x6c6   : > { %8432 = vmatpush.msrb.mxu3 %v8431_v40  ;;  %v6873_v30 = vpop.f32.mrf.mxu0  ;;  %8311 = vmatmul.f32.vlgmr.msrb.gmra.mxu0 %v13334_v8  ;;  %v6685_v27 = vadd.f32 %v16132_v31, %v15954_v29  ;;  %v16137_v29 = vand.u32 4294901760, %v14043_v35  ;;  %v6612_v61 = vadd.f32 %v16139_v42, %v6555_v16  ;;  %9443 = vtanh.f32 %v13817_v13  ;;  %v16157_v42 = vld [vmem:[#allocation20_spill] sm:$0xff] }
 0x6c7   : > { %8448 = vmatpush.msra.mxu0 %v14043_v35  ;;  %8332 = vmatpush.msrb.mxu1 %v14023_v43  ;;  %v6456_v43 = vadd.f32 %v16135_v18, %v6390_v36  ;;  %v6869_v40 = vadd.f32 %v14225_v7, %v13831_v37  ;;  %v6608_v1 = vadd.f32 %v16140_v60, %v6551_v26  ;;  %v16141_v35 = vld [vmem:[#allocation79_spill] sm:$0xff]  ;;  %v16148_v2 = vand.u32 4294901760, %v14100_v0 }
 0x6c8   : > { %8561 = vmatpush.msra.mxu3 %v14013_v41  ;;  %8367 = vmatpush.msrb.mxu2 %v14154_v11  ;;  %v6677_v10 = vadd.f32 %v16141_v35, %v16026_v34  ;;  %v6874_v37 = vadd.f32 %v6873_v30, %v13889_v55  ;;  %v16145_v34 = vld [vmem:[#allocation206_spill] sm:$0xff]  ;;  %v6604_v47 = vadd.f32 %v16146_v14, %v6547_v24  ;;  %v16151_v53 = vand.u32 4294901760, %v14119_v22  ;;  %v16152_v18 = vld [vmem:[#allocation219_spill] sm:$0xff] }
 0x6c9   : > { %8373 = vmatmul.f32.vlgmr.msrb.gmra.mxu2 %v13422_v44  ;;  %8451 = vmatpush.msra.mxu0 %v14066_v51  ;;  %v6940_v7 = vadd.f32 %v6939_v45, %v6869_v40  ;;  %v6543_v36 = vadd.f32 %v16145_v34, %v6456_v43  ;;  %v16147_v51 = vld [vmem:[#allocation120_spill] sm:$0xff]  ;;  %v6717_v55 = vadd.f32 %v13922_v23, %v15969_v50  ;;  %v16154_v33 = vand.u32 4294901760, %v14146_v49  ;;  %v16158_v40 = vld [vmem:[#allocation227_spill] sm:$0xff] }
 0x6ca   : > { %8563 = vmatpush.msra.mxu3 %v14026_v19  ;;  %8518 = vmatpush.msra.mxu2 %v16137_v29  ;;  %v7077_v13 = vpop.f32.mrf.mxu3  ;;  %v9440_v20 = vpop.eup %9439  ;;  %9445 = vtanh.f32 %v16147_v51  ;;  %v6934_v30 = vadd.f32 %v14231_v48, %v6864_v17 }
 0x6cb   : > { %8334 = vmatpush.msrb.mxu1 %v14047_v32  ;;  %8434 = vmatmul.f32.vlgmr.msrb.gmra.mxu3 %v13334_v8  ;;  %v6790_v32 = vadd.f32 %v16142_v5, %v6685_v27  ;;  %9447 = vtanh.f32 %v6612_v61  ;;  %v9442_v31 = vpop.eup %9441  ;;  %v7017_v48 = vadd.f32 %v7016_v46, %v6940_v7  ;;  %v7153_v7 = vpop.permute.xlu1 %7152 }
 0x6cc   : > { %8454 = vmatpush.msra.mxu0 %v14100_v0  ;;  %8522 = vmatpush.msra.mxu2 %v16143_v39  ;;  %v16150_v0 = vld [vmem:[#allocation96_spill] sm:$0xff]  ;;  %v9444_v23 = vpop.eup %9443  ;;  %9449 = vtanh.f32 %v6608_v1  ;;  %v14337_v6 = vand.u32 4294901760, %v9442_v31  ;;  %v16159_v1 = vld [vmem:[#allocation234_spill] sm:$0xff] }
 0x6cd   : > { %8565 = vmatpush.msra.mxu3 %v14059_v12  ;;  %8336 = vmatpush.msrb.mxu1 %v14063_v59  ;;  %v6859_v21 = vadd.f32 %v14110_v57, %v6790_v32  ;;  %v6945_v59 = vpop.f32.mrf.mxu1  ;;  %v7020_v52 = vpop.f32.mrf.mxu2  ;;  %v16149_v57 = vld [vmem:[#allocation91_spill] sm:$0xff]  ;;  %v6786_v3 = vadd.f32 %v16150_v0, %v6677_v10  ;;  %9451 = vtanh.f32 %v6604_v47  ;;  %v14344_v35 = vand.u32 4294901760, %v9444_v23  ;;  %v16163_v47 = vld [vmem:[#allocation226_spill] sm:$0xff] }
 0x6ce   : > { %8457 = vmatpush.msra.mxu0 %v14119_v22  ;;  %8526 = vmatpush.msra.mxu2 %v16148_v2  ;;  %v6946_v45 = vadd.f32 %v6945_v59, %v6874_v37  ;;  %v6600_v27 = vadd.f32 %v16149_v57, %v6543_v36  ;;  %v6878_v50 = vpop.f32.mrf.mxu0  ;;  %v16155_v22 = vld [vmem:[#allocation218_spill] sm:$0xff]  ;;  %v7074_v5 = vadd.f32 %v14263_v25, %v7017_v48  ;;  %v16165_v59 = vld [vmem:[#allocation204_spill] sm:$0xff] }
 0x6cf   : > { %8567 = vmatpush.msra.mxu3 %v14077_v38  ;;  %8338 = vmatpush.msrb.mxu1 %v14074_v54  ;;  %v6928_v58 = vadd.f32 %v14184_v15, %v6859_v21  ;;  %v14327_v54 = vand.u32 4294901760, %v9440_v20  ;;  %v6854_v43 = vadd.f32 %v16152_v18, %v6786_v3  ;;  %v16153_v15 = vld [vmem:[#allocation223_spill] sm:$0xff]  ;;  %v6806_v26 = vadd.f32 %v16155_v22, %v6717_v55  ;;  %v16164_v21 = vld [vmem:[#allocation230_spill] sm:$0xff] }
 0x6d0   : > { %8460 = vmatpush.msra.mxu0 %v14146_v49  ;;  %8340 = vmatmul.f32.vlgmr.msrb.gmra.mxu1 %v13334_v8  ;;  %v7021_v16 = vadd.f32 %v7020_v52, %v6946_v45  ;;  %v9446_v24 = vpop.eup %9445  ;;  %9453 = vtanh.f32 %v6600_v27  ;;  %v16160_v49 = vand.u32 4294901760, %v16153_v15  ;;  %v14359_v25 = vsub.f32 %v9442_v31, %v14337_v6 }
 0x6d1   : > { %8530 = vmatpush.msra.mxu2 %v16151_v53  ;;  %8485 = vmatpush.msra.mxu1 %v14013_v41  ;;  %v16156_v41 = vld [vmem:[#allocation235_spill] sm:$0xff]  ;;  %v6922_v61 = vadd.f32 %v16157_v42, %v6854_v43  ;;  %v7009_v60 = vadd.f32 %v16158_v40, %v6928_v58  ;;  %v14349_v10 = vsub.f32 %v9440_v20, %v14327_v54  ;;  %v14361_v20 = vand.u32 4294901760, %v9446_v24  ;;  %v16166_v53 = vld [vmem:[#allocation222_spill] sm:$0xff] }
 0x6d2   : > { %8569 = vmatpush.msra.mxu3 %v14104_v9  ;;  %8463 = vmatpush.msra.mxu0 %v16153_v15  ;;  %v7013_v29 = vadd.f32 %v16156_v41, %v6934_v30  ;;  %v7078_v46 = vadd.f32 %v7077_v13, %v7021_v16  ;;  %v6879_v32 = vadd.f32 %v6878_v50, %v6806_v26  ;;  %v7081_v39 = vpop.f32.mrf.mxu3  ;;  %v16161_v13 = vand.u32 4294901760, %v16159_v1 }
 0x6d3   : > { %8534 = vmatpush.msra.mxu2 %v16154_v33  ;;  %8487 = vmatpush.msra.mxu1 %v14026_v19  ;;  %v9448_v19 = vpop.eup %9447  ;;  %v7005_v51 = vadd.f32 %v16163_v47, %v6922_v61  ;;  %v7066_v2 = vadd.f32 %v16164_v21, %v7009_v60  ;;  %v8624_v55 = vand.u32 4294901760, %v14349_v10  ;;  %v14375_v31 = vperm.slane %v7153_v7, 0  ;;  %v16169_v7 = vld [vmem:[#allocation215_spill] sm:$0xff] }
 0x6d4   : > { %8571 = vmatpush.msra.mxu3 %v14125_v56  ;;  %8466 = vmatpush.msra.mxu0 %v16159_v1  ;;  %9455 = vtanh.f32 %v7078_v46  ;;  %v9450_v37 = vpop.eup %9449  ;;  %v14367_v52 = vand.u32 4294901760, %v9448_v19  ;;  %v8630_v3 = vand.u32 4294901760, %v14359_v25 }
 0x6d5   : > { %8538 = vmatpush.msra.mxu2 %v16160_v49  ;;  %8489 = vmatpush.msra.mxu1 %v14059_v12  ;;  %v6951_v28 = vpop.f32.mrf.mxu1  ;;  %v7024_v17 = vpop.f32.mrf.mxu2  ;;  %v16162_v12 = vld [vmem:[#allocation231_spill] sm:$0xff]  ;;  %9457 = vtanh.f32 %v7074_v5  ;;  %v14380_v57 = vand.u32 4294901760, %v9450_v37 }
 0x6d6   : > { %8573 = vmatpush.msra.mxu3 %v14142_v62  ;;  %8469 = vmatpush.msra.mxu0 %v14196_v4  ;;  %v7070_v34 = vadd.f32 %v16162_v12, %v7013_v29  ;;  %v6952_v36 = vadd.f32 %v6951_v28, %v6879_v32  ;;  %v9452_v14 = vpop.eup %9451  ;;  %v7189_v27 = vpop.f32.mrf.mxu0  ;;  %v7062_v4 = vadd.f32 %v16166_v53, %v7005_v51  ;;  %v16167_v49 = vld [vmem:[#allocation187_spill] sm:$0xff] }
 0x6d7   : > { %8542 = vmatpush.msra.mxu2 %v16161_v13  ;;  %8491 = vmatpush.msra.mxu1 %v14077_v38  ;;  %v14372_v38 = vsub.f32 %v9444_v23, %v14344_v35  ;;  %v9454_v45 = vpop.eup %9453  ;;  %v14394_v50 = vand.u32 4294901760, %v9452_v14  ;;  %v8625_v23 = vsub.f32 %v14349_v10, %v8624_v55  ;;  %v7190_v16 = vadd.f32 %v7189_v27, %v14375_v31  ;;  %v16168_v13 = vld [vmem:[#allocation94_spill] sm:$0xff] }
 0x6d8   : > { %8575 = vmatpush.msra.mxu3 %v14154_v11  ;;  %8472 = vmatmul.f32.vlgmr.msra.gmra.mxu0 %v16165_v59  ;;  %v7025_v30 = vadd.f32 %v7024_v17, %v6952_v36  ;;  %9459 = vtanh.f32 %v7070_v34  ;;  %v14408_v18 = vand.u32 4294901760, %v9454_v45  ;;  %v8631_v26 = vsub.f32 %v14359_v25, %v8630_v3 }
 0x6d9   : > { %8590 = vmatpush.msrb.mxu0 %v14327_v54  ;;  %8493 = vmatpush.msra.mxu1 %v14104_v9  ;;  %v14385_v9 = vsub.f32 %v9446_v24, %v14361_v20  ;;  %9461 = vtanh.f32 %v7066_v2  ;;  %v8636_v48 = vand.u32 4294901760, %v14372_v38  ;;  %v14421_v29 = vsub.f32 %v9452_v14, %v14394_v50 }
 0x6da   : > { %8722 = vmatpush.msrb.mxu3 %v14327_v54  ;;  %8546 = vmatpush.msra.mxu2 %v8429_v63  ;;  %v9456_v0 = vpop.eup %9455  ;;  %v7082_v58 = vadd.f32 %v7081_v39, %v7025_v30  ;;  %v14392_v63 = vsub.f32 %v9448_v19, %v14367_v52  ;;  %v7319_v46 = vpop.f32.mrf.mxu3  ;;  %v8626_v42 = vand.u32 4294901760, %v8625_v23  ;;  %v14432_v19 = vsub.f32 %v9454_v45, %v14408_v18 }
 0x6db   : > { %8592 = vmatpush.msrb.mxu0 %v14337_v6  ;;  %8495 = vmatpush.msra.mxu1 %v14125_v56  ;;  %v14406_v56 = vsub.f32 %v9450_v37, %v14380_v57  ;;  %v14410_v33 = vand.u32 4294901760, %v9456_v0  ;;  %v9458_v22 = vpop.eup %9457  ;;  %v8637_v61 = vsub.f32 %v14372_v38, %v8636_v48  ;;  %v8632_v28 = vand.u32 4294901760, %v8631_v26 }
 0x6dc   : > { %8724 = vmatpush.msrb.mxu3 %v14337_v6  ;;  %8685 = vmatpush.msrb.mxu2 %v14349_v10  ;;  %9463 = vtanh.f32 %v7082_v58  ;;  %v8648_v40 = vand.u32 4294901760, %v14392_v63  ;;  %v14435_v5 = vand.u32 4294901760, %v9458_v22  ;;  %v8660_v12 = vand.u32 4294901760, %v14421_v29 }
 0x6dd   : > { %8548 = vmatmul.f32.vlgmr.msra.gmra.mxu2 %v13334_v8  ;;  %8594 = vmatpush.msrb.mxu0 %v14344_v35  ;;  %v7250_v43 = vpop.f32.mrf.mxu1  ;;  %v7288_v15 = vpop.f32.mrf.mxu2  ;;  %9465 = vtanh.f32 %v7062_v4  ;;  %v14438_v32 = vsub.f32 %v9456_v0, %v14410_v33  ;;  %v8638_v47 = vand.u32 4294901760, %v8637_v61  ;;  %v8666_v4 = vand.u32 4294901760, %v14432_v19 }
 0x6de   : > { %8688 = vmatpush.msrb.mxu2 %v14359_v25  ;;  %8726 = vmatpush.msrb.mxu3 %v14344_v35  ;;  %v7251_v41 = vadd.f32 %v7250_v43, %v7190_v16  ;;  %v9460_v24 = vpop.eup %9459  ;;  %9467 = vtanh.f32 %v16168_v13  ;;  %v7364_v34 = vpop.f32.mrf.mxu0  ;;  %v8649_v51 = vsub.f32 %v14392_v63, %v8648_v40  ;;  %v14465_v27 = vsub.f32 %v9458_v22, %v14435_v5 }
 0x6df   : > { %8497 = vmatpush.msra.mxu1 %v14142_v62  ;;  %8577 = vmatmul.f32.vlgmr.msra.gmra.mxu3 %v13334_v8  ;;  %v8642_v62 = vand.u32 4294901760, %v14385_v9  ;;  %v9462_v1 = vpop.eup %9461  ;;  %9469 = vtanh.f32 %v16169_v7  ;;  %v14451_v14 = vand.u32 4294901760, %v9460_v24  ;;  %v8867_v0 = vand.u32 4294901760, %v14438_v32 }
 0x6e0   : > { %8596 = vmatpush.msrb.mxu0 %v14361_v20  ;;  %8691 = vmatpush.msrb.mxu2 %v14372_v38  ;;  %v7289_v60 = vadd.f32 %v7288_v15, %v7251_v41  ;;  %v14457_v2 = vand.u32 4294901760, %v9462_v1  ;;  %v8650_v26 = vand.u32 4294901760, %v8649_v51  ;;  %v8661_v41 = vsub.f32 %v14421_v29, %v8660_v12 }
 0x6e1   : > { %8728 = vmatpush.msrb.mxu3 %v14361_v20  ;;  %8499 = vmatpush.msra.mxu1 %v14154_v11  ;;  %v8654_v11 = vand.u32 4294901760, %v14406_v56  ;;  %v8643_v17 = vsub.f32 %v14385_v9, %v8642_v62  ;;  %v14478_v15 = vsub.f32 %v9460_v24, %v14451_v14 }
 0x6e2   : > { %8598 = vmatpush.msrb.mxu0 %v14367_v52  ;;  %8503 = vmatmul.f32.vlgmr.msra.gmra.mxu1 %v16167_v49  ;;  %v9464_v39 = vpop.eup %9463  ;;  %v7320_v37 = vadd.f32 %v7319_v46, %v7289_v60  ;;  %v14487_v61 = vsub.f32 %v9462_v1, %v14457_v2  ;;  %v8662_v10 = vand.u32 4294901760, %v8661_v41 }
 0x6e3   : > { %8694 = vmatpush.msrb.mxu2 %v14385_v9  ;;  %8627 = vmatpush.msrb.mxu1 %v8626_v42  ;;  %v14449_v36 = vand.u32 4294901760, %v9464_v39  ;;  %v9466_v30 = vpop.eup %9465  ;;  %v8644_v58 = vand.u32 4294901760, %v8643_v17  ;;  %v8655_v53 = vsub.f32 %v14406_v56, %v8654_v11  ;;  %v8873_v17 = vand.u32 4294901760, %v14465_v27 }
 0x6e4   : > { %8730 = vmatpush.msrb.mxu3 %v14367_v52  ;;  %8600 = vmatpush.msrb.mxu0 %v14380_v57  ;;  %v7365_v21 = vadd.f32 %v7364_v34, %v7320_v37  ;;  %v9468_v22 = vpop.eup %9467  ;;  %v14484_v42 = vand.u32 4294901760, %v9466_v30  ;;  %v8667_v37 = vsub.f32 %v14432_v19, %v8666_v4  ;;  %v8879_v51 = vand.u32 4294901760, %v14478_v15 }
 0x6e5   : > { %8697 = vmatpush.msrb.mxu2 %v14392_v63  ;;  %8633 = vmatpush.msrb.mxu1 %v8632_v28  ;;  %v14462_v45 = vsub.f32 %v9464_v39, %v14449_v36  ;;  %v7426_v23 = vpop.f32.mrf.mxu2  ;;  %v7393_v46 = vpop.f32.mrf.mxu1  ;;  %v8868_v28 = vsub.f32 %v14438_v32, %v8867_v0  ;;  %v8656_v1 = vand.u32 4294901760, %v8655_v53  ;;  %v8874_v53 = vsub.f32 %v14465_v27, %v8873_v17 }
 0x6e6   : > { %8732 = vmatpush.msrb.mxu3 %v14380_v57  ;;  %8602 = vmatpush.msrb.mxu0 %v14394_v50  ;;  %v7427_v16 = vadd.f32 %v7426_v23, %v14375_v31  ;;  %v9470_v60 = vpop.eup %9469  ;;  %v14491_v24 = vadd.f32 %v7393_v46, %v7365_v21  ;;  %v7487_v39 = vpop.f32.mrf.mxu3  ;;  %v14519_v23 = vsub.f32 %v9466_v30, %v14484_v42  ;;  %v8668_v25 = vand.u32 4294901760, %v8667_v37 }
 0x6e7   : > { %8700 = vmatpush.msrb.mxu2 %v14406_v56  ;;  %8639 = vmatpush.msrb.mxu1 %v8638_v47  ;;  %v8861_v43 = vand.u32 4294901760, %v14462_v45  ;;  %v14507_v47 = vand.u32 4294901760, %v9468_v22  ;;  %v8875_v38 = vand.u32 4294901760, %v8874_v53 }
 0x6e8   : > { %8734 = vmatpush.msrb.mxu3 %v14394_v50  ;;  %8604 = vmatpush.msrb.mxu0 %v14408_v18  ;;  %v7488_v7 = vadd.f32 %v7487_v39, %v7427_v16  ;;  %v8885_v16 = vand.u32 4294901760, %v14487_v61  ;;  %v8891_v46 = vand.u32 4294901760, %v14519_v23 }
 0x6e9   : > { %8703 = vmatpush.msrb.mxu2 %v14421_v29  ;;  %8645 = vmatpush.msrb.mxu1 %v8644_v58  ;;  %v8862_v13 = vsub.f32 %v14462_v45, %v8861_v43  ;;  %v7525_v21 = vpop.f32.mrf.mxu0  ;;  %v8869_v58 = vand.u32 4294901760, %v8868_v28  ;;  %v14529_v41 = vsub.f32 %v9468_v22, %v14507_v47 }
 0x6ea   : > { %8736 = vmatpush.msrb.mxu3 %v14408_v18  ;;  %8610 = vmatmul.f32.vlgmr.msrb.gmra.mxu0 %v13422_v44 }
 0x6eb   : > { %8706 = vmatpush.msrb.mxu2 %v14432_v19  ;;  %8755 = vmatpush.msra.mxu0 %v8624_v55  ;;  %v8863_v34 = vand.u32 4294901760, %v8862_v13  ;;  %v14512_v55 = vand.u32 4294901760, %v9470_v60  ;;  %v8897_v22 = vand.u32 4294901760, %v14529_v41 }
 0x6ec   : > { %8651 = vmatpush.msrb.mxu1 %v8650_v26  ;;  %8709 = vmatmul.f32.vlgmr.msrb.gmra.mxu2 %v16165_v59  ;;  %v8880_v26 = vsub.f32 %v14478_v15, %v8879_v51 }
 0x6ed   : > { %8740 = vmatmul.f32.vlgmr.msrb.gmra.mxu3 %v16167_v49  ;;  %8759 = vmatpush.msra.mxu0 %v8630_v3  ;;  %v7526_v3 = vadd.f32 %v7525_v21, %v7488_v7  ;;  %v14539_v30 = vsub.f32 %v9470_v60, %v14512_v55 }
 0x6ee   : > { %8657 = vmatpush.msrb.mxu1 %v8656_v1  ;;  %8827 = vmatpush.msra.mxu2 %v14449_v36 }
 0x6ef   : > { %8864 = vmatpush.msra.mxu3 %v8863_v34  ;;  %8763 = vmatpush.msra.mxu0 %v8636_v48  ;;  %v8886_v48 = vsub.f32 %v14487_v61, %v8885_v16  ;;  %v7556_v9 = vpop.f32.mrf.mxu1 }
 0x6f0   : > { %8663 = vmatpush.msrb.mxu1 %v8662_v10  ;;  %8829 = vmatpush.msra.mxu2 %v14410_v33  ;;  %v7557_v60 = vadd.f32 %v7556_v9, %v7526_v3  ;;  %v7601_v39 = vpop.f32.mrf.mxu2 }
 0x6f1   : > { %8870 = vmatpush.msra.mxu3 %v8869_v58  ;;  %8767 = vmatpush.msra.mxu0 %v8642_v62  ;;  %v8881_v62 = vand.u32 4294901760, %v8880_v26  ;;  %v8887_v63 = vand.u32 4294901760, %v8886_v48 }
 0x6f2   : > { %8669 = vmatpush.msrb.mxu1 %v8668_v25  ;;  %8831 = vmatpush.msra.mxu2 %v14435_v5  ;;  %v7602_v56 = vadd.f32 %v7601_v39, %v7557_v60 }
 0x6f3   : > { %8671 = vmatmul.f32.vlgmr.msrb.gmra.mxu1 %v13334_v8  ;;  %8771 = vmatpush.msra.mxu0 %v8648_v40  ;;  %v8903_v40 = vand.u32 4294901760, %v14539_v30 }
 0x6f4   : > { %8798 = vmatpush.msra.mxu1 %v14327_v54  ;;  %8833 = vmatpush.msra.mxu2 %v14451_v14  ;;  %v8892_v54 = vsub.f32 %v14519_v23, %v8891_v46 }
 0x6f5   : > { %8876 = vmatpush.msra.mxu3 %v8875_v38  ;;  %8775 = vmatpush.msra.mxu0 %v8654_v11  ;;  %v8898_v11 = vsub.f32 %v14529_v41, %v8897_v22 }
 0x6f6   : > { %8800 = vmatpush.msra.mxu1 %v14337_v6  ;;  %8835 = vmatpush.msra.mxu2 %v14457_v2  ;;  %v7630_v6 = vpop.f32.mrf.mxu3  ;;  %v8893_v29 = vand.u32 4294901760, %v8892_v54 }
 0x6f7   : > { %8882 = vmatpush.msra.mxu3 %v8881_v62  ;;  %8779 = vmatpush.msra.mxu0 %v8660_v12  ;;  %v7631_v13 = vadd.f32 %v7630_v6, %v7602_v56  ;;  %v8899_v19 = vand.u32 4294901760, %v8898_v11 }
 0x6f8   : > { %8802 = vmatpush.msra.mxu1 %v14344_v35  ;;  %8837 = vmatpush.msra.mxu2 %v14484_v42  ;;  %v8904_v35 = vsub.f32 %v14539_v30, %v8903_v40 }
 0x6f9   : > { %8888 = vmatpush.msra.mxu3 %v8887_v63  ;;  %8783 = vmatpush.msra.mxu0 %v8666_v4  ;;  %v9063_v12 = vrot.slane %v7631_v13, 7 }
 0x6fa   : > { %8804 = vmatpush.msra.mxu1 %v14361_v20  ;;  %8785 = vmatmul.f32.vlgmr.msra.gmra.mxu0 %v13334_v8  ;;  %v8905_v4 = vand.u32 4294901760, %v8904_v35 }
 0x6fb   : > { %8839 = vmatpush.msra.mxu2 %v14507_v47  ;;  %8922 = vmatpush.msrb.mxu0 %v14462_v45  ;;  %v14572_v20 = vsel %vm9070_vm3, %v14491_v24, %v9063_v12 }
 0x6fc   : > { %8806 = vmatpush.msra.mxu1 %v14367_v52  ;;  %8894 = vmatpush.msra.mxu3 %v8893_v29 }
 0x6fd   : > { %8841 = vmatpush.msra.mxu2 %v14512_v55  ;;  %8925 = vmatpush.msrb.mxu0 %v14438_v32 }
 0x6fe   : > { %8808 = vmatpush.msra.mxu1 %v14380_v57  ;;  %8847 = vmatmul.f32.vlgmr.msra.gmra.mxu2 %v13422_v44  ;;  %v7663_v44 = vpop.f32.mrf.mxu0 }
 0x6ff   : > { %8900 = vmatpush.msra.mxu3 %v8899_v19  ;;  %8928 = vmatpush.msrb.mxu0 %v14465_v27  ;;  %v7793_v57 = vpop.f32.mrf.mxu3 }
 0x700   : > { %8810 = vmatpush.msra.mxu1 %v14394_v50  ;;  %8992 = vmatpush.msrb.mxu2 %v8861_v43 }
 0x701   : > { %8906 = vmatpush.msra.mxu3 %v8905_v4  ;;  %8931 = vmatpush.msrb.mxu0 %v14478_v15 }
 0x702   : > { %8812 = vmatpush.msra.mxu1 %v14408_v18  ;;  %8996 = vmatpush.msrb.mxu2 %v8867_v0 }
 0x703   : > { %8814 = vmatmul.f32.vlgmr.msra.gmra.mxu1 %v13334_v8  ;;  %8934 = vmatpush.msrb.mxu0 %v14487_v61  ;;  %v7724_v52 = vpop.f32.mrf.mxu1 }
 0x704   : > { %8959 = vmatpush.msrb.mxu1 %v14449_v36  ;;  %9000 = vmatpush.msrb.mxu2 %v8873_v17 }
 0x705   : > { %8908 = vmatmul.f32.vlgmr.msra.gmra.mxu3 %v13334_v8  ;;  %8937 = vmatpush.msrb.mxu0 %v14519_v23 }
 0x706   : > { %8961 = vmatpush.msrb.mxu1 %v14410_v33  ;;  %9004 = vmatpush.msrb.mxu2 %v8879_v51  ;;  %v7664_v51 = vadd.f32 %v7663_v44, %v14375_v31 }
 0x707   : > { %9035 = vmatpush.msrb.mxu3 %v14449_v36  ;;  %8940 = vmatpush.msrb.mxu0 %v14529_v41 }
 0x708   : > { %8963 = vmatpush.msrb.mxu1 %v14435_v5  ;;  %9008 = vmatpush.msrb.mxu2 %v8885_v16  ;;  %v7725_v21 = vadd.f32 %v7724_v52, %v7664_v51 }
 0x709   : > { %9037 = vmatpush.msrb.mxu3 %v14410_v33  ;;  %8943 = vmatpush.msrb.mxu0 %v14539_v30 }
 0x70a   : > { %8965 = vmatpush.msrb.mxu1 %v14451_v14  ;;  %9012 = vmatpush.msrb.mxu2 %v8891_v46 }
 0x70b   : > { %9039 = vmatpush.msrb.mxu3 %v14435_v5  ;;  %8946 = vmatmul.f32.vlgmr.msrb.gmra.mxu0 %v16165_v59  ;;  %v7762_v59 = vpop.f32.mrf.mxu2 }
 0x70c   : > { %8967 = vmatpush.msrb.mxu1 %v14457_v2  ;;  %9016 = vmatpush.msrb.mxu2 %v8897_v22  ;;  %v7838_v50 = vpop.f32.mrf.mxu0  ;;  %v7763_v46 = vadd.f32 %v7762_v59, %v7725_v21 }
 0x70d   : > { %9041 = vmatpush.msrb.mxu3 %v14451_v14 }
 0x70e   : > { %8969 = vmatpush.msrb.mxu1 %v14484_v42  ;;  %9020 = vmatpush.msrb.mxu2 %v8903_v40  ;;  %v7794_v40 = vadd.f32 %v7793_v57, %v7763_v46 }
 0x70f   : > { %9043 = vmatpush.msrb.mxu3 %v14457_v2  ;;  %9022 = vmatmul.f32.vlgmr.msrb.gmra.mxu2 %v13334_v8 }
 0x710   : > { %8971 = vmatpush.msrb.mxu1 %v14507_v47  ;;  %v7839_v12 = vadd.f32 %v7838_v50, %v7794_v40 }
 0x711   : > { %9045 = vmatpush.msrb.mxu3 %v14484_v42 }
 0x712   : > { %8973 = vmatpush.msrb.mxu1 %v14512_v55 }
 0x713   : > { %8977 = vmatmul.f32.vlgmr.msrb.gmra.mxu1 %v16167_v49  ;;  %9047 = vmatpush.msrb.mxu3 %v14507_v47 }
 0x715   : > { %9049 = vmatpush.msrb.mxu3 %v14512_v55  ;;  %v7900_v18 = vpop.f32.mrf.mxu2 }
 0x716   : > { %9051 = vmatmul.f32.vlgmr.msrb.gmra.mxu3 %v13334_v8  ;;  %v7901_v47 = vadd.f32 %v7900_v18, %v14375_v31 }
 0x717   : > { %v7867_v33 = vpop.f32.mrf.mxu1  ;;  %v7961_v5 = vpop.f32.mrf.mxu3 }
 0x718   : > { %v7962_v58 = vadd.f32 %v7961_v5, %v7901_v47  ;;  %v7868_v4 = vadd.f32 %v7867_v33, %v7839_v12 }
 0x71f   : > { %v7999_v32 = vpop.f32.mrf.mxu0 }
 0x720   : > { %v8000_v25 = vadd.f32 %v7999_v32, %v7962_v58 }
 0x729   : > { %v8030_v14 = vpop.f32.mrf.mxu1 }
 0x72a   : > { %v8075_v36 = vpop.f32.mrf.mxu2  ;;  %v8031_v9 = vadd.f32 %v8030_v14, %v8000_v25  ;;  %v9064_v14 = vrot.slane %v7868_v4, 6 }
 0x72c   : > { %v8104_v2 = vpop.f32.mrf.mxu3  ;;  %v8076_v56 = vadd.f32 %v8075_v36, %v8031_v9 }
 0x72e   : > { %v8105_v19 = vadd.f32 %v8104_v2, %v8076_v56 }
 0x730   : > { %v9065_v57 = vrot.slane %v8105_v19, 5 }
 0x731   : > { %v8137_v45 = vpop.f32.mrf.mxu0 }
 0x732   : > { %v8138_v23 = vadd.f32 %v8137_v45, %v14375_v31  ;;  %v9073_v45 = vsel %vm9072_vm4, %v9064_v14, %v9065_v57 }
 0x73b   : > { %v8198_v27 = vpop.f32.mrf.mxu1 }
 0x73c   : > { %v8236_v49 = vpop.f32.mrf.mxu2  ;;  %v8199_v41 = vadd.f32 %v8198_v27, %v8138_v23 }
 0x73e   : > { %v8267_v0 = vpop.f32.mrf.mxu3  ;;  %v8237_v39 = vadd.f32 %v8236_v49, %v8199_v41 }
 0x740   : > { %v8268_v13 = vadd.f32 %v8267_v0, %v8237_v39 }
 0x743   : > { %v8312_v43 = vpop.f32.mrf.mxu0 }
 0x744   : > { %v8313_v59 = vadd.f32 %v8312_v43, %v8268_v13 }
 0x74c   : > { %v8374_v15 = vpop.f32.mrf.mxu2 }
 0x74d   : > { %v8341_v42 = vpop.f32.mrf.mxu1  ;;  %v8375_v55 = vadd.f32 %v8374_v15, %v14375_v31 }
 0x74e   : > { %v8435_v8 = vpop.f32.mrf.mxu3  ;;  %v8342_v5 = vadd.f32 %v8341_v42, %v8313_v59  ;;  %v9075_v42 = vsel %vm9074_vm7, %v14572_v20, %v9073_v45 }
 0x74f   : > { %v8436_v38 = vadd.f32 %v8435_v8, %v8375_v55 }
 0x750   : > { %v9066_v49 = vrot.slane %v8342_v5, 4 }
 0x755   : > { %v8473_v61 = vpop.f32.mrf.mxu0 }
 0x756   : > { %v8474_v62 = vadd.f32 %v8473_v61, %v8436_v38 }
 0x75f   : > { %v8504_v28 = vpop.f32.mrf.mxu1 }
 0x760   : > { %v8549_v24 = vpop.f32.mrf.mxu2  ;;  %v8505_v63 = vadd.f32 %v8504_v28, %v8474_v62 }
 0x762   : > { %v8578_v17 = vpop.f32.mrf.mxu3  ;;  %v8550_v29 = vadd.f32 %v8549_v24, %v8505_v63 }
 0x764   : > { %v8579_v52 = vadd.f32 %v8578_v17, %v8550_v29 }
 0x766   : > { %v9067_v33 = vrot.slane %v8579_v52, 3 }
 0x767   : > { %v8611_v1 = vpop.f32.mrf.mxu0 }
 0x768   : > { %v8612_v16 = vadd.f32 %v8611_v1, %v14375_v31  ;;  %v9077_v43 = vsel %vm9076_vm5, %v9066_v49, %v9067_v33 }
 0x76f   : > { %v8710_v37 = vpop.f32.mrf.mxu2 }
 0x770   : > { %v8672_v7 = vpop.f32.mrf.mxu1  ;;  %v8741_v34 = vpop.f32.mrf.mxu3 }
 0x771   : > { %v8673_v48 = vadd.f32 %v8672_v7, %v8612_v16 }
 0x773   : > { %v8711_v54 = vadd.f32 %v8710_v37, %v8673_v48 }
 0x775   : > { %v8742_v35 = vadd.f32 %v8741_v34, %v8711_v54 }
 0x777   : > { %v8786_v10 = vpop.f32.mrf.mxu0 }
 0x778   : > { %v8787_v18 = vadd.f32 %v8786_v10, %v8742_v35 }
 0x780   : > { %v8815_v3 = vpop.f32.mrf.mxu1 }
 0x781   : > { %v8848_v53 = vpop.f32.mrf.mxu2  ;;  %v8816_v32 = vadd.f32 %v8815_v3, %v8787_v18 }
 0x782   : > { %v8849_v30 = vadd.f32 %v8848_v53, %v14375_v31 }
 0x783   : > { %v9068_v27 = vrot.slane %v8816_v32, 2 }
 0x788   : > { %v8909_v26 = vpop.f32.mrf.mxu3  ;;  %v8947_v60 = vpop.f32.mrf.mxu0 }
 0x789   : > { %v8910_v22 = vadd.f32 %v8909_v26, %v8849_v30 }
 0x78b   : > { %v8948_v6 = vadd.f32 %v8947_v60, %v8910_v22 }
 0x790   : > { %v8978_v11 = vpop.f32.mrf.mxu1 }
 0x791   : > { %v8979_v31 = vadd.f32 %v8978_v11, %v8948_v6 }
 0x792   : > { %v9023_v44 = vpop.f32.mrf.mxu2 }
 0x793   : > { %v9024_v36 = vadd.f32 %v9023_v44, %v8979_v31 }
 0x799   : > { %v9052_v50 = vpop.f32.mrf.mxu3 }
 0x79a   : > { %v9053_v2 = vadd.f32 %v9052_v50, %v9024_v36 }
 0x79c   : > { %v9069_v0 = vrot.slane %v9053_v2, 1 }
 0x79e   : > { %v9079_v15 = vsel %vm9078_vm6, %v9068_v27, %v9069_v0 }
 0x79f   : > { %v9081_v8 = vsel %vm9080_vm8, %v9077_v43, %v9079_v15 }
 0x7a0   : > { %v9083_v61 = vsel %vm9082_vm9, %v9075_v42, %v9081_v8 }
 0x7a1   : > { %9085 = vst [vmem:[%s274_s17] sm:$0xff] %v9083_v61 }
 0x7a2   : > { %9498 = shalt.err (!%p9495_p3)
}
 0x7a3   : > { %9172 = dma.vmem_to_hbm [thread:$0]  (%p9614_p5), %s9100_s18, 128, %s9102_s19, %s9087_s14  }
 0x7a4 PF: > { %p9178_p4 = scmp.ge.s32.totalorder %s9533_s29, 2  ;;  %s9113_s6 = sand.u32 1, %s9521_s26  }
 0x7a5   : > { %s9114_s9 = scalar_lea.sflag [#allocation4], %s9113_s6 }
 0x7a6   : > { %p9175_p7 = pnand %p9178_p4, %p9618_p6 }
 0x7a8   : > { %p9176_p8 = pneg %p9175_p7 }
 0x7aa   : > { %9516 = dma.done.wait (%p9176_p8), %s9114_s9, 128  }
 0x7ab   : > { %9518 = vsyncadd (%p9176_p8), %s9114_s9, 4294967168  ;;  %p19_p9 = scmp.ge.s32.totalorder %s9602_s8, 4   ;;  %s16170_s26 = smov %s9525_s27 }
 0x7ac   : > { %s16171_s27 = smov %s9529_s28  ;;  %s16172_s28 = smov %s9612_s11 }
 0x7ad   : > { %s16173_s29 = smov %s9602_s8  ;;  %21 = sbr.rel (!%p19_p9) target bundleno = 6 (0x6), region = 86 }
 0x7b2   :  { %9120 = vsyncpa [#allocation4], 1 }
 0x7b3   :  { %9122 = vsyncpa [#allocation4 + $0x1], 1 }

</bundles_post_ra>
